<compile_context>
chip_gen: v7x
topology: tpu7x:2x2x1
jax: 0.10.0
libtpu: 0.0.40
codegen_flags: <defaults>
</compile_context>

<pallas_src>
import jax
import jax.numpy as jnp
from jax import lax
from jax.experimental import pallas as pl
from jax.experimental.pallas import tpu as pltpu


# ----------------------------------------------------------------------------
# Fused Pallas kernel: cn6 + linear1 + biGRU1(add_output) + biGRU2 + linear2
# ----------------------------------------------------------------------------
def crnn_head_kernel(patches_ref, wconv_ref, cbias_ref, w1h_ref, b1_ref,
                     wih1_ref, bi1_ref, whh1_ref, bhn1_ref,
                     wih2_ref, bi2_ref, whh2_ref, bhn2_ref,
                     w2_ref, b2_ref,
                     o_ref,
                     gif_ref, gib_ref, o1f_ref, o1b_ref, o2f_ref, o2b_ref):
    """Whole CRNN head for the full batch; everything stays resident in VMEM.

    patches_ref: [Hf*T*N, 9*Cpad] bf16   im2col of the padded feature map
    wconv_ref:   [9*Cpad, Cout]   bf16   conv weight (BN scale folded in)
    cbias_ref:   [1, Cout]        f32    folded conv-bias + BN shift
    w1h_ref:     [Hf, Cout, L1]   bf16   linear1 weight, split by feature row h
    wih*_ref:    [2, In, 3H]      bf16   packed GRU input weights (dir, gates r|z|n)
    bi*_ref:     [2, 1, 3H]       f32    b_ih with b_hh(r,z) pre-folded
    whh*_ref:    [2, H, 3H]       bf16   packed GRU hidden weights
    bhn*_ref:    [2, 1, H]        f32    b_hn (stays inside r*(...))
    w2_ref:      [2, H, V]        bf16   linear2 weight split for fwd/bwd halves
    o_ref:       [T, N, V]        f32    logits (seq-major, like PyTorch pre-permute)
    """
    f32, bf16 = jnp.float32, jnp.bfloat16
    T, N, V = o_ref.shape                 # T = batch axis (GRU time), N = Wf
    Hf, Cout, L1 = w1h_ref.shape
    H = whh1_ref.shape[1]
    BW = T * N

    # --- cn6: 3x3 conv as one im2col matmul (BN folded) + bias + ReLU --------
    co = jnp.dot(patches_ref[...], wconv_ref[...], preferred_element_type=f32)
    co = jnp.maximum(co + cbias_ref[...], 0.0)            # [Hf*BW, Cout]

    # --- permute(0,3,1,2) + view + linear1, as a sum over the Hf row blocks --
    z = jnp.zeros((BW, L1), f32)
    for h in range(Hf):                                    # Hf is tiny & static
        z = z + jnp.dot(co[h * BW:(h + 1) * BW, :].astype(bf16), w1h_ref[h],
                        preferred_element_type=f32)
    z = z + b1_ref[...]                                    # [BW, L1]

    # --- fused bidirectional GRU layer (PyTorch gate order r, z, n) ----------
    def run_bigru(x_flat, wih_ref, bi_ref, whh_ref, bhn_ref, of_ref, ob_ref):
        # Precompute input projections (+ folded r/z biases) for every step.
        x16 = x_flat.astype(bf16)
        gif_ref[...] = (jnp.dot(x16, wih_ref[0], preferred_element_type=f32)
                        + bi_ref[0]).reshape(T, N, 3 * H)
        gib_ref[...] = (jnp.dot(x16, wih_ref[1], preferred_element_type=f32)
                        + bi_ref[1]).reshape(T, N, 3 * H)
        whh_f, whh_b = whh_ref[0], whh_ref[1]              # hoisted, loop-invariant
        bhn_f, bhn_b = bhn_ref[0], bhn_ref[1]

        def upd(h_prev, gi, gh, bhn):
            r = jax.nn.sigmoid(gi[:, 0:H] + gh[:, 0:H])
            zg = jax.nn.sigmoid(gi[:, H:2 * H] + gh[:, H:2 * H])
            n = jnp.tanh(gi[:, 2 * H:] + r * (gh[:, 2 * H:] + bhn))
            return (1.0 - zg) * n + zg * h_prev

        def step(t, carry):
            h_f, h_b = carry
            gh_f = jnp.dot(h_f.astype(bf16), whh_f, preferred_element_type=f32)
            gh_b = jnp.dot(h_b.astype(bf16), whh_b, preferred_element_type=f32)
            h_f = upd(h_f, gif_ref[t], gh_f, bhn_f)
            h_b = upd(h_b, gib_ref[T - 1 - t], gh_b, bhn_b)
            of_ref[t] = h_f
            ob_ref[T - 1 - t] = h_b          # bwd output indexed by original time
            return h_f, h_b

        h0 = jnp.zeros((N, H), f32)
        lax.fori_loop(0, T, step, (h0, h0), unroll=True)

    # --- gru1 (bidirectional) with add_output=True ----------------------------
    run_bigru(z, wih1_ref, bi1_ref, whh1_ref, bhn1_ref, o1f_ref, o1b_ref)
    o1 = (o1f_ref[...] + o1b_ref[...]).reshape(BW, H)

    # --- gru2 (bidirectional, outputs = concat(fwd, bwd)) ---------------------
    run_bigru(o1, wih2_ref, bi2_ref, whh2_ref, bhn2_ref, o2f_ref, o2b_ref)

    # --- linear2 on concat(fwd, bwd) via a split-weight matmul ----------------
    logits = (jnp.dot(o2f_ref[...].reshape(BW, H).astype(bf16), w2_ref[0],
                      preferred_element_type=f32)
              + jnp.dot(o2b_ref[...].reshape(BW, H).astype(bf16), w2_ref[1],
                        preferred_element_type=f32)
              + b2_ref[...])
    o_ref[...] = logits.reshape(T, N, V)


# ----------------------------------------------------------------------------
# pallas_call wrapper
# ----------------------------------------------------------------------------
def crnn_head(patches, pp, *, T, N):
    H = pp["whh1"].shape[1]
    V = pp["b2"].shape[1]
    G3 = 3 * H

    def full(shape):
        return pl.BlockSpec(shape, lambda *_: (0,) * len(shape))

    args = (patches, pp["wconv"], pp["cbias"], pp["w1h"], pp["b1"],
            pp["wih1"], pp["bi1"], pp["whh1"], pp["bhn1"],
            pp["wih2"], pp["bi2"], pp["whh2"], pp["bhn2"],
            pp["w2"], pp["b2"])

    return pl.pallas_call(
        crnn_head_kernel,
        out_shape=jax.ShapeDtypeStruct((T, N, V), jnp.float32),
        grid=(1,),
        in_specs=[full(a.shape) for a in args],
        out_specs=full((T, N, V)),
        scratch_shapes=[
            pltpu.VMEM((T, N, G3), jnp.float32),   # gi fwd (reused by gru1 & gru2)
            pltpu.VMEM((T, N, G3), jnp.float32),   # gi bwd
            pltpu.VMEM((T, N, H), jnp.float32),    # gru1 fwd outputs
            pltpu.VMEM((T, N, H), jnp.float32),    # gru1 bwd outputs
            pltpu.VMEM((T, N, H), jnp.float32),    # gru2 fwd outputs
            pltpu.VMEM((T, N, H), jnp.float32),    # gru2 bwd outputs
        ],
        compiler_params=pltpu.CompilerParams(
            dimension_semantics=("arbitrary",),
            vmem_limit_bytes=28 * 1024 * 1024,     # actual use ~12 MB (bf16 weights)
        ),
    )(*args)


# ----------------------------------------------------------------------------
# Full CRNN head forward (post-backbone), matching PyTorch semantics
# ----------------------------------------------------------------------------
def crnn_forward(feat, pp):
    """feat: backbone feature map [B, 960, Hf, Wf]  (NCHW, like PyTorch)."""
    B, Cin, Hf, Wf = feat.shape
    Cpad = pp["wconv"].shape[0] // 9

    # NCHW -> NHWC; pad spatially (conv pad=1) and channels with zeros to Cpad.
    x = jnp.transpose(feat, (0, 2, 3, 1))
    x = jnp.pad(x, ((0, 0), (1, 1), (1, 1), (0, Cpad - Cin)))

    # im2col: rows ordered (h, b, w), reduction dim ordered (kh, kw, c),
    # matching the packed conv weight layout built in prepare_params.
    taps = [x[:, kh:kh + Hf, kw:kw + Wf, :] for kh in range(3) for kw in range(3)]
    patches = jnp.stack(taps, axis=3)                      # [B, Hf, Wf, 9, Cpad]
    patches = jnp.transpose(patches, (1, 0, 2, 3, 4))      # [Hf, B, Wf, 9, Cpad]
    patches = patches.reshape(Hf * B * Wf, 9 * Cpad).astype(jnp.bfloat16)

    out = crnn_head(patches, pp, T=B, N=Wf)                # [B, Wf, vocab]
    return jnp.transpose(out, (1, 0, 2))                   # [Wf, B, vocab]


# ----------------------------------------------------------------------------
# Parameter prep: fold BN, pack GRU gates, pre-transpose (done ONCE, off the
# forward path so no per-step XLA transposes are emitted).
# ----------------------------------------------------------------------------
def prepare_params(p, Hf, Cpad):
    f32, bf16 = jnp.float32, jnp.bfloat16
    Cout, Cin, _, _ = p["conv_w"].shape

    # cn6: BN (eval) scale folded into the conv weight, bias folded separately.
    scale = p["bn_gamma"] / jnp.sqrt(p["bn_var"] + 1e-5)
    cbias = (p["conv_b"] - p["bn_mean"]) * scale + p["bn_beta"]
    w = jnp.transpose(p["conv_w"], (2, 3, 1, 0))                 # [3,3,Cin,Cout]
    w = jnp.pad(w, ((0, 0), (0, 0), (0, Cpad - Cin), (0, 0)))    # zero-pad channels
    w = w * scale[None, None, None, :]
    wconv = w.reshape(9 * Cpad, Cout).astype(bf16)

    # linear1: rows of lin1_w.T are indexed c*Hf + h  ->  [Hf, Cout, L1]
    L1 = p["lin1_w"].shape[0]
    w1h = p["lin1_w"].T.reshape(Cout, Hf, L1).transpose(1, 0, 2).astype(bf16)
    b1 = p["lin1_b"][None, :].astype(f32)

    def pack_bigru(pf, pb):
        def pack_dir(wih, whh, bih, bhh):
            wihp = jnp.concatenate([wih[0], wih[1], wih[2]], axis=1)   # [In, 3H]
            whhp = jnp.concatenate([whh[0], whh[1], whh[2]], axis=1)   # [H, 3H]
            bip = jnp.concatenate(
                [bih[0] + bhh[0], bih[1] + bhh[1], bih[2]], axis=1)    # [1, 3H]
            return wihp, whhp, bip, bhh[2]
        wf_, hf_, bf_, nf_ = pack_dir(*pf)
        wb_, hb_, bb_, nb_ = pack_dir(*pb)
        return (jnp.stack([wf_, wb_]).astype(bf16),   # wih [2, In, 3H]
                jnp.stack([bf_, bb_]).astype(f32),    # bi  [2, 1, 3H]
                jnp.stack([hf_, hb_]).astype(bf16),   # whh [2, H, 3H]
                jnp.stack([nf_, nb_]).astype(f32))    # bhn [2, 1, H]

    wih1, bi1, whh1, bhn1 = pack_bigru(p["gru1_fwd"], p["gru1_bwd"])
    wih2, bi2, whh2, bhn2 = pack_bigru(p["gru2_fwd"], p["gru2_bwd"])

    V = p["lin2_w"].shape[0]
    w2 = p["lin2_w"].T.reshape(2, -1, V).astype(bf16)     # [2, H, V] (fwd/bwd halves)
    b2 = p["lin2_b"][None, :].astype(f32)

    return dict(wconv=wconv, cbias=cbias[None, :].astype(f32), w1h=w1h, b1=b1,
                wih1=wih1, bi1=bi1, whh1=whh1, bhn1=bhn1,
                wih2=wih2, bi2=bi2, whh2=whh2, bhn2=bhn2,
                w2=w2, b2=b2)


# ----------------------------------------------------------------------------
# Deterministic parameter init (shapes from CRNN.__init__; synthetic values)
# ----------------------------------------------------------------------------
def init_params(key, Cb, Cout, hidden, vocab, imgH):
    ks = list(jax.random.split(key, 32))
    it = iter(ks)

    def u(shape, bound):
        return jax.random.uniform(next(it), shape, jnp.float32, -bound, bound)

    p = {}
    kconv = 1.0 / float(jnp.sqrt(Cb * 9.0))
    p["conv_w"] = u((Cout, Cb, 3, 3), kconv)        # nn.Conv2d(960, 256, 3, pad=1)
    p["conv_b"] = u((Cout,), kconv)
    p["bn_gamma"] = jax.random.uniform(next(it), (Cout,), jnp.float32, 0.5, 1.5)
    p["bn_beta"] = u((Cout,), 0.1)
    p["bn_mean"] = u((Cout,), 0.1)
    p["bn_var"] = jax.random.uniform(next(it), (Cout,), jnp.float32, 0.5, 1.5)

    lin1_in = imgH * 8                               # nn.Linear(imgH*8, 256)
    k1 = 1.0 / float(jnp.sqrt(lin1_in))
    p["lin1_w"] = u((Cout, lin1_in), k1)
    p["lin1_b"] = u((Cout,), k1)

    kh = 1.0 / float(jnp.sqrt(hidden))

    def gru_dir(in_size):
        return (u((3, in_size, hidden), kh),         # W_ih (gate order r,z,n)
                u((3, hidden, hidden), kh),          # W_hh
                u((3, 1, hidden), kh),               # b_ih
                u((3, 1, hidden), kh))               # b_hh

    p["gru1_fwd"] = gru_dir(Cout)                    # blockRNN(256, H, H, bidir)
    p["gru1_bwd"] = gru_dir(Cout)
    p["gru2_fwd"] = gru_dir(hidden)                  # blockRNN(H, H, vocab, bidir)
    p["gru2_bwd"] = gru_dir(hidden)

    k2 = 1.0 / float(jnp.sqrt(2 * hidden))
    p["lin2_w"] = u((vocab, 2 * hidden), k2)         # nn.Linear(2H, vocab)
    p["lin2_b"] = u((vocab,), k2)
    return p


# ----------------------------------------------------------------------------
if __name__ == "__main__":
    key = jax.random.PRNGKey(0)
    B, imgH, imgW = 2, 64, 256        # args: imgH=64; original image [B,3,imgH,imgW]
    hidden, vocab = 32, 16            # args: nHidden=32, nClasses=16
    Cb = 960                          # MobileNetV3-Large feature channels
    Hf, Wf = imgH // 32, imgW // 32   # backbone output stride = 32

    kf, kp = jax.random.split(key)
    # Backbone feature map stand-in (MobileNetV3 itself not reproduced).
    feat = jax.random.normal(kf, (B, Cb, Hf, Wf), jnp.float32)
    raw = init_params(kp, Cb=Cb, Cout=256, hidden=hidden, vocab=vocab, imgH=imgH)

    Cpad = ((Cb + 127) // 128) * 128                 # 960 -> 1024 (zero-padded)
    pp = prepare_params(raw, Hf=Hf, Cpad=Cpad)       # one-time prep, off the fwd path
    pp = jax.tree_util.tree_map(jax.block_until_ready, pp)

    fwd = jax.jit(crnn_forward)
    out = jax.block_until_ready(fwd(feat, pp))
    assert out.shape == (Wf, B, vocab), out.shape
    assert bool(jnp.all(jnp.isfinite(out)))
    print("KERNEL_OK")
</pallas_src>

<mosaic_0001>
module attributes {stable_mosaic.version = 11 : i64} {
  func.func @crnn_head_kernel(%arg0: i32, %arg1: memref<32x9216xbf16, #tpu.memory_space<vmem>>, %arg2: memref<9216x256xbf16, #tpu.memory_space<vmem>>, %arg3: memref<1x256xf32, #tpu.memory_space<vmem>>, %arg4: memref<2x256x256xbf16, #tpu.memory_space<vmem>>, %arg5: memref<1x256xf32, #tpu.memory_space<vmem>>, %arg6: memref<2x256x96xbf16, #tpu.memory_space<vmem>>, %arg7: memref<2x1x96xf32, #tpu.memory_space<vmem>>, %arg8: memref<2x32x96xbf16, #tpu.memory_space<vmem>>, %arg9: memref<2x1x32xf32, #tpu.memory_space<vmem>>, %arg10: memref<2x32x96xbf16, #tpu.memory_space<vmem>>, %arg11: memref<2x1x96xf32, #tpu.memory_space<vmem>>, %arg12: memref<2x32x96xbf16, #tpu.memory_space<vmem>>, %arg13: memref<2x1x32xf32, #tpu.memory_space<vmem>>, %arg14: memref<2x32x16xbf16, #tpu.memory_space<vmem>>, %arg15: memref<1x16xf32, #tpu.memory_space<vmem>>, %arg16: memref<2x8x16xf32, #tpu.memory_space<vmem>>, %arg17: memref<2x8x96xf32, #tpu.memory_space<vmem>>, %arg18: memref<2x8x96xf32, #tpu.memory_space<vmem>>, %arg19: memref<2x8x32xf32, #tpu.memory_space<vmem>>, %arg20: memref<2x8x32xf32, #tpu.memory_space<vmem>>, %arg21: memref<2x8x32xf32, #tpu.memory_space<vmem>>, %arg22: memref<2x8x32xf32, #tpu.memory_space<vmem>>) attributes {dimension_semantics = [#tpu.dimension_semantics<arbitrary>], iteration_bounds = array<i64: 1>, scalar_prefetch = 0 : i64, scratch_operands = 6 : i64, tpu.core_type = #tpu.core_type<tc>, window_params = [{pipeline_mode = #tpu.pipeline_mode<synchronous>, transform_indices = @transform_0, window_bounds = array<i64: 32, 9216>}, {pipeline_mode = #tpu.pipeline_mode<synchronous>, transform_indices = @transform_1, window_bounds = array<i64: 9216, 256>}, {pipeline_mode = #tpu.pipeline_mode<synchronous>, transform_indices = @transform_2, window_bounds = array<i64: 1, 256>}, {pipeline_mode = #tpu.pipeline_mode<synchronous>, transform_indices = @transform_3, window_bounds = array<i64: 2, 256, 256>}, {pipeline_mode = #tpu.pipeline_mode<synchronous>, transform_indices = @transform_4, window_bounds = array<i64: 1, 256>}, {pipeline_mode = #tpu.pipeline_mode<synchronous>, transform_indices = @transform_5, window_bounds = array<i64: 2, 256, 96>}, {pipeline_mode = #tpu.pipeline_mode<synchronous>, transform_indices = @transform_6, window_bounds = array<i64: 2, 1, 96>}, {pipeline_mode = #tpu.pipeline_mode<synchronous>, transform_indices = @transform_7, window_bounds = array<i64: 2, 32, 96>}, {pipeline_mode = #tpu.pipeline_mode<synchronous>, transform_indices = @transform_8, window_bounds = array<i64: 2, 1, 32>}, {pipeline_mode = #tpu.pipeline_mode<synchronous>, transform_indices = @transform_9, window_bounds = array<i64: 2, 32, 96>}, {pipeline_mode = #tpu.pipeline_mode<synchronous>, transform_indices = @transform_10, window_bounds = array<i64: 2, 1, 96>}, {pipeline_mode = #tpu.pipeline_mode<synchronous>, transform_indices = @transform_11, window_bounds = array<i64: 2, 32, 96>}, {pipeline_mode = #tpu.pipeline_mode<synchronous>, transform_indices = @transform_12, window_bounds = array<i64: 2, 1, 32>}, {pipeline_mode = #tpu.pipeline_mode<synchronous>, transform_indices = @transform_13, window_bounds = array<i64: 2, 32, 16>}, {pipeline_mode = #tpu.pipeline_mode<synchronous>, transform_indices = @transform_14, window_bounds = array<i64: 1, 16>}, {pipeline_mode = #tpu.pipeline_mode<synchronous>, transform_indices = @transform_15, window_bounds = array<i64: 2, 8, 16>}]} {
    %c0 = arith.constant 0 : index
    %c0_0 = arith.constant 0 : index
    %0 = vector.load %arg1[%c0, %c0_0] : memref<32x9216xbf16, #tpu.memory_space<vmem>>, vector<32x9216xbf16>
    %c0_1 = arith.constant 0 : index
    %c0_2 = arith.constant 0 : index
    %1 = vector.load %arg2[%c0_1, %c0_2] : memref<9216x256xbf16, #tpu.memory_space<vmem>>, vector<9216x256xbf16>
    %cst = arith.constant dense<0.000000e+00> : vector<32x256xf32>
    %2 = tpu.matmul %0, %1, %cst {dimension_numbers = #tpu.dot_dimension_numbers<[1], [0], [0], [1], [0, 0, 1, 1], [], []>} : vector<32x9216xbf16>, vector<9216x256xbf16>, vector<32x256xf32> -> vector<32x256xf32>
    %c0_3 = arith.constant 0 : index
    %c0_4 = arith.constant 0 : index
    %3 = vector.load %arg3[%c0_3, %c0_4] : memref<1x256xf32, #tpu.memory_space<vmem>>, vector<1x256xf32>
    %4 = vector.broadcast %3 : vector<1x256xf32> to vector<32x256xf32>
    %5 = arith.addf %2, %4 : vector<32x256xf32>
    %cst_5 = arith.constant 0.000000e+00 : f32
    %6 = vector.broadcast %cst_5 : f32 to vector<32x256xf32>
    %7 = arith.maximumf %5, %6 : vector<32x256xf32>
    %cst_6 = arith.constant 0.000000e+00 : f32
    %8 = vector.broadcast %cst_6 : f32 to vector<16x256xf32>
    %9 = vector.extract_strided_slice %7 {offsets = [0, 0], sizes = [16, 256], strides = [1, 1]} : vector<32x256xf32> to vector<16x256xf32>
    %10 = arith.truncf %9 : vector<16x256xf32> to vector<16x256xbf16>
    %c0_7 = arith.constant 0 : index
    %c0_8 = arith.constant 0 : index
    %c0_9 = arith.constant 0 : index
    %11 = vector.load %arg4[%c0_7, %c0_8, %c0_9] : memref<2x256x256xbf16, #tpu.memory_space<vmem>>, vector<1x256x256xbf16>
    %12 = vector.shape_cast %11 : vector<1x256x256xbf16> to vector<256x256xbf16>
    %cst_10 = arith.constant dense<0.000000e+00> : vector<16x256xf32>
    %13 = tpu.matmul %10, %12, %cst_10 {dimension_numbers = #tpu.dot_dimension_numbers<[1], [0], [0], [1], [0, 0, 1, 1], [], []>} : vector<16x256xbf16>, vector<256x256xbf16>, vector<16x256xf32> -> vector<16x256xf32>
    %14 = arith.addf %8, %13 : vector<16x256xf32>
    %15 = vector.extract_strided_slice %7 {offsets = [16, 0], sizes = [16, 256], strides = [1, 1]} : vector<32x256xf32> to vector<16x256xf32>
    %16 = arith.truncf %15 : vector<16x256xf32> to vector<16x256xbf16>
    %c1 = arith.constant 1 : index
    %c0_11 = arith.constant 0 : index
    %c0_12 = arith.constant 0 : index
    %17 = vector.load %arg4[%c1, %c0_11, %c0_12] : memref<2x256x256xbf16, #tpu.memory_space<vmem>>, vector<1x256x256xbf16>
    %18 = vector.shape_cast %17 : vector<1x256x256xbf16> to vector<256x256xbf16>
    %cst_13 = arith.constant dense<0.000000e+00> : vector<16x256xf32>
    %19 = tpu.matmul %16, %18, %cst_13 {dimension_numbers = #tpu.dot_dimension_numbers<[1], [0], [0], [1], [0, 0, 1, 1], [], []>} : vector<16x256xbf16>, vector<256x256xbf16>, vector<16x256xf32> -> vector<16x256xf32>
    %20 = arith.addf %14, %19 : vector<16x256xf32>
    %c0_14 = arith.constant 0 : index
    %c0_15 = arith.constant 0 : index
    %21 = vector.load %arg5[%c0_14, %c0_15] : memref<1x256xf32, #tpu.memory_space<vmem>>, vector<1x256xf32>
    %22 = vector.broadcast %21 : vector<1x256xf32> to vector<16x256xf32>
    %23 = arith.addf %20, %22 : vector<16x256xf32>
    %24 = arith.truncf %23 : vector<16x256xf32> to vector<16x256xbf16>
    %c0_16 = arith.constant 0 : index
    %c0_17 = arith.constant 0 : index
    %c0_18 = arith.constant 0 : index
    %25 = vector.load %arg6[%c0_16, %c0_17, %c0_18] : memref<2x256x96xbf16, #tpu.memory_space<vmem>>, vector<1x256x96xbf16>
    %26 = vector.shape_cast %25 : vector<1x256x96xbf16> to vector<256x96xbf16>
    %cst_19 = arith.constant dense<0.000000e+00> : vector<16x96xf32>
    %27 = tpu.matmul %24, %26, %cst_19 {dimension_numbers = #tpu.dot_dimension_numbers<[1], [0], [0], [1], [0, 0, 1, 1], [], []>} : vector<16x256xbf16>, vector<256x96xbf16>, vector<16x96xf32> -> vector<16x96xf32>
    %c0_20 = arith.constant 0 : index
    %c0_21 = arith.constant 0 : index
    %c0_22 = arith.constant 0 : index
    %28 = vector.load %arg7[%c0_20, %c0_21, %c0_22] : memref<2x1x96xf32, #tpu.memory_space<vmem>>, vector<1x1x96xf32>
    %29 = vector.shape_cast %28 : vector<1x1x96xf32> to vector<1x96xf32>
    %30 = vector.broadcast %29 : vector<1x96xf32> to vector<16x96xf32>
    %31 = arith.addf %27, %30 : vector<16x96xf32>
    %32 = vector.shape_cast %31 : vector<16x96xf32> to vector<2x8x96xf32>
    %c0_23 = arith.constant 0 : index
    %c0_24 = arith.constant 0 : index
    %c0_25 = arith.constant 0 : index
    %33 = vector.load %arg17[%c0_23, %c0_24, %c0_25] : memref<2x8x96xf32, #tpu.memory_space<vmem>>, vector<2x8x96xf32>
    tpu.vector_store %arg17[%c0_23, %c0_24, %c0_25], %32 {strides = array<i32>} : memref<2x8x96xf32, #tpu.memory_space<vmem>>, vector<2x8x96xf32>,
    %c1_26 = arith.constant 1 : index
    %c0_27 = arith.constant 0 : index
    %c0_28 = arith.constant 0 : index
    %34 = vector.load %arg6[%c1_26, %c0_27, %c0_28] : memref<2x256x96xbf16, #tpu.memory_space<vmem>>, vector<1x256x96xbf16>
    %35 = vector.shape_cast %34 : vector<1x256x96xbf16> to vector<256x96xbf16>
    %cst_29 = arith.constant dense<0.000000e+00> : vector<16x96xf32>
    %36 = tpu.matmul %24, %35, %cst_29 {dimension_numbers = #tpu.dot_dimension_numbers<[1], [0], [0], [1], [0, 0, 1, 1], [], []>} : vector<16x256xbf16>, vector<256x96xbf16>, vector<16x96xf32> -> vector<16x96xf32>
    %c1_30 = arith.constant 1 : index
    %c0_31 = arith.constant 0 : index
    %c0_32 = arith.constant 0 : index
    %37 = vector.load %arg7[%c1_30, %c0_31, %c0_32] : memref<2x1x96xf32, #tpu.memory_space<vmem>>, vector<1x1x96xf32>
    %38 = vector.shape_cast %37 : vector<1x1x96xf32> to vector<1x96xf32>
    %39 = vector.broadcast %38 : vector<1x96xf32> to vector<16x96xf32>
    %40 = arith.addf %36, %39 : vector<16x96xf32>
    %41 = vector.shape_cast %40 : vector<16x96xf32> to vector<2x8x96xf32>
    %c0_33 = arith.constant 0 : index
    %c0_34 = arith.constant 0 : index
    %c0_35 = arith.constant 0 : index
    %42 = vector.load %arg18[%c0_33, %c0_34, %c0_35] : memref<2x8x96xf32, #tpu.memory_space<vmem>>, vector<2x8x96xf32>
    tpu.vector_store %arg18[%c0_33, %c0_34, %c0_35], %41 {strides = array<i32>} : memref<2x8x96xf32, #tpu.memory_space<vmem>>, vector<2x8x96xf32>,
    %c0_36 = arith.constant 0 : index
    %c0_37 = arith.constant 0 : index
    %c0_38 = arith.constant 0 : index
    %43 = vector.load %arg8[%c0_36, %c0_37, %c0_38] : memref<2x32x96xbf16, #tpu.memory_space<vmem>>, vector<1x32x96xbf16>
    %44 = vector.shape_cast %43 : vector<1x32x96xbf16> to vector<32x96xbf16>
    %c1_39 = arith.constant 1 : index
    %c0_40 = arith.constant 0 : index
    %c0_41 = arith.constant 0 : index
    %45 = vector.load %arg8[%c1_39, %c0_40, %c0_41] : memref<2x32x96xbf16, #tpu.memory_space<vmem>>, vector<1x32x96xbf16>
    %46 = vector.shape_cast %45 : vector<1x32x96xbf16> to vector<32x96xbf16>
    %c0_42 = arith.constant 0 : index
    %c0_43 = arith.constant 0 : index
    %c0_44 = arith.constant 0 : index
    %47 = vector.load %arg9[%c0_42, %c0_43, %c0_44] : memref<2x1x32xf32, #tpu.memory_space<vmem>>, vector<1x1x32xf32>
    %48 = vector.shape_cast %47 : vector<1x1x32xf32> to vector<1x32xf32>
    %c1_45 = arith.constant 1 : index
    %c0_46 = arith.constant 0 : index
    %c0_47 = arith.constant 0 : index
    %49 = vector.load %arg9[%c1_45, %c0_46, %c0_47] : memref<2x1x32xf32, #tpu.memory_space<vmem>>, vector<1x1x32xf32>
    %50 = vector.shape_cast %49 : vector<1x1x32xf32> to vector<1x32xf32>
    %cst_48 = arith.constant 0.000000e+00 : f32
    %51 = vector.broadcast %cst_48 : f32 to vector<8x32xf32>
    %c0_i32 = arith.constant 0 : i32
    %52 = arith.truncf %51 : vector<8x32xf32> to vector<8x32xbf16>
    %cst_49 = arith.constant dense<0.000000e+00> : vector<8x96xf32>
    %53 = tpu.matmul %52, %44, %cst_49 {dimension_numbers = #tpu.dot_dimension_numbers<[1], [0], [0], [1], [0, 0, 1, 1], [], []>} : vector<8x32xbf16>, vector<32x96xbf16>, vector<8x96xf32> -> vector<8x96xf32>
    %54 = arith.truncf %51 : vector<8x32xf32> to vector<8x32xbf16>
    %cst_50 = arith.constant dense<0.000000e+00> : vector<8x96xf32>
    %55 = tpu.matmul %54, %46, %cst_50 {dimension_numbers = #tpu.dot_dimension_numbers<[1], [0], [0], [1], [0, 0, 1, 1], [], []>} : vector<8x32xbf16>, vector<32x96xbf16>, vector<8x96xf32> -> vector<8x96xf32>
    %56 = arith.index_cast %c0_i32 : i32 to index
    %c0_51 = arith.constant 0 : index
    %c0_52 = arith.constant 0 : index
    %57 = vector.load %arg17[%56, %c0_51, %c0_52] : memref<2x8x96xf32, #tpu.memory_space<vmem>>, vector<1x8x96xf32>
    %58 = vector.shape_cast %57 : vector<1x8x96xf32> to vector<8x96xf32>
    %59 = vector.extract_strided_slice %58 {offsets = [0, 0], sizes = [8, 32], strides = [1, 1]} : vector<8x96xf32> to vector<8x32xf32>
    %60 = vector.extract_strided_slice %53 {offsets = [0, 0], sizes = [8, 32], strides = [1, 1]} : vector<8x96xf32> to vector<8x32xf32>
    %61 = arith.addf %59, %60 : vector<8x32xf32>
    %62 = arith.negf %61 : vector<8x32xf32>
    %63 = math.exp %62 : vector<8x32xf32>
    %cst_53 = arith.constant 1.000000e+00 : f32
    %64 = vector.broadcast %cst_53 : f32 to vector<8x32xf32>
    %65 = arith.addf %64, %63 : vector<8x32xf32>
    %66 = arith.divf %64, %65 : vector<8x32xf32>
    %67 = vector.extract_strided_slice %58 {offsets = [0, 32], sizes = [8, 32], strides = [1, 1]} : vector<8x96xf32> to vector<8x32xf32>
    %68 = vector.extract_strided_slice %53 {offsets = [0, 32], sizes = [8, 32], strides = [1, 1]} : vector<8x96xf32> to vector<8x32xf32>
    %69 = arith.addf %67, %68 : vector<8x32xf32>
    %70 = arith.negf %69 : vector<8x32xf32>
    %71 = math.exp %70 : vector<8x32xf32>
    %cst_54 = arith.constant 1.000000e+00 : f32
    %72 = vector.broadcast %cst_54 : f32 to vector<8x32xf32>
    %73 = arith.addf %72, %71 : vector<8x32xf32>
    %74 = arith.divf %72, %73 : vector<8x32xf32>
    %75 = vector.extract_strided_slice %58 {offsets = [0, 64], sizes = [8, 32], strides = [1, 1]} : vector<8x96xf32> to vector<8x32xf32>
    %76 = vector.extract_strided_slice %53 {offsets = [0, 64], sizes = [8, 32], strides = [1, 1]} : vector<8x96xf32> to vector<8x32xf32>
    %77 = vector.broadcast %48 : vector<1x32xf32> to vector<8x32xf32>
    %78 = arith.addf %76, %77 : vector<8x32xf32>
    %79 = arith.mulf %66, %78 : vector<8x32xf32>
    %80 = arith.addf %75, %79 : vector<8x32xf32>
    %81 = math.tanh %80 : vector<8x32xf32>
    %cst_55 = arith.constant 1.000000e+00 : f32
    %82 = vector.broadcast %cst_55 : f32 to vector<8x32xf32>
    %83 = arith.subf %82, %74 : vector<8x32xf32>
    %84 = arith.mulf %83, %81 : vector<8x32xf32>
    %85 = arith.mulf %74, %51 : vector<8x32xf32>
    %86 = arith.addf %84, %85 : vector<8x32xf32>
    %c1_i32 = arith.constant 1 : i32
    %87 = arith.subi %c1_i32, %c0_i32 : i32
    %88 = arith.index_cast %87 : i32 to index
    %c0_56 = arith.constant 0 : index
    %c0_57 = arith.constant 0 : index
    %89 = vector.load %arg18[%88, %c0_56, %c0_57] : memref<2x8x96xf32, #tpu.memory_space<vmem>>, vector<1x8x96xf32>
    %90 = vector.shape_cast %89 : vector<1x8x96xf32> to vector<8x96xf32>
    %91 = vector.extract_strided_slice %90 {offsets = [0, 0], sizes = [8, 32], strides = [1, 1]} : vector<8x96xf32> to vector<8x32xf32>
    %92 = vector.extract_strided_slice %55 {offsets = [0, 0], sizes = [8, 32], strides = [1, 1]} : vector<8x96xf32> to vector<8x32xf32>
    %93 = arith.addf %91, %92 : vector<8x32xf32>
    %94 = arith.negf %93 : vector<8x32xf32>
    %95 = math.exp %94 : vector<8x32xf32>
    %cst_58 = arith.constant 1.000000e+00 : f32
    %96 = vector.broadcast %cst_58 : f32 to vector<8x32xf32>
    %97 = arith.addf %96, %95 : vector<8x32xf32>
    %98 = arith.divf %96, %97 : vector<8x32xf32>
    %99 = vector.extract_strided_slice %90 {offsets = [0, 32], sizes = [8, 32], strides = [1, 1]} : vector<8x96xf32> to vector<8x32xf32>
    %100 = vector.extract_strided_slice %55 {offsets = [0, 32], sizes = [8, 32], strides = [1, 1]} : vector<8x96xf32> to vector<8x32xf32>
    %101 = arith.addf %99, %100 : vector<8x32xf32>
    %102 = arith.negf %101 : vector<8x32xf32>
    %103 = math.exp %102 : vector<8x32xf32>
    %cst_59 = arith.constant 1.000000e+00 : f32
    %104 = vector.broadcast %cst_59 : f32 to vector<8x32xf32>
    %105 = arith.addf %104, %103 : vector<8x32xf32>
    %106 = arith.divf %104, %105 : vector<8x32xf32>
    %107 = vector.extract_strided_slice %90 {offsets = [0, 64], sizes = [8, 32], strides = [1, 1]} : vector<8x96xf32> to vector<8x32xf32>
    %108 = vector.extract_strided_slice %55 {offsets = [0, 64], sizes = [8, 32], strides = [1, 1]} : vector<8x96xf32> to vector<8x32xf32>
    %109 = vector.broadcast %50 : vector<1x32xf32> to vector<8x32xf32>
    %110 = arith.addf %108, %109 : vector<8x32xf32>
    %111 = arith.mulf %98, %110 : vector<8x32xf32>
    %112 = arith.addf %107, %111 : vector<8x32xf32>
    %113 = math.tanh %112 : vector<8x32xf32>
    %cst_60 = arith.constant 1.000000e+00 : f32
    %114 = vector.broadcast %cst_60 : f32 to vector<8x32xf32>
    %115 = arith.subf %114, %106 : vector<8x32xf32>
    %116 = arith.mulf %115, %113 : vector<8x32xf32>
    %117 = arith.mulf %106, %51 : vector<8x32xf32>
    %118 = arith.addf %116, %117 : vector<8x32xf32>
    %119 = arith.index_cast %c0_i32 : i32 to index
    %c0_61 = arith.constant 0 : index
    %c0_62 = arith.constant 0 : index
    %120 = vector.load %arg19[%119, %c0_61, %c0_62] : memref<2x8x32xf32, #tpu.memory_space<vmem>>, vector<1x8x32xf32>
    %121 = vector.shape_cast %120 : vector<1x8x32xf32> to vector<8x32xf32>
    %122 = vector.shape_cast %86 : vector<8x32xf32> to vector<1x8x32xf32>
    tpu.vector_store %arg19[%119, %c0_61, %c0_62], %122 {strides = array<i32>} : memref<2x8x32xf32, #tpu.memory_space<vmem>>, vector<1x8x32xf32>,
    %c1_i32_63 = arith.constant 1 : i32
    %123 = arith.subi %c1_i32_63, %c0_i32 : i32
    %124 = arith.index_cast %123 : i32 to index
    %c0_64 = arith.constant 0 : index
    %c0_65 = arith.constant 0 : index
    %125 = vector.load %arg20[%124, %c0_64, %c0_65] : memref<2x8x32xf32, #tpu.memory_space<vmem>>, vector<1x8x32xf32>
    %126 = vector.shape_cast %125 : vector<1x8x32xf32> to vector<8x32xf32>
    %127 = vector.shape_cast %118 : vector<8x32xf32> to vector<1x8x32xf32>
    tpu.vector_store %arg20[%124, %c0_64, %c0_65], %127 {strides = array<i32>} : memref<2x8x32xf32, #tpu.memory_space<vmem>>, vector<1x8x32xf32>,
    %c1_i32_66 = arith.constant 1 : i32
    %128 = arith.truncf %86 : vector<8x32xf32> to vector<8x32xbf16>
    %cst_67 = arith.constant dense<0.000000e+00> : vector<8x96xf32>
    %129 = tpu.matmul %128, %44, %cst_67 {dimension_numbers = #tpu.dot_dimension_numbers<[1], [0], [0], [1], [0, 0, 1, 1], [], []>} : vector<8x32xbf16>, vector<32x96xbf16>, vector<8x96xf32> -> vector<8x96xf32>
    %130 = arith.truncf %118 : vector<8x32xf32> to vector<8x32xbf16>
    %cst_68 = arith.constant dense<0.000000e+00> : vector<8x96xf32>
    %131 = tpu.matmul %130, %46, %cst_68 {dimension_numbers = #tpu.dot_dimension_numbers<[1], [0], [0], [1], [0, 0, 1, 1], [], []>} : vector<8x32xbf16>, vector<32x96xbf16>, vector<8x96xf32> -> vector<8x96xf32>
    %132 = arith.index_cast %c1_i32_66 : i32 to index
    %c0_69 = arith.constant 0 : index
    %c0_70 = arith.constant 0 : index
    %133 = vector.load %arg17[%132, %c0_69, %c0_70] : memref<2x8x96xf32, #tpu.memory_space<vmem>>, vector<1x8x96xf32>
    %134 = vector.shape_cast %133 : vector<1x8x96xf32> to vector<8x96xf32>
    %135 = vector.extract_strided_slice %134 {offsets = [0, 0], sizes = [8, 32], strides = [1, 1]} : vector<8x96xf32> to vector<8x32xf32>
    %136 = vector.extract_strided_slice %129 {offsets = [0, 0], sizes = [8, 32], strides = [1, 1]} : vector<8x96xf32> to vector<8x32xf32>
    %137 = arith.addf %135, %136 : vector<8x32xf32>
    %138 = arith.negf %137 : vector<8x32xf32>
    %139 = math.exp %138 : vector<8x32xf32>
    %cst_71 = arith.constant 1.000000e+00 : f32
    %140 = vector.broadcast %cst_71 : f32 to vector<8x32xf32>
    %141 = arith.addf %140, %139 : vector<8x32xf32>
    %142 = arith.divf %140, %141 : vector<8x32xf32>
    %143 = vector.extract_strided_slice %134 {offsets = [0, 32], sizes = [8, 32], strides = [1, 1]} : vector<8x96xf32> to vector<8x32xf32>
    %144 = vector.extract_strided_slice %129 {offsets = [0, 32], sizes = [8, 32], strides = [1, 1]} : vector<8x96xf32> to vector<8x32xf32>
    %145 = arith.addf %143, %144 : vector<8x32xf32>
    %146 = arith.negf %145 : vector<8x32xf32>
    %147 = math.exp %146 : vector<8x32xf32>
    %cst_72 = arith.constant 1.000000e+00 : f32
    %148 = vector.broadcast %cst_72 : f32 to vector<8x32xf32>
    %149 = arith.addf %148, %147 : vector<8x32xf32>
    %150 = arith.divf %148, %149 : vector<8x32xf32>
    %151 = vector.extract_strided_slice %134 {offsets = [0, 64], sizes = [8, 32], strides = [1, 1]} : vector<8x96xf32> to vector<8x32xf32>
    %152 = vector.extract_strided_slice %129 {offsets = [0, 64], sizes = [8, 32], strides = [1, 1]} : vector<8x96xf32> to vector<8x32xf32>
    %153 = vector.broadcast %48 : vector<1x32xf32> to vector<8x32xf32>
    %154 = arith.addf %152, %153 : vector<8x32xf32>
    %155 = arith.mulf %142, %154 : vector<8x32xf32>
    %156 = arith.addf %151, %155 : vector<8x32xf32>
    %157 = math.tanh %156 : vector<8x32xf32>
    %cst_73 = arith.constant 1.000000e+00 : f32
    %158 = vector.broadcast %cst_73 : f32 to vector<8x32xf32>
    %159 = arith.subf %158, %150 : vector<8x32xf32>
    %160 = arith.mulf %159, %157 : vector<8x32xf32>
    %161 = arith.mulf %150, %86 : vector<8x32xf32>
    %162 = arith.addf %160, %161 : vector<8x32xf32>
    %c1_i32_74 = arith.constant 1 : i32
    %163 = arith.subi %c1_i32_74, %c1_i32_66 : i32
    %164 = arith.index_cast %163 : i32 to index
    %c0_75 = arith.constant 0 : index
    %c0_76 = arith.constant 0 : index
    %165 = vector.load %arg18[%164, %c0_75, %c0_76] : memref<2x8x96xf32, #tpu.memory_space<vmem>>, vector<1x8x96xf32>
    %166 = vector.shape_cast %165 : vector<1x8x96xf32> to vector<8x96xf32>
    %167 = vector.extract_strided_slice %166 {offsets = [0, 0], sizes = [8, 32], strides = [1, 1]} : vector<8x96xf32> to vector<8x32xf32>
    %168 = vector.extract_strided_slice %131 {offsets = [0, 0], sizes = [8, 32], strides = [1, 1]} : vector<8x96xf32> to vector<8x32xf32>
    %169 = arith.addf %167, %168 : vector<8x32xf32>
    %170 = arith.negf %169 : vector<8x32xf32>
    %171 = math.exp %170 : vector<8x32xf32>
    %cst_77 = arith.constant 1.000000e+00 : f32
    %172 = vector.broadcast %cst_77 : f32 to vector<8x32xf32>
    %173 = arith.addf %172, %171 : vector<8x32xf32>
    %174 = arith.divf %172, %173 : vector<8x32xf32>
    %175 = vector.extract_strided_slice %166 {offsets = [0, 32], sizes = [8, 32], strides = [1, 1]} : vector<8x96xf32> to vector<8x32xf32>
    %176 = vector.extract_strided_slice %131 {offsets = [0, 32], sizes = [8, 32], strides = [1, 1]} : vector<8x96xf32> to vector<8x32xf32>
    %177 = arith.addf %175, %176 : vector<8x32xf32>
    %178 = arith.negf %177 : vector<8x32xf32>
    %179 = math.exp %178 : vector<8x32xf32>
    %cst_78 = arith.constant 1.000000e+00 : f32
    %180 = vector.broadcast %cst_78 : f32 to vector<8x32xf32>
    %181 = arith.addf %180, %179 : vector<8x32xf32>
    %182 = arith.divf %180, %181 : vector<8x32xf32>
    %183 = vector.extract_strided_slice %166 {offsets = [0, 64], sizes = [8, 32], strides = [1, 1]} : vector<8x96xf32> to vector<8x32xf32>
    %184 = vector.extract_strided_slice %131 {offsets = [0, 64], sizes = [8, 32], strides = [1, 1]} : vector<8x96xf32> to vector<8x32xf32>
    %185 = vector.broadcast %50 : vector<1x32xf32> to vector<8x32xf32>
    %186 = arith.addf %184, %185 : vector<8x32xf32>
    %187 = arith.mulf %174, %186 : vector<8x32xf32>
    %188 = arith.addf %183, %187 : vector<8x32xf32>
    %189 = math.tanh %188 : vector<8x32xf32>
    %cst_79 = arith.constant 1.000000e+00 : f32
    %190 = vector.broadcast %cst_79 : f32 to vector<8x32xf32>
    %191 = arith.subf %190, %182 : vector<8x32xf32>
    %192 = arith.mulf %191, %189 : vector<8x32xf32>
    %193 = arith.mulf %182, %118 : vector<8x32xf32>
    %194 = arith.addf %192, %193 : vector<8x32xf32>
    %195 = arith.index_cast %c1_i32_66 : i32 to index
    %c0_80 = arith.constant 0 : index
    %c0_81 = arith.constant 0 : index
    %196 = vector.load %arg19[%195, %c0_80, %c0_81] : memref<2x8x32xf32, #tpu.memory_space<vmem>>, vector<1x8x32xf32>
    %197 = vector.shape_cast %196 : vector<1x8x32xf32> to vector<8x32xf32>
    %198 = vector.shape_cast %162 : vector<8x32xf32> to vector<1x8x32xf32>
    tpu.vector_store %arg19[%195, %c0_80, %c0_81], %198 {strides = array<i32>} : memref<2x8x32xf32, #tpu.memory_space<vmem>>, vector<1x8x32xf32>,
    %c1_i32_82 = arith.constant 1 : i32
    %199 = arith.subi %c1_i32_82, %c1_i32_66 : i32
    %200 = arith.index_cast %199 : i32 to index
    %c0_83 = arith.constant 0 : index
    %c0_84 = arith.constant 0 : index
    %201 = vector.load %arg20[%200, %c0_83, %c0_84] : memref<2x8x32xf32, #tpu.memory_space<vmem>>, vector<1x8x32xf32>
    %202 = vector.shape_cast %201 : vector<1x8x32xf32> to vector<8x32xf32>
    %203 = vector.shape_cast %194 : vector<8x32xf32> to vector<1x8x32xf32>
    tpu.vector_store %arg20[%200, %c0_83, %c0_84], %203 {strides = array<i32>} : memref<2x8x32xf32, #tpu.memory_space<vmem>>, vector<1x8x32xf32>,
    %c2_i32 = arith.constant 2 : i32
    %c0_85 = arith.constant 0 : index
    %c0_86 = arith.constant 0 : index
    %c0_87 = arith.constant 0 : index
    %204 = vector.load %arg19[%c0_85, %c0_86, %c0_87] : memref<2x8x32xf32, #tpu.memory_space<vmem>>, vector<2x8x32xf32>
    %c0_88 = arith.constant 0 : index
    %c0_89 = arith.constant 0 : index
    %c0_90 = arith.constant 0 : index
    %205 = vector.load %arg20[%c0_88, %c0_89, %c0_90] : memref<2x8x32xf32, #tpu.memory_space<vmem>>, vector<2x8x32xf32>
    %206 = arith.addf %204, %205 : vector<2x8x32xf32>
    %207 = vector.shape_cast %206 : vector<2x8x32xf32> to vector<16x32xf32>
    %208 = arith.truncf %207 : vector<16x32xf32> to vector<16x32xbf16>
    %c0_91 = arith.constant 0 : index
    %c0_92 = arith.constant 0 : index
    %c0_93 = arith.constant 0 : index
    %209 = vector.load %arg10[%c0_91, %c0_92, %c0_93] : memref<2x32x96xbf16, #tpu.memory_space<vmem>>, vector<1x32x96xbf16>
    %210 = vector.shape_cast %209 : vector<1x32x96xbf16> to vector<32x96xbf16>
    %cst_94 = arith.constant dense<0.000000e+00> : vector<16x96xf32>
    %211 = tpu.matmul %208, %210, %cst_94 {dimension_numbers = #tpu.dot_dimension_numbers<[1], [0], [0], [1], [0, 0, 1, 1], [], []>} : vector<16x32xbf16>, vector<32x96xbf16>, vector<16x96xf32> -> vector<16x96xf32>
    %c0_95 = arith.constant 0 : index
    %c0_96 = arith.constant 0 : index
    %c0_97 = arith.constant 0 : index
    %212 = vector.load %arg11[%c0_95, %c0_96, %c0_97] : memref<2x1x96xf32, #tpu.memory_space<vmem>>, vector<1x1x96xf32>
    %213 = vector.shape_cast %212 : vector<1x1x96xf32> to vector<1x96xf32>
    %214 = vector.broadcast %213 : vector<1x96xf32> to vector<16x96xf32>
    %215 = arith.addf %211, %214 : vector<16x96xf32>
    %216 = vector.shape_cast %215 : vector<16x96xf32> to vector<2x8x96xf32>
    %c0_98 = arith.constant 0 : index
    %c0_99 = arith.constant 0 : index
    %c0_100 = arith.constant 0 : index
    %217 = vector.load %arg17[%c0_98, %c0_99, %c0_100] : memref<2x8x96xf32, #tpu.memory_space<vmem>>, vector<2x8x96xf32>
    tpu.vector_store %arg17[%c0_98, %c0_99, %c0_100], %216 {strides = array<i32>} : memref<2x8x96xf32, #tpu.memory_space<vmem>>, vector<2x8x96xf32>,
    %c1_101 = arith.constant 1 : index
    %c0_102 = arith.constant 0 : index
    %c0_103 = arith.constant 0 : index
    %218 = vector.load %arg10[%c1_101, %c0_102, %c0_103] : memref<2x32x96xbf16, #tpu.memory_space<vmem>>, vector<1x32x96xbf16>
    %219 = vector.shape_cast %218 : vector<1x32x96xbf16> to vector<32x96xbf16>
    %cst_104 = arith.constant dense<0.000000e+00> : vector<16x96xf32>
    %220 = tpu.matmul %208, %219, %cst_104 {dimension_numbers = #tpu.dot_dimension_numbers<[1], [0], [0], [1], [0, 0, 1, 1], [], []>} : vector<16x32xbf16>, vector<32x96xbf16>, vector<16x96xf32> -> vector<16x96xf32>
    %c1_105 = arith.constant 1 : index
    %c0_106 = arith.constant 0 : index
    %c0_107 = arith.constant 0 : index
    %221 = vector.load %arg11[%c1_105, %c0_106, %c0_107] : memref<2x1x96xf32, #tpu.memory_space<vmem>>, vector<1x1x96xf32>
    %222 = vector.shape_cast %221 : vector<1x1x96xf32> to vector<1x96xf32>
    %223 = vector.broadcast %222 : vector<1x96xf32> to vector<16x96xf32>
    %224 = arith.addf %220, %223 : vector<16x96xf32>
    %225 = vector.shape_cast %224 : vector<16x96xf32> to vector<2x8x96xf32>
    %c0_108 = arith.constant 0 : index
    %c0_109 = arith.constant 0 : index
    %c0_110 = arith.constant 0 : index
    %226 = vector.load %arg18[%c0_108, %c0_109, %c0_110] : memref<2x8x96xf32, #tpu.memory_space<vmem>>, vector<2x8x96xf32>
    tpu.vector_store %arg18[%c0_108, %c0_109, %c0_110], %225 {strides = array<i32>} : memref<2x8x96xf32, #tpu.memory_space<vmem>>, vector<2x8x96xf32>,
    %c0_111 = arith.constant 0 : index
    %c0_112 = arith.constant 0 : index
    %c0_113 = arith.constant 0 : index
    %227 = vector.load %arg12[%c0_111, %c0_112, %c0_113] : memref<2x32x96xbf16, #tpu.memory_space<vmem>>, vector<1x32x96xbf16>
    %228 = vector.shape_cast %227 : vector<1x32x96xbf16> to vector<32x96xbf16>
    %c1_114 = arith.constant 1 : index
    %c0_115 = arith.constant 0 : index
    %c0_116 = arith.constant 0 : index
    %229 = vector.load %arg12[%c1_114, %c0_115, %c0_116] : memref<2x32x96xbf16, #tpu.memory_space<vmem>>, vector<1x32x96xbf16>
    %230 = vector.shape_cast %229 : vector<1x32x96xbf16> to vector<32x96xbf16>
    %c0_117 = arith.constant 0 : index
    %c0_118 = arith.constant 0 : index
    %c0_119 = arith.constant 0 : index
    %231 = vector.load %arg13[%c0_117, %c0_118, %c0_119] : memref<2x1x32xf32, #tpu.memory_space<vmem>>, vector<1x1x32xf32>
    %232 = vector.shape_cast %231 : vector<1x1x32xf32> to vector<1x32xf32>
    %c1_120 = arith.constant 1 : index
    %c0_121 = arith.constant 0 : index
    %c0_122 = arith.constant 0 : index
    %233 = vector.load %arg13[%c1_120, %c0_121, %c0_122] : memref<2x1x32xf32, #tpu.memory_space<vmem>>, vector<1x1x32xf32>
    %234 = vector.shape_cast %233 : vector<1x1x32xf32> to vector<1x32xf32>
    %cst_123 = arith.constant 0.000000e+00 : f32
    %235 = vector.broadcast %cst_123 : f32 to vector<8x32xf32>
    %c0_i32_124 = arith.constant 0 : i32
    %236 = arith.truncf %235 : vector<8x32xf32> to vector<8x32xbf16>
    %cst_125 = arith.constant dense<0.000000e+00> : vector<8x96xf32>
    %237 = tpu.matmul %236, %228, %cst_125 {dimension_numbers = #tpu.dot_dimension_numbers<[1], [0], [0], [1], [0, 0, 1, 1], [], []>} : vector<8x32xbf16>, vector<32x96xbf16>, vector<8x96xf32> -> vector<8x96xf32>
    %238 = arith.truncf %235 : vector<8x32xf32> to vector<8x32xbf16>
    %cst_126 = arith.constant dense<0.000000e+00> : vector<8x96xf32>
    %239 = tpu.matmul %238, %230, %cst_126 {dimension_numbers = #tpu.dot_dimension_numbers<[1], [0], [0], [1], [0, 0, 1, 1], [], []>} : vector<8x32xbf16>, vector<32x96xbf16>, vector<8x96xf32> -> vector<8x96xf32>
    %240 = arith.index_cast %c0_i32_124 : i32 to index
    %c0_127 = arith.constant 0 : index
    %c0_128 = arith.constant 0 : index
    %241 = vector.load %arg17[%240, %c0_127, %c0_128] : memref<2x8x96xf32, #tpu.memory_space<vmem>>, vector<1x8x96xf32>
    %242 = vector.shape_cast %241 : vector<1x8x96xf32> to vector<8x96xf32>
    %243 = vector.extract_strided_slice %242 {offsets = [0, 0], sizes = [8, 32], strides = [1, 1]} : vector<8x96xf32> to vector<8x32xf32>
    %244 = vector.extract_strided_slice %237 {offsets = [0, 0], sizes = [8, 32], strides = [1, 1]} : vector<8x96xf32> to vector<8x32xf32>
    %245 = arith.addf %243, %244 : vector<8x32xf32>
    %246 = arith.negf %245 : vector<8x32xf32>
    %247 = math.exp %246 : vector<8x32xf32>
    %cst_129 = arith.constant 1.000000e+00 : f32
    %248 = vector.broadcast %cst_129 : f32 to vector<8x32xf32>
    %249 = arith.addf %248, %247 : vector<8x32xf32>
    %250 = arith.divf %248, %249 : vector<8x32xf32>
    %251 = vector.extract_strided_slice %242 {offsets = [0, 32], sizes = [8, 32], strides = [1, 1]} : vector<8x96xf32> to vector<8x32xf32>
    %252 = vector.extract_strided_slice %237 {offsets = [0, 32], sizes = [8, 32], strides = [1, 1]} : vector<8x96xf32> to vector<8x32xf32>
    %253 = arith.addf %251, %252 : vector<8x32xf32>
    %254 = arith.negf %253 : vector<8x32xf32>
    %255 = math.exp %254 : vector<8x32xf32>
    %cst_130 = arith.constant 1.000000e+00 : f32
    %256 = vector.broadcast %cst_130 : f32 to vector<8x32xf32>
    %257 = arith.addf %256, %255 : vector<8x32xf32>
    %258 = arith.divf %256, %257 : vector<8x32xf32>
    %259 = vector.extract_strided_slice %242 {offsets = [0, 64], sizes = [8, 32], strides = [1, 1]} : vector<8x96xf32> to vector<8x32xf32>
    %260 = vector.extract_strided_slice %237 {offsets = [0, 64], sizes = [8, 32], strides = [1, 1]} : vector<8x96xf32> to vector<8x32xf32>
    %261 = vector.broadcast %232 : vector<1x32xf32> to vector<8x32xf32>
    %262 = arith.addf %260, %261 : vector<8x32xf32>
    %263 = arith.mulf %250, %262 : vector<8x32xf32>
    %264 = arith.addf %259, %263 : vector<8x32xf32>
    %265 = math.tanh %264 : vector<8x32xf32>
    %cst_131 = arith.constant 1.000000e+00 : f32
    %266 = vector.broadcast %cst_131 : f32 to vector<8x32xf32>
    %267 = arith.subf %266, %258 : vector<8x32xf32>
    %268 = arith.mulf %267, %265 : vector<8x32xf32>
    %269 = arith.mulf %258, %235 : vector<8x32xf32>
    %270 = arith.addf %268, %269 : vector<8x32xf32>
    %c1_i32_132 = arith.constant 1 : i32
    %271 = arith.subi %c1_i32_132, %c0_i32_124 : i32
    %272 = arith.index_cast %271 : i32 to index
    %c0_133 = arith.constant 0 : index
    %c0_134 = arith.constant 0 : index
    %273 = vector.load %arg18[%272, %c0_133, %c0_134] : memref<2x8x96xf32, #tpu.memory_space<vmem>>, vector<1x8x96xf32>
    %274 = vector.shape_cast %273 : vector<1x8x96xf32> to vector<8x96xf32>
    %275 = vector.extract_strided_slice %274 {offsets = [0, 0], sizes = [8, 32], strides = [1, 1]} : vector<8x96xf32> to vector<8x32xf32>
    %276 = vector.extract_strided_slice %239 {offsets = [0, 0], sizes = [8, 32], strides = [1, 1]} : vector<8x96xf32> to vector<8x32xf32>
    %277 = arith.addf %275, %276 : vector<8x32xf32>
    %278 = arith.negf %277 : vector<8x32xf32>
    %279 = math.exp %278 : vector<8x32xf32>
    %cst_135 = arith.constant 1.000000e+00 : f32
    %280 = vector.broadcast %cst_135 : f32 to vector<8x32xf32>
    %281 = arith.addf %280, %279 : vector<8x32xf32>
    %282 = arith.divf %280, %281 : vector<8x32xf32>
    %283 = vector.extract_strided_slice %274 {offsets = [0, 32], sizes = [8, 32], strides = [1, 1]} : vector<8x96xf32> to vector<8x32xf32>
    %284 = vector.extract_strided_slice %239 {offsets = [0, 32], sizes = [8, 32], strides = [1, 1]} : vector<8x96xf32> to vector<8x32xf32>
    %285 = arith.addf %283, %284 : vector<8x32xf32>
    %286 = arith.negf %285 : vector<8x32xf32>
    %287 = math.exp %286 : vector<8x32xf32>
    %cst_136 = arith.constant 1.000000e+00 : f32
    %288 = vector.broadcast %cst_136 : f32 to vector<8x32xf32>
    %289 = arith.addf %288, %287 : vector<8x32xf32>
    %290 = arith.divf %288, %289 : vector<8x32xf32>
    %291 = vector.extract_strided_slice %274 {offsets = [0, 64], sizes = [8, 32], strides = [1, 1]} : vector<8x96xf32> to vector<8x32xf32>
    %292 = vector.extract_strided_slice %239 {offsets = [0, 64], sizes = [8, 32], strides = [1, 1]} : vector<8x96xf32> to vector<8x32xf32>
    %293 = vector.broadcast %234 : vector<1x32xf32> to vector<8x32xf32>
    %294 = arith.addf %292, %293 : vector<8x32xf32>
    %295 = arith.mulf %282, %294 : vector<8x32xf32>
    %296 = arith.addf %291, %295 : vector<8x32xf32>
    %297 = math.tanh %296 : vector<8x32xf32>
    %cst_137 = arith.constant 1.000000e+00 : f32
    %298 = vector.broadcast %cst_137 : f32 to vector<8x32xf32>
    %299 = arith.subf %298, %290 : vector<8x32xf32>
    %300 = arith.mulf %299, %297 : vector<8x32xf32>
    %301 = arith.mulf %290, %235 : vector<8x32xf32>
    %302 = arith.addf %300, %301 : vector<8x32xf32>
    %303 = arith.index_cast %c0_i32_124 : i32 to index
    %c0_138 = arith.constant 0 : index
    %c0_139 = arith.constant 0 : index
    %304 = vector.load %arg21[%303, %c0_138, %c0_139] : memref<2x8x32xf32, #tpu.memory_space<vmem>>, vector<1x8x32xf32>
    %305 = vector.shape_cast %304 : vector<1x8x32xf32> to vector<8x32xf32>
    %306 = vector.shape_cast %270 : vector<8x32xf32> to vector<1x8x32xf32>
    tpu.vector_store %arg21[%303, %c0_138, %c0_139], %306 {strides = array<i32>} : memref<2x8x32xf32, #tpu.memory_space<vmem>>, vector<1x8x32xf32>,
    %c1_i32_140 = arith.constant 1 : i32
    %307 = arith.subi %c1_i32_140, %c0_i32_124 : i32
    %308 = arith.index_cast %307 : i32 to index
    %c0_141 = arith.constant 0 : index
    %c0_142 = arith.constant 0 : index
    %309 = vector.load %arg22[%308, %c0_141, %c0_142] : memref<2x8x32xf32, #tpu.memory_space<vmem>>, vector<1x8x32xf32>
    %310 = vector.shape_cast %309 : vector<1x8x32xf32> to vector<8x32xf32>
    %311 = vector.shape_cast %302 : vector<8x32xf32> to vector<1x8x32xf32>
    tpu.vector_store %arg22[%308, %c0_141, %c0_142], %311 {strides = array<i32>} : memref<2x8x32xf32, #tpu.memory_space<vmem>>, vector<1x8x32xf32>,
    %c1_i32_143 = arith.constant 1 : i32
    %312 = arith.truncf %270 : vector<8x32xf32> to vector<8x32xbf16>
    %cst_144 = arith.constant dense<0.000000e+00> : vector<8x96xf32>
    %313 = tpu.matmul %312, %228, %cst_144 {dimension_numbers = #tpu.dot_dimension_numbers<[1], [0], [0], [1], [0, 0, 1, 1], [], []>} : vector<8x32xbf16>, vector<32x96xbf16>, vector<8x96xf32> -> vector<8x96xf32>
    %314 = arith.truncf %302 : vector<8x32xf32> to vector<8x32xbf16>
    %cst_145 = arith.constant dense<0.000000e+00> : vector<8x96xf32>
    %315 = tpu.matmul %314, %230, %cst_145 {dimension_numbers = #tpu.dot_dimension_numbers<[1], [0], [0], [1], [0, 0, 1, 1], [], []>} : vector<8x32xbf16>, vector<32x96xbf16>, vector<8x96xf32> -> vector<8x96xf32>
    %316 = arith.index_cast %c1_i32_143 : i32 to index
    %c0_146 = arith.constant 0 : index
    %c0_147 = arith.constant 0 : index
    %317 = vector.load %arg17[%316, %c0_146, %c0_147] : memref<2x8x96xf32, #tpu.memory_space<vmem>>, vector<1x8x96xf32>
    %318 = vector.shape_cast %317 : vector<1x8x96xf32> to vector<8x96xf32>
    %319 = vector.extract_strided_slice %318 {offsets = [0, 0], sizes = [8, 32], strides = [1, 1]} : vector<8x96xf32> to vector<8x32xf32>
    %320 = vector.extract_strided_slice %313 {offsets = [0, 0], sizes = [8, 32], strides = [1, 1]} : vector<8x96xf32> to vector<8x32xf32>
    %321 = arith.addf %319, %320 : vector<8x32xf32>
    %322 = arith.negf %321 : vector<8x32xf32>
    %323 = math.exp %322 : vector<8x32xf32>
    %cst_148 = arith.constant 1.000000e+00 : f32
    %324 = vector.broadcast %cst_148 : f32 to vector<8x32xf32>
    %325 = arith.addf %324, %323 : vector<8x32xf32>
    %326 = arith.divf %324, %325 : vector<8x32xf32>
    %327 = vector.extract_strided_slice %318 {offsets = [0, 32], sizes = [8, 32], strides = [1, 1]} : vector<8x96xf32> to vector<8x32xf32>
    %328 = vector.extract_strided_slice %313 {offsets = [0, 32], sizes = [8, 32], strides = [1, 1]} : vector<8x96xf32> to vector<8x32xf32>
    %329 = arith.addf %327, %328 : vector<8x32xf32>
    %330 = arith.negf %329 : vector<8x32xf32>
    %331 = math.exp %330 : vector<8x32xf32>
    %cst_149 = arith.constant 1.000000e+00 : f32
    %332 = vector.broadcast %cst_149 : f32 to vector<8x32xf32>
    %333 = arith.addf %332, %331 : vector<8x32xf32>
    %334 = arith.divf %332, %333 : vector<8x32xf32>
    %335 = vector.extract_strided_slice %318 {offsets = [0, 64], sizes = [8, 32], strides = [1, 1]} : vector<8x96xf32> to vector<8x32xf32>
    %336 = vector.extract_strided_slice %313 {offsets = [0, 64], sizes = [8, 32], strides = [1, 1]} : vector<8x96xf32> to vector<8x32xf32>
    %337 = vector.broadcast %232 : vector<1x32xf32> to vector<8x32xf32>
    %338 = arith.addf %336, %337 : vector<8x32xf32>
    %339 = arith.mulf %326, %338 : vector<8x32xf32>
    %340 = arith.addf %335, %339 : vector<8x32xf32>
    %341 = math.tanh %340 : vector<8x32xf32>
    %cst_150 = arith.constant 1.000000e+00 : f32
    %342 = vector.broadcast %cst_150 : f32 to vector<8x32xf32>
    %343 = arith.subf %342, %334 : vector<8x32xf32>
    %344 = arith.mulf %343, %341 : vector<8x32xf32>
    %345 = arith.mulf %334, %270 : vector<8x32xf32>
    %346 = arith.addf %344, %345 : vector<8x32xf32>
    %c1_i32_151 = arith.constant 1 : i32
    %347 = arith.subi %c1_i32_151, %c1_i32_143 : i32
    %348 = arith.index_cast %347 : i32 to index
    %c0_152 = arith.constant 0 : index
    %c0_153 = arith.constant 0 : index
    %349 = vector.load %arg18[%348, %c0_152, %c0_153] : memref<2x8x96xf32, #tpu.memory_space<vmem>>, vector<1x8x96xf32>
    %350 = vector.shape_cast %349 : vector<1x8x96xf32> to vector<8x96xf32>
    %351 = vector.extract_strided_slice %350 {offsets = [0, 0], sizes = [8, 32], strides = [1, 1]} : vector<8x96xf32> to vector<8x32xf32>
    %352 = vector.extract_strided_slice %315 {offsets = [0, 0], sizes = [8, 32], strides = [1, 1]} : vector<8x96xf32> to vector<8x32xf32>
    %353 = arith.addf %351, %352 : vector<8x32xf32>
    %354 = arith.negf %353 : vector<8x32xf32>
    %355 = math.exp %354 : vector<8x32xf32>
    %cst_154 = arith.constant 1.000000e+00 : f32
    %356 = vector.broadcast %cst_154 : f32 to vector<8x32xf32>
    %357 = arith.addf %356, %355 : vector<8x32xf32>
    %358 = arith.divf %356, %357 : vector<8x32xf32>
    %359 = vector.extract_strided_slice %350 {offsets = [0, 32], sizes = [8, 32], strides = [1, 1]} : vector<8x96xf32> to vector<8x32xf32>
    %360 = vector.extract_strided_slice %315 {offsets = [0, 32], sizes = [8, 32], strides = [1, 1]} : vector<8x96xf32> to vector<8x32xf32>
    %361 = arith.addf %359, %360 : vector<8x32xf32>
    %362 = arith.negf %361 : vector<8x32xf32>
    %363 = math.exp %362 : vector<8x32xf32>
    %cst_155 = arith.constant 1.000000e+00 : f32
    %364 = vector.broadcast %cst_155 : f32 to vector<8x32xf32>
    %365 = arith.addf %364, %363 : vector<8x32xf32>
    %366 = arith.divf %364, %365 : vector<8x32xf32>
    %367 = vector.extract_strided_slice %350 {offsets = [0, 64], sizes = [8, 32], strides = [1, 1]} : vector<8x96xf32> to vector<8x32xf32>
    %368 = vector.extract_strided_slice %315 {offsets = [0, 64], sizes = [8, 32], strides = [1, 1]} : vector<8x96xf32> to vector<8x32xf32>
    %369 = vector.broadcast %234 : vector<1x32xf32> to vector<8x32xf32>
    %370 = arith.addf %368, %369 : vector<8x32xf32>
    %371 = arith.mulf %358, %370 : vector<8x32xf32>
    %372 = arith.addf %367, %371 : vector<8x32xf32>
    %373 = math.tanh %372 : vector<8x32xf32>
    %cst_156 = arith.constant 1.000000e+00 : f32
    %374 = vector.broadcast %cst_156 : f32 to vector<8x32xf32>
    %375 = arith.subf %374, %366 : vector<8x32xf32>
    %376 = arith.mulf %375, %373 : vector<8x32xf32>
    %377 = arith.mulf %366, %302 : vector<8x32xf32>
    %378 = arith.addf %376, %377 : vector<8x32xf32>
    %379 = arith.index_cast %c1_i32_143 : i32 to index
    %c0_157 = arith.constant 0 : index
    %c0_158 = arith.constant 0 : index
    %380 = vector.load %arg21[%379, %c0_157, %c0_158] : memref<2x8x32xf32, #tpu.memory_space<vmem>>, vector<1x8x32xf32>
    %381 = vector.shape_cast %380 : vector<1x8x32xf32> to vector<8x32xf32>
    %382 = vector.shape_cast %346 : vector<8x32xf32> to vector<1x8x32xf32>
    tpu.vector_store %arg21[%379, %c0_157, %c0_158], %382 {strides = array<i32>} : memref<2x8x32xf32, #tpu.memory_space<vmem>>, vector<1x8x32xf32>,
    %c1_i32_159 = arith.constant 1 : i32
    %383 = arith.subi %c1_i32_159, %c1_i32_143 : i32
    %384 = arith.index_cast %383 : i32 to index
    %c0_160 = arith.constant 0 : index
    %c0_161 = arith.constant 0 : index
    %385 = vector.load %arg22[%384, %c0_160, %c0_161] : memref<2x8x32xf32, #tpu.memory_space<vmem>>, vector<1x8x32xf32>
    %386 = vector.shape_cast %385 : vector<1x8x32xf32> to vector<8x32xf32>
    %387 = vector.shape_cast %378 : vector<8x32xf32> to vector<1x8x32xf32>
    tpu.vector_store %arg22[%384, %c0_160, %c0_161], %387 {strides = array<i32>} : memref<2x8x32xf32, #tpu.memory_space<vmem>>, vector<1x8x32xf32>,
    %c2_i32_162 = arith.constant 2 : i32
    %c0_163 = arith.constant 0 : index
    %c0_164 = arith.constant 0 : index
    %c0_165 = arith.constant 0 : index
    %388 = vector.load %arg21[%c0_163, %c0_164, %c0_165] : memref<2x8x32xf32, #tpu.memory_space<vmem>>, vector<2x8x32xf32>
    %389 = vector.shape_cast %388 : vector<2x8x32xf32> to vector<16x32xf32>
    %390 = arith.truncf %389 : vector<16x32xf32> to vector<16x32xbf16>
    %c0_166 = arith.constant 0 : index
    %c0_167 = arith.constant 0 : index
    %c0_168 = arith.constant 0 : index
    %391 = vector.load %arg14[%c0_166, %c0_167, %c0_168] : memref<2x32x16xbf16, #tpu.memory_space<vmem>>, vector<1x32x16xbf16>
    %392 = vector.shape_cast %391 : vector<1x32x16xbf16> to vector<32x16xbf16>
    %cst_169 = arith.constant dense<0.000000e+00> : vector<16x16xf32>
    %393 = tpu.matmul %390, %392, %cst_169 {dimension_numbers = #tpu.dot_dimension_numbers<[1], [0], [0], [1], [0, 0, 1, 1], [], []>} : vector<16x32xbf16>, vector<32x16xbf16>, vector<16x16xf32> -> vector<16x16xf32>
    %c0_170 = arith.constant 0 : index
    %c0_171 = arith.constant 0 : index
    %c0_172 = arith.constant 0 : index
    %394 = vector.load %arg22[%c0_170, %c0_171, %c0_172] : memref<2x8x32xf32, #tpu.memory_space<vmem>>, vector<2x8x32xf32>
    %395 = vector.shape_cast %394 : vector<2x8x32xf32> to vector<16x32xf32>
    %396 = arith.truncf %395 : vector<16x32xf32> to vector<16x32xbf16>
    %c1_173 = arith.constant 1 : index
    %c0_174 = arith.constant 0 : index
    %c0_175 = arith.constant 0 : index
    %397 = vector.load %arg14[%c1_173, %c0_174, %c0_175] : memref<2x32x16xbf16, #tpu.memory_space<vmem>>, vector<1x32x16xbf16>
    %398 = vector.shape_cast %397 : vector<1x32x16xbf16> to vector<32x16xbf16>
    %cst_176 = arith.constant dense<0.000000e+00> : vector<16x16xf32>
    %399 = tpu.matmul %396, %398, %cst_176 {dimension_numbers = #tpu.dot_dimension_numbers<[1], [0], [0], [1], [0, 0, 1, 1], [], []>} : vector<16x32xbf16>, vector<32x16xbf16>, vector<16x16xf32> -> vector<16x16xf32>
    %400 = arith.addf %393, %399 : vector<16x16xf32>
    %c0_177 = arith.constant 0 : index
    %c0_178 = arith.constant 0 : index
    %401 = vector.load %arg15[%c0_177, %c0_178] : memref<1x16xf32, #tpu.memory_space<vmem>>, vector<1x16xf32>
    %402 = vector.broadcast %401 : vector<1x16xf32> to vector<16x16xf32>
    %403 = arith.addf %400, %402 : vector<16x16xf32>
    %404 = vector.shape_cast %403 : vector<16x16xf32> to vector<2x8x16xf32>
    %c0_179 = arith.constant 0 : index
    %c0_180 = arith.constant 0 : index
    %c0_181 = arith.constant 0 : index
    %405 = vector.load %arg16[%c0_179, %c0_180, %c0_181] : memref<2x8x16xf32, #tpu.memory_space<vmem>>, vector<2x8x16xf32>
    tpu.vector_store %arg16[%c0_179, %c0_180, %c0_181], %404 {strides = array<i32>} : memref<2x8x16xf32, #tpu.memory_space<vmem>>, vector<2x8x16xf32>,
    return
  }
  func.func @transform_0(%arg0: i32) -> (i32, i32) {
    %c0_i32 = arith.constant 0 : i32
    %c0_i32_0 = arith.constant 0 : i32
    %c0_i32_1 = arith.constant 0 : i32
    return %c0_i32, %c0_i32_0 : i32, i32
  }
  func.func @transform_1(%arg0: i32) -> (i32, i32) {
    %c0_i32 = arith.constant 0 : i32
    %c0_i32_0 = arith.constant 0 : i32
    %c0_i32_1 = arith.constant 0 : i32
    return %c0_i32, %c0_i32_0 : i32, i32
  }
  func.func @transform_2(%arg0: i32) -> (i32, i32) {
    %c0_i32 = arith.constant 0 : i32
    %c0_i32_0 = arith.constant 0 : i32
    %c0_i32_1 = arith.constant 0 : i32
    return %c0_i32, %c0_i32_0 : i32, i32
  }
  func.func @transform_3(%arg0: i32) -> (i32, i32, i32) {
    %c0_i32 = arith.constant 0 : i32
    %c0_i32_0 = arith.constant 0 : i32
    %c0_i32_1 = arith.constant 0 : i32
    %c0_i32_2 = arith.constant 0 : i32
    return %c0_i32, %c0_i32_0, %c0_i32_1 : i32, i32, i32
  }
  func.func @transform_4(%arg0: i32) -> (i32, i32) {
    %c0_i32 = arith.constant 0 : i32
    %c0_i32_0 = arith.constant 0 : i32
    %c0_i32_1 = arith.constant 0 : i32
    return %c0_i32, %c0_i32_0 : i32, i32
  }
  func.func @transform_5(%arg0: i32) -> (i32, i32, i32) {
    %c0_i32 = arith.constant 0 : i32
    %c0_i32_0 = arith.constant 0 : i32
    %c0_i32_1 = arith.constant 0 : i32
    %c0_i32_2 = arith.constant 0 : i32
    return %c0_i32, %c0_i32_0, %c0_i32_1 : i32, i32, i32
  }
  func.func @transform_6(%arg0: i32) -> (i32, i32, i32) {
    %c0_i32 = arith.constant 0 : i32
    %c0_i32_0 = arith.constant 0 : i32
    %c0_i32_1 = arith.constant 0 : i32
    %c0_i32_2 = arith.constant 0 : i32
    return %c0_i32, %c0_i32_0, %c0_i32_1 : i32, i32, i32
  }
  func.func @transform_7(%arg0: i32) -> (i32, i32, i32) {
    %c0_i32 = arith.constant 0 : i32
    %c0_i32_0 = arith.constant 0 : i32
    %c0_i32_1 = arith.constant 0 : i32
    %c0_i32_2 = arith.constant 0 : i32
    return %c0_i32, %c0_i32_0, %c0_i32_1 : i32, i32, i32
  }
  func.func @transform_8(%arg0: i32) -> (i32, i32, i32) {
    %c0_i32 = arith.constant 0 : i32
    %c0_i32_0 = arith.constant 0 : i32
    %c0_i32_1 = arith.constant 0 : i32
    %c0_i32_2 = arith.constant 0 : i32
    return %c0_i32, %c0_i32_0, %c0_i32_1 : i32, i32, i32
  }
  func.func @transform_9(%arg0: i32) -> (i32, i32, i32) {
    %c0_i32 = arith.constant 0 : i32
    %c0_i32_0 = arith.constant 0 : i32
    %c0_i32_1 = arith.constant 0 : i32
    %c0_i32_2 = arith.constant 0 : i32
    return %c0_i32, %c0_i32_0, %c0_i32_1 : i32, i32, i32
  }
  func.func @transform_10(%arg0: i32) -> (i32, i32, i32) {
    %c0_i32 = arith.constant 0 : i32
    %c0_i32_0 = arith.constant 0 : i32
    %c0_i32_1 = arith.constant 0 : i32
    %c0_i32_2 = arith.constant 0 : i32
    return %c0_i32, %c0_i32_0, %c0_i32_1 : i32, i32, i32
  }
  func.func @transform_11(%arg0: i32) -> (i32, i32, i32) {
    %c0_i32 = arith.constant 0 : i32
    %c0_i32_0 = arith.constant 0 : i32
    %c0_i32_1 = arith.constant 0 : i32
    %c0_i32_2 = arith.constant 0 : i32
    return %c0_i32, %c0_i32_0, %c0_i32_1 : i32, i32, i32
  }
  func.func @transform_12(%arg0: i32) -> (i32, i32, i32) {
    %c0_i32 = arith.constant 0 : i32
    %c0_i32_0 = arith.constant 0 : i32
    %c0_i32_1 = arith.constant 0 : i32
    %c0_i32_2 = arith.constant 0 : i32
    return %c0_i32, %c0_i32_0, %c0_i32_1 : i32, i32, i32
  }
  func.func @transform_13(%arg0: i32) -> (i32, i32, i32) {
    %c0_i32 = arith.constant 0 : i32
    %c0_i32_0 = arith.constant 0 : i32
    %c0_i32_1 = arith.constant 0 : i32
    %c0_i32_2 = arith.constant 0 : i32
    return %c0_i32, %c0_i32_0, %c0_i32_1 : i32, i32, i32
  }
  func.func @transform_14(%arg0: i32) -> (i32, i32) {
    %c0_i32 = arith.constant 0 : i32
    %c0_i32_0 = arith.constant 0 : i32
    %c0_i32_1 = arith.constant 0 : i32
    return %c0_i32, %c0_i32_0 : i32, i32
  }
  func.func @transform_15(%arg0: i32) -> (i32, i32, i32) {
    %c0_i32 = arith.constant 0 : i32
    %c0_i32_0 = arith.constant 0 : i32
    %c0_i32_1 = arith.constant 0 : i32
    %c0_i32_2 = arith.constant 0 : i32
    return %c0_i32, %c0_i32_0, %c0_i32_1 : i32, i32, i32
  }
}

</mosaic_0001>

<bundles_post_ra>
// kernel: crnn_forward.1
= control target key start
LH: loop header
LB: loop body
LE: loop exit
PB: predicated region body
PF: predicated region fallthrough
CT: control target
= control target key end

     0   :  { %20 = vsyncpa [#allocation9], 0  ;;  %s17273_s0 = inlined_call_operand.vmem [shape: bf16[32,9216], index: 0, kind: input, shape index: {}]   ;;  %s17274_s1 = inlined_call_operand.hbm [shape: bf16[9216,256], index: 1, kind: input, shape index: {}]   ;;  %s17275_s2 = inlined_call_operand.hbm [shape: f32[1,256], index: 2, kind: input, shape index: {}]   ;;  %s17276_s3 = inlined_call_operand.hbm [shape: bf16[2,256,256], index: 3, kind: input, shape index: {}]   ;;  %s17277_s4 = inlined_call_operand.hbm [shape: f32[1,256], index: 4, kind: input, shape index: {}]   ;;  %s17278_s5 = inlined_call_operand.vmem [shape: bf16[2,256,96], index: 5, kind: input, shape index: {}]   ;;  %s17279_s6 = inlined_call_operand.hbm [shape: f32[2,1,96], index: 6, kind: input, shape index: {}]   ;;  %s17280_s7 = inlined_call_operand.hbm [shape: bf16[2,32,96], index: 7, kind: input, shape index: {}]   ;;  %s17281_s8 = inlined_call_operand.hbm [shape: f32[2,1,32], index: 8, kind: input, shape index: {}]   ;;  %s17282_s9 = inlined_call_operand.hbm [shape: bf16[2,32,96], index: 9, kind: input, shape index: {}]   ;;  %s17283_s10 = inlined_call_operand.hbm [shape: f32[2,1,96], index: 10, kind: input, shape index: {}]   ;;  %s17284_s11 = inlined_call_operand.hbm [shape: bf16[2,32,96], index: 11, kind: input, shape index: {}]   ;;  %s17285_s12 = inlined_call_operand.hbm [shape: f32[2,1,32], index: 12, kind: input, shape index: {}]   ;;  %s17286_s13 = inlined_call_operand.vmem [shape: bf16[2,32,16], index: 13, kind: input, shape index: {}]   ;;  %s17287_s14 = inlined_call_operand.hbm [shape: f32[1,16], index: 14, kind: input, shape index: {}]   ;;  %s17288_s15 = inlined_call_operand.vmem [shape: f32[2,8,16], index: 15, kind: output, shape index: {}]  }
   0x1   :  { %21 = vsyncpa [#allocation11], 0 }
   0x2   :  { %22 = vsyncpa [#allocation14], 0 }
   0x3   :  { %23 = vsyncpa [#allocation17], 0 }
   0x4   :  { %24 = vsyncpa [#allocation20], 0 }
   0x5   :  { %25 = vsyncpa [#allocation23], 0 }
   0x6   :  { %26 = vsyncpa [#allocation26], 0  ;;  %s15941_s18 = smov [#allocation10]   ;;  %s15942_s20 = smov [#allocation13]  }
   0x7   :  { %s47_s19 = sshll.u32 %s15941_s18, 4  ;;  %s69_s21 = sshll.u32 %s15942_s20, 4  ;;  %s48_s19 = int_to_ptr.vmem [resolvable:$true] %s47_s19  ;;  %s70_s21 = int_to_ptr.vmem [resolvable:$true] %s69_s21 }
   0x8   :  { %s15663_s24 = scalar_lea.hbm %s17275_s2, 32 }
   0x9   :  { %p15664_p0 = scmp.ne.s32.totalorder %s17275_s2, %s15663_s24  ;;  %p15667_p1 = scmp.lt.u32.totalorder %s15663_s24, %s17275_s2 }
   0xb   :  { %p15669_p2 = pnand %p15667_p1, %p15664_p0 }
   0xd   :  { %15672 = shalt.err (!%p15669_p2)
}
   0xe   :  { %s15673_s29 = scalar_lea.vmem %s48_s19, 32  ;;  %p15678_p4 = scmp.lt.s32.totalorder %s48_s19, %s48_s19 }
   0xf   :  { %p15674_p3 = scmp.ne.s32.totalorder %s48_s19, %s15673_s29  ;;  %p15679_p5 = scmp.lt.s32.totalorder %s15673_s29, %s15673_s29 }
  0x11   :  { %p15680_p6 = por %p15679_p5, %p15678_p4 }
  0x13   :  { %p15681_p7 = pnand %p15680_p6, %p15674_p3 }
  0x15   :  { %15684 = shalt.err (!%p15681_p7)
}
  0x16   :  { %50 = dma.hbm_to_vmem [thread:$0]  %s17275_s2, 32, %s48_s19, [#allocation11]  }
  0x17   :  { %s15685_s20 = scalar_lea.hbm %s17277_s4, 32 }
  0x18   :  { %p15686_p8 = scmp.ne.s32.totalorder %s17277_s4, %s15685_s20  ;;  %p15689_p9 = scmp.lt.u32.totalorder %s15685_s20, %s17277_s4 }
  0x1a   :  { %p15691_p10 = pnand %p15689_p9, %p15686_p8 }
  0x1c   :  { %15694 = shalt.err (!%p15691_p10)
}
  0x1d   :  { %s15695_s26 = scalar_lea.vmem %s70_s21, 32  ;;  %p15700_p12 = scmp.lt.s32.totalorder %s70_s21, %s70_s21 }
  0x1e   :  { %p15696_p11 = scmp.ne.s32.totalorder %s70_s21, %s15695_s26  ;;  %p15701_p13 = scmp.lt.s32.totalorder %s15695_s26, %s15695_s26 }
  0x20   :  { %p15702_p0 = por %p15701_p13, %p15700_p12 }
  0x22   :  { %p15703_p1 = pnand %p15702_p0, %p15696_p11 }
  0x24   :  { %15706 = shalt.err (!%p15703_p1)
}
  0x25   :  { %72 = dma.hbm_to_vmem [thread:$0]  %s17277_s4, 32, %s70_s21, [#allocation14]  }
  0x26   :  { %s15943_s27 = smov [#allocation16]   ;;  %s15707_s16 = scalar_lea.hbm %s17280_s7, 512 }
  0x27   :  { %s92_s28 = sshll.u32 %s15943_s27, 4  ;;  %p15708_p2 = scmp.ne.s32.totalorder %s17280_s7, %s15707_s16  ;;  %s93_s28 = int_to_ptr.vmem [resolvable:$true] %s92_s28 }
  0x28   :  { %p15711_p3 = scmp.lt.u32.totalorder %s15707_s16, %s17280_s7 }
  0x2a   :  { %p15713_p4 = pnand %p15711_p3, %p15708_p2 }
  0x2c   :  { %15716 = shalt.err (!%p15713_p4)
}
  0x2d   :  { %s15717_s23 = scalar_lea.vmem %s93_s28, 512  ;;  %p15722_p6 = scmp.lt.s32.totalorder %s93_s28, %s93_s28 }
  0x2e   :  { %p15718_p5 = scmp.ne.s32.totalorder %s93_s28, %s15717_s23  ;;  %p15723_p7 = scmp.lt.s32.totalorder %s15717_s23, %s15717_s23 }
  0x30   :  { %p15724_p8 = por %p15723_p7, %p15722_p6 }
  0x32   :  { %p15725_p9 = pnand %p15724_p8, %p15718_p5 }
  0x34   :  { %15728 = shalt.err (!%p15725_p9)
}
  0x35   :  { %s15944_s4 = smov 64   ;;  %s15945_s21 = smov 4  }
  0x36   :  { %98 = dma.hbm_to_vmem [thread:$0]  %s17280_s7, 512, %s93_s28, [#allocation17], %s15944_s4, %s15944_s4, %s15945_s21  }
  0x37   :  { %s15946_s26 = smov [#allocation19]   ;;  %s15947_s19 = smov [#allocation22]  }
  0x38   :  { %s116_s2 = sshll.u32 %s15946_s26, 4  ;;  %s140_s27 = sshll.u32 %s15947_s19, 4  ;;  %s117_s2 = int_to_ptr.vmem [resolvable:$true] %s116_s2  ;;  %s141_s27 = int_to_ptr.vmem [resolvable:$true] %s140_s27 }
  0x39   :  { %s15729_s16 = scalar_lea.hbm %s17282_s9, 512 }
  0x3a   :  { %p15730_p10 = scmp.ne.s32.totalorder %s17282_s9, %s15729_s16  ;;  %p15733_p11 = scmp.lt.u32.totalorder %s15729_s16, %s17282_s9 }
  0x3c   :  { %p15735_p12 = pnand %p15733_p11, %p15730_p10 }
  0x3e   :  { %15738 = shalt.err (!%p15735_p12)
}
  0x3f   :  { %s15739_s7 = scalar_lea.vmem %s117_s2, 512  ;;  %p15744_p0 = scmp.lt.s32.totalorder %s117_s2, %s117_s2 }
  0x40   :  { %p15740_p13 = scmp.ne.s32.totalorder %s117_s2, %s15739_s7  ;;  %p15745_p1 = scmp.lt.s32.totalorder %s15739_s7, %s15739_s7 }
  0x42   :  { %p15746_p2 = por %p15745_p1, %p15744_p0 }
  0x44   :  { %p15747_p3 = pnand %p15746_p2, %p15740_p13 }
  0x46   :  { %15750 = shalt.err (!%p15747_p3)
}
  0x47   :  { %122 = dma.hbm_to_vmem [thread:$0]  %s17282_s9, 512, %s117_s2, [#allocation20], %s15944_s4, %s15944_s4, %s15945_s21  }
  0x48   :  { %s15751_s26 = scalar_lea.hbm %s17284_s11, 512 }
  0x49   :  { %p15752_p4 = scmp.ne.s32.totalorder %s17284_s11, %s15751_s26  ;;  %p15755_p5 = scmp.lt.u32.totalorder %s15751_s26, %s17284_s11 }
  0x4b   :  { %p15757_p6 = pnand %p15755_p5, %p15752_p4 }
  0x4d   :  { %15760 = shalt.err (!%p15757_p6)
}
  0x4e   :  { %s15761_s17 = scalar_lea.vmem %s141_s27, 512  ;;  %p15766_p8 = scmp.lt.s32.totalorder %s141_s27, %s141_s27 }
  0x4f   :  { %p15762_p7 = scmp.ne.s32.totalorder %s141_s27, %s15761_s17  ;;  %p15767_p9 = scmp.lt.s32.totalorder %s15761_s17, %s15761_s17 }
  0x51   :  { %p15768_p10 = por %p15767_p9, %p15766_p8 }
  0x53   :  { %p15769_p11 = pnand %p15768_p10, %p15762_p7 }
  0x55   :  { %15772 = shalt.err (!%p15769_p11)
}
  0x56   :  { %146 = dma.hbm_to_vmem [thread:$0]  %s17284_s11, 512, %s141_s27, [#allocation23], %s15944_s4, %s15944_s4, %s15945_s21  }
  0x57   :  { %s15948_s18 = smov [#allocation8]   ;;  %s15773_s28 = scalar_lea.hbm %s17274_s1, 147456 }
  0x58   :  { %s34_s20 = sshll.u32 %s15948_s18, 4  ;;  %p15774_p12 = scmp.ne.s32.totalorder %s17274_s1, %s15773_s28  ;;  %s35_s20 = int_to_ptr.vmem [resolvable:$true] %s34_s20 }
  0x59   :  { %p15777_p13 = scmp.lt.u32.totalorder %s15773_s28, %s17274_s1 }
  0x5b   :  { %p15779_p0 = pnand %p15777_p13, %p15774_p12 }
  0x5d   :  { %15782 = shalt.err (!%p15779_p0)
}
  0x5e   :  { %s15783_s19 = scalar_lea.vmem %s35_s20, 147456  ;;  %p15788_p2 = scmp.lt.s32.totalorder %s35_s20, %s35_s20 }
  0x5f   :  { %p15784_p1 = scmp.ne.s32.totalorder %s35_s20, %s15783_s19  ;;  %p15789_p3 = scmp.lt.s32.totalorder %s15783_s19, %s15783_s19 }
  0x61   :  { %p15790_p4 = por %p15789_p3, %p15788_p2 }
  0x63   :  { %p15791_p5 = pnand %p15790_p4, %p15784_p1 }
  0x65   :  { %15794 = shalt.err (!%p15791_p5)
}
  0x66   :  { %s15949_s11 = smov 128   ;;  %s15950_s21 = smov 8  }
  0x67   :  { %40 = dma.hbm_to_vmem [thread:$0]  %s17274_s1, 147456, %s35_s20, [#allocation9], %s15949_s11, %s15949_s11, %s15950_s21  }
  0x68   :  { %s15951_s30 = smov [#allocation12]   ;;  %s15952_s17 = smov [#allocation15]  }
  0x69   :  { %s56_s16 = sshll.u32 %s15951_s30, 4  ;;  %s80_s9 = sshll.u32 %s15952_s17, 4  ;;  %s57_s16 = int_to_ptr.vmem [resolvable:$true] %s56_s16  ;;  %s16124_s9 = int_to_ptr.vmem [resolvable:$true] %s80_s9 }
  0x6a   :  { %s15795_s22 = scalar_lea.hbm %s17276_s3, 8192 }
  0x6b   :  { %p15796_p6 = scmp.ne.s32.totalorder %s17276_s3, %s15795_s22  ;;  %p15799_p7 = scmp.lt.u32.totalorder %s15795_s22, %s17276_s3 }
  0x6d   :  { %p15801_p8 = pnand %p15799_p7, %p15796_p6 }
  0x6f   :  { %15804 = shalt.err (!%p15801_p8)
}
  0x70   :  { %s15805_s1 = scalar_lea.vmem %s57_s16, 8192  ;;  %p15810_p10 = scmp.lt.s32.totalorder %s57_s16, %s57_s16 }
  0x71   :  { %p15806_p9 = scmp.ne.s32.totalorder %s57_s16, %s15805_s1  ;;  %p15811_p11 = scmp.lt.s32.totalorder %s15805_s1, %s15805_s1 }
  0x73   :  { %p15812_p12 = por %p15811_p11, %p15810_p10 }
  0x75   :  { %p15813_p13 = pnand %p15812_p12, %p15806_p9 }
  0x77   :  { %15816 = shalt.err (!%p15813_p13)
}
  0x78   :  { %62 = dma.hbm_to_vmem [thread:$0]  %s17276_s3, 8192, %s57_s16, [#allocation11], %s15949_s11, %s15949_s11, %s15950_s21  }
  0x79   :  { %s15817_s27 = scalar_lea.hbm %s17279_s6, 32 }
  0x7a   :  { %p15818_p0 = scmp.ne.s32.totalorder %s17279_s6, %s15817_s27  ;;  %p15821_p1 = scmp.lt.u32.totalorder %s15817_s27, %s17279_s6 }
  0x7c   :  { %p15823_p2 = pnand %p15821_p1, %p15818_p0 }
  0x7e   :  { %15826 = shalt.err (!%p15823_p2)
}
  0x7f   :  { %s15827_s18 = scalar_lea.vmem %s16124_s9, 32  ;;  %p15832_p4 = scmp.lt.s32.totalorder %s16124_s9, %s16124_s9 }
  0x80   :  { %p15828_p3 = scmp.ne.s32.totalorder %s16124_s9, %s15827_s18  ;;  %p15833_p5 = scmp.lt.s32.totalorder %s15827_s18, %s15827_s18 }
  0x82   :  { %p15834_p6 = por %p15833_p5, %p15832_p4 }
  0x84   :  { %p15835_p7 = pnand %p15834_p6, %p15828_p3 }
  0x86   :  { %15838 = shalt.err (!%p15835_p7)
}
  0x87   :  { %s15953_s3 = smov 16   ;;  %s15954_s11 = smov 1  }
  0x88   :  { %86 = dma.hbm_to_vmem [thread:$0]  %s17279_s6, 32, %s16124_s9, [#allocation14], %s15953_s3, %s15953_s3, %s15954_s11  }
  0x89   :  { %s15955_s22 = smov [#allocation18]   ;;  %s15956_s28 = smov [#allocation21]  }
  0x8a   :  { %s104_s7 = sshll.u32 %s15955_s22, 4  ;;  %s128_s23 = sshll.u32 %s15956_s28, 4  ;;  %s105_s7 = int_to_ptr.vmem [resolvable:$true] %s104_s7  ;;  %s16158_s23 = int_to_ptr.vmem [resolvable:$true] %s128_s23 }
  0x8b   :  { %s15839_s20 = scalar_lea.hbm %s17281_s8, 32 }
  0x8c   :  { %p15840_p8 = scmp.ne.s32.totalorder %s17281_s8, %s15839_s20  ;;  %p15843_p9 = scmp.lt.u32.totalorder %s15839_s20, %s17281_s8 }
  0x8e   :  { %p15845_p10 = pnand %p15843_p9, %p15840_p8 }
  0x90   :  { %15848 = shalt.err (!%p15845_p10)
}
  0x91   :  { %s15849_s6 = scalar_lea.vmem %s105_s7, 32  ;;  %p15854_p12 = scmp.lt.s32.totalorder %s105_s7, %s105_s7 }
  0x92   :  { %p15850_p11 = scmp.ne.s32.totalorder %s105_s7, %s15849_s6  ;;  %p15855_p13 = scmp.lt.s32.totalorder %s15849_s6, %s15849_s6 }
  0x94   :  { %p15856_p0 = por %p15855_p13, %p15854_p12 }
  0x96   :  { %p15857_p1 = pnand %p15856_p0, %p15850_p11 }
  0x98   :  { %15860 = shalt.err (!%p15857_p1)
}
  0x99   :  { %110 = dma.hbm_to_vmem [thread:$0]  %s17281_s8, 32, %s105_s7, [#allocation17], %s15953_s3, %s15953_s3, %s15954_s11  }
  0x9a   :  { %s15861_s2 = scalar_lea.hbm %s17283_s10, 32 }
  0x9b   :  { %p15862_p2 = scmp.ne.s32.totalorder %s17283_s10, %s15861_s2  ;;  %p15865_p3 = scmp.lt.u32.totalorder %s15861_s2, %s17283_s10 }
  0x9d   :  { %p15867_p4 = pnand %p15865_p3, %p15862_p2 }
  0x9f   :  { %15870 = shalt.err (!%p15867_p4)
}
  0xa0   :  { %s15871_s28 = scalar_lea.vmem %s16158_s23, 32  ;;  %p15876_p6 = scmp.lt.s32.totalorder %s16158_s23, %s16158_s23 }
  0xa1   :  { %p15872_p5 = scmp.ne.s32.totalorder %s16158_s23, %s15871_s28  ;;  %p15877_p7 = scmp.lt.s32.totalorder %s15871_s28, %s15871_s28 }
  0xa3   :  { %p15878_p8 = por %p15877_p7, %p15876_p6 }
  0xa5   :  { %p15879_p9 = pnand %p15878_p8, %p15872_p5 }
  0xa7   :  { %15882 = shalt.err (!%p15879_p9)
}
  0xa8   :  { %134 = dma.hbm_to_vmem [thread:$0]  %s17283_s10, 32, %s16158_s23, [#allocation20], %s15953_s3, %s15953_s3, %s15954_s11  }
  0xa9   :  { %s15957_s24 = smov [#allocation24]   ;;  %s15958_s20 = smov [#allocation25]  }
  0xaa   :  { %s152_s1 = sshll.u32 %s15957_s24, 4  ;;  %s167_s25 = sshll.u32 %s15958_s20, 4  ;;  %s153_s1 = int_to_ptr.vmem [resolvable:$true] %s152_s1  ;;  %s168_s25 = int_to_ptr.vmem [resolvable:$true] %s167_s25 }
  0xab   :  { %s15883_s27 = scalar_lea.hbm %s17285_s12, 32 }
  0xac   :  { %p15884_p10 = scmp.ne.s32.totalorder %s17285_s12, %s15883_s27  ;;  %p15887_p11 = scmp.lt.u32.totalorder %s15883_s27, %s17285_s12 }
  0xae   :  { %p15889_p12 = pnand %p15887_p11, %p15884_p10 }
  0xb0   :  { %15892 = shalt.err (!%p15889_p12)
}
  0xb1   :  { %s15893_s10 = scalar_lea.vmem %s153_s1, 32  ;;  %p15898_p0 = scmp.lt.s32.totalorder %s153_s1, %s153_s1 }
  0xb2   :  { %p15894_p13 = scmp.ne.s32.totalorder %s153_s1, %s15893_s10  ;;  %p15899_p1 = scmp.lt.s32.totalorder %s15893_s10, %s15893_s10 }
  0xb4   :  { %p15900_p2 = por %p15899_p1, %p15898_p0 }
  0xb6   :  { %p15901_p3 = pnand %p15900_p2, %p15894_p13 }
  0xb8   :  { %15904 = shalt.err (!%p15901_p3)
}
  0xb9   :  { %158 = dma.hbm_to_vmem [thread:$0]  %s17285_s12, 32, %s153_s1, [#allocation23], %s15953_s3, %s15953_s3, %s15954_s11  }
  0xba   :  { %s15905_s21 = scalar_lea.hbm %s17287_s14, 16 }
  0xbb   :  { %p15906_p4 = scmp.ne.s32.totalorder %s17287_s14, %s15905_s21  ;;  %p15909_p5 = scmp.lt.u32.totalorder %s15905_s21, %s17287_s14 }
  0xbd   :  { %p15911_p6 = pnand %p15909_p5, %p15906_p4 }
  0xbf   :  { %15914 = shalt.err (!%p15911_p6)
}
  0xc0   :  { %s15915_s7 = scalar_lea.vmem %s168_s25, 16  ;;  %s15919_s24 = scalar_lea.vmem %s168_s25, 32 }
  0xc1   :  { %p15916_p7 = scmp.ne.s32.totalorder %s168_s25, %s15915_s7  ;;  %p15920_p8 = scmp.lt.s32.totalorder %s168_s25, %s168_s25 }
  0xc2   :  { %p15921_p9 = scmp.lt.s32.totalorder %s15919_s24, %s15915_s7 }
  0xc4   :  { %p15922_p10 = por %p15921_p9, %p15920_p8 }
  0xc6   :  { %p15923_p11 = pnand %p15922_p10, %p15916_p7 }
  0xc8   :  { %15926 = shalt.err (!%p15923_p11)
}
  0xc9   :  { %170 = dma.hbm_to_vmem [thread:$0]  %s17287_s14, 16, %s168_s25, [#allocation26]  }
  0xca   :  { %15927 = dma.done.wait [#allocation9], 147456  }
  0xcb   :  { %15928 = vsyncadd [#allocation9], 4294819840 }
  0xcc   :  { %15929 = dma.done.wait [#allocation11], 8224  }
  0xcd   :  { %15930 = vsyncadd [#allocation11], 4294959072 }
  0xce   :  { %15931 = dma.done.wait [#allocation14], 64  }
  0xcf   :  { %15932 = vsyncadd [#allocation14], 4294967232 }
  0xd0   :  { %15933 = dma.done.wait [#allocation17], 544  }
  0xd1   :  { %15934 = vsyncadd [#allocation17], 4294966752 }
  0xd2   :  { %15935 = dma.done.wait [#allocation20], 544  }
  0xd3   :  { %15936 = vsyncadd [#allocation20], 4294966752 }
  0xd4   :  { %15937 = dma.done.wait [#allocation23], 544  }
  0xd5   :  { %15938 = vsyncadd [#allocation23], 4294966752 }
  0xd6   :  { %15939 = dma.done.wait [#allocation26], 16  }
  0xd7   :  { %15940 = vsyncadd [#allocation26], 4294967280  ;;  %v13743_v0 = vld [vmem:[#allocation8 + $0x4] ss:$8 sps:$4 sm:$0xff]   ;;  %v13747_v2 = vld [vmem:[#allocation8] ss:$8 sps:$4 sm:$0xff]  }
  0xd8   :  { %v13745_v1 = vld [vmem:[#allocation8 + $0x1004] ss:$8 sps:$4 sm:$0xff]   ;;  %7996 = vmatprep.subr.bf16.mxu1 %v13743_v0  ;;  %v13748_v3 = vld [vmem:[#allocation8 + $0x1000] ss:$8 sps:$4 sm:$0xff]   ;;  %v13749_v4 = vld [vmem:[#allocation8 + $0x14] ss:$8 sps:$4 sm:$0xff]  }
  0xd9   :  { %8844 = vmatprep.subr.bf16.mxu0 %v13745_v1  ;;  %7997 = vmatpush1.bf16.msra.mxu1 %v13747_v2  ;;  %v13751_v5 = vld [vmem:[#allocation8 + $0x1014] ss:$8 sps:$4 sm:$0xff]   ;;  %v13753_v6 = vld [vmem:[#allocation8 + $0x10] ss:$8 sps:$4 sm:$0xff]   ;;  %v13755_v8 = vld [vmem:[#allocation8 + $0x24] ss:$8 sps:$4 sm:$0xff]  }
  0xda   :  { %8845 = vmatpush1.bf16.msra.mxu0 %v13748_v3  ;;  %7998 = vmatprep.subr.bf16.mxu1 %v13749_v4  ;;  %v13754_v7 = vld [vmem:[#allocation8 + $0x1010] ss:$8 sps:$4 sm:$0xff]   ;;  %v13757_v9 = vld [vmem:[#allocation8 + $0x1024] ss:$8 sps:$4 sm:$0xff]   ;;  %v13759_v10 = vld [vmem:[#allocation8 + $0x20] ss:$8 sps:$4 sm:$0xff]  }
  0xdb   :  { %8846 = vmatprep.subr.bf16.mxu0 %v13751_v5  ;;  %v13760_v11 = vld [vmem:[#allocation8 + $0x1020] ss:$8 sps:$4 sm:$0xff]   ;;  %v13761_v12 = vld [vmem:[#allocation8 + $0x34] ss:$8 sps:$4 sm:$0xff]   ;;  %v13765_v14 = vld [vmem:[#allocation8 + $0x30] ss:$8 sps:$4 sm:$0xff]  }
  0xdc   :  { %v13763_v13 = vld [vmem:[#allocation8 + $0x1034] ss:$8 sps:$4 sm:$0xff]   ;;  %v13766_v15 = vld [vmem:[#allocation8 + $0x1030] ss:$8 sps:$4 sm:$0xff]   ;;  %v13767_v16 = vld [vmem:[#allocation8 + $0x44] ss:$8 sps:$4 sm:$0xff]  }
  0xdd   :  { %7999 = vmatpush1.bf16.msra.mxu1 %v13753_v6  ;;  %v13769_v17 = vld [vmem:[#allocation8 + $0x1044] ss:$8 sps:$4 sm:$0xff]   ;;  %v13771_v18 = vld [vmem:[#allocation8 + $0x40] ss:$8 sps:$4 sm:$0xff]   ;;  %v13773_v20 = vld [vmem:[#allocation8 + $0x54] ss:$8 sps:$4 sm:$0xff]  }
  0xde   :  { %8847 = vmatpush1.bf16.msra.mxu0 %v13754_v7  ;;  %8000 = vmatprep.subr.bf16.mxu1 %v13755_v8  ;;  %v13772_v19 = vld [vmem:[#allocation8 + $0x1040] ss:$8 sps:$4 sm:$0xff]   ;;  %v13775_v21 = vld [vmem:[#allocation8 + $0x1054] ss:$8 sps:$4 sm:$0xff]   ;;  %v13777_v22 = vld [vmem:[#allocation8 + $0x50] ss:$8 sps:$4 sm:$0xff]  }
  0xdf   :  { %8848 = vmatprep.subr.bf16.mxu0 %v13757_v9  ;;  %v13778_v23 = vld [vmem:[#allocation8 + $0x1050] ss:$8 sps:$4 sm:$0xff]   ;;  %v13779_v24 = vld [vmem:[#allocation8 + $0x64] ss:$8 sps:$4 sm:$0xff]   ;;  %v13783_v26 = vld [vmem:[#allocation8 + $0x60] ss:$8 sps:$4 sm:$0xff]  }
  0xe0   :  { %v13781_v25 = vld [vmem:[#allocation8 + $0x1064] ss:$8 sps:$4 sm:$0xff]   ;;  %v13784_v27 = vld [vmem:[#allocation8 + $0x1060] ss:$8 sps:$4 sm:$0xff]   ;;  %v13785_v28 = vld [vmem:[#allocation8 + $0x74] ss:$8 sps:$4 sm:$0xff]  }
  0xe1   :  { %8001 = vmatpush1.bf16.msra.mxu1 %v13759_v10  ;;  %v13787_v29 = vld [vmem:[#allocation8 + $0x1074] ss:$8 sps:$4 sm:$0xff]   ;;  %v13789_v30 = vld [vmem:[#allocation8 + $0x70] ss:$8 sps:$4 sm:$0xff]   ;;  %v13791_v32 = vld [vmem:[#allocation8 + $0x84] ss:$8 sps:$4 sm:$0xff]  }
  0xe2   :  { %8849 = vmatpush1.bf16.msra.mxu0 %v13760_v11  ;;  %8002 = vmatprep.subr.bf16.mxu1 %v13761_v12  ;;  %v13790_v31 = vld [vmem:[#allocation8 + $0x1070] ss:$8 sps:$4 sm:$0xff]   ;;  %v13793_v33 = vld [vmem:[#allocation8 + $0x1084] ss:$8 sps:$4 sm:$0xff]   ;;  %v13795_v34 = vld [vmem:[#allocation8 + $0x80] ss:$8 sps:$4 sm:$0xff]  }
  0xe3   :  { %8850 = vmatprep.subr.bf16.mxu0 %v13763_v13  ;;  %v13796_v35 = vld [vmem:[#allocation8 + $0x1080] ss:$8 sps:$4 sm:$0xff]   ;;  %v13797_v36 = vld [vmem:[#allocation8 + $0x94] ss:$8 sps:$4 sm:$0xff]   ;;  %v13801_v38 = vld [vmem:[#allocation8 + $0x90] ss:$8 sps:$4 sm:$0xff]  }
  0xe4   :  { %v13799_v37 = vld [vmem:[#allocation8 + $0x1094] ss:$8 sps:$4 sm:$0xff]   ;;  %v13802_v39 = vld [vmem:[#allocation8 + $0x1090] ss:$8 sps:$4 sm:$0xff]   ;;  %v13803_v40 = vld [vmem:[#allocation8 + $0xa4] ss:$8 sps:$4 sm:$0xff]  }
  0xe5   :  { %8003 = vmatpush1.bf16.msra.mxu1 %v13765_v14  ;;  %v13805_v41 = vld [vmem:[#allocation8 + $0x10a4] ss:$8 sps:$4 sm:$0xff]   ;;  %v13807_v42 = vld [vmem:[#allocation8 + $0xa0] ss:$8 sps:$4 sm:$0xff]   ;;  %v13809_v44 = vld [vmem:[#allocation8 + $0xb4] ss:$8 sps:$4 sm:$0xff]  }
  0xe6   :  { %8851 = vmatpush1.bf16.msra.mxu0 %v13766_v15  ;;  %8004 = vmatprep.subr.bf16.mxu1 %v13767_v16  ;;  %v13808_v43 = vld [vmem:[#allocation8 + $0x10a0] ss:$8 sps:$4 sm:$0xff]   ;;  %v13811_v45 = vld [vmem:[#allocation8 + $0x10b4] ss:$8 sps:$4 sm:$0xff]   ;;  %v13813_v46 = vld [vmem:[#allocation8 + $0xb0] ss:$8 sps:$4 sm:$0xff]  }
  0xe7   :  { %8852 = vmatprep.subr.bf16.mxu0 %v13769_v17  ;;  %v13814_v47 = vld [vmem:[#allocation8 + $0x10b0] ss:$8 sps:$4 sm:$0xff]   ;;  %v208_v48 = vld [vmem:[%s17273_s0] sm:$0xff]  ;;  %v13821_v58 = vld [vmem:[#allocation8 + $0xd4] ss:$8 sps:$4 sm:$0xff]   ;;  %vm15960_vm0 = vmmov 0  }
  0xe8   :  { %v244_v49 = vld [vmem:[%s17273_s0 + $0x120] sm:$0xff]  ;;  %v13823_v59 = vld [vmem:[#allocation8 + $0x10d4] ss:$8 sps:$4 sm:$0xff]   ;;  %v13825_v60 = vld [vmem:[#allocation8 + $0xd0] ss:$8 sps:$4 sm:$0xff]   ;;  %vm10581_vm1 = vcmask 785408  }
  0xe9   :  { %8005 = vmatpush1.bf16.msra.mxu1 %v13771_v18  ;;  %v13815_v50 = vld [vmem:[#allocation8 + $0xc4] ss:$8 sps:$4 sm:$0xff]   ;;  %v11785_v52 = vcombine.high %v208_v48, %v244_v49  ;;  %v13819_v56 = vld [vmem:[#allocation8 + $0xc0] ss:$8 sps:$4 sm:$0xff]   ;;  %v13826_v61 = vld [vmem:[#allocation8 + $0x10d0] ss:$8 sps:$4 sm:$0xff]   ;;  %v11784_v8 = vcombine.low %v208_v48, %v244_v49 }
  0xea   :  { %8853 = vmatpush1.bf16.msra.mxu0 %v13772_v19  ;;  %8006 = vmatprep.subr.bf16.mxu1 %v13773_v20  ;;  %v13817_v51 = vld [vmem:[#allocation8 + $0x10c4] ss:$8 sps:$4 sm:$0xff]   ;;  %v13820_v57 = vld [vmem:[#allocation8 + $0x10c0] ss:$8 sps:$4 sm:$0xff]   ;;  %v13833_v2 = vld [vmem:[#allocation8 + $0xf4] ss:$8 sps:$4 sm:$0xff]  }
  0xeb   :  { %8854 = vmatprep.subr.bf16.mxu0 %v13775_v21  ;;  %v224_v53 = vld [vmem:[%s17273_s0 + $0x80] sm:$0xff]  ;;  %8028 = vmatprep.mubr.bf16.mxu1 %v11785_v52  ;;  %v13835_v3 = vld [vmem:[#allocation8 + $0x10f4] ss:$8 sps:$4 sm:$0xff]   ;;  %v13837_v4 = vld [vmem:[#allocation8 + $0xf0] ss:$8 sps:$4 sm:$0xff]   ;;  %vm10788_vm2 = vcmask 261120  }
  0xec   :  { %v260_v54 = vld [vmem:[%s17273_s0 + $0x1a0] sm:$0xff]  ;;  %v13838_v5 = vld [vmem:[#allocation8 + $0x10f0] ss:$8 sps:$4 sm:$0xff]   ;;  %v13847_v12 = vld [vmem:[#allocation8 + $0x114] ss:$8 sps:$4 sm:$0xff]   ;;  %vm11770_vm3 = vcmask 130048  }
  0xed   :  { %8007 = vmatpush1.bf16.msra.mxu1 %v13777_v22  ;;  %v11817_v55 = vcombine.high %v224_v53, %v260_v54  ;;  %v13827_v62 = vld [vmem:[#allocation8 + $0xe4] ss:$8 sps:$4 sm:$0xff]   ;;  %v13831_v0 = vld [vmem:[#allocation8 + $0xe0] ss:$8 sps:$4 sm:$0xff]   ;;  %v11816_v10 = vcombine.low %v224_v53, %v260_v54  ;;  %v13850_v13 = vld [vmem:[#allocation8 + $0x1114] ss:$8 sps:$4 sm:$0xff]  }
  0xee   :  { %8855 = vmatpush1.bf16.msra.mxu0 %v13778_v23  ;;  %8008 = vmatprep.subr.bf16.mxu1 %v13779_v24  ;;  %v13829_v63 = vld [vmem:[#allocation8 + $0x10e4] ss:$8 sps:$4 sm:$0xff]   ;;  %v13832_v1 = vld [vmem:[#allocation8 + $0x10e0] ss:$8 sps:$4 sm:$0xff]   ;;  %v13845_v14 = vld [vmem:[#allocation8 + $0x110] ss:$8 sps:$4 sm:$0xff]  }
  0xef   :  { %8856 = vmatprep.subr.bf16.mxu0 %v13781_v25  ;;  %8876 = vmatprep.mubr.bf16.mxu0 %v11817_v55  ;;  %v13841_v6 = vld [vmem:[#allocation8 + $0x104] ss:$8 sps:$4 sm:$0xff]   ;;  %v13839_v9 = vld [vmem:[#allocation8 + $0x100] ss:$8 sps:$4 sm:$0xff]   ;;  %v13848_v15 = vld [vmem:[#allocation8 + $0x1110] ss:$8 sps:$4 sm:$0xff]  }
  0xf0   :  { %v13844_v7 = vld [vmem:[#allocation8 + $0x1104] ss:$8 sps:$4 sm:$0xff]   ;;  %v13842_v11 = vld [vmem:[#allocation8 + $0x1100] ss:$8 sps:$4 sm:$0xff]   ;;  %v13859_v20 = vld [vmem:[#allocation8 + $0x134] ss:$8 sps:$4 sm:$0xff]  }
  0xf1   :  { %8009 = vmatpush1.bf16.msra.mxu1 %v13783_v26  ;;  %v13853_v16 = vld [vmem:[#allocation8 + $0x124] ss:$8 sps:$4 sm:$0xff]   ;;  %v13851_v18 = vld [vmem:[#allocation8 + $0x120] ss:$8 sps:$4 sm:$0xff]   ;;  %v13862_v21 = vld [vmem:[#allocation8 + $0x1134] ss:$8 sps:$4 sm:$0xff]  }
  0xf2   :  { %8857 = vmatpush1.bf16.msra.mxu0 %v13784_v27  ;;  %8010 = vmatprep.subr.bf16.mxu1 %v13785_v28  ;;  %v13856_v17 = vld [vmem:[#allocation8 + $0x1124] ss:$8 sps:$4 sm:$0xff]   ;;  %v13854_v19 = vld [vmem:[#allocation8 + $0x1120] ss:$8 sps:$4 sm:$0xff]   ;;  %v13857_v22 = vld [vmem:[#allocation8 + $0x130] ss:$8 sps:$4 sm:$0xff]  }
  0xf3   :  { %8858 = vmatprep.subr.bf16.mxu0 %v13787_v29  ;;  %v13860_v23 = vld [vmem:[#allocation8 + $0x1130] ss:$8 sps:$4 sm:$0xff]   ;;  %v13865_v24 = vld [vmem:[#allocation8 + $0x144] ss:$8 sps:$4 sm:$0xff]   ;;  %v13863_v26 = vld [vmem:[#allocation8 + $0x140] ss:$8 sps:$4 sm:$0xff]  }
  0xf4   :  { %v13868_v25 = vld [vmem:[#allocation8 + $0x1144] ss:$8 sps:$4 sm:$0xff]   ;;  %v13866_v27 = vld [vmem:[#allocation8 + $0x1140] ss:$8 sps:$4 sm:$0xff]   ;;  %v13871_v28 = vld [vmem:[#allocation8 + $0x154] ss:$8 sps:$4 sm:$0xff]  }
  0xf5   :  { %8011 = vmatpush1.bf16.msra.mxu1 %v13789_v30  ;;  %v13874_v29 = vld [vmem:[#allocation8 + $0x1154] ss:$8 sps:$4 sm:$0xff]   ;;  %v280_v30 = vld [vmem:[%s17273_s0 + $0x240] sm:$0xff]  ;;  %v16261_v49 = vld [vmem:[%s17273_s0 + $0x88] sm:$0xff] }
  0xf6   :  { %8859 = vmatpush1.bf16.msra.mxu0 %v13790_v31  ;;  %8012 = vmatprep.subr.bf16.mxu1 %v13791_v32  ;;  %v316_v31 = vld [vmem:[%s17273_s0 + $0x360] sm:$0xff]  ;;  %v13869_v32 = vld [vmem:[#allocation8 + $0x150] ss:$8 sps:$4 sm:$0xff]  }
  0xf7   :  { %8860 = vmatprep.subr.bf16.mxu0 %v13793_v33  ;;  %v11857_v33 = vcombine.high %v280_v30, %v316_v31  ;;  %v13884_v52 = vld [vmem:[#allocation8 + $0x1170] ss:$8 sps:$4 sm:$0xff]   ;;  %v13889_v54 = vld [vmem:[#allocation8 + $0x184] ss:$8 sps:$4 sm:$0xff]  }
  0xf8   :  { %v13892_v55 = vld [vmem:[#allocation8 + $0x1184] ss:$8 sps:$4 sm:$0xff]  }
  0xf9   :  { %8013 = vmatpush1.bf16.msra.mxu1 %v13795_v34  ;;  %v13872_v34 = vld [vmem:[#allocation8 + $0x1150] ss:$8 sps:$4 sm:$0xff]  }
  0xfa   :  { %8861 = vmatpush1.bf16.msra.mxu0 %v13796_v35  ;;  %8014 = vmatprep.subr.bf16.mxu1 %v13797_v36  ;;  %v296_v35 = vld [vmem:[%s17273_s0 + $0x2c0] sm:$0xff] }
  0xfb   :  { %8862 = vmatprep.subr.bf16.mxu0 %v13799_v37  ;;  %v332_v36 = vld [vmem:[%s17273_s0 + $0x3e0] sm:$0xff]  ;;  %v11856_v37 = vcombine.low %v280_v30, %v316_v31  ;;  %v13943_v30 = vld [vmem:[#allocation8 + $0x214] ss:$8 sps:$4 sm:$0xff]  }
  0xfc   :  { %v13946_v31 = vld [vmem:[#allocation8 + $0x1214] ss:$8 sps:$4 sm:$0xff]  }
  0xfd   :  { %8015 = vmatpush1.bf16.msra.mxu1 %v13801_v38  ;;  %v13877_v38 = vld [vmem:[#allocation8 + $0x164] ss:$8 sps:$4 sm:$0xff]  }
  0xfe   :  { %8863 = vmatpush1.bf16.msra.mxu0 %v13802_v39  ;;  %8016 = vmatprep.subr.bf16.mxu1 %v13803_v40  ;;  %v11889_v39 = vcombine.high %v296_v35, %v332_v36  ;;  %v11888_v40 = vcombine.low %v296_v35, %v332_v36  ;;  %v13941_v36 = vld [vmem:[#allocation8 + $0x210] ss:$8 sps:$4 sm:$0xff]  }
  0xff   :  { %8864 = vmatprep.subr.bf16.mxu0 %v13805_v41  ;;  %v13880_v41 = vld [vmem:[#allocation8 + $0x1164] ss:$8 sps:$4 sm:$0xff]  }
 0x101   :  { %8017 = vmatpush1.bf16.msra.mxu1 %v13807_v42  ;;  %v13875_v42 = vld [vmem:[#allocation8 + $0x160] ss:$8 sps:$4 sm:$0xff]  }
 0x102   :  { %8865 = vmatpush1.bf16.msra.mxu0 %v13808_v43  ;;  %8018 = vmatprep.subr.bf16.mxu1 %v13809_v44  ;;  %v13878_v43 = vld [vmem:[#allocation8 + $0x1160] ss:$8 sps:$4 sm:$0xff]  }
 0x103   :  { %8866 = vmatprep.subr.bf16.mxu0 %v13811_v45  ;;  %v16249_v44 = vld [vmem:[%s17273_s0 + $0x8] sm:$0xff] }
 0x104   :  { %v16254_v45 = vld [vmem:[%s17273_s0 + $0x128] sm:$0xff] }
 0x105   :  { %8019 = vmatpush1.bf16.msra.mxu1 %v13813_v46  ;;  %v13883_v46 = vld [vmem:[#allocation8 + $0x174] ss:$8 sps:$4 sm:$0xff]   ;;  %v11787_v48 = vcombine.high %v16249_v44, %v16254_v45 }
 0x106   :  { %8867 = vmatpush1.bf16.msra.mxu0 %v13814_v47  ;;  %8020 = vmatprep.subr.bf16.mxu1 %v13815_v50  ;;  %v13886_v47 = vld [vmem:[#allocation8 + $0x1174] ss:$8 sps:$4 sm:$0xff]   ;;  %v16266_v50 = vld [vmem:[%s17273_s0 + $0x1a8] sm:$0xff] }
 0x107   :  { %8868 = vmatprep.subr.bf16.mxu0 %v13817_v51  ;;  %v13881_v51 = vld [vmem:[#allocation8 + $0x170] ss:$8 sps:$4 sm:$0xff]   ;;  %v11819_v53 = vcombine.high %v16261_v49, %v16266_v50 }
 0x109   :  { %8021 = vmatpush1.bf16.msra.mxu1 %v13819_v56  ;;  %v13887_v56 = vld [vmem:[#allocation8 + $0x180] ss:$8 sps:$4 sm:$0xff]  }
 0x10a   :  { %8869 = vmatpush1.bf16.msra.mxu0 %v13820_v57  ;;  %8022 = vmatprep.subr.bf16.mxu1 %v13821_v58  ;;  %v13890_v57 = vld [vmem:[#allocation8 + $0x1180] ss:$8 sps:$4 sm:$0xff]   ;;  %v13895_v58 = vld [vmem:[#allocation8 + $0x194] ss:$8 sps:$4 sm:$0xff]  }
 0x10b   :  { %8870 = vmatprep.subr.bf16.mxu0 %v13823_v59  ;;  %v13898_v59 = vld [vmem:[#allocation8 + $0x1194] ss:$8 sps:$4 sm:$0xff]  }
 0x10d   :  { %8023 = vmatpush1.bf16.msra.mxu1 %v13825_v60  ;;  %v13893_v60 = vld [vmem:[#allocation8 + $0x190] ss:$8 sps:$4 sm:$0xff]  }
 0x10e   :  { %8871 = vmatpush1.bf16.msra.mxu0 %v13826_v61  ;;  %8024 = vmatprep.subr.bf16.mxu1 %v13827_v62  ;;  %v13896_v61 = vld [vmem:[#allocation8 + $0x1190] ss:$8 sps:$4 sm:$0xff]   ;;  %v13901_v62 = vld [vmem:[#allocation8 + $0x1a4] ss:$8 sps:$4 sm:$0xff]  }
 0x10f   :  { %8872 = vmatprep.subr.bf16.mxu0 %v13829_v63  ;;  %v13904_v63 = vld [vmem:[#allocation8 + $0x11a4] ss:$8 sps:$4 sm:$0xff]  }
 0x111   :  { %8025 = vmatpush1.bf16.msra.mxu1 %v13831_v0  ;;  %v13899_v0 = vld [vmem:[#allocation8 + $0x1a0] ss:$8 sps:$4 sm:$0xff]  }
 0x112   :  { %8873 = vmatpush1.bf16.msra.mxu0 %v13832_v1  ;;  %8026 = vmatprep.subr.bf16.mxu1 %v13833_v2  ;;  %v13902_v1 = vld [vmem:[#allocation8 + $0x11a0] ss:$8 sps:$4 sm:$0xff]   ;;  %v13907_v2 = vld [vmem:[#allocation8 + $0x1b4] ss:$8 sps:$4 sm:$0xff]  }
 0x113   :  { %8874 = vmatprep.subr.bf16.mxu0 %v13835_v3  ;;  %v13910_v3 = vld [vmem:[#allocation8 + $0x11b4] ss:$8 sps:$4 sm:$0xff]  }
 0x115   :  { %8027 = vmatpush1.bf16.msra.mxu1 %v13837_v4  ;;  %v13905_v4 = vld [vmem:[#allocation8 + $0x1b0] ss:$8 sps:$4 sm:$0xff]  }
 0x116   :  { %8875 = vmatpush1.bf16.msra.mxu0 %v13838_v5  ;;  %8049 = vmatprep.subr.bf16.mxu1 %v13841_v6  ;;  %v13908_v5 = vld [vmem:[#allocation8 + $0x11b0] ss:$8 sps:$4 sm:$0xff]   ;;  %v13913_v6 = vld [vmem:[#allocation8 + $0x1c4] ss:$8 sps:$4 sm:$0xff]  }
 0x117   :  { %8897 = vmatprep.subr.bf16.mxu0 %v13844_v7  ;;  %v13916_v7 = vld [vmem:[#allocation8 + $0x11c4] ss:$8 sps:$4 sm:$0xff]  }
 0x118   :  { %8029 = vmatmul.mubr.bf16.vlgmr.msra.gmra.mrb[0].mxu1 %v11784_v8  ;;  %v13911_v8 = vld [vmem:[#allocation8 + $0x1c0] ss:$8 sps:$4 sm:$0xff]  }
 0x119   :  { %8877 = vmatmul.mubr.bf16.vlgmr.msra.gmra.mrb[0].mxu0 %v11816_v10  ;;  %8050 = vmatpush1.bf16.msra.mxu1 %v13839_v9  ;;  %v13914_v9 = vld [vmem:[#allocation8 + $0x11c0] ss:$8 sps:$4 sm:$0xff]   ;;  %v13919_v10 = vld [vmem:[#allocation8 + $0x1d4] ss:$8 sps:$4 sm:$0xff]  }
 0x11a   :  { %8898 = vmatpush1.bf16.msra.mxu0 %v13842_v11  ;;  %8051 = vmatprep.subr.bf16.mxu1 %v13847_v12  ;;  %v13922_v11 = vld [vmem:[#allocation8 + $0x11d4] ss:$8 sps:$4 sm:$0xff]   ;;  %v13917_v12 = vld [vmem:[#allocation8 + $0x1d0] ss:$8 sps:$4 sm:$0xff]  }
 0x11b   :  { %8899 = vmatprep.subr.bf16.mxu0 %v13850_v13  ;;  %8038 = vmatprep.mubr.bf16.mxu1 %v11857_v33  ;;  %v13920_v13 = vld [vmem:[#allocation8 + $0x11d0] ss:$8 sps:$4 sm:$0xff]   ;;  %v333_v33 = vld [vmem:[%s17273_s0 + $0x3e8] sm:$0xff] }
 0x11c   :  { %8886 = vmatprep.mubr.bf16.mxu0 %v11889_v39  ;;  %v13952_v39 = vld [vmem:[#allocation8 + $0x1224] ss:$8 sps:$4 sm:$0xff]  }
 0x11d   :  { %8052 = vmatpush1.bf16.msra.mxu1 %v13845_v14  ;;  %v13925_v14 = vld [vmem:[#allocation8 + $0x1e4] ss:$8 sps:$4 sm:$0xff]  }
 0x11e   :  { %8900 = vmatpush1.bf16.msra.mxu0 %v13848_v15  ;;  %8053 = vmatprep.subr.bf16.mxu1 %v13853_v16  ;;  %v13928_v15 = vld [vmem:[#allocation8 + $0x11e4] ss:$8 sps:$4 sm:$0xff]   ;;  %v13923_v16 = vld [vmem:[#allocation8 + $0x1e0] ss:$8 sps:$4 sm:$0xff]  }
 0x11f   :  { %8901 = vmatprep.subr.bf16.mxu0 %v13856_v17  ;;  %v13926_v17 = vld [vmem:[#allocation8 + $0x11e0] ss:$8 sps:$4 sm:$0xff]  }
 0x120   :  { %8039 = vmatmul.mubr.bf16.gmra.mrb[4].mxu1 %v11856_v37  ;;  %v13944_v37 = vld [vmem:[#allocation8 + $0x1210] ss:$8 sps:$4 sm:$0xff]  }
 0x121   :  { %8054 = vmatpush1.bf16.msra.mxu1 %v13851_v18  ;;  %8887 = vmatmul.mubr.bf16.gmra.mrb[4].mxu0 %v11888_v40  ;;  %v13931_v18 = vld [vmem:[#allocation8 + $0x1f4] ss:$8 sps:$4 sm:$0xff]   ;;  %v13947_v40 = vld [vmem:[#allocation8 + $0x220] ss:$8 sps:$4 sm:$0xff]  }
 0x122   :  { %8902 = vmatpush1.bf16.msra.mxu0 %v13854_v19  ;;  %8055 = vmatprep.subr.bf16.mxu1 %v13859_v20  ;;  %v13934_v19 = vld [vmem:[#allocation8 + $0x11f4] ss:$8 sps:$4 sm:$0xff]   ;;  %v13929_v20 = vld [vmem:[#allocation8 + $0x1f0] ss:$8 sps:$4 sm:$0xff]  }
 0x123   :  { %8903 = vmatprep.subr.bf16.mxu0 %v13862_v21  ;;  %8081 = vmatprep.mubr.bf16.mxu1 %v11787_v48  ;;  %v13932_v21 = vld [vmem:[#allocation8 + $0x11f0] ss:$8 sps:$4 sm:$0xff]   ;;  %v13955_v48 = vld [vmem:[#allocation8 + $0x234] ss:$8 sps:$4 sm:$0xff]  }
 0x124   :  { %8929 = vmatprep.mubr.bf16.mxu0 %v11819_v53  ;;  %v13956_v53 = vld [vmem:[#allocation8 + $0x1230] ss:$8 sps:$4 sm:$0xff]  }
 0x125   :  { %8056 = vmatpush1.bf16.msra.mxu1 %v13857_v22  ;;  %v13937_v22 = vld [vmem:[#allocation8 + $0x204] ss:$8 sps:$4 sm:$0xff]  }
 0x126   :  { %8904 = vmatpush1.bf16.msra.mxu0 %v13860_v23  ;;  %8057 = vmatprep.subr.bf16.mxu1 %v13865_v24  ;;  %v13940_v23 = vld [vmem:[#allocation8 + $0x1204] ss:$8 sps:$4 sm:$0xff]   ;;  %v13935_v24 = vld [vmem:[#allocation8 + $0x200] ss:$8 sps:$4 sm:$0xff]  }
 0x127   :  { %8905 = vmatprep.subr.bf16.mxu0 %v13868_v25  ;;  %v13938_v25 = vld [vmem:[#allocation8 + $0x1200] ss:$8 sps:$4 sm:$0xff]  }
 0x129   :  { %8058 = vmatpush1.bf16.msra.mxu1 %v13863_v26  ;;  %v281_v26 = vld [vmem:[%s17273_s0 + $0x248] sm:$0xff] }
 0x12a   :  { %8906 = vmatpush1.bf16.msra.mxu0 %v13866_v27  ;;  %8059 = vmatprep.subr.bf16.mxu1 %v13871_v28  ;;  %v11786_v27 = vcombine.low %v16249_v44, %v16254_v45  ;;  %v11818_v28 = vcombine.low %v16261_v49, %v16266_v50  ;;  %v16294_v45 = vld [vmem:[%s17273_s0 + $0x130] sm:$0xff] }
 0x12b   :  { %8907 = vmatprep.subr.bf16.mxu0 %v13874_v29  ;;  %v317_v29 = vld [vmem:[%s17273_s0 + $0x368] sm:$0xff]  ;;  %v13958_v49 = vld [vmem:[#allocation8 + $0x1234] ss:$8 sps:$4 sm:$0xff]  }
 0x12d   :  { %8060 = vmatpush1.bf16.msra.mxu1 %v13869_v32  ;;  %v297_v32 = vld [vmem:[%s17273_s0 + $0x2c8] sm:$0xff] }
 0x12e   :  { %8908 = vmatpush1.bf16.msra.mxu0 %v13872_v34  ;;  %8061 = vmatprep.subr.bf16.mxu1 %v13877_v38  ;;  %v11859_v34 = vcombine.high %v281_v26, %v317_v29  ;;  %v11891_v35 = vcombine.high %v297_v32, %v333_v33  ;;  %v13949_v38 = vld [vmem:[#allocation8 + $0x224] ss:$8 sps:$4 sm:$0xff]   ;;  %v11890_v44 = vcombine.low %v297_v32, %v333_v33  ;;  %v14019_v32 = vld [vmem:[#allocation8 + $0x2e0] ss:$8 sps:$4 sm:$0xff]  }
 0x12f   :  { %8909 = vmatprep.subr.bf16.mxu0 %v13880_v41  ;;  %v13950_v41 = vld [vmem:[#allocation8 + $0x1220] ss:$8 sps:$4 sm:$0xff]  }
 0x130   :  { %v14022_v33 = vld [vmem:[#allocation8 + $0x12e0] ss:$8 sps:$4 sm:$0xff]  }
 0x131   :  { %8062 = vmatpush1.bf16.msra.mxu1 %v13875_v42  ;;  %v16289_v42 = vld [vmem:[%s17273_s0 + $0x10] sm:$0xff] }
 0x132   :  { %8910 = vmatpush1.bf16.msra.mxu0 %v13878_v43  ;;  %8063 = vmatprep.subr.bf16.mxu1 %v13883_v46  ;;  %v11858_v43 = vcombine.low %v281_v26, %v317_v29  ;;  %v16299_v46 = vld [vmem:[%s17273_s0 + $0x90] sm:$0xff]  ;;  %v11789_v50 = vcombine.high %v16289_v42, %v16294_v45 }
 0x133   :  { %8911 = vmatprep.subr.bf16.mxu0 %v13886_v47  ;;  %v16304_v47 = vld [vmem:[%s17273_s0 + $0x1b0] sm:$0xff] }
 0x134   :  { %v14015_v26 = vld [vmem:[#allocation8 + $0x2d4] ss:$8 sps:$4 sm:$0xff]   ;;  %v14016_v29 = vld [vmem:[#allocation8 + $0x12d0] ss:$8 sps:$4 sm:$0xff]  }
 0x135   :  { %8064 = vmatpush1.bf16.msra.mxu1 %v13881_v51  ;;  %v11821_v51 = vcombine.high %v16299_v46, %v16304_v47 }
 0x136   :  { %8912 = vmatpush1.bf16.msra.mxu0 %v13884_v52  ;;  %8065 = vmatprep.subr.bf16.mxu1 %v13889_v54  ;;  %v13953_v52 = vld [vmem:[#allocation8 + $0x230] ss:$8 sps:$4 sm:$0xff]   ;;  %v13961_v54 = vld [vmem:[#allocation8 + $0x244] ss:$8 sps:$4 sm:$0xff]  }
 0x137   :  { %8913 = vmatprep.subr.bf16.mxu0 %v13892_v55  ;;  %v13964_v55 = vld [vmem:[#allocation8 + $0x1244] ss:$8 sps:$4 sm:$0xff]  }
 0x139   :  { %8066 = vmatpush1.bf16.msra.mxu1 %v13887_v56  ;;  %v13959_v56 = vld [vmem:[#allocation8 + $0x240] ss:$8 sps:$4 sm:$0xff]  }
 0x13a   :  { %8914 = vmatpush1.bf16.msra.mxu0 %v13890_v57  ;;  %8067 = vmatprep.subr.bf16.mxu1 %v13895_v58  ;;  %v13962_v57 = vld [vmem:[#allocation8 + $0x1240] ss:$8 sps:$4 sm:$0xff]   ;;  %v13967_v58 = vld [vmem:[#allocation8 + $0x254] ss:$8 sps:$4 sm:$0xff]  }
 0x13b   :  { %8915 = vmatprep.subr.bf16.mxu0 %v13898_v59  ;;  %v13970_v59 = vld [vmem:[#allocation8 + $0x1254] ss:$8 sps:$4 sm:$0xff]  }
 0x13d   :  { %8068 = vmatpush1.bf16.msra.mxu1 %v13893_v60  ;;  %v13965_v60 = vld [vmem:[#allocation8 + $0x250] ss:$8 sps:$4 sm:$0xff]  }
 0x13e   :  { %8916 = vmatpush1.bf16.msra.mxu0 %v13896_v61  ;;  %8069 = vmatprep.subr.bf16.mxu1 %v13901_v62  ;;  %v13968_v61 = vld [vmem:[#allocation8 + $0x1250] ss:$8 sps:$4 sm:$0xff]   ;;  %v13973_v62 = vld [vmem:[#allocation8 + $0x264] ss:$8 sps:$4 sm:$0xff]  }
 0x13f   :  { %8917 = vmatprep.subr.bf16.mxu0 %v13904_v63  ;;  %v13976_v63 = vld [vmem:[#allocation8 + $0x1264] ss:$8 sps:$4 sm:$0xff]  }
 0x141   :  { %8070 = vmatpush1.bf16.msra.mxu1 %v13899_v0  ;;  %v13971_v0 = vld [vmem:[#allocation8 + $0x260] ss:$8 sps:$4 sm:$0xff]  }
 0x142   :  { %8918 = vmatpush1.bf16.msra.mxu0 %v13902_v1  ;;  %8071 = vmatprep.subr.bf16.mxu1 %v13907_v2  ;;  %v13974_v1 = vld [vmem:[#allocation8 + $0x1260] ss:$8 sps:$4 sm:$0xff]   ;;  %v13979_v2 = vld [vmem:[#allocation8 + $0x274] ss:$8 sps:$4 sm:$0xff]  }
 0x143   :  { %8919 = vmatprep.subr.bf16.mxu0 %v13910_v3  ;;  %v13982_v3 = vld [vmem:[#allocation8 + $0x1274] ss:$8 sps:$4 sm:$0xff]  }
 0x145   :  { %8072 = vmatpush1.bf16.msra.mxu1 %v13905_v4  ;;  %v13977_v4 = vld [vmem:[#allocation8 + $0x270] ss:$8 sps:$4 sm:$0xff]  }
 0x146   :  { %8920 = vmatpush1.bf16.msra.mxu0 %v13908_v5  ;;  %8073 = vmatprep.subr.bf16.mxu1 %v13913_v6  ;;  %v13980_v5 = vld [vmem:[#allocation8 + $0x1270] ss:$8 sps:$4 sm:$0xff]   ;;  %v13985_v6 = vld [vmem:[#allocation8 + $0x284] ss:$8 sps:$4 sm:$0xff]  }
 0x147   :  { %8921 = vmatprep.subr.bf16.mxu0 %v13916_v7  ;;  %v13988_v7 = vld [vmem:[#allocation8 + $0x1284] ss:$8 sps:$4 sm:$0xff]  }
 0x149   :  { %8074 = vmatpush1.bf16.msra.mxu1 %v13911_v8  ;;  %v13983_v8 = vld [vmem:[#allocation8 + $0x280] ss:$8 sps:$4 sm:$0xff]  }
 0x14a   :  { %8922 = vmatpush1.bf16.msra.mxu0 %v13914_v9  ;;  %8075 = vmatprep.subr.bf16.mxu1 %v13919_v10  ;;  %v13986_v9 = vld [vmem:[#allocation8 + $0x1280] ss:$8 sps:$4 sm:$0xff]   ;;  %v13991_v10 = vld [vmem:[#allocation8 + $0x294] ss:$8 sps:$4 sm:$0xff]  }
 0x14b   :  { %8923 = vmatprep.subr.bf16.mxu0 %v13922_v11  ;;  %v13994_v11 = vld [vmem:[#allocation8 + $0x1294] ss:$8 sps:$4 sm:$0xff]  }
 0x14d   :  { %8076 = vmatpush1.bf16.msra.mxu1 %v13917_v12  ;;  %v13989_v12 = vld [vmem:[#allocation8 + $0x290] ss:$8 sps:$4 sm:$0xff]  }
 0x14e   :  { %8924 = vmatpush1.bf16.msra.mxu0 %v13920_v13  ;;  %8077 = vmatprep.subr.bf16.mxu1 %v13925_v14  ;;  %v13992_v13 = vld [vmem:[#allocation8 + $0x1290] ss:$8 sps:$4 sm:$0xff]   ;;  %v13997_v14 = vld [vmem:[#allocation8 + $0x2a4] ss:$8 sps:$4 sm:$0xff]  }
 0x14f   :  { %8925 = vmatprep.subr.bf16.mxu0 %v13928_v15  ;;  %v14000_v15 = vld [vmem:[#allocation8 + $0x12a4] ss:$8 sps:$4 sm:$0xff]  }
 0x151   :  { %8078 = vmatpush1.bf16.msra.mxu1 %v13923_v16  ;;  %v13995_v16 = vld [vmem:[#allocation8 + $0x2a0] ss:$8 sps:$4 sm:$0xff]  }
 0x152   :  { %8926 = vmatpush1.bf16.msra.mxu0 %v13926_v17  ;;  %8079 = vmatprep.subr.bf16.mxu1 %v13931_v18  ;;  %v13998_v17 = vld [vmem:[#allocation8 + $0x12a0] ss:$8 sps:$4 sm:$0xff]   ;;  %v14003_v18 = vld [vmem:[#allocation8 + $0x2b4] ss:$8 sps:$4 sm:$0xff]  }
 0x153   :  { %8927 = vmatprep.subr.bf16.mxu0 %v13934_v19  ;;  %v14006_v19 = vld [vmem:[#allocation8 + $0x12b4] ss:$8 sps:$4 sm:$0xff]  }
 0x155   :  { %8080 = vmatpush1.bf16.msra.mxu1 %v13929_v20  ;;  %v14001_v20 = vld [vmem:[#allocation8 + $0x2b0] ss:$8 sps:$4 sm:$0xff]  }
 0x156   :  { %8928 = vmatpush1.bf16.msra.mxu0 %v13932_v21  ;;  %8102 = vmatprep.subr.bf16.mxu1 %v13937_v22  ;;  %v14004_v21 = vld [vmem:[#allocation8 + $0x12b0] ss:$8 sps:$4 sm:$0xff]   ;;  %v14009_v22 = vld [vmem:[#allocation8 + $0x2c4] ss:$8 sps:$4 sm:$0xff]  }
 0x157   :  { %8950 = vmatprep.subr.bf16.mxu0 %v13940_v23  ;;  %v14012_v23 = vld [vmem:[#allocation8 + $0x12c4] ss:$8 sps:$4 sm:$0xff]  }
 0x158   :  { %8082 = vmatmul.mubr.bf16.vlgmr.msra.gmra.mrb[0].mxu1 %v11786_v27  ;;  %v14018_v27 = vld [vmem:[#allocation8 + $0x12d4] ss:$8 sps:$4 sm:$0xff]  }
 0x159   :  { %8930 = vmatmul.mubr.bf16.vlgmr.msra.gmra.mrb[0].mxu0 %v11818_v28  ;;  %8103 = vmatpush1.bf16.msra.mxu1 %v13935_v24  ;;  %v14007_v24 = vld [vmem:[#allocation8 + $0x2c0] ss:$8 sps:$4 sm:$0xff]   ;;  %v14013_v28 = vld [vmem:[#allocation8 + $0x2d0] ss:$8 sps:$4 sm:$0xff]  }
 0x15a   :  { %8951 = vmatpush1.bf16.msra.mxu0 %v13938_v25  ;;  %8104 = vmatprep.subr.bf16.mxu1 %v13943_v30  ;;  %v14010_v25 = vld [vmem:[#allocation8 + $0x12c0] ss:$8 sps:$4 sm:$0xff]   ;;  %v14021_v30 = vld [vmem:[#allocation8 + $0x2e4] ss:$8 sps:$4 sm:$0xff]  }
 0x15b   :  { %8952 = vmatprep.subr.bf16.mxu0 %v13946_v31  ;;  %8091 = vmatprep.mubr.bf16.mxu1 %v11859_v34  ;;  %v14024_v31 = vld [vmem:[#allocation8 + $0x12e4] ss:$8 sps:$4 sm:$0xff]   ;;  %v14027_v34 = vld [vmem:[#allocation8 + $0x2f4] ss:$8 sps:$4 sm:$0xff]  }
 0x15c   :  { %8939 = vmatprep.mubr.bf16.mxu0 %v11891_v35  ;;  %v14030_v35 = vld [vmem:[#allocation8 + $0x12f4] ss:$8 sps:$4 sm:$0xff]  }
 0x15d   :  { %8105 = vmatpush1.bf16.msra.mxu1 %v13941_v36  ;;  %v14025_v36 = vld [vmem:[#allocation8 + $0x2f0] ss:$8 sps:$4 sm:$0xff]  }
 0x15e   :  { %8953 = vmatpush1.bf16.msra.mxu0 %v13944_v37  ;;  %8106 = vmatprep.subr.bf16.mxu1 %v13949_v38  ;;  %v14028_v37 = vld [vmem:[#allocation8 + $0x12f0] ss:$8 sps:$4 sm:$0xff]   ;;  %v14033_v38 = vld [vmem:[#allocation8 + $0x304] ss:$8 sps:$4 sm:$0xff]  }
 0x15f   :  { %8954 = vmatprep.subr.bf16.mxu0 %v13952_v39  ;;  %v14036_v39 = vld [vmem:[#allocation8 + $0x1304] ss:$8 sps:$4 sm:$0xff]  }
 0x160   :  { %8092 = vmatmul.mubr.bf16.gmra.mrb[4].mxu1 %v11858_v43  ;;  %v282_v43 = vld [vmem:[%s17273_s0 + $0x250] sm:$0xff] }
 0x161   :  { %8940 = vmatmul.mubr.bf16.gmra.mrb[4].mxu0 %v11890_v44  ;;  %8107 = vmatpush1.bf16.msra.mxu1 %v13947_v40  ;;  %v14031_v40 = vld [vmem:[#allocation8 + $0x300] ss:$8 sps:$4 sm:$0xff]   ;;  %v318_v44 = vld [vmem:[%s17273_s0 + $0x370] sm:$0xff] }
 0x162   :  { %8955 = vmatpush1.bf16.msra.mxu0 %v13950_v41  ;;  %8108 = vmatprep.subr.bf16.mxu1 %v13955_v48  ;;  %v14034_v41 = vld [vmem:[#allocation8 + $0x1300] ss:$8 sps:$4 sm:$0xff]   ;;  %v11788_v48 = vcombine.low %v16289_v42, %v16294_v45  ;;  %v14037_v42 = vld [vmem:[#allocation8 + $0x310] ss:$8 sps:$4 sm:$0xff]  }
 0x163   :  { %8956 = vmatprep.subr.bf16.mxu0 %v13958_v49  ;;  %8134 = vmatprep.mubr.bf16.mxu1 %v11789_v50  ;;  %v11820_v49 = vcombine.low %v16299_v46, %v16304_v47  ;;  %v298_v50 = vld [vmem:[%s17273_s0 + $0x2d0] sm:$0xff]  ;;  %v14045_v46 = vld [vmem:[#allocation8 + $0x324] ss:$8 sps:$4 sm:$0xff]  }
 0x164   :  { %8982 = vmatprep.mubr.bf16.mxu0 %v11821_v51  ;;  %v334_v51 = vld [vmem:[%s17273_s0 + $0x3f0] sm:$0xff]  ;;  %v14048_v47 = vld [vmem:[#allocation8 + $0x1324] ss:$8 sps:$4 sm:$0xff]  }
 0x165   :  { %8109 = vmatpush1.bf16.msra.mxu1 %v13953_v52  ;;  %v14039_v52 = vld [vmem:[#allocation8 + $0x314] ss:$8 sps:$4 sm:$0xff]   ;;  %v14040_v45 = vld [vmem:[#allocation8 + $0x1310] ss:$8 sps:$4 sm:$0xff]  }
 0x166   :  { %8957 = vmatpush1.bf16.msra.mxu0 %v13956_v53  ;;  %8110 = vmatprep.subr.bf16.mxu1 %v13961_v54  ;;  %v14042_v53 = vld [vmem:[#allocation8 + $0x1314] ss:$8 sps:$4 sm:$0xff]   ;;  %v11861_v54 = vcombine.high %v282_v43, %v318_v44 }
 0x167   :  { %8958 = vmatprep.subr.bf16.mxu0 %v13964_v55  ;;  %v11893_v55 = vcombine.high %v298_v50, %v334_v51 }
 0x169   :  { %8111 = vmatpush1.bf16.msra.mxu1 %v13959_v56  ;;  %v14043_v56 = vld [vmem:[#allocation8 + $0x320] ss:$8 sps:$4 sm:$0xff]  }
 0x16a   :  { %8959 = vmatpush1.bf16.msra.mxu0 %v13962_v57  ;;  %8112 = vmatprep.subr.bf16.mxu1 %v13967_v58  ;;  %v14046_v57 = vld [vmem:[#allocation8 + $0x1320] ss:$8 sps:$4 sm:$0xff]   ;;  %v16329_v58 = vld [vmem:[%s17273_s0 + $0x18] sm:$0xff] }
 0x16b   :  { %8960 = vmatprep.subr.bf16.mxu0 %v13970_v59  ;;  %v16334_v59 = vld [vmem:[%s17273_s0 + $0x138] sm:$0xff] }
 0x16d   :  { %8113 = vmatpush1.bf16.msra.mxu1 %v13965_v60  ;;  %v11860_v60 = vcombine.low %v282_v43, %v318_v44  ;;  %v14111_v43 = vld [vmem:[#allocation8 + $0x3d4] ss:$8 sps:$4 sm:$0xff]  }
 0x16e   :  { %8961 = vmatpush1.bf16.msra.mxu0 %v13968_v61  ;;  %8114 = vmatprep.subr.bf16.mxu1 %v13973_v62  ;;  %v11892_v61 = vcombine.low %v298_v50, %v334_v51  ;;  %v16339_v62 = vld [vmem:[%s17273_s0 + $0x98] sm:$0xff]  ;;  %v14117_v50 = vld [vmem:[#allocation8 + $0x3e4] ss:$8 sps:$4 sm:$0xff]  }
 0x16f   :  { %8962 = vmatprep.subr.bf16.mxu0 %v13976_v63  ;;  %v16344_v63 = vld [vmem:[%s17273_s0 + $0x1b8] sm:$0xff]  ;;  %v14120_v51 = vld [vmem:[#allocation8 + $0x13e4] ss:$8 sps:$4 sm:$0xff]  }
 0x170   :  { %v14114_v44 = vld [vmem:[#allocation8 + $0x13d4] ss:$8 sps:$4 sm:$0xff]  }
 0x171   :  { %8115 = vmatpush1.bf16.msra.mxu1 %v13971_v0  ;;  %v14051_v0 = vld [vmem:[#allocation8 + $0x334] ss:$8 sps:$4 sm:$0xff]  }
 0x172   :  { %8963 = vmatpush1.bf16.msra.mxu0 %v13974_v1  ;;  %8116 = vmatprep.subr.bf16.mxu1 %v13979_v2  ;;  %v14054_v1 = vld [vmem:[#allocation8 + $0x1334] ss:$8 sps:$4 sm:$0xff]   ;;  %v11791_v2 = vcombine.high %v16329_v58, %v16334_v59 }
 0x173   :  { %8964 = vmatprep.subr.bf16.mxu0 %v13982_v3  ;;  %v11823_v3 = vcombine.high %v16339_v62, %v16344_v63 }
 0x175   :  { %8117 = vmatpush1.bf16.msra.mxu1 %v13977_v4  ;;  %v14049_v4 = vld [vmem:[#allocation8 + $0x330] ss:$8 sps:$4 sm:$0xff]  }
 0x176   :  { %8965 = vmatpush1.bf16.msra.mxu0 %v13980_v5  ;;  %8118 = vmatprep.subr.bf16.mxu1 %v13985_v6  ;;  %v14052_v5 = vld [vmem:[#allocation8 + $0x1330] ss:$8 sps:$4 sm:$0xff]   ;;  %v14057_v6 = vld [vmem:[#allocation8 + $0x344] ss:$8 sps:$4 sm:$0xff]  }
 0x177   :  { %8966 = vmatprep.subr.bf16.mxu0 %v13988_v7  ;;  %v14060_v7 = vld [vmem:[#allocation8 + $0x1344] ss:$8 sps:$4 sm:$0xff]  }
 0x179   :  { %8119 = vmatpush1.bf16.msra.mxu1 %v13983_v8  ;;  %v14055_v8 = vld [vmem:[#allocation8 + $0x340] ss:$8 sps:$4 sm:$0xff]  }
 0x17a   :  { %8967 = vmatpush1.bf16.msra.mxu0 %v13986_v9  ;;  %8120 = vmatprep.subr.bf16.mxu1 %v13991_v10  ;;  %v14058_v9 = vld [vmem:[#allocation8 + $0x1340] ss:$8 sps:$4 sm:$0xff]   ;;  %v14063_v10 = vld [vmem:[#allocation8 + $0x354] ss:$8 sps:$4 sm:$0xff]  }
 0x17b   :  { %8968 = vmatprep.subr.bf16.mxu0 %v13994_v11  ;;  %v14066_v11 = vld [vmem:[#allocation8 + $0x1354] ss:$8 sps:$4 sm:$0xff]  }
 0x17d   :  { %8121 = vmatpush1.bf16.msra.mxu1 %v13989_v12  ;;  %v14061_v12 = vld [vmem:[#allocation8 + $0x350] ss:$8 sps:$4 sm:$0xff]  }
 0x17e   :  { %8969 = vmatpush1.bf16.msra.mxu0 %v13992_v13  ;;  %8122 = vmatprep.subr.bf16.mxu1 %v13997_v14  ;;  %v14064_v13 = vld [vmem:[#allocation8 + $0x1350] ss:$8 sps:$4 sm:$0xff]   ;;  %v14069_v14 = vld [vmem:[#allocation8 + $0x364] ss:$8 sps:$4 sm:$0xff]  }
 0x17f   :  { %8970 = vmatprep.subr.bf16.mxu0 %v14000_v15  ;;  %v14072_v15 = vld [vmem:[#allocation8 + $0x1364] ss:$8 sps:$4 sm:$0xff]  }
 0x181   :  { %8123 = vmatpush1.bf16.msra.mxu1 %v13995_v16  ;;  %v14067_v16 = vld [vmem:[#allocation8 + $0x360] ss:$8 sps:$4 sm:$0xff]  }
 0x182   :  { %8971 = vmatpush1.bf16.msra.mxu0 %v13998_v17  ;;  %8124 = vmatprep.subr.bf16.mxu1 %v14003_v18  ;;  %v14070_v17 = vld [vmem:[#allocation8 + $0x1360] ss:$8 sps:$4 sm:$0xff]   ;;  %v14075_v18 = vld [vmem:[#allocation8 + $0x374] ss:$8 sps:$4 sm:$0xff]  }
 0x183   :  { %8972 = vmatprep.subr.bf16.mxu0 %v14006_v19  ;;  %v14078_v19 = vld [vmem:[#allocation8 + $0x1374] ss:$8 sps:$4 sm:$0xff]  }
 0x185   :  { %8125 = vmatpush1.bf16.msra.mxu1 %v14001_v20  ;;  %v14073_v20 = vld [vmem:[#allocation8 + $0x370] ss:$8 sps:$4 sm:$0xff]  }
 0x186   :  { %8973 = vmatpush1.bf16.msra.mxu0 %v14004_v21  ;;  %8126 = vmatprep.subr.bf16.mxu1 %v14009_v22  ;;  %v14076_v21 = vld [vmem:[#allocation8 + $0x1370] ss:$8 sps:$4 sm:$0xff]   ;;  %v14081_v22 = vld [vmem:[#allocation8 + $0x384] ss:$8 sps:$4 sm:$0xff]  }
 0x187   :  { %8974 = vmatprep.subr.bf16.mxu0 %v14012_v23  ;;  %v14084_v23 = vld [vmem:[#allocation8 + $0x1384] ss:$8 sps:$4 sm:$0xff]  }
 0x189   :  { %8127 = vmatpush1.bf16.msra.mxu1 %v14007_v24  ;;  %v14079_v24 = vld [vmem:[#allocation8 + $0x380] ss:$8 sps:$4 sm:$0xff]  }
 0x18a   :  { %8975 = vmatpush1.bf16.msra.mxu0 %v14010_v25  ;;  %8128 = vmatprep.subr.bf16.mxu1 %v14015_v26  ;;  %v14082_v25 = vld [vmem:[#allocation8 + $0x1380] ss:$8 sps:$4 sm:$0xff]   ;;  %v14087_v26 = vld [vmem:[#allocation8 + $0x394] ss:$8 sps:$4 sm:$0xff]  }
 0x18b   :  { %8976 = vmatprep.subr.bf16.mxu0 %v14018_v27  ;;  %v14090_v27 = vld [vmem:[#allocation8 + $0x1394] ss:$8 sps:$4 sm:$0xff]  }
 0x18d   :  { %8129 = vmatpush1.bf16.msra.mxu1 %v14013_v28  ;;  %v14085_v28 = vld [vmem:[#allocation8 + $0x390] ss:$8 sps:$4 sm:$0xff]  }
 0x18e   :  { %8977 = vmatpush1.bf16.msra.mxu0 %v14016_v29  ;;  %8130 = vmatprep.subr.bf16.mxu1 %v14021_v30  ;;  %v14088_v29 = vld [vmem:[#allocation8 + $0x1390] ss:$8 sps:$4 sm:$0xff]   ;;  %v14093_v30 = vld [vmem:[#allocation8 + $0x3a4] ss:$8 sps:$4 sm:$0xff]  }
 0x18f   :  { %8978 = vmatprep.subr.bf16.mxu0 %v14024_v31  ;;  %v14096_v31 = vld [vmem:[#allocation8 + $0x13a4] ss:$8 sps:$4 sm:$0xff]  }
 0x191   :  { %8131 = vmatpush1.bf16.msra.mxu1 %v14019_v32  ;;  %v14091_v32 = vld [vmem:[#allocation8 + $0x3a0] ss:$8 sps:$4 sm:$0xff]  }
 0x192   :  { %8979 = vmatpush1.bf16.msra.mxu0 %v14022_v33  ;;  %8132 = vmatprep.subr.bf16.mxu1 %v14027_v34  ;;  %v14094_v33 = vld [vmem:[#allocation8 + $0x13a0] ss:$8 sps:$4 sm:$0xff]   ;;  %v14099_v34 = vld [vmem:[#allocation8 + $0x3b4] ss:$8 sps:$4 sm:$0xff]  }
 0x193   :  { %8980 = vmatprep.subr.bf16.mxu0 %v14030_v35  ;;  %v14102_v35 = vld [vmem:[#allocation8 + $0x13b4] ss:$8 sps:$4 sm:$0xff]  }
 0x195   :  { %8133 = vmatpush1.bf16.msra.mxu1 %v14025_v36  ;;  %v14097_v36 = vld [vmem:[#allocation8 + $0x3b0] ss:$8 sps:$4 sm:$0xff]  }
 0x196   :  { %8981 = vmatpush1.bf16.msra.mxu0 %v14028_v37  ;;  %8155 = vmatprep.subr.bf16.mxu1 %v14033_v38  ;;  %v14100_v37 = vld [vmem:[#allocation8 + $0x13b0] ss:$8 sps:$4 sm:$0xff]   ;;  %v14105_v38 = vld [vmem:[#allocation8 + $0x3c4] ss:$8 sps:$4 sm:$0xff]  }
 0x197   :  { %9003 = vmatprep.subr.bf16.mxu0 %v14036_v39  ;;  %v14108_v39 = vld [vmem:[#allocation8 + $0x13c4] ss:$8 sps:$4 sm:$0xff]  }
 0x198   :  { %8135 = vmatmul.mubr.bf16.vlgmr.msra.gmra.mrb[0].mxu1 %v11788_v48  ;;  %v14109_v48 = vld [vmem:[#allocation8 + $0x3d0] ss:$8 sps:$4 sm:$0xff]  }
 0x199   :  { %8983 = vmatmul.mubr.bf16.vlgmr.msra.gmra.mrb[0].mxu0 %v11820_v49  ;;  %8156 = vmatpush1.bf16.msra.mxu1 %v14031_v40  ;;  %v14103_v40 = vld [vmem:[#allocation8 + $0x3c0] ss:$8 sps:$4 sm:$0xff]   ;;  %v14112_v49 = vld [vmem:[#allocation8 + $0x13d0] ss:$8 sps:$4 sm:$0xff]  }
 0x19a   :  { %9004 = vmatpush1.bf16.msra.mxu0 %v14034_v41  ;;  %8157 = vmatprep.subr.bf16.mxu1 %v14039_v52  ;;  %v14106_v41 = vld [vmem:[#allocation8 + $0x13c0] ss:$8 sps:$4 sm:$0xff]  }
 0x19b   :  { %9005 = vmatprep.subr.bf16.mxu0 %v14042_v53  ;;  %8144 = vmatprep.mubr.bf16.mxu1 %v11861_v54  ;;  %v14115_v52 = vld [vmem:[#allocation8 + $0x3e0] ss:$8 sps:$4 sm:$0xff]   ;;  %v14123_v54 = vld [vmem:[#allocation8 + $0x3f4] ss:$8 sps:$4 sm:$0xff]  }
 0x19c   :  { %8992 = vmatprep.mubr.bf16.mxu0 %v11893_v55  ;;  %v14118_v53 = vld [vmem:[#allocation8 + $0x13e0] ss:$8 sps:$4 sm:$0xff]   ;;  %v14126_v55 = vld [vmem:[#allocation8 + $0x13f4] ss:$8 sps:$4 sm:$0xff]  }
 0x19d   :  { %8158 = vmatpush1.bf16.msra.mxu1 %v14037_v42  ;;  %v14121_v42 = vld [vmem:[#allocation8 + $0x3f0] ss:$8 sps:$4 sm:$0xff]  }
 0x19e   :  { %9006 = vmatpush1.bf16.msra.mxu0 %v14040_v45  ;;  %8159 = vmatprep.subr.bf16.mxu1 %v14045_v46  ;;  %v14124_v45 = vld [vmem:[#allocation8 + $0x13f0] ss:$8 sps:$4 sm:$0xff]   ;;  %v14129_v46 = vld [vmem:[#allocation8 + $0x404] ss:$8 sps:$4 sm:$0xff]  }
 0x19f   :  { %9007 = vmatprep.subr.bf16.mxu0 %v14048_v47  ;;  %v14132_v47 = vld [vmem:[#allocation8 + $0x1404] ss:$8 sps:$4 sm:$0xff]  }
 0x1a0   :  { %8145 = vmatmul.mubr.bf16.gmra.mrb[4].mxu1 %v11860_v60  ;;  %v283_v60 = vld [vmem:[%s17273_s0 + $0x258] sm:$0xff] }
 0x1a1   :  { %8993 = vmatmul.mubr.bf16.gmra.mrb[4].mxu0 %v11892_v61  ;;  %8160 = vmatpush1.bf16.msra.mxu1 %v14043_v56  ;;  %v14127_v56 = vld [vmem:[#allocation8 + $0x400] ss:$8 sps:$4 sm:$0xff]   ;;  %v319_v61 = vld [vmem:[%s17273_s0 + $0x378] sm:$0xff] }
 0x1a2   :  { %9008 = vmatpush1.bf16.msra.mxu0 %v14046_v57  ;;  %8161 = vmatprep.subr.bf16.mxu1 %v14051_v0  ;;  %v14130_v57 = vld [vmem:[#allocation8 + $0x1400] ss:$8 sps:$4 sm:$0xff]   ;;  %v11790_v0 = vcombine.low %v16329_v58, %v16334_v59  ;;  %v14133_v58 = vld [vmem:[#allocation8 + $0x410] ss:$8 sps:$4 sm:$0xff]  }
 0x1a3   :  { %9009 = vmatprep.subr.bf16.mxu0 %v14054_v1  ;;  %8187 = vmatprep.mubr.bf16.mxu1 %v11791_v2  ;;  %v11822_v1 = vcombine.low %v16339_v62, %v16344_v63  ;;  %v299_v2 = vld [vmem:[%s17273_s0 + $0x2d8] sm:$0xff]  ;;  %v14141_v62 = vld [vmem:[#allocation8 + $0x424] ss:$8 sps:$4 sm:$0xff]  }
 0x1a4   :  { %9035 = vmatprep.mubr.bf16.mxu0 %v11823_v3  ;;  %v335_v3 = vld [vmem:[%s17273_s0 + $0x3f8] sm:$0xff]  ;;  %v14144_v63 = vld [vmem:[#allocation8 + $0x1424] ss:$8 sps:$4 sm:$0xff]  }
 0x1a5   :  { %8162 = vmatpush1.bf16.msra.mxu1 %v14049_v4  ;;  %v14135_v4 = vld [vmem:[#allocation8 + $0x414] ss:$8 sps:$4 sm:$0xff]   ;;  %v14136_v59 = vld [vmem:[#allocation8 + $0x1410] ss:$8 sps:$4 sm:$0xff]  }
 0x1a6   :  { %9010 = vmatpush1.bf16.msra.mxu0 %v14052_v5  ;;  %8163 = vmatprep.subr.bf16.mxu1 %v14057_v6  ;;  %v14138_v5 = vld [vmem:[#allocation8 + $0x1414] ss:$8 sps:$4 sm:$0xff]   ;;  %v11863_v6 = vcombine.high %v283_v60, %v319_v61 }
 0x1a7   :  { %9011 = vmatprep.subr.bf16.mxu0 %v14060_v7  ;;  %v11895_v7 = vcombine.high %v299_v2, %v335_v3 }
 0x1a9   :  { %8164 = vmatpush1.bf16.msra.mxu1 %v14055_v8  ;;  %v16369_v8 = vld [vmem:[%s17273_s0 + $0x20] sm:$0xff] }
 0x1aa   :  { %9012 = vmatpush1.bf16.msra.mxu0 %v14058_v9  ;;  %8165 = vmatprep.subr.bf16.mxu1 %v14063_v10  ;;  %v16374_v9 = vld [vmem:[%s17273_s0 + $0x140] sm:$0xff] }
 0x1ab   :  { %9013 = vmatprep.subr.bf16.mxu0 %v14066_v11  ;;  %v16379_v10 = vld [vmem:[%s17273_s0 + $0xa0] sm:$0xff]  ;;  %v11862_v11 = vcombine.low %v283_v60, %v319_v61  ;;  %v14207_v60 = vld [vmem:[#allocation8 + $0x4d4] ss:$8 sps:$4 sm:$0xff]  }
 0x1ac   :  { %v14210_v61 = vld [vmem:[#allocation8 + $0x14d4] ss:$8 sps:$4 sm:$0xff]  }
 0x1ad   :  { %8166 = vmatpush1.bf16.msra.mxu1 %v14061_v12  ;;  %v11894_v12 = vcombine.low %v299_v2, %v335_v3  ;;  %v14213_v2 = vld [vmem:[#allocation8 + $0x4e4] ss:$8 sps:$4 sm:$0xff]  }
 0x1ae   :  { %9014 = vmatpush1.bf16.msra.mxu0 %v14064_v13  ;;  %8167 = vmatprep.subr.bf16.mxu1 %v14069_v14  ;;  %v16384_v13 = vld [vmem:[%s17273_s0 + $0x1c0] sm:$0xff] }
 0x1af   :  { %9015 = vmatprep.subr.bf16.mxu0 %v14072_v15  ;;  %v14139_v14 = vld [vmem:[#allocation8 + $0x420] ss:$8 sps:$4 sm:$0xff]   ;;  %v14216_v3 = vld [vmem:[#allocation8 + $0x14e4] ss:$8 sps:$4 sm:$0xff]  }
 0x1b0   :  { %v14142_v15 = vld [vmem:[#allocation8 + $0x1420] ss:$8 sps:$4 sm:$0xff]  }
 0x1b1   :  { %8168 = vmatpush1.bf16.msra.mxu1 %v14067_v16  ;;  %v14147_v16 = vld [vmem:[#allocation8 + $0x434] ss:$8 sps:$4 sm:$0xff]  }
 0x1b2   :  { %9016 = vmatpush1.bf16.msra.mxu0 %v14070_v17  ;;  %8169 = vmatprep.subr.bf16.mxu1 %v14075_v18  ;;  %v14150_v17 = vld [vmem:[#allocation8 + $0x1434] ss:$8 sps:$4 sm:$0xff]   ;;  %v11793_v18 = vcombine.high %v16369_v8, %v16374_v9 }
 0x1b3   :  { %9017 = vmatprep.subr.bf16.mxu0 %v14078_v19  ;;  %v11825_v19 = vcombine.high %v16379_v10, %v16384_v13 }
 0x1b5   :  { %8170 = vmatpush1.bf16.msra.mxu1 %v14073_v20  ;;  %v14145_v20 = vld [vmem:[#allocation8 + $0x430] ss:$8 sps:$4 sm:$0xff]  }
 0x1b6   :  { %9018 = vmatpush1.bf16.msra.mxu0 %v14076_v21  ;;  %8171 = vmatprep.subr.bf16.mxu1 %v14081_v22  ;;  %v14148_v21 = vld [vmem:[#allocation8 + $0x1430] ss:$8 sps:$4 sm:$0xff]   ;;  %v14153_v22 = vld [vmem:[#allocation8 + $0x444] ss:$8 sps:$4 sm:$0xff]  }
 0x1b7   :  { %9019 = vmatprep.subr.bf16.mxu0 %v14084_v23  ;;  %v14156_v23 = vld [vmem:[#allocation8 + $0x1444] ss:$8 sps:$4 sm:$0xff]  }
 0x1b9   :  { %8172 = vmatpush1.bf16.msra.mxu1 %v14079_v24  ;;  %v14151_v24 = vld [vmem:[#allocation8 + $0x440] ss:$8 sps:$4 sm:$0xff]  }
 0x1ba   :  { %9020 = vmatpush1.bf16.msra.mxu0 %v14082_v25  ;;  %8173 = vmatprep.subr.bf16.mxu1 %v14087_v26  ;;  %v14154_v25 = vld [vmem:[#allocation8 + $0x1440] ss:$8 sps:$4 sm:$0xff]   ;;  %v14159_v26 = vld [vmem:[#allocation8 + $0x454] ss:$8 sps:$4 sm:$0xff]  }
 0x1bb   :  { %9021 = vmatprep.subr.bf16.mxu0 %v14090_v27  ;;  %v14162_v27 = vld [vmem:[#allocation8 + $0x1454] ss:$8 sps:$4 sm:$0xff]  }
 0x1bd   :  { %8174 = vmatpush1.bf16.msra.mxu1 %v14085_v28  ;;  %v14157_v28 = vld [vmem:[#allocation8 + $0x450] ss:$8 sps:$4 sm:$0xff]  }
 0x1be   :  { %9022 = vmatpush1.bf16.msra.mxu0 %v14088_v29  ;;  %8175 = vmatprep.subr.bf16.mxu1 %v14093_v30  ;;  %v14160_v29 = vld [vmem:[#allocation8 + $0x1450] ss:$8 sps:$4 sm:$0xff]   ;;  %v14165_v30 = vld [vmem:[#allocation8 + $0x464] ss:$8 sps:$4 sm:$0xff]  }
 0x1bf   :  { %9023 = vmatprep.subr.bf16.mxu0 %v14096_v31  ;;  %v14168_v31 = vld [vmem:[#allocation8 + $0x1464] ss:$8 sps:$4 sm:$0xff]  }
 0x1c1   :  { %8176 = vmatpush1.bf16.msra.mxu1 %v14091_v32  ;;  %v14163_v32 = vld [vmem:[#allocation8 + $0x460] ss:$8 sps:$4 sm:$0xff]  }
 0x1c2   :  { %9024 = vmatpush1.bf16.msra.mxu0 %v14094_v33  ;;  %8177 = vmatprep.subr.bf16.mxu1 %v14099_v34  ;;  %v14166_v33 = vld [vmem:[#allocation8 + $0x1460] ss:$8 sps:$4 sm:$0xff]   ;;  %v14171_v34 = vld [vmem:[#allocation8 + $0x474] ss:$8 sps:$4 sm:$0xff]  }
 0x1c3   :  { %9025 = vmatprep.subr.bf16.mxu0 %v14102_v35  ;;  %v14174_v35 = vld [vmem:[#allocation8 + $0x1474] ss:$8 sps:$4 sm:$0xff]  }
 0x1c5   :  { %8178 = vmatpush1.bf16.msra.mxu1 %v14097_v36  ;;  %v14169_v36 = vld [vmem:[#allocation8 + $0x470] ss:$8 sps:$4 sm:$0xff]  }
 0x1c6   :  { %9026 = vmatpush1.bf16.msra.mxu0 %v14100_v37  ;;  %8179 = vmatprep.subr.bf16.mxu1 %v14105_v38  ;;  %v14172_v37 = vld [vmem:[#allocation8 + $0x1470] ss:$8 sps:$4 sm:$0xff]   ;;  %v14177_v38 = vld [vmem:[#allocation8 + $0x484] ss:$8 sps:$4 sm:$0xff]  }
 0x1c7   :  { %9027 = vmatprep.subr.bf16.mxu0 %v14108_v39  ;;  %v14180_v39 = vld [vmem:[#allocation8 + $0x1484] ss:$8 sps:$4 sm:$0xff]  }
 0x1c9   :  { %8180 = vmatpush1.bf16.msra.mxu1 %v14103_v40  ;;  %v14175_v40 = vld [vmem:[#allocation8 + $0x480] ss:$8 sps:$4 sm:$0xff]  }
 0x1ca   :  { %9028 = vmatpush1.bf16.msra.mxu0 %v14106_v41  ;;  %8181 = vmatprep.subr.bf16.mxu1 %v14111_v43  ;;  %v14178_v41 = vld [vmem:[#allocation8 + $0x1480] ss:$8 sps:$4 sm:$0xff]   ;;  %v14183_v43 = vld [vmem:[#allocation8 + $0x494] ss:$8 sps:$4 sm:$0xff]  }
 0x1cb   :  { %9029 = vmatprep.subr.bf16.mxu0 %v14114_v44  ;;  %v14186_v44 = vld [vmem:[#allocation8 + $0x1494] ss:$8 sps:$4 sm:$0xff]  }
 0x1cd   :  { %8182 = vmatpush1.bf16.msra.mxu1 %v14109_v48  ;;  %v14181_v48 = vld [vmem:[#allocation8 + $0x490] ss:$8 sps:$4 sm:$0xff]  }
 0x1ce   :  { %9030 = vmatpush1.bf16.msra.mxu0 %v14112_v49  ;;  %8183 = vmatprep.subr.bf16.mxu1 %v14117_v50  ;;  %v14184_v49 = vld [vmem:[#allocation8 + $0x1490] ss:$8 sps:$4 sm:$0xff]   ;;  %v14189_v50 = vld [vmem:[#allocation8 + $0x4a4] ss:$8 sps:$4 sm:$0xff]  }
 0x1cf   :  { %9031 = vmatprep.subr.bf16.mxu0 %v14120_v51  ;;  %v14192_v51 = vld [vmem:[#allocation8 + $0x14a4] ss:$8 sps:$4 sm:$0xff]  }
 0x1d1   :  { %8184 = vmatpush1.bf16.msra.mxu1 %v14115_v52  ;;  %v14187_v52 = vld [vmem:[#allocation8 + $0x4a0] ss:$8 sps:$4 sm:$0xff]  }
 0x1d2   :  { %9032 = vmatpush1.bf16.msra.mxu0 %v14118_v53  ;;  %8185 = vmatprep.subr.bf16.mxu1 %v14123_v54  ;;  %v14190_v53 = vld [vmem:[#allocation8 + $0x14a0] ss:$8 sps:$4 sm:$0xff]   ;;  %v14195_v54 = vld [vmem:[#allocation8 + $0x4b4] ss:$8 sps:$4 sm:$0xff]  }
 0x1d3   :  { %9033 = vmatprep.subr.bf16.mxu0 %v14126_v55  ;;  %v14198_v55 = vld [vmem:[#allocation8 + $0x14b4] ss:$8 sps:$4 sm:$0xff]  }
 0x1d5   :  { %8186 = vmatpush1.bf16.msra.mxu1 %v14121_v42  ;;  %v14193_v42 = vld [vmem:[#allocation8 + $0x4b0] ss:$8 sps:$4 sm:$0xff]  }
 0x1d6   :  { %9034 = vmatpush1.bf16.msra.mxu0 %v14124_v45  ;;  %8208 = vmatprep.subr.bf16.mxu1 %v14129_v46  ;;  %v14196_v45 = vld [vmem:[#allocation8 + $0x14b0] ss:$8 sps:$4 sm:$0xff]   ;;  %v14201_v46 = vld [vmem:[#allocation8 + $0x4c4] ss:$8 sps:$4 sm:$0xff]  }
 0x1d7   :  { %9056 = vmatprep.subr.bf16.mxu0 %v14132_v47  ;;  %v14204_v47 = vld [vmem:[#allocation8 + $0x14c4] ss:$8 sps:$4 sm:$0xff]  }
 0x1d8   :  { %8188 = vmatmul.mubr.bf16.vlgmr.msra.gmra.mrb[0].mxu1 %v11790_v0  ;;  %v14205_v0 = vld [vmem:[#allocation8 + $0x4d0] ss:$8 sps:$4 sm:$0xff]  }
 0x1d9   :  { %9036 = vmatmul.mubr.bf16.vlgmr.msra.gmra.mrb[0].mxu0 %v11822_v1  ;;  %8209 = vmatpush1.bf16.msra.mxu1 %v14127_v56  ;;  %v14199_v56 = vld [vmem:[#allocation8 + $0x4c0] ss:$8 sps:$4 sm:$0xff]   ;;  %v14208_v1 = vld [vmem:[#allocation8 + $0x14d0] ss:$8 sps:$4 sm:$0xff]  }
 0x1da   :  { %9057 = vmatpush1.bf16.msra.mxu0 %v14130_v57  ;;  %8210 = vmatprep.subr.bf16.mxu1 %v14135_v4  ;;  %v14202_v57 = vld [vmem:[#allocation8 + $0x14c0] ss:$8 sps:$4 sm:$0xff]  }
 0x1db   :  { %9058 = vmatprep.subr.bf16.mxu0 %v14138_v5  ;;  %8197 = vmatprep.mubr.bf16.mxu1 %v11863_v6  ;;  %v14211_v4 = vld [vmem:[#allocation8 + $0x4e0] ss:$8 sps:$4 sm:$0xff]   ;;  %v14219_v6 = vld [vmem:[#allocation8 + $0x4f4] ss:$8 sps:$4 sm:$0xff]  }
 0x1dc   :  { %9045 = vmatprep.mubr.bf16.mxu0 %v11895_v7  ;;  %v14214_v5 = vld [vmem:[#allocation8 + $0x14e0] ss:$8 sps:$4 sm:$0xff]   ;;  %v14222_v7 = vld [vmem:[#allocation8 + $0x14f4] ss:$8 sps:$4 sm:$0xff]  }
 0x1dd   :  { %8211 = vmatpush1.bf16.msra.mxu1 %v14133_v58  ;;  %v14217_v58 = vld [vmem:[#allocation8 + $0x4f0] ss:$8 sps:$4 sm:$0xff]  }
 0x1de   :  { %9059 = vmatpush1.bf16.msra.mxu0 %v14136_v59  ;;  %8212 = vmatprep.subr.bf16.mxu1 %v14141_v62  ;;  %v14220_v59 = vld [vmem:[#allocation8 + $0x14f0] ss:$8 sps:$4 sm:$0xff]   ;;  %v14225_v62 = vld [vmem:[#allocation8 + $0x504] ss:$8 sps:$4 sm:$0xff]  }
 0x1df   :  { %9060 = vmatprep.subr.bf16.mxu0 %v14144_v63  ;;  %v14228_v63 = vld [vmem:[#allocation8 + $0x1504] ss:$8 sps:$4 sm:$0xff]  }
 0x1e0   :  { %8198 = vmatmul.mubr.bf16.gmra.mrb[4].mxu1 %v11862_v11  ;;  %v284_v11 = vld [vmem:[%s17273_s0 + $0x260] sm:$0xff] }
 0x1e1   :  { %9046 = vmatmul.mubr.bf16.gmra.mrb[4].mxu0 %v11894_v12  ;;  %8213 = vmatpush1.bf16.msra.mxu1 %v14139_v14  ;;  %v320_v12 = vld [vmem:[%s17273_s0 + $0x380] sm:$0xff] }
 0x1e2   :  { %9061 = vmatpush1.bf16.msra.mxu0 %v14142_v15  ;;  %8214 = vmatprep.subr.bf16.mxu1 %v14147_v16  ;;  %v300_v14 = vld [vmem:[%s17273_s0 + $0x2e0] sm:$0xff]  ;;  %v11792_v16 = vcombine.low %v16369_v8, %v16374_v9 }
 0x1e3   :  { %9062 = vmatprep.subr.bf16.mxu0 %v14150_v17  ;;  %8240 = vmatprep.mubr.bf16.mxu1 %v11793_v18  ;;  %v336_v15 = vld [vmem:[%s17273_s0 + $0x400] sm:$0xff]  ;;  %v11824_v17 = vcombine.low %v16379_v10, %v16384_v13  ;;  %v16409_v10 = vld [vmem:[%s17273_s0 + $0x28] sm:$0xff] }
 0x1e4   :  { %9088 = vmatprep.mubr.bf16.mxu0 %v11825_v19  ;;  %v14223_v18 = vld [vmem:[#allocation8 + $0x500] ss:$8 sps:$4 sm:$0xff]   ;;  %v14237_v8 = vld [vmem:[#allocation8 + $0x524] ss:$8 sps:$4 sm:$0xff]  }
 0x1e5   :  { %8215 = vmatpush1.bf16.msra.mxu1 %v14145_v20  ;;  %v14226_v19 = vld [vmem:[#allocation8 + $0x1500] ss:$8 sps:$4 sm:$0xff]   ;;  %v14231_v20 = vld [vmem:[#allocation8 + $0x514] ss:$8 sps:$4 sm:$0xff]   ;;  %v14240_v9 = vld [vmem:[#allocation8 + $0x1524] ss:$8 sps:$4 sm:$0xff]  }
 0x1e6   :  { %9063 = vmatpush1.bf16.msra.mxu0 %v14148_v21  ;;  %8216 = vmatprep.subr.bf16.mxu1 %v14153_v22  ;;  %v14234_v21 = vld [vmem:[#allocation8 + $0x1514] ss:$8 sps:$4 sm:$0xff]   ;;  %v14229_v22 = vld [vmem:[#allocation8 + $0x510] ss:$8 sps:$4 sm:$0xff]   ;;  %v16414_v13 = vld [vmem:[%s17273_s0 + $0x148] sm:$0xff] }
 0x1e7   :  { %9064 = vmatprep.subr.bf16.mxu0 %v14156_v23  ;;  %v14232_v23 = vld [vmem:[#allocation8 + $0x1510] ss:$8 sps:$4 sm:$0xff]  }
 0x1e9   :  { %8217 = vmatpush1.bf16.msra.mxu1 %v14151_v24  ;;  %v11865_v24 = vcombine.high %v284_v11, %v320_v12 }
 0x1ea   :  { %9065 = vmatpush1.bf16.msra.mxu0 %v14154_v25  ;;  %8218 = vmatprep.subr.bf16.mxu1 %v14159_v26  ;;  %v11897_v25 = vcombine.high %v300_v14, %v336_v15  ;;  %v16419_v26 = vld [vmem:[%s17273_s0 + $0xa8] sm:$0xff] }
 0x1eb   :  { %9066 = vmatprep.subr.bf16.mxu0 %v14162_v27  ;;  %v16424_v27 = vld [vmem:[%s17273_s0 + $0x1c8] sm:$0xff] }
 0x1ed   :  { %8219 = vmatpush1.bf16.msra.mxu1 %v14157_v28  ;;  %v11864_v28 = vcombine.low %v284_v11, %v320_v12  ;;  %v14295_v11 = vld [vmem:[#allocation8 + $0x5c0] ss:$8 sps:$4 sm:$0xff]  }
 0x1ee   :  { %9067 = vmatpush1.bf16.msra.mxu0 %v14160_v29  ;;  %8220 = vmatprep.subr.bf16.mxu1 %v14165_v30  ;;  %v11896_v29 = vcombine.low %v300_v14, %v336_v15  ;;  %v14235_v30 = vld [vmem:[#allocation8 + $0x520] ss:$8 sps:$4 sm:$0xff]   ;;  %v14303_v14 = vld [vmem:[#allocation8 + $0x5d4] ss:$8 sps:$4 sm:$0xff]  }
 0x1ef   :  { %9068 = vmatprep.subr.bf16.mxu0 %v14168_v31  ;;  %v14238_v31 = vld [vmem:[#allocation8 + $0x1520] ss:$8 sps:$4 sm:$0xff]   ;;  %v14306_v15 = vld [vmem:[#allocation8 + $0x15d4] ss:$8 sps:$4 sm:$0xff]  }
 0x1f0   :  { %v14298_v12 = vld [vmem:[#allocation8 + $0x15c0] ss:$8 sps:$4 sm:$0xff]  }
 0x1f1   :  { %8221 = vmatpush1.bf16.msra.mxu1 %v14163_v32  ;;  %v14243_v32 = vld [vmem:[#allocation8 + $0x534] ss:$8 sps:$4 sm:$0xff]  }
 0x1f2   :  { %9069 = vmatpush1.bf16.msra.mxu0 %v14166_v33  ;;  %8222 = vmatprep.subr.bf16.mxu1 %v14171_v34  ;;  %v14246_v33 = vld [vmem:[#allocation8 + $0x1534] ss:$8 sps:$4 sm:$0xff]   ;;  %v11795_v34 = vcombine.high %v16409_v10, %v16414_v13 }
 0x1f3   :  { %9070 = vmatprep.subr.bf16.mxu0 %v14174_v35  ;;  %v11827_v35 = vcombine.high %v16419_v26, %v16424_v27 }
 0x1f5   :  { %8223 = vmatpush1.bf16.msra.mxu1 %v14169_v36  ;;  %v14241_v36 = vld [vmem:[#allocation8 + $0x530] ss:$8 sps:$4 sm:$0xff]  }
 0x1f6   :  { %9071 = vmatpush1.bf16.msra.mxu0 %v14172_v37  ;;  %8224 = vmatprep.subr.bf16.mxu1 %v14177_v38  ;;  %v14244_v37 = vld [vmem:[#allocation8 + $0x1530] ss:$8 sps:$4 sm:$0xff]   ;;  %v14249_v38 = vld [vmem:[#allocation8 + $0x544] ss:$8 sps:$4 sm:$0xff]  }
 0x1f7   :  { %9072 = vmatprep.subr.bf16.mxu0 %v14180_v39  ;;  %v14252_v39 = vld [vmem:[#allocation8 + $0x1544] ss:$8 sps:$4 sm:$0xff]  }
 0x1f9   :  { %8225 = vmatpush1.bf16.msra.mxu1 %v14175_v40  ;;  %v14247_v40 = vld [vmem:[#allocation8 + $0x540] ss:$8 sps:$4 sm:$0xff]  }
 0x1fa   :  { %9073 = vmatpush1.bf16.msra.mxu0 %v14178_v41  ;;  %8226 = vmatprep.subr.bf16.mxu1 %v14183_v43  ;;  %v14250_v41 = vld [vmem:[#allocation8 + $0x1540] ss:$8 sps:$4 sm:$0xff]   ;;  %v14255_v43 = vld [vmem:[#allocation8 + $0x554] ss:$8 sps:$4 sm:$0xff]  }
 0x1fb   :  { %9074 = vmatprep.subr.bf16.mxu0 %v14186_v44  ;;  %v14258_v44 = vld [vmem:[#allocation8 + $0x1554] ss:$8 sps:$4 sm:$0xff]  }
 0x1fd   :  { %8227 = vmatpush1.bf16.msra.mxu1 %v14181_v48  ;;  %v14253_v48 = vld [vmem:[#allocation8 + $0x550] ss:$8 sps:$4 sm:$0xff]  }
 0x1fe   :  { %9075 = vmatpush1.bf16.msra.mxu0 %v14184_v49  ;;  %8228 = vmatprep.subr.bf16.mxu1 %v14189_v50  ;;  %v14256_v49 = vld [vmem:[#allocation8 + $0x1550] ss:$8 sps:$4 sm:$0xff]   ;;  %v14261_v50 = vld [vmem:[#allocation8 + $0x564] ss:$8 sps:$4 sm:$0xff]  }
 0x1ff   :  { %9076 = vmatprep.subr.bf16.mxu0 %v14192_v51  ;;  %v14264_v51 = vld [vmem:[#allocation8 + $0x1564] ss:$8 sps:$4 sm:$0xff]  }
 0x201   :  { %8229 = vmatpush1.bf16.msra.mxu1 %v14187_v52  ;;  %v14259_v52 = vld [vmem:[#allocation8 + $0x560] ss:$8 sps:$4 sm:$0xff]  }
 0x202   :  { %9077 = vmatpush1.bf16.msra.mxu0 %v14190_v53  ;;  %8230 = vmatprep.subr.bf16.mxu1 %v14195_v54  ;;  %v14262_v53 = vld [vmem:[#allocation8 + $0x1560] ss:$8 sps:$4 sm:$0xff]   ;;  %v14267_v54 = vld [vmem:[#allocation8 + $0x574] ss:$8 sps:$4 sm:$0xff]  }
 0x203   :  { %9078 = vmatprep.subr.bf16.mxu0 %v14198_v55  ;;  %v14270_v55 = vld [vmem:[#allocation8 + $0x1574] ss:$8 sps:$4 sm:$0xff]  }
 0x205   :  { %8231 = vmatpush1.bf16.msra.mxu1 %v14193_v42  ;;  %v14265_v42 = vld [vmem:[#allocation8 + $0x570] ss:$8 sps:$4 sm:$0xff]  }
 0x206   :  { %9079 = vmatpush1.bf16.msra.mxu0 %v14196_v45  ;;  %8232 = vmatprep.subr.bf16.mxu1 %v14201_v46  ;;  %v14268_v45 = vld [vmem:[#allocation8 + $0x1570] ss:$8 sps:$4 sm:$0xff]   ;;  %v14273_v46 = vld [vmem:[#allocation8 + $0x584] ss:$8 sps:$4 sm:$0xff]  }
 0x207   :  { %9080 = vmatprep.subr.bf16.mxu0 %v14204_v47  ;;  %v14276_v47 = vld [vmem:[#allocation8 + $0x1584] ss:$8 sps:$4 sm:$0xff]  }
 0x209   :  { %8233 = vmatpush1.bf16.msra.mxu1 %v14199_v56  ;;  %v14271_v56 = vld [vmem:[#allocation8 + $0x580] ss:$8 sps:$4 sm:$0xff]  }
 0x20a   :  { %9081 = vmatpush1.bf16.msra.mxu0 %v14202_v57  ;;  %8234 = vmatprep.subr.bf16.mxu1 %v14207_v60  ;;  %v14274_v57 = vld [vmem:[#allocation8 + $0x1580] ss:$8 sps:$4 sm:$0xff]   ;;  %v14279_v60 = vld [vmem:[#allocation8 + $0x594] ss:$8 sps:$4 sm:$0xff]  }
 0x20b   :  { %9082 = vmatprep.subr.bf16.mxu0 %v14210_v61  ;;  %v14282_v61 = vld [vmem:[#allocation8 + $0x1594] ss:$8 sps:$4 sm:$0xff]  }
 0x20d   :  { %8235 = vmatpush1.bf16.msra.mxu1 %v14205_v0  ;;  %v14277_v0 = vld [vmem:[#allocation8 + $0x590] ss:$8 sps:$4 sm:$0xff]  }
 0x20e   :  { %9083 = vmatpush1.bf16.msra.mxu0 %v14208_v1  ;;  %8236 = vmatprep.subr.bf16.mxu1 %v14213_v2  ;;  %v14280_v1 = vld [vmem:[#allocation8 + $0x1590] ss:$8 sps:$4 sm:$0xff]   ;;  %v14285_v2 = vld [vmem:[#allocation8 + $0x5a4] ss:$8 sps:$4 sm:$0xff]  }
 0x20f   :  { %9084 = vmatprep.subr.bf16.mxu0 %v14216_v3  ;;  %v14288_v3 = vld [vmem:[#allocation8 + $0x15a4] ss:$8 sps:$4 sm:$0xff]  }
 0x211   :  { %8237 = vmatpush1.bf16.msra.mxu1 %v14211_v4  ;;  %v14283_v4 = vld [vmem:[#allocation8 + $0x5a0] ss:$8 sps:$4 sm:$0xff]  }
 0x212   :  { %9085 = vmatpush1.bf16.msra.mxu0 %v14214_v5  ;;  %8238 = vmatprep.subr.bf16.mxu1 %v14219_v6  ;;  %v14286_v5 = vld [vmem:[#allocation8 + $0x15a0] ss:$8 sps:$4 sm:$0xff]   ;;  %v14291_v6 = vld [vmem:[#allocation8 + $0x5b4] ss:$8 sps:$4 sm:$0xff]  }
 0x213   :  { %9086 = vmatprep.subr.bf16.mxu0 %v14222_v7  ;;  %v14294_v7 = vld [vmem:[#allocation8 + $0x15b4] ss:$8 sps:$4 sm:$0xff]  }
 0x215   :  { %8239 = vmatpush1.bf16.msra.mxu1 %v14217_v58  ;;  %v14289_v58 = vld [vmem:[#allocation8 + $0x5b0] ss:$8 sps:$4 sm:$0xff]  }
 0x216   :  { %9087 = vmatpush1.bf16.msra.mxu0 %v14220_v59  ;;  %8261 = vmatprep.subr.bf16.mxu1 %v14225_v62  ;;  %v14292_v59 = vld [vmem:[#allocation8 + $0x15b0] ss:$8 sps:$4 sm:$0xff]   ;;  %v14297_v62 = vld [vmem:[#allocation8 + $0x5c4] ss:$8 sps:$4 sm:$0xff]  }
 0x217   :  { %9109 = vmatprep.subr.bf16.mxu0 %v14228_v63  ;;  %v14300_v63 = vld [vmem:[#allocation8 + $0x15c4] ss:$8 sps:$4 sm:$0xff]  }
 0x218   :  { %8241 = vmatmul.mubr.bf16.vlgmr.msra.gmra.mrb[0].mxu1 %v11792_v16  ;;  %v14301_v16 = vld [vmem:[#allocation8 + $0x5d0] ss:$8 sps:$4 sm:$0xff]  }
 0x219   :  { %9089 = vmatmul.mubr.bf16.vlgmr.msra.gmra.mrb[0].mxu0 %v11824_v17  ;;  %8262 = vmatpush1.bf16.msra.mxu1 %v14223_v18  ;;  %v14304_v17 = vld [vmem:[#allocation8 + $0x15d0] ss:$8 sps:$4 sm:$0xff]   ;;  %v14309_v18 = vld [vmem:[#allocation8 + $0x5e4] ss:$8 sps:$4 sm:$0xff]  }
 0x21a   :  { %9110 = vmatpush1.bf16.msra.mxu0 %v14226_v19  ;;  %8263 = vmatprep.subr.bf16.mxu1 %v14231_v20  ;;  %v14312_v19 = vld [vmem:[#allocation8 + $0x15e4] ss:$8 sps:$4 sm:$0xff]   ;;  %v14307_v20 = vld [vmem:[#allocation8 + $0x5e0] ss:$8 sps:$4 sm:$0xff]  }
 0x21b   :  { %9111 = vmatprep.subr.bf16.mxu0 %v14234_v21  ;;  %8250 = vmatprep.mubr.bf16.mxu1 %v11865_v24  ;;  %v14310_v21 = vld [vmem:[#allocation8 + $0x15e0] ss:$8 sps:$4 sm:$0xff]   ;;  %v14313_v24 = vld [vmem:[#allocation8 + $0x5f0] ss:$8 sps:$4 sm:$0xff]  }
 0x21c   :  { %9098 = vmatprep.mubr.bf16.mxu0 %v11897_v25  ;;  %v14316_v25 = vld [vmem:[#allocation8 + $0x15f0] ss:$8 sps:$4 sm:$0xff]  }
 0x21d   :  { %8264 = vmatpush1.bf16.msra.mxu1 %v14229_v22  ;;  %v14315_v22 = vld [vmem:[#allocation8 + $0x5f4] ss:$8 sps:$4 sm:$0xff]  }
 0x21e   :  { %9112 = vmatpush1.bf16.msra.mxu0 %v14232_v23  ;;  %8265 = vmatprep.subr.bf16.mxu1 %v14237_v8  ;;  %v14318_v23 = vld [vmem:[#allocation8 + $0x15f4] ss:$8 sps:$4 sm:$0xff]   ;;  %v14321_v8 = vld [vmem:[#allocation8 + $0x604] ss:$8 sps:$4 sm:$0xff]  }
 0x21f   :  { %9113 = vmatprep.subr.bf16.mxu0 %v14240_v9  ;;  %v14324_v9 = vld [vmem:[#allocation8 + $0x1604] ss:$8 sps:$4 sm:$0xff]  }
 0x220   :  { %8251 = vmatmul.mubr.bf16.gmra.mrb[4].mxu1 %v11864_v28  ;;  %v285_v28 = vld [vmem:[%s17273_s0 + $0x268] sm:$0xff] }
 0x221   :  { %9099 = vmatmul.mubr.bf16.gmra.mrb[4].mxu0 %v11896_v29  ;;  %8266 = vmatpush1.bf16.msra.mxu1 %v14235_v30  ;;  %v321_v29 = vld [vmem:[%s17273_s0 + $0x388] sm:$0xff] }
 0x222   :  { %9114 = vmatpush1.bf16.msra.mxu0 %v14238_v31  ;;  %8267 = vmatprep.subr.bf16.mxu1 %v14243_v32  ;;  %v301_v30 = vld [vmem:[%s17273_s0 + $0x2e8] sm:$0xff]  ;;  %v11794_v32 = vcombine.low %v16409_v10, %v16414_v13 }
 0x223   :  { %9115 = vmatprep.subr.bf16.mxu0 %v14246_v33  ;;  %8293 = vmatprep.mubr.bf16.mxu1 %v11795_v34  ;;  %v337_v31 = vld [vmem:[%s17273_s0 + $0x408] sm:$0xff]  ;;  %v11826_v33 = vcombine.low %v16419_v26, %v16424_v27  ;;  %v16449_v26 = vld [vmem:[%s17273_s0 + $0x30] sm:$0xff] }
 0x224   :  { %9141 = vmatprep.mubr.bf16.mxu0 %v11827_v35  ;;  %v14319_v34 = vld [vmem:[#allocation8 + $0x600] ss:$8 sps:$4 sm:$0xff]   ;;  %v14333_v10 = vld [vmem:[#allocation8 + $0x624] ss:$8 sps:$4 sm:$0xff]   ;;  %v16454_v27 = vld [vmem:[%s17273_s0 + $0x150] sm:$0xff] }
 0x225   :  { %8268 = vmatpush1.bf16.msra.mxu1 %v14241_v36  ;;  %v14322_v35 = vld [vmem:[#allocation8 + $0x1600] ss:$8 sps:$4 sm:$0xff]   ;;  %v14327_v36 = vld [vmem:[#allocation8 + $0x614] ss:$8 sps:$4 sm:$0xff]   ;;  %v14336_v13 = vld [vmem:[#allocation8 + $0x1624] ss:$8 sps:$4 sm:$0xff]  }
 0x226   :  { %9116 = vmatpush1.bf16.msra.mxu0 %v14244_v37  ;;  %8269 = vmatprep.subr.bf16.mxu1 %v14249_v38  ;;  %v14330_v37 = vld [vmem:[#allocation8 + $0x1614] ss:$8 sps:$4 sm:$0xff]   ;;  %v14325_v38 = vld [vmem:[#allocation8 + $0x610] ss:$8 sps:$4 sm:$0xff]  }
 0x227   :  { %9117 = vmatprep.subr.bf16.mxu0 %v14252_v39  ;;  %v14328_v39 = vld [vmem:[#allocation8 + $0x1610] ss:$8 sps:$4 sm:$0xff]  }
 0x229   :  { %8270 = vmatpush1.bf16.msra.mxu1 %v14247_v40  ;;  %v11867_v40 = vcombine.high %v285_v28, %v321_v29 }
 0x22a   :  { %9118 = vmatpush1.bf16.msra.mxu0 %v14250_v41  ;;  %8271 = vmatprep.subr.bf16.mxu1 %v14255_v43  ;;  %v11899_v41 = vcombine.high %v301_v30, %v337_v31  ;;  %v16459_v43 = vld [vmem:[%s17273_s0 + $0xb0] sm:$0xff] }
 0x22b   :  { %9119 = vmatprep.subr.bf16.mxu0 %v14258_v44  ;;  %v16464_v44 = vld [vmem:[%s17273_s0 + $0x1d0] sm:$0xff] }
 0x22d   :  { %8272 = vmatpush1.bf16.msra.mxu1 %v14253_v48  ;;  %v11866_v48 = vcombine.low %v285_v28, %v321_v29  ;;  %v14391_v28 = vld [vmem:[#allocation8 + $0x6c0] ss:$8 sps:$4 sm:$0xff]  }
 0x22e   :  { %9120 = vmatpush1.bf16.msra.mxu0 %v14256_v49  ;;  %8273 = vmatprep.subr.bf16.mxu1 %v14261_v50  ;;  %v11898_v49 = vcombine.low %v301_v30, %v337_v31  ;;  %v14331_v50 = vld [vmem:[#allocation8 + $0x620] ss:$8 sps:$4 sm:$0xff]   ;;  %v14399_v30 = vld [vmem:[#allocation8 + $0x6d4] ss:$8 sps:$4 sm:$0xff]  }
 0x22f   :  { %9121 = vmatprep.subr.bf16.mxu0 %v14264_v51  ;;  %v14334_v51 = vld [vmem:[#allocation8 + $0x1620] ss:$8 sps:$4 sm:$0xff]   ;;  %v14402_v31 = vld [vmem:[#allocation8 + $0x16d4] ss:$8 sps:$4 sm:$0xff]  }
 0x230   :  { %v14394_v29 = vld [vmem:[#allocation8 + $0x16c0] ss:$8 sps:$4 sm:$0xff]  }
 0x231   :  { %8274 = vmatpush1.bf16.msra.mxu1 %v14259_v52  ;;  %v14339_v52 = vld [vmem:[#allocation8 + $0x634] ss:$8 sps:$4 sm:$0xff]  }
 0x232   :  { %9122 = vmatpush1.bf16.msra.mxu0 %v14262_v53  ;;  %8275 = vmatprep.subr.bf16.mxu1 %v14267_v54  ;;  %v14342_v53 = vld [vmem:[#allocation8 + $0x1634] ss:$8 sps:$4 sm:$0xff]   ;;  %v11797_v54 = vcombine.high %v16449_v26, %v16454_v27 }
 0x233   :  { %9123 = vmatprep.subr.bf16.mxu0 %v14270_v55  ;;  %v11829_v55 = vcombine.high %v16459_v43, %v16464_v44 }
 0x235   :  { %8276 = vmatpush1.bf16.msra.mxu1 %v14265_v42  ;;  %v14337_v42 = vld [vmem:[#allocation8 + $0x630] ss:$8 sps:$4 sm:$0xff]  }
 0x236   :  { %9124 = vmatpush1.bf16.msra.mxu0 %v14268_v45  ;;  %8277 = vmatprep.subr.bf16.mxu1 %v14273_v46  ;;  %v14340_v45 = vld [vmem:[#allocation8 + $0x1630] ss:$8 sps:$4 sm:$0xff]   ;;  %v14345_v46 = vld [vmem:[#allocation8 + $0x644] ss:$8 sps:$4 sm:$0xff]  }
 0x237   :  { %9125 = vmatprep.subr.bf16.mxu0 %v14276_v47  ;;  %v14348_v47 = vld [vmem:[#allocation8 + $0x1644] ss:$8 sps:$4 sm:$0xff]  }
 0x239   :  { %8278 = vmatpush1.bf16.msra.mxu1 %v14271_v56  ;;  %v14343_v56 = vld [vmem:[#allocation8 + $0x640] ss:$8 sps:$4 sm:$0xff]  }
 0x23a   :  { %9126 = vmatpush1.bf16.msra.mxu0 %v14274_v57  ;;  %8279 = vmatprep.subr.bf16.mxu1 %v14279_v60  ;;  %v14346_v57 = vld [vmem:[#allocation8 + $0x1640] ss:$8 sps:$4 sm:$0xff]   ;;  %v14351_v60 = vld [vmem:[#allocation8 + $0x654] ss:$8 sps:$4 sm:$0xff]  }
 0x23b   :  { %9127 = vmatprep.subr.bf16.mxu0 %v14282_v61  ;;  %v14354_v61 = vld [vmem:[#allocation8 + $0x1654] ss:$8 sps:$4 sm:$0xff]  }
 0x23d   :  { %8280 = vmatpush1.bf16.msra.mxu1 %v14277_v0  ;;  %v14349_v0 = vld [vmem:[#allocation8 + $0x650] ss:$8 sps:$4 sm:$0xff]  }
 0x23e   :  { %9128 = vmatpush1.bf16.msra.mxu0 %v14280_v1  ;;  %8281 = vmatprep.subr.bf16.mxu1 %v14285_v2  ;;  %v14352_v1 = vld [vmem:[#allocation8 + $0x1650] ss:$8 sps:$4 sm:$0xff]   ;;  %v14357_v2 = vld [vmem:[#allocation8 + $0x664] ss:$8 sps:$4 sm:$0xff]  }
 0x23f   :  { %9129 = vmatprep.subr.bf16.mxu0 %v14288_v3  ;;  %v14360_v3 = vld [vmem:[#allocation8 + $0x1664] ss:$8 sps:$4 sm:$0xff]  }
 0x241   :  { %8282 = vmatpush1.bf16.msra.mxu1 %v14283_v4  ;;  %v14355_v4 = vld [vmem:[#allocation8 + $0x660] ss:$8 sps:$4 sm:$0xff]  }
 0x242   :  { %9130 = vmatpush1.bf16.msra.mxu0 %v14286_v5  ;;  %8283 = vmatprep.subr.bf16.mxu1 %v14291_v6  ;;  %v14358_v5 = vld [vmem:[#allocation8 + $0x1660] ss:$8 sps:$4 sm:$0xff]   ;;  %v14363_v6 = vld [vmem:[#allocation8 + $0x674] ss:$8 sps:$4 sm:$0xff]  }
 0x243   :  { %9131 = vmatprep.subr.bf16.mxu0 %v14294_v7  ;;  %v14366_v7 = vld [vmem:[#allocation8 + $0x1674] ss:$8 sps:$4 sm:$0xff]  }
 0x245   :  { %8284 = vmatpush1.bf16.msra.mxu1 %v14289_v58  ;;  %v14361_v58 = vld [vmem:[#allocation8 + $0x670] ss:$8 sps:$4 sm:$0xff]  }
 0x246   :  { %9132 = vmatpush1.bf16.msra.mxu0 %v14292_v59  ;;  %8285 = vmatprep.subr.bf16.mxu1 %v14297_v62  ;;  %v14364_v59 = vld [vmem:[#allocation8 + $0x1670] ss:$8 sps:$4 sm:$0xff]   ;;  %v14369_v62 = vld [vmem:[#allocation8 + $0x684] ss:$8 sps:$4 sm:$0xff]  }
 0x247   :  { %9133 = vmatprep.subr.bf16.mxu0 %v14300_v63  ;;  %v14372_v63 = vld [vmem:[#allocation8 + $0x1684] ss:$8 sps:$4 sm:$0xff]  }
 0x249   :  { %8286 = vmatpush1.bf16.msra.mxu1 %v14295_v11  ;;  %v14367_v11 = vld [vmem:[#allocation8 + $0x680] ss:$8 sps:$4 sm:$0xff]  }
 0x24a   :  { %9134 = vmatpush1.bf16.msra.mxu0 %v14298_v12  ;;  %8287 = vmatprep.subr.bf16.mxu1 %v14303_v14  ;;  %v14370_v12 = vld [vmem:[#allocation8 + $0x1680] ss:$8 sps:$4 sm:$0xff]   ;;  %v14375_v14 = vld [vmem:[#allocation8 + $0x694] ss:$8 sps:$4 sm:$0xff]  }
 0x24b   :  { %9135 = vmatprep.subr.bf16.mxu0 %v14306_v15  ;;  %v14378_v15 = vld [vmem:[#allocation8 + $0x1694] ss:$8 sps:$4 sm:$0xff]  }
 0x24d   :  { %8288 = vmatpush1.bf16.msra.mxu1 %v14301_v16  ;;  %v14373_v16 = vld [vmem:[#allocation8 + $0x690] ss:$8 sps:$4 sm:$0xff]  }
 0x24e   :  { %9136 = vmatpush1.bf16.msra.mxu0 %v14304_v17  ;;  %8289 = vmatprep.subr.bf16.mxu1 %v14309_v18  ;;  %v14376_v17 = vld [vmem:[#allocation8 + $0x1690] ss:$8 sps:$4 sm:$0xff]   ;;  %v14381_v18 = vld [vmem:[#allocation8 + $0x6a4] ss:$8 sps:$4 sm:$0xff]  }
 0x24f   :  { %9137 = vmatprep.subr.bf16.mxu0 %v14312_v19  ;;  %v14384_v19 = vld [vmem:[#allocation8 + $0x16a4] ss:$8 sps:$4 sm:$0xff]  }
 0x251   :  { %8290 = vmatpush1.bf16.msra.mxu1 %v14307_v20  ;;  %v14379_v20 = vld [vmem:[#allocation8 + $0x6a0] ss:$8 sps:$4 sm:$0xff]  }
 0x252   :  { %9138 = vmatpush1.bf16.msra.mxu0 %v14310_v21  ;;  %8291 = vmatprep.subr.bf16.mxu1 %v14315_v22  ;;  %v14382_v21 = vld [vmem:[#allocation8 + $0x16a0] ss:$8 sps:$4 sm:$0xff]   ;;  %v14387_v22 = vld [vmem:[#allocation8 + $0x6b4] ss:$8 sps:$4 sm:$0xff]  }
 0x253   :  { %9139 = vmatprep.subr.bf16.mxu0 %v14318_v23  ;;  %v14390_v23 = vld [vmem:[#allocation8 + $0x16b4] ss:$8 sps:$4 sm:$0xff]  }
 0x255   :  { %8292 = vmatpush1.bf16.msra.mxu1 %v14313_v24  ;;  %v14385_v24 = vld [vmem:[#allocation8 + $0x6b0] ss:$8 sps:$4 sm:$0xff]  }
 0x256   :  { %9140 = vmatpush1.bf16.msra.mxu0 %v14316_v25  ;;  %8314 = vmatprep.subr.bf16.mxu1 %v14321_v8  ;;  %v14388_v25 = vld [vmem:[#allocation8 + $0x16b0] ss:$8 sps:$4 sm:$0xff]   ;;  %v14393_v8 = vld [vmem:[#allocation8 + $0x6c4] ss:$8 sps:$4 sm:$0xff]  }
 0x257   :  { %9162 = vmatprep.subr.bf16.mxu0 %v14324_v9  ;;  %v14396_v9 = vld [vmem:[#allocation8 + $0x16c4] ss:$8 sps:$4 sm:$0xff]  }
 0x258   :  { %8294 = vmatmul.mubr.bf16.vlgmr.msra.gmra.mrb[0].mxu1 %v11794_v32  ;;  %v14397_v32 = vld [vmem:[#allocation8 + $0x6d0] ss:$8 sps:$4 sm:$0xff]  }
 0x259   :  { %9142 = vmatmul.mubr.bf16.vlgmr.msra.gmra.mrb[0].mxu0 %v11826_v33  ;;  %8315 = vmatpush1.bf16.msra.mxu1 %v14319_v34  ;;  %v14400_v33 = vld [vmem:[#allocation8 + $0x16d0] ss:$8 sps:$4 sm:$0xff]   ;;  %v14405_v34 = vld [vmem:[#allocation8 + $0x6e4] ss:$8 sps:$4 sm:$0xff]  }
 0x25a   :  { %9163 = vmatpush1.bf16.msra.mxu0 %v14322_v35  ;;  %8316 = vmatprep.subr.bf16.mxu1 %v14327_v36  ;;  %v14408_v35 = vld [vmem:[#allocation8 + $0x16e4] ss:$8 sps:$4 sm:$0xff]   ;;  %v14403_v36 = vld [vmem:[#allocation8 + $0x6e0] ss:$8 sps:$4 sm:$0xff]  }
 0x25b   :  { %9164 = vmatprep.subr.bf16.mxu0 %v14330_v37  ;;  %8303 = vmatprep.mubr.bf16.mxu1 %v11867_v40  ;;  %v14406_v37 = vld [vmem:[#allocation8 + $0x16e0] ss:$8 sps:$4 sm:$0xff]   ;;  %v14409_v40 = vld [vmem:[#allocation8 + $0x6f0] ss:$8 sps:$4 sm:$0xff]  }
 0x25c   :  { %9151 = vmatprep.mubr.bf16.mxu0 %v11899_v41  ;;  %v14412_v41 = vld [vmem:[#allocation8 + $0x16f0] ss:$8 sps:$4 sm:$0xff]  }
 0x25d   :  { %8317 = vmatpush1.bf16.msra.mxu1 %v14325_v38  ;;  %v14411_v38 = vld [vmem:[#allocation8 + $0x6f4] ss:$8 sps:$4 sm:$0xff]  }
 0x25e   :  { %9165 = vmatpush1.bf16.msra.mxu0 %v14328_v39  ;;  %8318 = vmatprep.subr.bf16.mxu1 %v14333_v10  ;;  %v14414_v39 = vld [vmem:[#allocation8 + $0x16f4] ss:$8 sps:$4 sm:$0xff]   ;;  %v14417_v10 = vld [vmem:[#allocation8 + $0x704] ss:$8 sps:$4 sm:$0xff]  }
 0x25f   :  { %9166 = vmatprep.subr.bf16.mxu0 %v14336_v13  ;;  %v14420_v13 = vld [vmem:[#allocation8 + $0x1704] ss:$8 sps:$4 sm:$0xff]  }
 0x260   :  { %8304 = vmatmul.mubr.bf16.gmra.mrb[4].mxu1 %v11866_v48  ;;  %v286_v48 = vld [vmem:[%s17273_s0 + $0x270] sm:$0xff] }
 0x261   :  { %9152 = vmatmul.mubr.bf16.gmra.mrb[4].mxu0 %v11898_v49  ;;  %8319 = vmatpush1.bf16.msra.mxu1 %v14331_v50  ;;  %v322_v49 = vld [vmem:[%s17273_s0 + $0x390] sm:$0xff] }
 0x262   :  { %9167 = vmatpush1.bf16.msra.mxu0 %v14334_v51  ;;  %8320 = vmatprep.subr.bf16.mxu1 %v14339_v52  ;;  %v302_v50 = vld [vmem:[%s17273_s0 + $0x2f0] sm:$0xff]  ;;  %v11796_v52 = vcombine.low %v16449_v26, %v16454_v27  ;;  %v14429_v26 = vld [vmem:[#allocation8 + $0x724] ss:$8 sps:$4 sm:$0xff]  }
 0x263   :  { %9168 = vmatprep.subr.bf16.mxu0 %v14342_v53  ;;  %8346 = vmatprep.mubr.bf16.mxu1 %v11797_v54  ;;  %v338_v51 = vld [vmem:[%s17273_s0 + $0x410] sm:$0xff]  ;;  %v11828_v53 = vcombine.low %v16459_v43, %v16464_v44  ;;  %v14415_v54 = vld [vmem:[#allocation8 + $0x700] ss:$8 sps:$4 sm:$0xff]   ;;  %v14432_v27 = vld [vmem:[#allocation8 + $0x1724] ss:$8 sps:$4 sm:$0xff]  }
 0x264   :  { %9194 = vmatprep.mubr.bf16.mxu0 %v11829_v55  ;;  %v14418_v55 = vld [vmem:[#allocation8 + $0x1700] ss:$8 sps:$4 sm:$0xff]   ;;  %v16489_v43 = vld [vmem:[%s17273_s0 + $0x38] sm:$0xff] }
 0x265   :  { %8321 = vmatpush1.bf16.msra.mxu1 %v14337_v42  ;;  %v14423_v42 = vld [vmem:[#allocation8 + $0x714] ss:$8 sps:$4 sm:$0xff]  }
 0x266   :  { %9169 = vmatpush1.bf16.msra.mxu0 %v14340_v45  ;;  %8322 = vmatprep.subr.bf16.mxu1 %v14345_v46  ;;  %v14426_v45 = vld [vmem:[#allocation8 + $0x1714] ss:$8 sps:$4 sm:$0xff]   ;;  %v14421_v46 = vld [vmem:[#allocation8 + $0x710] ss:$8 sps:$4 sm:$0xff]  }
 0x267   :  { %9170 = vmatprep.subr.bf16.mxu0 %v14348_v47  ;;  %v14424_v47 = vld [vmem:[#allocation8 + $0x1710] ss:$8 sps:$4 sm:$0xff]  }
 0x268   :  { %v16494_v44 = vld [vmem:[%s17273_s0 + $0x158] sm:$0xff] }
 0x269   :  { %8323 = vmatpush1.bf16.msra.mxu1 %v14343_v56  ;;  %v11869_v56 = vcombine.high %v286_v48, %v322_v49 }
 0x26a   :  { %9171 = vmatpush1.bf16.msra.mxu0 %v14346_v57  ;;  %8324 = vmatprep.subr.bf16.mxu1 %v14351_v60  ;;  %v11901_v57 = vcombine.high %v302_v50, %v338_v51  ;;  %v16499_v60 = vld [vmem:[%s17273_s0 + $0xb8] sm:$0xff] }
 0x26b   :  { %9172 = vmatprep.subr.bf16.mxu0 %v14354_v61  ;;  %v16504_v61 = vld [vmem:[%s17273_s0 + $0x1d8] sm:$0xff] }
 0x26d   :  { %8325 = vmatpush1.bf16.msra.mxu1 %v14349_v0  ;;  %v11868_v0 = vcombine.low %v286_v48, %v322_v49  ;;  %v14487_v48 = vld [vmem:[#allocation8 + $0x7c0] ss:$8 sps:$4 sm:$0xff]  }
 0x26e   :  { %9173 = vmatpush1.bf16.msra.mxu0 %v14352_v1  ;;  %8326 = vmatprep.subr.bf16.mxu1 %v14357_v2  ;;  %v11900_v1 = vcombine.low %v302_v50, %v338_v51  ;;  %v14427_v2 = vld [vmem:[#allocation8 + $0x720] ss:$8 sps:$4 sm:$0xff]   ;;  %v14495_v50 = vld [vmem:[#allocation8 + $0x7d4] ss:$8 sps:$4 sm:$0xff]  }
 0x26f   :  { %9174 = vmatprep.subr.bf16.mxu0 %v14360_v3  ;;  %v14430_v3 = vld [vmem:[#allocation8 + $0x1720] ss:$8 sps:$4 sm:$0xff]   ;;  %v14498_v51 = vld [vmem:[#allocation8 + $0x17d4] ss:$8 sps:$4 sm:$0xff]  }
 0x270   :  { %v14490_v49 = vld [vmem:[#allocation8 + $0x17c0] ss:$8 sps:$4 sm:$0xff]  }
 0x271   :  { %8327 = vmatpush1.bf16.msra.mxu1 %v14355_v4  ;;  %v14435_v4 = vld [vmem:[#allocation8 + $0x734] ss:$8 sps:$4 sm:$0xff]  }
 0x272   :  { %9175 = vmatpush1.bf16.msra.mxu0 %v14358_v5  ;;  %8328 = vmatprep.subr.bf16.mxu1 %v14363_v6  ;;  %v14438_v5 = vld [vmem:[#allocation8 + $0x1734] ss:$8 sps:$4 sm:$0xff]   ;;  %v11799_v6 = vcombine.high %v16489_v43, %v16494_v44 }
 0x273   :  { %9176 = vmatprep.subr.bf16.mxu0 %v14366_v7  ;;  %v11831_v7 = vcombine.high %v16499_v60, %v16504_v61 }
 0x275   :  { %8329 = vmatpush1.bf16.msra.mxu1 %v14361_v58  ;;  %v14433_v58 = vld [vmem:[#allocation8 + $0x730] ss:$8 sps:$4 sm:$0xff]  }
 0x276   :  { %9177 = vmatpush1.bf16.msra.mxu0 %v14364_v59  ;;  %8330 = vmatprep.subr.bf16.mxu1 %v14369_v62  ;;  %v14436_v59 = vld [vmem:[#allocation8 + $0x1730] ss:$8 sps:$4 sm:$0xff]   ;;  %v14441_v62 = vld [vmem:[#allocation8 + $0x744] ss:$8 sps:$4 sm:$0xff]  }
 0x277   :  { %9178 = vmatprep.subr.bf16.mxu0 %v14372_v63  ;;  %v14444_v63 = vld [vmem:[#allocation8 + $0x1744] ss:$8 sps:$4 sm:$0xff]  }
 0x279   :  { %8331 = vmatpush1.bf16.msra.mxu1 %v14367_v11  ;;  %v14439_v11 = vld [vmem:[#allocation8 + $0x740] ss:$8 sps:$4 sm:$0xff]  }
 0x27a   :  { %9179 = vmatpush1.bf16.msra.mxu0 %v14370_v12  ;;  %8332 = vmatprep.subr.bf16.mxu1 %v14375_v14  ;;  %v14442_v12 = vld [vmem:[#allocation8 + $0x1740] ss:$8 sps:$4 sm:$0xff]   ;;  %v14447_v14 = vld [vmem:[#allocation8 + $0x754] ss:$8 sps:$4 sm:$0xff]  }
 0x27b   :  { %9180 = vmatprep.subr.bf16.mxu0 %v14378_v15  ;;  %v14450_v15 = vld [vmem:[#allocation8 + $0x1754] ss:$8 sps:$4 sm:$0xff]  }
 0x27d   :  { %8333 = vmatpush1.bf16.msra.mxu1 %v14373_v16  ;;  %v14445_v16 = vld [vmem:[#allocation8 + $0x750] ss:$8 sps:$4 sm:$0xff]  }
 0x27e   :  { %9181 = vmatpush1.bf16.msra.mxu0 %v14376_v17  ;;  %8334 = vmatprep.subr.bf16.mxu1 %v14381_v18  ;;  %v14448_v17 = vld [vmem:[#allocation8 + $0x1750] ss:$8 sps:$4 sm:$0xff]   ;;  %v14453_v18 = vld [vmem:[#allocation8 + $0x764] ss:$8 sps:$4 sm:$0xff]  }
 0x27f   :  { %9182 = vmatprep.subr.bf16.mxu0 %v14384_v19  ;;  %v14456_v19 = vld [vmem:[#allocation8 + $0x1764] ss:$8 sps:$4 sm:$0xff]  }
 0x281   :  { %8335 = vmatpush1.bf16.msra.mxu1 %v14379_v20  ;;  %v14451_v20 = vld [vmem:[#allocation8 + $0x760] ss:$8 sps:$4 sm:$0xff]  }
 0x282   :  { %9183 = vmatpush1.bf16.msra.mxu0 %v14382_v21  ;;  %8336 = vmatprep.subr.bf16.mxu1 %v14387_v22  ;;  %v14454_v21 = vld [vmem:[#allocation8 + $0x1760] ss:$8 sps:$4 sm:$0xff]   ;;  %v14459_v22 = vld [vmem:[#allocation8 + $0x774] ss:$8 sps:$4 sm:$0xff]  }
 0x283   :  { %9184 = vmatprep.subr.bf16.mxu0 %v14390_v23  ;;  %v14462_v23 = vld [vmem:[#allocation8 + $0x1774] ss:$8 sps:$4 sm:$0xff]  }
 0x285   :  { %8337 = vmatpush1.bf16.msra.mxu1 %v14385_v24  ;;  %v14457_v24 = vld [vmem:[#allocation8 + $0x770] ss:$8 sps:$4 sm:$0xff]  }
 0x286   :  { %9185 = vmatpush1.bf16.msra.mxu0 %v14388_v25  ;;  %8338 = vmatprep.subr.bf16.mxu1 %v14393_v8  ;;  %v14460_v25 = vld [vmem:[#allocation8 + $0x1770] ss:$8 sps:$4 sm:$0xff]   ;;  %v14465_v8 = vld [vmem:[#allocation8 + $0x784] ss:$8 sps:$4 sm:$0xff]  }
 0x287   :  { %9186 = vmatprep.subr.bf16.mxu0 %v14396_v9  ;;  %v14468_v9 = vld [vmem:[#allocation8 + $0x1784] ss:$8 sps:$4 sm:$0xff]  }
 0x289   :  { %8339 = vmatpush1.bf16.msra.mxu1 %v14391_v28  ;;  %v14463_v28 = vld [vmem:[#allocation8 + $0x780] ss:$8 sps:$4 sm:$0xff]  }
 0x28a   :  { %9187 = vmatpush1.bf16.msra.mxu0 %v14394_v29  ;;  %8340 = vmatprep.subr.bf16.mxu1 %v14399_v30  ;;  %v14466_v29 = vld [vmem:[#allocation8 + $0x1780] ss:$8 sps:$4 sm:$0xff]   ;;  %v14471_v30 = vld [vmem:[#allocation8 + $0x794] ss:$8 sps:$4 sm:$0xff]  }
 0x28b   :  { %9188 = vmatprep.subr.bf16.mxu0 %v14402_v31  ;;  %v14474_v31 = vld [vmem:[#allocation8 + $0x1794] ss:$8 sps:$4 sm:$0xff]  }
 0x28d   :  { %8341 = vmatpush1.bf16.msra.mxu1 %v14397_v32  ;;  %v14469_v32 = vld [vmem:[#allocation8 + $0x790] ss:$8 sps:$4 sm:$0xff]  }
 0x28e   :  { %9189 = vmatpush1.bf16.msra.mxu0 %v14400_v33  ;;  %8342 = vmatprep.subr.bf16.mxu1 %v14405_v34  ;;  %v14472_v33 = vld [vmem:[#allocation8 + $0x1790] ss:$8 sps:$4 sm:$0xff]   ;;  %v14477_v34 = vld [vmem:[#allocation8 + $0x7a4] ss:$8 sps:$4 sm:$0xff]  }
 0x28f   :  { %9190 = vmatprep.subr.bf16.mxu0 %v14408_v35  ;;  %v14480_v35 = vld [vmem:[#allocation8 + $0x17a4] ss:$8 sps:$4 sm:$0xff]  }
 0x291   :  { %8343 = vmatpush1.bf16.msra.mxu1 %v14403_v36  ;;  %v14475_v36 = vld [vmem:[#allocation8 + $0x7a0] ss:$8 sps:$4 sm:$0xff]  }
 0x292   :  { %9191 = vmatpush1.bf16.msra.mxu0 %v14406_v37  ;;  %8344 = vmatprep.subr.bf16.mxu1 %v14411_v38  ;;  %v14478_v37 = vld [vmem:[#allocation8 + $0x17a0] ss:$8 sps:$4 sm:$0xff]   ;;  %v14483_v38 = vld [vmem:[#allocation8 + $0x7b4] ss:$8 sps:$4 sm:$0xff]  }
 0x293   :  { %9192 = vmatprep.subr.bf16.mxu0 %v14414_v39  ;;  %v14486_v39 = vld [vmem:[#allocation8 + $0x17b4] ss:$8 sps:$4 sm:$0xff]  }
 0x295   :  { %8345 = vmatpush1.bf16.msra.mxu1 %v14409_v40  ;;  %v14481_v40 = vld [vmem:[#allocation8 + $0x7b0] ss:$8 sps:$4 sm:$0xff]  }
 0x296   :  { %9193 = vmatpush1.bf16.msra.mxu0 %v14412_v41  ;;  %8367 = vmatprep.subr.bf16.mxu1 %v14417_v10  ;;  %v14484_v41 = vld [vmem:[#allocation8 + $0x17b0] ss:$8 sps:$4 sm:$0xff]   ;;  %v14489_v10 = vld [vmem:[#allocation8 + $0x7c4] ss:$8 sps:$4 sm:$0xff]  }
 0x297   :  { %9215 = vmatprep.subr.bf16.mxu0 %v14420_v13  ;;  %v14492_v13 = vld [vmem:[#allocation8 + $0x17c4] ss:$8 sps:$4 sm:$0xff]  }
 0x298   :  { %8347 = vmatmul.mubr.bf16.vlgmr.msra.gmra.mrb[0].mxu1 %v11796_v52  ;;  %v14493_v52 = vld [vmem:[#allocation8 + $0x7d0] ss:$8 sps:$4 sm:$0xff]  }
 0x299   :  { %9195 = vmatmul.mubr.bf16.vlgmr.msra.gmra.mrb[0].mxu0 %v11828_v53  ;;  %8368 = vmatpush1.bf16.msra.mxu1 %v14415_v54  ;;  %v14496_v53 = vld [vmem:[#allocation8 + $0x17d0] ss:$8 sps:$4 sm:$0xff]   ;;  %v14501_v54 = vld [vmem:[#allocation8 + $0x7e4] ss:$8 sps:$4 sm:$0xff]  }
 0x29a   :  { %9216 = vmatpush1.bf16.msra.mxu0 %v14418_v55  ;;  %8369 = vmatprep.subr.bf16.mxu1 %v14423_v42  ;;  %v14504_v55 = vld [vmem:[#allocation8 + $0x17e4] ss:$8 sps:$4 sm:$0xff]   ;;  %v14499_v42 = vld [vmem:[#allocation8 + $0x7e0] ss:$8 sps:$4 sm:$0xff]  }
 0x29b   :  { %9217 = vmatprep.subr.bf16.mxu0 %v14426_v45  ;;  %8356 = vmatprep.mubr.bf16.mxu1 %v11869_v56  ;;  %v14502_v45 = vld [vmem:[#allocation8 + $0x17e0] ss:$8 sps:$4 sm:$0xff]   ;;  %v14505_v56 = vld [vmem:[#allocation8 + $0x7f0] ss:$8 sps:$4 sm:$0xff]  }
 0x29c   :  { %9204 = vmatprep.mubr.bf16.mxu0 %v11901_v57  ;;  %v14508_v57 = vld [vmem:[#allocation8 + $0x17f0] ss:$8 sps:$4 sm:$0xff]  }
 0x29d   :  { %8370 = vmatpush1.bf16.msra.mxu1 %v14421_v46  ;;  %v14507_v46 = vld [vmem:[#allocation8 + $0x7f4] ss:$8 sps:$4 sm:$0xff]  }
 0x29e   :  { %9218 = vmatpush1.bf16.msra.mxu0 %v14424_v47  ;;  %8371 = vmatprep.subr.bf16.mxu1 %v14429_v26  ;;  %v14510_v47 = vld [vmem:[#allocation8 + $0x17f4] ss:$8 sps:$4 sm:$0xff]   ;;  %v14513_v26 = vld [vmem:[#allocation8 + $0x804] ss:$8 sps:$4 sm:$0xff]  }
 0x29f   :  { %9219 = vmatprep.subr.bf16.mxu0 %v14432_v27  ;;  %v14516_v27 = vld [vmem:[#allocation8 + $0x1804] ss:$8 sps:$4 sm:$0xff]  }
 0x2a0   :  { %8357 = vmatmul.mubr.bf16.gmra.mrb[4].mxu1 %v11868_v0  ;;  %v287_v0 = vld [vmem:[%s17273_s0 + $0x278] sm:$0xff] }
 0x2a1   :  { %9205 = vmatmul.mubr.bf16.gmra.mrb[4].mxu0 %v11900_v1  ;;  %8372 = vmatpush1.bf16.msra.mxu1 %v14427_v2  ;;  %v323_v1 = vld [vmem:[%s17273_s0 + $0x398] sm:$0xff] }
 0x2a2   :  { %9220 = vmatpush1.bf16.msra.mxu0 %v14430_v3  ;;  %8373 = vmatprep.subr.bf16.mxu1 %v14435_v4  ;;  %v303_v2 = vld [vmem:[%s17273_s0 + $0x2f8] sm:$0xff]  ;;  %v11798_v4 = vcombine.low %v16489_v43, %v16494_v44  ;;  %v14525_v43 = vld [vmem:[#allocation8 + $0x824] ss:$8 sps:$4 sm:$0xff]  }
 0x2a3   :  { %9221 = vmatprep.subr.bf16.mxu0 %v14438_v5  ;;  %8399 = vmatprep.mubr.bf16.mxu1 %v11799_v6  ;;  %v339_v3 = vld [vmem:[%s17273_s0 + $0x418] sm:$0xff]  ;;  %v11830_v5 = vcombine.low %v16499_v60, %v16504_v61  ;;  %v14511_v6 = vld [vmem:[#allocation8 + $0x800] ss:$8 sps:$4 sm:$0xff]   ;;  %v14528_v44 = vld [vmem:[#allocation8 + $0x1824] ss:$8 sps:$4 sm:$0xff]  }
 0x2a4   :  { %9247 = vmatprep.mubr.bf16.mxu0 %v11831_v7  ;;  %v14514_v7 = vld [vmem:[#allocation8 + $0x1800] ss:$8 sps:$4 sm:$0xff]  }
 0x2a5   :  { %8374 = vmatpush1.bf16.msra.mxu1 %v14433_v58  ;;  %v14519_v58 = vld [vmem:[#allocation8 + $0x814] ss:$8 sps:$4 sm:$0xff]   ;;  %v16529_v60 = vld [vmem:[%s17273_s0 + $0x40] sm:$0xff] }
 0x2a6   :  { %9222 = vmatpush1.bf16.msra.mxu0 %v14436_v59  ;;  %8375 = vmatprep.subr.bf16.mxu1 %v14441_v62  ;;  %v14522_v59 = vld [vmem:[#allocation8 + $0x1814] ss:$8 sps:$4 sm:$0xff]   ;;  %v14517_v62 = vld [vmem:[#allocation8 + $0x810] ss:$8 sps:$4 sm:$0xff]   ;;  %v16534_v61 = vld [vmem:[%s17273_s0 + $0x160] sm:$0xff] }
 0x2a7   :  { %9223 = vmatprep.subr.bf16.mxu0 %v14444_v63  ;;  %v14520_v63 = vld [vmem:[#allocation8 + $0x1810] ss:$8 sps:$4 sm:$0xff]  }
 0x2a9   :  { %8376 = vmatpush1.bf16.msra.mxu1 %v14439_v11  ;;  %v11871_v11 = vcombine.high %v287_v0, %v323_v1 }
 0x2aa   :  { %9224 = vmatpush1.bf16.msra.mxu0 %v14442_v12  ;;  %8377 = vmatprep.subr.bf16.mxu1 %v14447_v14  ;;  %v11903_v12 = vcombine.high %v303_v2, %v339_v3  ;;  %v16539_v14 = vld [vmem:[%s17273_s0 + $0xc0] sm:$0xff] }
 0x2ab   :  { %9225 = vmatprep.subr.bf16.mxu0 %v14450_v15  ;;  %v16544_v15 = vld [vmem:[%s17273_s0 + $0x1e0] sm:$0xff] }
 0x2ad   :  { %8378 = vmatpush1.bf16.msra.mxu1 %v14445_v16  ;;  %v11870_v16 = vcombine.low %v287_v0, %v323_v1  ;;  %v14583_v0 = vld [vmem:[#allocation8 + $0x8c0] ss:$8 sps:$4 sm:$0xff]  }
 0x2ae   :  { %9226 = vmatpush1.bf16.msra.mxu0 %v14448_v17  ;;  %8379 = vmatprep.subr.bf16.mxu1 %v14453_v18  ;;  %v11902_v17 = vcombine.low %v303_v2, %v339_v3  ;;  %v14523_v18 = vld [vmem:[#allocation8 + $0x820] ss:$8 sps:$4 sm:$0xff]   ;;  %v14591_v2 = vld [vmem:[#allocation8 + $0x8d4] ss:$8 sps:$4 sm:$0xff]  }
 0x2af   :  { %9227 = vmatprep.subr.bf16.mxu0 %v14456_v19  ;;  %v14526_v19 = vld [vmem:[#allocation8 + $0x1820] ss:$8 sps:$4 sm:$0xff]   ;;  %v14594_v3 = vld [vmem:[#allocation8 + $0x18d4] ss:$8 sps:$4 sm:$0xff]  }
 0x2b0   :  { %v14586_v1 = vld [vmem:[#allocation8 + $0x18c0] ss:$8 sps:$4 sm:$0xff]  }
 0x2b1   :  { %8380 = vmatpush1.bf16.msra.mxu1 %v14451_v20  ;;  %v14531_v20 = vld [vmem:[#allocation8 + $0x834] ss:$8 sps:$4 sm:$0xff]  }
 0x2b2   :  { %9228 = vmatpush1.bf16.msra.mxu0 %v14454_v21  ;;  %8381 = vmatprep.subr.bf16.mxu1 %v14459_v22  ;;  %v14534_v21 = vld [vmem:[#allocation8 + $0x1834] ss:$8 sps:$4 sm:$0xff]   ;;  %v11801_v22 = vcombine.high %v16529_v60, %v16534_v61 }
 0x2b3   :  { %9229 = vmatprep.subr.bf16.mxu0 %v14462_v23  ;;  %v11833_v23 = vcombine.high %v16539_v14, %v16544_v15 }
 0x2b5   :  { %8382 = vmatpush1.bf16.msra.mxu1 %v14457_v24  ;;  %v14529_v24 = vld [vmem:[#allocation8 + $0x830] ss:$8 sps:$4 sm:$0xff]  }
 0x2b6   :  { %9230 = vmatpush1.bf16.msra.mxu0 %v14460_v25  ;;  %8383 = vmatprep.subr.bf16.mxu1 %v14465_v8  ;;  %v14532_v25 = vld [vmem:[#allocation8 + $0x1830] ss:$8 sps:$4 sm:$0xff]   ;;  %v14537_v8 = vld [vmem:[#allocation8 + $0x844] ss:$8 sps:$4 sm:$0xff]  }
 0x2b7   :  { %9231 = vmatprep.subr.bf16.mxu0 %v14468_v9  ;;  %v14540_v9 = vld [vmem:[#allocation8 + $0x1844] ss:$8 sps:$4 sm:$0xff]  }
 0x2b9   :  { %8384 = vmatpush1.bf16.msra.mxu1 %v14463_v28  ;;  %v14535_v28 = vld [vmem:[#allocation8 + $0x840] ss:$8 sps:$4 sm:$0xff]  }
 0x2ba   :  { %9232 = vmatpush1.bf16.msra.mxu0 %v14466_v29  ;;  %8385 = vmatprep.subr.bf16.mxu1 %v14471_v30  ;;  %v14538_v29 = vld [vmem:[#allocation8 + $0x1840] ss:$8 sps:$4 sm:$0xff]   ;;  %v14543_v30 = vld [vmem:[#allocation8 + $0x854] ss:$8 sps:$4 sm:$0xff]  }
 0x2bb   :  { %9233 = vmatprep.subr.bf16.mxu0 %v14474_v31  ;;  %v14546_v31 = vld [vmem:[#allocation8 + $0x1854] ss:$8 sps:$4 sm:$0xff]  }
 0x2bd   :  { %8386 = vmatpush1.bf16.msra.mxu1 %v14469_v32  ;;  %v14541_v32 = vld [vmem:[#allocation8 + $0x850] ss:$8 sps:$4 sm:$0xff]  }
 0x2be   :  { %9234 = vmatpush1.bf16.msra.mxu0 %v14472_v33  ;;  %8387 = vmatprep.subr.bf16.mxu1 %v14477_v34  ;;  %v14544_v33 = vld [vmem:[#allocation8 + $0x1850] ss:$8 sps:$4 sm:$0xff]   ;;  %v14549_v34 = vld [vmem:[#allocation8 + $0x864] ss:$8 sps:$4 sm:$0xff]  }
 0x2bf   :  { %9235 = vmatprep.subr.bf16.mxu0 %v14480_v35  ;;  %v14552_v35 = vld [vmem:[#allocation8 + $0x1864] ss:$8 sps:$4 sm:$0xff]  }
 0x2c1   :  { %8388 = vmatpush1.bf16.msra.mxu1 %v14475_v36  ;;  %v14547_v36 = vld [vmem:[#allocation8 + $0x860] ss:$8 sps:$4 sm:$0xff]  }
 0x2c2   :  { %9236 = vmatpush1.bf16.msra.mxu0 %v14478_v37  ;;  %8389 = vmatprep.subr.bf16.mxu1 %v14483_v38  ;;  %v14550_v37 = vld [vmem:[#allocation8 + $0x1860] ss:$8 sps:$4 sm:$0xff]   ;;  %v14555_v38 = vld [vmem:[#allocation8 + $0x874] ss:$8 sps:$4 sm:$0xff]  }
 0x2c3   :  { %9237 = vmatprep.subr.bf16.mxu0 %v14486_v39  ;;  %v14558_v39 = vld [vmem:[#allocation8 + $0x1874] ss:$8 sps:$4 sm:$0xff]  }
 0x2c5   :  { %8390 = vmatpush1.bf16.msra.mxu1 %v14481_v40  ;;  %v14553_v40 = vld [vmem:[#allocation8 + $0x870] ss:$8 sps:$4 sm:$0xff]  }
 0x2c6   :  { %9238 = vmatpush1.bf16.msra.mxu0 %v14484_v41  ;;  %8391 = vmatprep.subr.bf16.mxu1 %v14489_v10  ;;  %v14556_v41 = vld [vmem:[#allocation8 + $0x1870] ss:$8 sps:$4 sm:$0xff]   ;;  %v14561_v10 = vld [vmem:[#allocation8 + $0x884] ss:$8 sps:$4 sm:$0xff]  }
 0x2c7   :  { %9239 = vmatprep.subr.bf16.mxu0 %v14492_v13  ;;  %v14564_v13 = vld [vmem:[#allocation8 + $0x1884] ss:$8 sps:$4 sm:$0xff]  }
 0x2c9   :  { %8392 = vmatpush1.bf16.msra.mxu1 %v14487_v48  ;;  %v14559_v48 = vld [vmem:[#allocation8 + $0x880] ss:$8 sps:$4 sm:$0xff]  }
 0x2ca   :  { %9240 = vmatpush1.bf16.msra.mxu0 %v14490_v49  ;;  %8393 = vmatprep.subr.bf16.mxu1 %v14495_v50  ;;  %v14562_v49 = vld [vmem:[#allocation8 + $0x1880] ss:$8 sps:$4 sm:$0xff]   ;;  %v14567_v50 = vld [vmem:[#allocation8 + $0x894] ss:$8 sps:$4 sm:$0xff]  }
 0x2cb   :  { %9241 = vmatprep.subr.bf16.mxu0 %v14498_v51  ;;  %v14570_v51 = vld [vmem:[#allocation8 + $0x1894] ss:$8 sps:$4 sm:$0xff]  }
 0x2cd   :  { %8394 = vmatpush1.bf16.msra.mxu1 %v14493_v52  ;;  %v14565_v52 = vld [vmem:[#allocation8 + $0x890] ss:$8 sps:$4 sm:$0xff]  }
 0x2ce   :  { %9242 = vmatpush1.bf16.msra.mxu0 %v14496_v53  ;;  %8395 = vmatprep.subr.bf16.mxu1 %v14501_v54  ;;  %v14568_v53 = vld [vmem:[#allocation8 + $0x1890] ss:$8 sps:$4 sm:$0xff]   ;;  %v14573_v54 = vld [vmem:[#allocation8 + $0x8a4] ss:$8 sps:$4 sm:$0xff]  }
 0x2cf   :  { %9243 = vmatprep.subr.bf16.mxu0 %v14504_v55  ;;  %v14576_v55 = vld [vmem:[#allocation8 + $0x18a4] ss:$8 sps:$4 sm:$0xff]  }
 0x2d1   :  { %8396 = vmatpush1.bf16.msra.mxu1 %v14499_v42  ;;  %v14571_v42 = vld [vmem:[#allocation8 + $0x8a0] ss:$8 sps:$4 sm:$0xff]  }
 0x2d2   :  { %9244 = vmatpush1.bf16.msra.mxu0 %v14502_v45  ;;  %8397 = vmatprep.subr.bf16.mxu1 %v14507_v46  ;;  %v14574_v45 = vld [vmem:[#allocation8 + $0x18a0] ss:$8 sps:$4 sm:$0xff]   ;;  %v14579_v46 = vld [vmem:[#allocation8 + $0x8b4] ss:$8 sps:$4 sm:$0xff]  }
 0x2d3   :  { %9245 = vmatprep.subr.bf16.mxu0 %v14510_v47  ;;  %v14582_v47 = vld [vmem:[#allocation8 + $0x18b4] ss:$8 sps:$4 sm:$0xff]  }
 0x2d5   :  { %8398 = vmatpush1.bf16.msra.mxu1 %v14505_v56  ;;  %v14577_v56 = vld [vmem:[#allocation8 + $0x8b0] ss:$8 sps:$4 sm:$0xff]  }
 0x2d6   :  { %9246 = vmatpush1.bf16.msra.mxu0 %v14508_v57  ;;  %8420 = vmatprep.subr.bf16.mxu1 %v14513_v26  ;;  %v14580_v57 = vld [vmem:[#allocation8 + $0x18b0] ss:$8 sps:$4 sm:$0xff]   ;;  %v14585_v26 = vld [vmem:[#allocation8 + $0x8c4] ss:$8 sps:$4 sm:$0xff]  }
 0x2d7   :  { %9268 = vmatprep.subr.bf16.mxu0 %v14516_v27  ;;  %v14588_v27 = vld [vmem:[#allocation8 + $0x18c4] ss:$8 sps:$4 sm:$0xff]  }
 0x2d8   :  { %8400 = vmatmul.mubr.bf16.vlgmr.msra.gmra.mrb[0].mxu1 %v11798_v4  ;;  %v14589_v4 = vld [vmem:[#allocation8 + $0x8d0] ss:$8 sps:$4 sm:$0xff]  }
 0x2d9   :  { %9248 = vmatmul.mubr.bf16.vlgmr.msra.gmra.mrb[0].mxu0 %v11830_v5  ;;  %8421 = vmatpush1.bf16.msra.mxu1 %v14511_v6  ;;  %v14592_v5 = vld [vmem:[#allocation8 + $0x18d0] ss:$8 sps:$4 sm:$0xff]   ;;  %v14597_v6 = vld [vmem:[#allocation8 + $0x8e4] ss:$8 sps:$4 sm:$0xff]  }
 0x2da   :  { %9269 = vmatpush1.bf16.msra.mxu0 %v14514_v7  ;;  %8422 = vmatprep.subr.bf16.mxu1 %v14519_v58  ;;  %v14600_v7 = vld [vmem:[#allocation8 + $0x18e4] ss:$8 sps:$4 sm:$0xff]   ;;  %v14595_v58 = vld [vmem:[#allocation8 + $0x8e0] ss:$8 sps:$4 sm:$0xff]  }
 0x2db   :  { %9270 = vmatprep.subr.bf16.mxu0 %v14522_v59  ;;  %8409 = vmatprep.mubr.bf16.mxu1 %v11871_v11  ;;  %v14598_v59 = vld [vmem:[#allocation8 + $0x18e0] ss:$8 sps:$4 sm:$0xff]   ;;  %v14601_v11 = vld [vmem:[#allocation8 + $0x8f0] ss:$8 sps:$4 sm:$0xff]  }
 0x2dc   :  { %9257 = vmatprep.mubr.bf16.mxu0 %v11903_v12  ;;  %v14604_v12 = vld [vmem:[#allocation8 + $0x18f0] ss:$8 sps:$4 sm:$0xff]  }
 0x2dd   :  { %8423 = vmatpush1.bf16.msra.mxu1 %v14517_v62  ;;  %v14603_v62 = vld [vmem:[#allocation8 + $0x8f4] ss:$8 sps:$4 sm:$0xff]  }
 0x2de   :  { %9271 = vmatpush1.bf16.msra.mxu0 %v14520_v63  ;;  %8424 = vmatprep.subr.bf16.mxu1 %v14525_v43  ;;  %v14606_v63 = vld [vmem:[#allocation8 + $0x18f4] ss:$8 sps:$4 sm:$0xff]   ;;  %v14609_v43 = vld [vmem:[#allocation8 + $0x904] ss:$8 sps:$4 sm:$0xff]  }
 0x2df   :  { %9272 = vmatprep.subr.bf16.mxu0 %v14528_v44  ;;  %v14612_v44 = vld [vmem:[#allocation8 + $0x1904] ss:$8 sps:$4 sm:$0xff]  }
 0x2e0   :  { %8410 = vmatmul.mubr.bf16.gmra.mrb[4].mxu1 %v11870_v16  ;;  %v288_v16 = vld [vmem:[%s17273_s0 + $0x280] sm:$0xff] }
 0x2e1   :  { %9258 = vmatmul.mubr.bf16.gmra.mrb[4].mxu0 %v11902_v17  ;;  %8425 = vmatpush1.bf16.msra.mxu1 %v14523_v18  ;;  %v324_v17 = vld [vmem:[%s17273_s0 + $0x3a0] sm:$0xff] }
 0x2e2   :  { %9273 = vmatpush1.bf16.msra.mxu0 %v14526_v19  ;;  %8426 = vmatprep.subr.bf16.mxu1 %v14531_v20  ;;  %v304_v18 = vld [vmem:[%s17273_s0 + $0x300] sm:$0xff]  ;;  %v11800_v20 = vcombine.low %v16529_v60, %v16534_v61 }
 0x2e3   :  { %9274 = vmatprep.subr.bf16.mxu0 %v14534_v21  ;;  %8452 = vmatprep.mubr.bf16.mxu1 %v11801_v22  ;;  %v340_v19 = vld [vmem:[%s17273_s0 + $0x420] sm:$0xff]  ;;  %v11832_v21 = vcombine.low %v16539_v14, %v16544_v15  ;;  %v16569_v14 = vld [vmem:[%s17273_s0 + $0x48] sm:$0xff] }
 0x2e4   :  { %9300 = vmatprep.mubr.bf16.mxu0 %v11833_v23  ;;  %v14607_v22 = vld [vmem:[#allocation8 + $0x900] ss:$8 sps:$4 sm:$0xff]   ;;  %v14621_v60 = vld [vmem:[#allocation8 + $0x924] ss:$8 sps:$4 sm:$0xff]  }
 0x2e5   :  { %8427 = vmatpush1.bf16.msra.mxu1 %v14529_v24  ;;  %v14610_v23 = vld [vmem:[#allocation8 + $0x1900] ss:$8 sps:$4 sm:$0xff]   ;;  %v14615_v24 = vld [vmem:[#allocation8 + $0x914] ss:$8 sps:$4 sm:$0xff]   ;;  %v14624_v61 = vld [vmem:[#allocation8 + $0x1924] ss:$8 sps:$4 sm:$0xff]  }
 0x2e6   :  { %9275 = vmatpush1.bf16.msra.mxu0 %v14532_v25  ;;  %8428 = vmatprep.subr.bf16.mxu1 %v14537_v8  ;;  %v14618_v25 = vld [vmem:[#allocation8 + $0x1914] ss:$8 sps:$4 sm:$0xff]   ;;  %v14613_v8 = vld [vmem:[#allocation8 + $0x910] ss:$8 sps:$4 sm:$0xff]   ;;  %v16574_v15 = vld [vmem:[%s17273_s0 + $0x168] sm:$0xff] }
 0x2e7   :  { %9276 = vmatprep.subr.bf16.mxu0 %v14540_v9  ;;  %v14616_v9 = vld [vmem:[#allocation8 + $0x1910] ss:$8 sps:$4 sm:$0xff]  }
 0x2e9   :  { %8429 = vmatpush1.bf16.msra.mxu1 %v14535_v28  ;;  %v11873_v28 = vcombine.high %v288_v16, %v324_v17 }
 0x2ea   :  { %9277 = vmatpush1.bf16.msra.mxu0 %v14538_v29  ;;  %8430 = vmatprep.subr.bf16.mxu1 %v14543_v30  ;;  %v11905_v29 = vcombine.high %v304_v18, %v340_v19  ;;  %v16579_v30 = vld [vmem:[%s17273_s0 + $0xc8] sm:$0xff] }
 0x2eb   :  { %9278 = vmatprep.subr.bf16.mxu0 %v14546_v31  ;;  %v16584_v31 = vld [vmem:[%s17273_s0 + $0x1e8] sm:$0xff] }
 0x2ed   :  { %8431 = vmatpush1.bf16.msra.mxu1 %v14541_v32  ;;  %v11872_v32 = vcombine.low %v288_v16, %v324_v17  ;;  %v14679_v16 = vld [vmem:[#allocation8 + $0x9c0] ss:$8 sps:$4 sm:$0xff]  }
 0x2ee   :  { %9279 = vmatpush1.bf16.msra.mxu0 %v14544_v33  ;;  %8432 = vmatprep.subr.bf16.mxu1 %v14549_v34  ;;  %v11904_v33 = vcombine.low %v304_v18, %v340_v19  ;;  %v14619_v34 = vld [vmem:[#allocation8 + $0x920] ss:$8 sps:$4 sm:$0xff]   ;;  %v14687_v18 = vld [vmem:[#allocation8 + $0x9d4] ss:$8 sps:$4 sm:$0xff]  }
 0x2ef   :  { %9280 = vmatprep.subr.bf16.mxu0 %v14552_v35  ;;  %v14622_v35 = vld [vmem:[#allocation8 + $0x1920] ss:$8 sps:$4 sm:$0xff]   ;;  %v14690_v19 = vld [vmem:[#allocation8 + $0x19d4] ss:$8 sps:$4 sm:$0xff]  }
 0x2f0   :  { %v14682_v17 = vld [vmem:[#allocation8 + $0x19c0] ss:$8 sps:$4 sm:$0xff]  }
 0x2f1   :  { %8433 = vmatpush1.bf16.msra.mxu1 %v14547_v36  ;;  %v14627_v36 = vld [vmem:[#allocation8 + $0x934] ss:$8 sps:$4 sm:$0xff]  }
 0x2f2   :  { %9281 = vmatpush1.bf16.msra.mxu0 %v14550_v37  ;;  %8434 = vmatprep.subr.bf16.mxu1 %v14555_v38  ;;  %v14630_v37 = vld [vmem:[#allocation8 + $0x1934] ss:$8 sps:$4 sm:$0xff]   ;;  %v11803_v38 = vcombine.high %v16569_v14, %v16574_v15 }
 0x2f3   :  { %9282 = vmatprep.subr.bf16.mxu0 %v14558_v39  ;;  %v11835_v39 = vcombine.high %v16579_v30, %v16584_v31 }
 0x2f5   :  { %8435 = vmatpush1.bf16.msra.mxu1 %v14553_v40  ;;  %v14625_v40 = vld [vmem:[#allocation8 + $0x930] ss:$8 sps:$4 sm:$0xff]  }
 0x2f6   :  { %9283 = vmatpush1.bf16.msra.mxu0 %v14556_v41  ;;  %8436 = vmatprep.subr.bf16.mxu1 %v14561_v10  ;;  %v14628_v41 = vld [vmem:[#allocation8 + $0x1930] ss:$8 sps:$4 sm:$0xff]   ;;  %v14633_v10 = vld [vmem:[#allocation8 + $0x944] ss:$8 sps:$4 sm:$0xff]  }
 0x2f7   :  { %9284 = vmatprep.subr.bf16.mxu0 %v14564_v13  ;;  %v14636_v13 = vld [vmem:[#allocation8 + $0x1944] ss:$8 sps:$4 sm:$0xff]  }
 0x2f9   :  { %8437 = vmatpush1.bf16.msra.mxu1 %v14559_v48  ;;  %v14631_v48 = vld [vmem:[#allocation8 + $0x940] ss:$8 sps:$4 sm:$0xff]  }
 0x2fa   :  { %9285 = vmatpush1.bf16.msra.mxu0 %v14562_v49  ;;  %8438 = vmatprep.subr.bf16.mxu1 %v14567_v50  ;;  %v14634_v49 = vld [vmem:[#allocation8 + $0x1940] ss:$8 sps:$4 sm:$0xff]   ;;  %v14639_v50 = vld [vmem:[#allocation8 + $0x954] ss:$8 sps:$4 sm:$0xff]  }
 0x2fb   :  { %9286 = vmatprep.subr.bf16.mxu0 %v14570_v51  ;;  %v14642_v51 = vld [vmem:[#allocation8 + $0x1954] ss:$8 sps:$4 sm:$0xff]  }
 0x2fd   :  { %8439 = vmatpush1.bf16.msra.mxu1 %v14565_v52  ;;  %v14637_v52 = vld [vmem:[#allocation8 + $0x950] ss:$8 sps:$4 sm:$0xff]  }
 0x2fe   :  { %9287 = vmatpush1.bf16.msra.mxu0 %v14568_v53  ;;  %8440 = vmatprep.subr.bf16.mxu1 %v14573_v54  ;;  %v14640_v53 = vld [vmem:[#allocation8 + $0x1950] ss:$8 sps:$4 sm:$0xff]   ;;  %v14645_v54 = vld [vmem:[#allocation8 + $0x964] ss:$8 sps:$4 sm:$0xff]  }
 0x2ff   :  { %9288 = vmatprep.subr.bf16.mxu0 %v14576_v55  ;;  %v14648_v55 = vld [vmem:[#allocation8 + $0x1964] ss:$8 sps:$4 sm:$0xff]  }
 0x301   :  { %8441 = vmatpush1.bf16.msra.mxu1 %v14571_v42  ;;  %v14643_v42 = vld [vmem:[#allocation8 + $0x960] ss:$8 sps:$4 sm:$0xff]  }
 0x302   :  { %9289 = vmatpush1.bf16.msra.mxu0 %v14574_v45  ;;  %8442 = vmatprep.subr.bf16.mxu1 %v14579_v46  ;;  %v14646_v45 = vld [vmem:[#allocation8 + $0x1960] ss:$8 sps:$4 sm:$0xff]   ;;  %v14651_v46 = vld [vmem:[#allocation8 + $0x974] ss:$8 sps:$4 sm:$0xff]  }
 0x303   :  { %9290 = vmatprep.subr.bf16.mxu0 %v14582_v47  ;;  %v14654_v47 = vld [vmem:[#allocation8 + $0x1974] ss:$8 sps:$4 sm:$0xff]  }
 0x305   :  { %8443 = vmatpush1.bf16.msra.mxu1 %v14577_v56  ;;  %v14649_v56 = vld [vmem:[#allocation8 + $0x970] ss:$8 sps:$4 sm:$0xff]  }
 0x306   :  { %9291 = vmatpush1.bf16.msra.mxu0 %v14580_v57  ;;  %8444 = vmatprep.subr.bf16.mxu1 %v14585_v26  ;;  %v14652_v57 = vld [vmem:[#allocation8 + $0x1970] ss:$8 sps:$4 sm:$0xff]   ;;  %v14657_v26 = vld [vmem:[#allocation8 + $0x984] ss:$8 sps:$4 sm:$0xff]  }
 0x307   :  { %9292 = vmatprep.subr.bf16.mxu0 %v14588_v27  ;;  %v14660_v27 = vld [vmem:[#allocation8 + $0x1984] ss:$8 sps:$4 sm:$0xff]  }
 0x309   :  { %8445 = vmatpush1.bf16.msra.mxu1 %v14583_v0  ;;  %v14655_v0 = vld [vmem:[#allocation8 + $0x980] ss:$8 sps:$4 sm:$0xff]  }
 0x30a   :  { %9293 = vmatpush1.bf16.msra.mxu0 %v14586_v1  ;;  %8446 = vmatprep.subr.bf16.mxu1 %v14591_v2  ;;  %v14658_v1 = vld [vmem:[#allocation8 + $0x1980] ss:$8 sps:$4 sm:$0xff]   ;;  %v14663_v2 = vld [vmem:[#allocation8 + $0x994] ss:$8 sps:$4 sm:$0xff]  }
 0x30b   :  { %9294 = vmatprep.subr.bf16.mxu0 %v14594_v3  ;;  %v14666_v3 = vld [vmem:[#allocation8 + $0x1994] ss:$8 sps:$4 sm:$0xff]  }
 0x30d   :  { %8447 = vmatpush1.bf16.msra.mxu1 %v14589_v4  ;;  %v14661_v4 = vld [vmem:[#allocation8 + $0x990] ss:$8 sps:$4 sm:$0xff]  }
 0x30e   :  { %9295 = vmatpush1.bf16.msra.mxu0 %v14592_v5  ;;  %8448 = vmatprep.subr.bf16.mxu1 %v14597_v6  ;;  %v14664_v5 = vld [vmem:[#allocation8 + $0x1990] ss:$8 sps:$4 sm:$0xff]   ;;  %v14669_v6 = vld [vmem:[#allocation8 + $0x9a4] ss:$8 sps:$4 sm:$0xff]  }
 0x30f   :  { %9296 = vmatprep.subr.bf16.mxu0 %v14600_v7  ;;  %v14672_v7 = vld [vmem:[#allocation8 + $0x19a4] ss:$8 sps:$4 sm:$0xff]  }
 0x311   :  { %8449 = vmatpush1.bf16.msra.mxu1 %v14595_v58  ;;  %v14667_v58 = vld [vmem:[#allocation8 + $0x9a0] ss:$8 sps:$4 sm:$0xff]  }
 0x312   :  { %9297 = vmatpush1.bf16.msra.mxu0 %v14598_v59  ;;  %8450 = vmatprep.subr.bf16.mxu1 %v14603_v62  ;;  %v14670_v59 = vld [vmem:[#allocation8 + $0x19a0] ss:$8 sps:$4 sm:$0xff]   ;;  %v14675_v62 = vld [vmem:[#allocation8 + $0x9b4] ss:$8 sps:$4 sm:$0xff]  }
 0x313   :  { %9298 = vmatprep.subr.bf16.mxu0 %v14606_v63  ;;  %v14678_v63 = vld [vmem:[#allocation8 + $0x19b4] ss:$8 sps:$4 sm:$0xff]  }
 0x315   :  { %8451 = vmatpush1.bf16.msra.mxu1 %v14601_v11  ;;  %v14673_v11 = vld [vmem:[#allocation8 + $0x9b0] ss:$8 sps:$4 sm:$0xff]  }
 0x316   :  { %9299 = vmatpush1.bf16.msra.mxu0 %v14604_v12  ;;  %8473 = vmatprep.subr.bf16.mxu1 %v14609_v43  ;;  %v14676_v12 = vld [vmem:[#allocation8 + $0x19b0] ss:$8 sps:$4 sm:$0xff]   ;;  %v14681_v43 = vld [vmem:[#allocation8 + $0x9c4] ss:$8 sps:$4 sm:$0xff]  }
 0x317   :  { %9321 = vmatprep.subr.bf16.mxu0 %v14612_v44  ;;  %v14684_v44 = vld [vmem:[#allocation8 + $0x19c4] ss:$8 sps:$4 sm:$0xff]  }
 0x318   :  { %8453 = vmatmul.mubr.bf16.vlgmr.msra.gmra.mrb[0].mxu1 %v11800_v20  ;;  %v14685_v20 = vld [vmem:[#allocation8 + $0x9d0] ss:$8 sps:$4 sm:$0xff]  }
 0x319   :  { %9301 = vmatmul.mubr.bf16.vlgmr.msra.gmra.mrb[0].mxu0 %v11832_v21  ;;  %8474 = vmatpush1.bf16.msra.mxu1 %v14607_v22  ;;  %v14688_v21 = vld [vmem:[#allocation8 + $0x19d0] ss:$8 sps:$4 sm:$0xff]   ;;  %v14693_v22 = vld [vmem:[#allocation8 + $0x9e4] ss:$8 sps:$4 sm:$0xff]  }
 0x31a   :  { %9322 = vmatpush1.bf16.msra.mxu0 %v14610_v23  ;;  %8475 = vmatprep.subr.bf16.mxu1 %v14615_v24  ;;  %v14696_v23 = vld [vmem:[#allocation8 + $0x19e4] ss:$8 sps:$4 sm:$0xff]   ;;  %v14691_v24 = vld [vmem:[#allocation8 + $0x9e0] ss:$8 sps:$4 sm:$0xff]  }
 0x31b   :  { %9323 = vmatprep.subr.bf16.mxu0 %v14618_v25  ;;  %8462 = vmatprep.mubr.bf16.mxu1 %v11873_v28  ;;  %v14694_v25 = vld [vmem:[#allocation8 + $0x19e0] ss:$8 sps:$4 sm:$0xff]   ;;  %v14697_v28 = vld [vmem:[#allocation8 + $0x9f0] ss:$8 sps:$4 sm:$0xff]  }
 0x31c   :  { %9310 = vmatprep.mubr.bf16.mxu0 %v11905_v29  ;;  %v14700_v29 = vld [vmem:[#allocation8 + $0x19f0] ss:$8 sps:$4 sm:$0xff]  }
 0x31d   :  { %8476 = vmatpush1.bf16.msra.mxu1 %v14613_v8  ;;  %v14699_v8 = vld [vmem:[#allocation8 + $0x9f4] ss:$8 sps:$4 sm:$0xff]  }
 0x31e   :  { %9324 = vmatpush1.bf16.msra.mxu0 %v14616_v9  ;;  %8477 = vmatprep.subr.bf16.mxu1 %v14621_v60  ;;  %v14702_v9 = vld [vmem:[#allocation8 + $0x19f4] ss:$8 sps:$4 sm:$0xff]   ;;  %v14705_v60 = vld [vmem:[#allocation8 + $0xa04] ss:$8 sps:$4 sm:$0xff]  }
 0x31f   :  { %9325 = vmatprep.subr.bf16.mxu0 %v14624_v61  ;;  %v14708_v61 = vld [vmem:[#allocation8 + $0x1a04] ss:$8 sps:$4 sm:$0xff]  }
 0x320   :  { %8463 = vmatmul.mubr.bf16.gmra.mrb[4].mxu1 %v11872_v32  ;;  %v289_v32 = vld [vmem:[%s17273_s0 + $0x288] sm:$0xff] }
 0x321   :  { %9311 = vmatmul.mubr.bf16.gmra.mrb[4].mxu0 %v11904_v33  ;;  %8478 = vmatpush1.bf16.msra.mxu1 %v14619_v34  ;;  %v325_v33 = vld [vmem:[%s17273_s0 + $0x3a8] sm:$0xff] }
 0x322   :  { %9326 = vmatpush1.bf16.msra.mxu0 %v14622_v35  ;;  %8479 = vmatprep.subr.bf16.mxu1 %v14627_v36  ;;  %v305_v34 = vld [vmem:[%s17273_s0 + $0x308] sm:$0xff]  ;;  %v11802_v36 = vcombine.low %v16569_v14, %v16574_v15 }
 0x323   :  { %9327 = vmatprep.subr.bf16.mxu0 %v14630_v37  ;;  %8505 = vmatprep.mubr.bf16.mxu1 %v11803_v38  ;;  %v341_v35 = vld [vmem:[%s17273_s0 + $0x428] sm:$0xff]  ;;  %v11834_v37 = vcombine.low %v16579_v30, %v16584_v31  ;;  %v16609_v30 = vld [vmem:[%s17273_s0 + $0x50] sm:$0xff] }
 0x324   :  { %9353 = vmatprep.mubr.bf16.mxu0 %v11835_v39  ;;  %v14703_v38 = vld [vmem:[#allocation8 + $0xa00] ss:$8 sps:$4 sm:$0xff]   ;;  %v14717_v14 = vld [vmem:[#allocation8 + $0xa24] ss:$8 sps:$4 sm:$0xff]   ;;  %v16614_v31 = vld [vmem:[%s17273_s0 + $0x170] sm:$0xff] }
 0x325   :  { %8480 = vmatpush1.bf16.msra.mxu1 %v14625_v40  ;;  %v14706_v39 = vld [vmem:[#allocation8 + $0x1a00] ss:$8 sps:$4 sm:$0xff]   ;;  %v14711_v40 = vld [vmem:[#allocation8 + $0xa14] ss:$8 sps:$4 sm:$0xff]   ;;  %v14720_v15 = vld [vmem:[#allocation8 + $0x1a24] ss:$8 sps:$4 sm:$0xff]  }
 0x326   :  { %9328 = vmatpush1.bf16.msra.mxu0 %v14628_v41  ;;  %8481 = vmatprep.subr.bf16.mxu1 %v14633_v10  ;;  %v14714_v41 = vld [vmem:[#allocation8 + $0x1a14] ss:$8 sps:$4 sm:$0xff]   ;;  %v14709_v10 = vld [vmem:[#allocation8 + $0xa10] ss:$8 sps:$4 sm:$0xff]  }
 0x327   :  { %9329 = vmatprep.subr.bf16.mxu0 %v14636_v13  ;;  %v14712_v13 = vld [vmem:[#allocation8 + $0x1a10] ss:$8 sps:$4 sm:$0xff]  }
 0x329   :  { %8482 = vmatpush1.bf16.msra.mxu1 %v14631_v48  ;;  %v11875_v48 = vcombine.high %v289_v32, %v325_v33 }
 0x32a   :  { %9330 = vmatpush1.bf16.msra.mxu0 %v14634_v49  ;;  %8483 = vmatprep.subr.bf16.mxu1 %v14639_v50  ;;  %v11907_v49 = vcombine.high %v305_v34, %v341_v35  ;;  %v16619_v50 = vld [vmem:[%s17273_s0 + $0xd0] sm:$0xff] }
 0x32b   :  { %9331 = vmatprep.subr.bf16.mxu0 %v14642_v51  ;;  %v16624_v51 = vld [vmem:[%s17273_s0 + $0x1f0] sm:$0xff] }
 0x32d   :  { %8484 = vmatpush1.bf16.msra.mxu1 %v14637_v52  ;;  %v11874_v52 = vcombine.low %v289_v32, %v325_v33  ;;  %v14775_v32 = vld [vmem:[#allocation8 + $0xac0] ss:$8 sps:$4 sm:$0xff]  }
 0x32e   :  { %9332 = vmatpush1.bf16.msra.mxu0 %v14640_v53  ;;  %8485 = vmatprep.subr.bf16.mxu1 %v14645_v54  ;;  %v11906_v53 = vcombine.low %v305_v34, %v341_v35  ;;  %v14715_v54 = vld [vmem:[#allocation8 + $0xa20] ss:$8 sps:$4 sm:$0xff]   ;;  %v14783_v34 = vld [vmem:[#allocation8 + $0xad4] ss:$8 sps:$4 sm:$0xff]  }
 0x32f   :  { %9333 = vmatprep.subr.bf16.mxu0 %v14648_v55  ;;  %v14718_v55 = vld [vmem:[#allocation8 + $0x1a20] ss:$8 sps:$4 sm:$0xff]   ;;  %v14786_v35 = vld [vmem:[#allocation8 + $0x1ad4] ss:$8 sps:$4 sm:$0xff]  }
 0x330   :  { %v14778_v33 = vld [vmem:[#allocation8 + $0x1ac0] ss:$8 sps:$4 sm:$0xff]  }
 0x331   :  { %8486 = vmatpush1.bf16.msra.mxu1 %v14643_v42  ;;  %v14723_v42 = vld [vmem:[#allocation8 + $0xa34] ss:$8 sps:$4 sm:$0xff]  }
 0x332   :  { %9334 = vmatpush1.bf16.msra.mxu0 %v14646_v45  ;;  %8487 = vmatprep.subr.bf16.mxu1 %v14651_v46  ;;  %v14726_v45 = vld [vmem:[#allocation8 + $0x1a34] ss:$8 sps:$4 sm:$0xff]   ;;  %v11805_v46 = vcombine.high %v16609_v30, %v16614_v31 }
 0x333   :  { %9335 = vmatprep.subr.bf16.mxu0 %v14654_v47  ;;  %v11837_v47 = vcombine.high %v16619_v50, %v16624_v51 }
 0x335   :  { %8488 = vmatpush1.bf16.msra.mxu1 %v14649_v56  ;;  %v14721_v56 = vld [vmem:[#allocation8 + $0xa30] ss:$8 sps:$4 sm:$0xff]  }
 0x336   :  { %9336 = vmatpush1.bf16.msra.mxu0 %v14652_v57  ;;  %8489 = vmatprep.subr.bf16.mxu1 %v14657_v26  ;;  %v14724_v57 = vld [vmem:[#allocation8 + $0x1a30] ss:$8 sps:$4 sm:$0xff]   ;;  %v14729_v26 = vld [vmem:[#allocation8 + $0xa44] ss:$8 sps:$4 sm:$0xff]  }
 0x337   :  { %9337 = vmatprep.subr.bf16.mxu0 %v14660_v27  ;;  %v14732_v27 = vld [vmem:[#allocation8 + $0x1a44] ss:$8 sps:$4 sm:$0xff]  }
 0x339   :  { %8490 = vmatpush1.bf16.msra.mxu1 %v14655_v0  ;;  %v14727_v0 = vld [vmem:[#allocation8 + $0xa40] ss:$8 sps:$4 sm:$0xff]  }
 0x33a   :  { %9338 = vmatpush1.bf16.msra.mxu0 %v14658_v1  ;;  %8491 = vmatprep.subr.bf16.mxu1 %v14663_v2  ;;  %v14730_v1 = vld [vmem:[#allocation8 + $0x1a40] ss:$8 sps:$4 sm:$0xff]   ;;  %v14735_v2 = vld [vmem:[#allocation8 + $0xa54] ss:$8 sps:$4 sm:$0xff]  }
 0x33b   :  { %9339 = vmatprep.subr.bf16.mxu0 %v14666_v3  ;;  %v14738_v3 = vld [vmem:[#allocation8 + $0x1a54] ss:$8 sps:$4 sm:$0xff]  }
 0x33d   :  { %8492 = vmatpush1.bf16.msra.mxu1 %v14661_v4  ;;  %v14733_v4 = vld [vmem:[#allocation8 + $0xa50] ss:$8 sps:$4 sm:$0xff]  }
 0x33e   :  { %9340 = vmatpush1.bf16.msra.mxu0 %v14664_v5  ;;  %8493 = vmatprep.subr.bf16.mxu1 %v14669_v6  ;;  %v14736_v5 = vld [vmem:[#allocation8 + $0x1a50] ss:$8 sps:$4 sm:$0xff]   ;;  %v14741_v6 = vld [vmem:[#allocation8 + $0xa64] ss:$8 sps:$4 sm:$0xff]  }
 0x33f   :  { %9341 = vmatprep.subr.bf16.mxu0 %v14672_v7  ;;  %v14744_v7 = vld [vmem:[#allocation8 + $0x1a64] ss:$8 sps:$4 sm:$0xff]  }
 0x341   :  { %8494 = vmatpush1.bf16.msra.mxu1 %v14667_v58  ;;  %v14739_v58 = vld [vmem:[#allocation8 + $0xa60] ss:$8 sps:$4 sm:$0xff]  }
 0x342   :  { %9342 = vmatpush1.bf16.msra.mxu0 %v14670_v59  ;;  %8495 = vmatprep.subr.bf16.mxu1 %v14675_v62  ;;  %v14742_v59 = vld [vmem:[#allocation8 + $0x1a60] ss:$8 sps:$4 sm:$0xff]   ;;  %v14747_v62 = vld [vmem:[#allocation8 + $0xa74] ss:$8 sps:$4 sm:$0xff]  }
 0x343   :  { %9343 = vmatprep.subr.bf16.mxu0 %v14678_v63  ;;  %v14750_v63 = vld [vmem:[#allocation8 + $0x1a74] ss:$8 sps:$4 sm:$0xff]  }
 0x345   :  { %8496 = vmatpush1.bf16.msra.mxu1 %v14673_v11  ;;  %v14745_v11 = vld [vmem:[#allocation8 + $0xa70] ss:$8 sps:$4 sm:$0xff]  }
 0x346   :  { %9344 = vmatpush1.bf16.msra.mxu0 %v14676_v12  ;;  %8497 = vmatprep.subr.bf16.mxu1 %v14681_v43  ;;  %v14748_v12 = vld [vmem:[#allocation8 + $0x1a70] ss:$8 sps:$4 sm:$0xff]   ;;  %v14753_v43 = vld [vmem:[#allocation8 + $0xa84] ss:$8 sps:$4 sm:$0xff]  }
 0x347   :  { %9345 = vmatprep.subr.bf16.mxu0 %v14684_v44  ;;  %v14756_v44 = vld [vmem:[#allocation8 + $0x1a84] ss:$8 sps:$4 sm:$0xff]  }
 0x349   :  { %8498 = vmatpush1.bf16.msra.mxu1 %v14679_v16  ;;  %v14751_v16 = vld [vmem:[#allocation8 + $0xa80] ss:$8 sps:$4 sm:$0xff]  }
 0x34a   :  { %9346 = vmatpush1.bf16.msra.mxu0 %v14682_v17  ;;  %8499 = vmatprep.subr.bf16.mxu1 %v14687_v18  ;;  %v14754_v17 = vld [vmem:[#allocation8 + $0x1a80] ss:$8 sps:$4 sm:$0xff]   ;;  %v14759_v18 = vld [vmem:[#allocation8 + $0xa94] ss:$8 sps:$4 sm:$0xff]  }
 0x34b   :  { %9347 = vmatprep.subr.bf16.mxu0 %v14690_v19  ;;  %v14762_v19 = vld [vmem:[#allocation8 + $0x1a94] ss:$8 sps:$4 sm:$0xff]  }
 0x34d   :  { %8500 = vmatpush1.bf16.msra.mxu1 %v14685_v20  ;;  %v14757_v20 = vld [vmem:[#allocation8 + $0xa90] ss:$8 sps:$4 sm:$0xff]  }
 0x34e   :  { %9348 = vmatpush1.bf16.msra.mxu0 %v14688_v21  ;;  %8501 = vmatprep.subr.bf16.mxu1 %v14693_v22  ;;  %v14760_v21 = vld [vmem:[#allocation8 + $0x1a90] ss:$8 sps:$4 sm:$0xff]   ;;  %v14765_v22 = vld [vmem:[#allocation8 + $0xaa4] ss:$8 sps:$4 sm:$0xff]  }
 0x34f   :  { %9349 = vmatprep.subr.bf16.mxu0 %v14696_v23  ;;  %v14768_v23 = vld [vmem:[#allocation8 + $0x1aa4] ss:$8 sps:$4 sm:$0xff]  }
 0x351   :  { %8502 = vmatpush1.bf16.msra.mxu1 %v14691_v24  ;;  %v14763_v24 = vld [vmem:[#allocation8 + $0xaa0] ss:$8 sps:$4 sm:$0xff]  }
 0x352   :  { %9350 = vmatpush1.bf16.msra.mxu0 %v14694_v25  ;;  %8503 = vmatprep.subr.bf16.mxu1 %v14699_v8  ;;  %v14766_v25 = vld [vmem:[#allocation8 + $0x1aa0] ss:$8 sps:$4 sm:$0xff]   ;;  %v14771_v8 = vld [vmem:[#allocation8 + $0xab4] ss:$8 sps:$4 sm:$0xff]  }
 0x353   :  { %9351 = vmatprep.subr.bf16.mxu0 %v14702_v9  ;;  %v14774_v9 = vld [vmem:[#allocation8 + $0x1ab4] ss:$8 sps:$4 sm:$0xff]  }
 0x355   :  { %8504 = vmatpush1.bf16.msra.mxu1 %v14697_v28  ;;  %v14769_v28 = vld [vmem:[#allocation8 + $0xab0] ss:$8 sps:$4 sm:$0xff]  }
 0x356   :  { %9352 = vmatpush1.bf16.msra.mxu0 %v14700_v29  ;;  %8526 = vmatprep.subr.bf16.mxu1 %v14705_v60  ;;  %v14772_v29 = vld [vmem:[#allocation8 + $0x1ab0] ss:$8 sps:$4 sm:$0xff]   ;;  %v14777_v60 = vld [vmem:[#allocation8 + $0xac4] ss:$8 sps:$4 sm:$0xff]  }
 0x357   :  { %9374 = vmatprep.subr.bf16.mxu0 %v14708_v61  ;;  %v14780_v61 = vld [vmem:[#allocation8 + $0x1ac4] ss:$8 sps:$4 sm:$0xff]  }
 0x358   :  { %8506 = vmatmul.mubr.bf16.vlgmr.msra.gmra.mrb[0].mxu1 %v11802_v36  ;;  %v14781_v36 = vld [vmem:[#allocation8 + $0xad0] ss:$8 sps:$4 sm:$0xff]  }
 0x359   :  { %9354 = vmatmul.mubr.bf16.vlgmr.msra.gmra.mrb[0].mxu0 %v11834_v37  ;;  %8527 = vmatpush1.bf16.msra.mxu1 %v14703_v38  ;;  %v14784_v37 = vld [vmem:[#allocation8 + $0x1ad0] ss:$8 sps:$4 sm:$0xff]   ;;  %v14789_v38 = vld [vmem:[#allocation8 + $0xae4] ss:$8 sps:$4 sm:$0xff]  }
 0x35a   :  { %9375 = vmatpush1.bf16.msra.mxu0 %v14706_v39  ;;  %8528 = vmatprep.subr.bf16.mxu1 %v14711_v40  ;;  %v14792_v39 = vld [vmem:[#allocation8 + $0x1ae4] ss:$8 sps:$4 sm:$0xff]   ;;  %v14787_v40 = vld [vmem:[#allocation8 + $0xae0] ss:$8 sps:$4 sm:$0xff]  }
 0x35b   :  { %9376 = vmatprep.subr.bf16.mxu0 %v14714_v41  ;;  %8515 = vmatprep.mubr.bf16.mxu1 %v11875_v48  ;;  %v14790_v41 = vld [vmem:[#allocation8 + $0x1ae0] ss:$8 sps:$4 sm:$0xff]   ;;  %v14793_v48 = vld [vmem:[#allocation8 + $0xaf0] ss:$8 sps:$4 sm:$0xff]  }
 0x35c   :  { %9363 = vmatprep.mubr.bf16.mxu0 %v11907_v49  ;;  %v14796_v49 = vld [vmem:[#allocation8 + $0x1af0] ss:$8 sps:$4 sm:$0xff]  }
 0x35d   :  { %8529 = vmatpush1.bf16.msra.mxu1 %v14709_v10  ;;  %v14795_v10 = vld [vmem:[#allocation8 + $0xaf4] ss:$8 sps:$4 sm:$0xff]  }
 0x35e   :  { %9377 = vmatpush1.bf16.msra.mxu0 %v14712_v13  ;;  %8530 = vmatprep.subr.bf16.mxu1 %v14717_v14  ;;  %v14798_v13 = vld [vmem:[#allocation8 + $0x1af4] ss:$8 sps:$4 sm:$0xff]   ;;  %v14801_v14 = vld [vmem:[#allocation8 + $0xb04] ss:$8 sps:$4 sm:$0xff]  }
 0x35f   :  { %9378 = vmatprep.subr.bf16.mxu0 %v14720_v15  ;;  %v14804_v15 = vld [vmem:[#allocation8 + $0x1b04] ss:$8 sps:$4 sm:$0xff]  }
 0x360   :  { %8516 = vmatmul.mubr.bf16.gmra.mrb[4].mxu1 %v11874_v52  ;;  %v290_v52 = vld [vmem:[%s17273_s0 + $0x290] sm:$0xff] }
 0x361   :  { %9364 = vmatmul.mubr.bf16.gmra.mrb[4].mxu0 %v11906_v53  ;;  %8531 = vmatpush1.bf16.msra.mxu1 %v14715_v54  ;;  %v326_v53 = vld [vmem:[%s17273_s0 + $0x3b0] sm:$0xff] }
 0x362   :  { %9379 = vmatpush1.bf16.msra.mxu0 %v14718_v55  ;;  %8532 = vmatprep.subr.bf16.mxu1 %v14723_v42  ;;  %v306_v54 = vld [vmem:[%s17273_s0 + $0x310] sm:$0xff]  ;;  %v11804_v42 = vcombine.low %v16609_v30, %v16614_v31  ;;  %v14813_v30 = vld [vmem:[#allocation8 + $0xb24] ss:$8 sps:$4 sm:$0xff]  }
 0x363   :  { %9380 = vmatprep.subr.bf16.mxu0 %v14726_v45  ;;  %8558 = vmatprep.mubr.bf16.mxu1 %v11805_v46  ;;  %v342_v55 = vld [vmem:[%s17273_s0 + $0x430] sm:$0xff]  ;;  %v11836_v45 = vcombine.low %v16619_v50, %v16624_v51  ;;  %v14799_v46 = vld [vmem:[#allocation8 + $0xb00] ss:$8 sps:$4 sm:$0xff]   ;;  %v14816_v31 = vld [vmem:[#allocation8 + $0x1b24] ss:$8 sps:$4 sm:$0xff]  }
 0x364   :  { %9406 = vmatprep.mubr.bf16.mxu0 %v11837_v47  ;;  %v14802_v47 = vld [vmem:[#allocation8 + $0x1b00] ss:$8 sps:$4 sm:$0xff]   ;;  %v16649_v50 = vld [vmem:[%s17273_s0 + $0x58] sm:$0xff] }
 0x365   :  { %8533 = vmatpush1.bf16.msra.mxu1 %v14721_v56  ;;  %v14807_v56 = vld [vmem:[#allocation8 + $0xb14] ss:$8 sps:$4 sm:$0xff]  }
 0x366   :  { %9381 = vmatpush1.bf16.msra.mxu0 %v14724_v57  ;;  %8534 = vmatprep.subr.bf16.mxu1 %v14729_v26  ;;  %v14810_v57 = vld [vmem:[#allocation8 + $0x1b14] ss:$8 sps:$4 sm:$0xff]   ;;  %v14805_v26 = vld [vmem:[#allocation8 + $0xb10] ss:$8 sps:$4 sm:$0xff]  }
 0x367   :  { %9382 = vmatprep.subr.bf16.mxu0 %v14732_v27  ;;  %v14808_v27 = vld [vmem:[#allocation8 + $0x1b10] ss:$8 sps:$4 sm:$0xff]  }
 0x368   :  { %v16654_v51 = vld [vmem:[%s17273_s0 + $0x178] sm:$0xff] }
 0x369   :  { %8535 = vmatpush1.bf16.msra.mxu1 %v14727_v0  ;;  %v11877_v0 = vcombine.high %v290_v52, %v326_v53 }
 0x36a   :  { %9383 = vmatpush1.bf16.msra.mxu0 %v14730_v1  ;;  %8536 = vmatprep.subr.bf16.mxu1 %v14735_v2  ;;  %v11909_v1 = vcombine.high %v306_v54, %v342_v55  ;;  %v16659_v2 = vld [vmem:[%s17273_s0 + $0xd8] sm:$0xff] }
 0x36b   :  { %9384 = vmatprep.subr.bf16.mxu0 %v14738_v3  ;;  %v16664_v3 = vld [vmem:[%s17273_s0 + $0x1f8] sm:$0xff] }
 0x36d   :  { %8537 = vmatpush1.bf16.msra.mxu1 %v14733_v4  ;;  %v11876_v4 = vcombine.low %v290_v52, %v326_v53  ;;  %v14871_v52 = vld [vmem:[#allocation8 + $0xbc0] ss:$8 sps:$4 sm:$0xff]  }
 0x36e   :  { %9385 = vmatpush1.bf16.msra.mxu0 %v14736_v5  ;;  %8538 = vmatprep.subr.bf16.mxu1 %v14741_v6  ;;  %v11908_v5 = vcombine.low %v306_v54, %v342_v55  ;;  %v14811_v6 = vld [vmem:[#allocation8 + $0xb20] ss:$8 sps:$4 sm:$0xff]   ;;  %v14879_v54 = vld [vmem:[#allocation8 + $0xbd4] ss:$8 sps:$4 sm:$0xff]  }
 0x36f   :  { %9386 = vmatprep.subr.bf16.mxu0 %v14744_v7  ;;  %v14814_v7 = vld [vmem:[#allocation8 + $0x1b20] ss:$8 sps:$4 sm:$0xff]   ;;  %v14882_v55 = vld [vmem:[#allocation8 + $0x1bd4] ss:$8 sps:$4 sm:$0xff]  }
 0x370   :  { %v14874_v53 = vld [vmem:[#allocation8 + $0x1bc0] ss:$8 sps:$4 sm:$0xff]  }
 0x371   :  { %8539 = vmatpush1.bf16.msra.mxu1 %v14739_v58  ;;  %v14819_v58 = vld [vmem:[#allocation8 + $0xb34] ss:$8 sps:$4 sm:$0xff]  }
 0x372   :  { %9387 = vmatpush1.bf16.msra.mxu0 %v14742_v59  ;;  %8540 = vmatprep.subr.bf16.mxu1 %v14747_v62  ;;  %v14822_v59 = vld [vmem:[#allocation8 + $0x1b34] ss:$8 sps:$4 sm:$0xff]   ;;  %v11807_v62 = vcombine.high %v16649_v50, %v16654_v51 }
 0x373   :  { %9388 = vmatprep.subr.bf16.mxu0 %v14750_v63  ;;  %v11839_v63 = vcombine.high %v16659_v2, %v16664_v3 }
 0x375   :  { %8541 = vmatpush1.bf16.msra.mxu1 %v14745_v11  ;;  %v14817_v11 = vld [vmem:[#allocation8 + $0xb30] ss:$8 sps:$4 sm:$0xff]  }
 0x376   :  { %9389 = vmatpush1.bf16.msra.mxu0 %v14748_v12  ;;  %8542 = vmatprep.subr.bf16.mxu1 %v14753_v43  ;;  %v14820_v12 = vld [vmem:[#allocation8 + $0x1b30] ss:$8 sps:$4 sm:$0xff]   ;;  %v14825_v43 = vld [vmem:[#allocation8 + $0xb44] ss:$8 sps:$4 sm:$0xff]  }
 0x377   :  { %9390 = vmatprep.subr.bf16.mxu0 %v14756_v44  ;;  %v14828_v44 = vld [vmem:[#allocation8 + $0x1b44] ss:$8 sps:$4 sm:$0xff]  }
 0x379   :  { %8543 = vmatpush1.bf16.msra.mxu1 %v14751_v16  ;;  %v14823_v16 = vld [vmem:[#allocation8 + $0xb40] ss:$8 sps:$4 sm:$0xff]  }
 0x37a   :  { %9391 = vmatpush1.bf16.msra.mxu0 %v14754_v17  ;;  %8544 = vmatprep.subr.bf16.mxu1 %v14759_v18  ;;  %v14826_v17 = vld [vmem:[#allocation8 + $0x1b40] ss:$8 sps:$4 sm:$0xff]   ;;  %v14831_v18 = vld [vmem:[#allocation8 + $0xb54] ss:$8 sps:$4 sm:$0xff]  }
 0x37b   :  { %9392 = vmatprep.subr.bf16.mxu0 %v14762_v19  ;;  %v14834_v19 = vld [vmem:[#allocation8 + $0x1b54] ss:$8 sps:$4 sm:$0xff]  }
 0x37d   :  { %8545 = vmatpush1.bf16.msra.mxu1 %v14757_v20  ;;  %v14829_v20 = vld [vmem:[#allocation8 + $0xb50] ss:$8 sps:$4 sm:$0xff]  }
 0x37e   :  { %9393 = vmatpush1.bf16.msra.mxu0 %v14760_v21  ;;  %8546 = vmatprep.subr.bf16.mxu1 %v14765_v22  ;;  %v14832_v21 = vld [vmem:[#allocation8 + $0x1b50] ss:$8 sps:$4 sm:$0xff]   ;;  %v14837_v22 = vld [vmem:[#allocation8 + $0xb64] ss:$8 sps:$4 sm:$0xff]  }
 0x37f   :  { %9394 = vmatprep.subr.bf16.mxu0 %v14768_v23  ;;  %v14840_v23 = vld [vmem:[#allocation8 + $0x1b64] ss:$8 sps:$4 sm:$0xff]  }
 0x381   :  { %8547 = vmatpush1.bf16.msra.mxu1 %v14763_v24  ;;  %v14835_v24 = vld [vmem:[#allocation8 + $0xb60] ss:$8 sps:$4 sm:$0xff]  }
 0x382   :  { %9395 = vmatpush1.bf16.msra.mxu0 %v14766_v25  ;;  %8548 = vmatprep.subr.bf16.mxu1 %v14771_v8  ;;  %v14838_v25 = vld [vmem:[#allocation8 + $0x1b60] ss:$8 sps:$4 sm:$0xff]   ;;  %v14843_v8 = vld [vmem:[#allocation8 + $0xb74] ss:$8 sps:$4 sm:$0xff]  }
 0x383   :  { %9396 = vmatprep.subr.bf16.mxu0 %v14774_v9  ;;  %v14846_v9 = vld [vmem:[#allocation8 + $0x1b74] ss:$8 sps:$4 sm:$0xff]  }
 0x385   :  { %8549 = vmatpush1.bf16.msra.mxu1 %v14769_v28  ;;  %v14841_v28 = vld [vmem:[#allocation8 + $0xb70] ss:$8 sps:$4 sm:$0xff]  }
 0x386   :  { %9397 = vmatpush1.bf16.msra.mxu0 %v14772_v29  ;;  %8550 = vmatprep.subr.bf16.mxu1 %v14777_v60  ;;  %v14844_v29 = vld [vmem:[#allocation8 + $0x1b70] ss:$8 sps:$4 sm:$0xff]   ;;  %v14849_v60 = vld [vmem:[#allocation8 + $0xb84] ss:$8 sps:$4 sm:$0xff]  }
 0x387   :  { %9398 = vmatprep.subr.bf16.mxu0 %v14780_v61  ;;  %v14852_v61 = vld [vmem:[#allocation8 + $0x1b84] ss:$8 sps:$4 sm:$0xff]  }
 0x389   :  { %8551 = vmatpush1.bf16.msra.mxu1 %v14775_v32  ;;  %v14847_v32 = vld [vmem:[#allocation8 + $0xb80] ss:$8 sps:$4 sm:$0xff]  }
 0x38a   :  { %9399 = vmatpush1.bf16.msra.mxu0 %v14778_v33  ;;  %8552 = vmatprep.subr.bf16.mxu1 %v14783_v34  ;;  %v14850_v33 = vld [vmem:[#allocation8 + $0x1b80] ss:$8 sps:$4 sm:$0xff]   ;;  %v14855_v34 = vld [vmem:[#allocation8 + $0xb94] ss:$8 sps:$4 sm:$0xff]  }
 0x38b   :  { %9400 = vmatprep.subr.bf16.mxu0 %v14786_v35  ;;  %v14858_v35 = vld [vmem:[#allocation8 + $0x1b94] ss:$8 sps:$4 sm:$0xff]  }
 0x38d   :  { %8553 = vmatpush1.bf16.msra.mxu1 %v14781_v36  ;;  %v14853_v36 = vld [vmem:[#allocation8 + $0xb90] ss:$8 sps:$4 sm:$0xff]  }
 0x38e   :  { %9401 = vmatpush1.bf16.msra.mxu0 %v14784_v37  ;;  %8554 = vmatprep.subr.bf16.mxu1 %v14789_v38  ;;  %v14856_v37 = vld [vmem:[#allocation8 + $0x1b90] ss:$8 sps:$4 sm:$0xff]   ;;  %v14861_v38 = vld [vmem:[#allocation8 + $0xba4] ss:$8 sps:$4 sm:$0xff]  }
 0x38f   :  { %9402 = vmatprep.subr.bf16.mxu0 %v14792_v39  ;;  %v14864_v39 = vld [vmem:[#allocation8 + $0x1ba4] ss:$8 sps:$4 sm:$0xff]  }
 0x391   :  { %8555 = vmatpush1.bf16.msra.mxu1 %v14787_v40  ;;  %v14859_v40 = vld [vmem:[#allocation8 + $0xba0] ss:$8 sps:$4 sm:$0xff]  }
 0x392   :  { %9403 = vmatpush1.bf16.msra.mxu0 %v14790_v41  ;;  %8556 = vmatprep.subr.bf16.mxu1 %v14795_v10  ;;  %v14862_v41 = vld [vmem:[#allocation8 + $0x1ba0] ss:$8 sps:$4 sm:$0xff]   ;;  %v14867_v10 = vld [vmem:[#allocation8 + $0xbb4] ss:$8 sps:$4 sm:$0xff]  }
 0x393   :  { %9404 = vmatprep.subr.bf16.mxu0 %v14798_v13  ;;  %v14870_v13 = vld [vmem:[#allocation8 + $0x1bb4] ss:$8 sps:$4 sm:$0xff]  }
 0x395   :  { %8557 = vmatpush1.bf16.msra.mxu1 %v14793_v48  ;;  %v14865_v48 = vld [vmem:[#allocation8 + $0xbb0] ss:$8 sps:$4 sm:$0xff]  }
 0x396   :  { %9405 = vmatpush1.bf16.msra.mxu0 %v14796_v49  ;;  %8579 = vmatprep.subr.bf16.mxu1 %v14801_v14  ;;  %v14868_v49 = vld [vmem:[#allocation8 + $0x1bb0] ss:$8 sps:$4 sm:$0xff]   ;;  %v14873_v14 = vld [vmem:[#allocation8 + $0xbc4] ss:$8 sps:$4 sm:$0xff]  }
 0x397   :  { %9427 = vmatprep.subr.bf16.mxu0 %v14804_v15  ;;  %v14876_v15 = vld [vmem:[#allocation8 + $0x1bc4] ss:$8 sps:$4 sm:$0xff]  }
 0x398   :  { %8559 = vmatmul.mubr.bf16.vlgmr.msra.gmra.mrb[0].mxu1 %v11804_v42  ;;  %v14877_v42 = vld [vmem:[#allocation8 + $0xbd0] ss:$8 sps:$4 sm:$0xff]  }
 0x399   :  { %9407 = vmatmul.mubr.bf16.vlgmr.msra.gmra.mrb[0].mxu0 %v11836_v45  ;;  %8580 = vmatpush1.bf16.msra.mxu1 %v14799_v46  ;;  %v14880_v45 = vld [vmem:[#allocation8 + $0x1bd0] ss:$8 sps:$4 sm:$0xff]   ;;  %v14885_v46 = vld [vmem:[#allocation8 + $0xbe4] ss:$8 sps:$4 sm:$0xff]  }
 0x39a   :  { %9428 = vmatpush1.bf16.msra.mxu0 %v14802_v47  ;;  %8581 = vmatprep.subr.bf16.mxu1 %v14807_v56  ;;  %v14888_v47 = vld [vmem:[#allocation8 + $0x1be4] ss:$8 sps:$4 sm:$0xff]   ;;  %v14883_v56 = vld [vmem:[#allocation8 + $0xbe0] ss:$8 sps:$4 sm:$0xff]  }
 0x39b   :  { %9429 = vmatprep.subr.bf16.mxu0 %v14810_v57  ;;  %8568 = vmatprep.mubr.bf16.mxu1 %v11877_v0  ;;  %v14886_v57 = vld [vmem:[#allocation8 + $0x1be0] ss:$8 sps:$4 sm:$0xff]   ;;  %v14889_v0 = vld [vmem:[#allocation8 + $0xbf0] ss:$8 sps:$4 sm:$0xff]  }
 0x39c   :  { %9416 = vmatprep.mubr.bf16.mxu0 %v11909_v1  ;;  %v14892_v1 = vld [vmem:[#allocation8 + $0x1bf0] ss:$8 sps:$4 sm:$0xff]  }
 0x39d   :  { %8582 = vmatpush1.bf16.msra.mxu1 %v14805_v26  ;;  %v14891_v26 = vld [vmem:[#allocation8 + $0xbf4] ss:$8 sps:$4 sm:$0xff]  }
 0x39e   :  { %9430 = vmatpush1.bf16.msra.mxu0 %v14808_v27  ;;  %8583 = vmatprep.subr.bf16.mxu1 %v14813_v30  ;;  %v14894_v27 = vld [vmem:[#allocation8 + $0x1bf4] ss:$8 sps:$4 sm:$0xff]   ;;  %v14897_v30 = vld [vmem:[#allocation8 + $0xc04] ss:$8 sps:$4 sm:$0xff]  }
 0x39f   :  { %9431 = vmatprep.subr.bf16.mxu0 %v14816_v31  ;;  %v14900_v31 = vld [vmem:[#allocation8 + $0x1c04] ss:$8 sps:$4 sm:$0xff]  }
 0x3a0   :  { %8569 = vmatmul.mubr.bf16.gmra.mrb[4].mxu1 %v11876_v4  ;;  %v291_v4 = vld [vmem:[%s17273_s0 + $0x298] sm:$0xff] }
 0x3a1   :  { %9417 = vmatmul.mubr.bf16.gmra.mrb[4].mxu0 %v11908_v5  ;;  %8584 = vmatpush1.bf16.msra.mxu1 %v14811_v6  ;;  %v327_v5 = vld [vmem:[%s17273_s0 + $0x3b8] sm:$0xff] }
 0x3a2   :  { %9432 = vmatpush1.bf16.msra.mxu0 %v14814_v7  ;;  %8585 = vmatprep.subr.bf16.mxu1 %v14819_v58  ;;  %v307_v6 = vld [vmem:[%s17273_s0 + $0x318] sm:$0xff]  ;;  %v11806_v58 = vcombine.low %v16649_v50, %v16654_v51  ;;  %v14909_v50 = vld [vmem:[#allocation8 + $0xc24] ss:$8 sps:$4 sm:$0xff]  }
 0x3a3   :  { %9433 = vmatprep.subr.bf16.mxu0 %v14822_v59  ;;  %8611 = vmatprep.mubr.bf16.mxu1 %v11807_v62  ;;  %v343_v7 = vld [vmem:[%s17273_s0 + $0x438] sm:$0xff]  ;;  %v11838_v59 = vcombine.low %v16659_v2, %v16664_v3  ;;  %v14895_v62 = vld [vmem:[#allocation8 + $0xc00] ss:$8 sps:$4 sm:$0xff]   ;;  %v14912_v51 = vld [vmem:[#allocation8 + $0x1c24] ss:$8 sps:$4 sm:$0xff]   ;;  %v11878_v3 = vcombine.low %v291_v4, %v327_v5 }
 0x3a4   :  { %9459 = vmatprep.mubr.bf16.mxu0 %v11839_v63  ;;  %v14898_v63 = vld [vmem:[#allocation8 + $0x1c00] ss:$8 sps:$4 sm:$0xff]  }
 0x3a5   :  { %8586 = vmatpush1.bf16.msra.mxu1 %v14817_v11  ;;  %v14903_v11 = vld [vmem:[#allocation8 + $0xc14] ss:$8 sps:$4 sm:$0xff]   ;;  %v16689_v2 = vld [vmem:[%s17273_s0 + $0x60] sm:$0xff] }
 0x3a6   :  { %9434 = vmatpush1.bf16.msra.mxu0 %v14820_v12  ;;  %8587 = vmatprep.subr.bf16.mxu1 %v14825_v43  ;;  %v14906_v12 = vld [vmem:[#allocation8 + $0x1c14] ss:$8 sps:$4 sm:$0xff]   ;;  %v11879_v43 = vcombine.high %v291_v4, %v327_v5  ;;  %v14967_v4 = vld [vmem:[#allocation8 + $0xcc0] ss:$8 sps:$4 sm:$0xff]  }
 0x3a7   :  { %9435 = vmatprep.subr.bf16.mxu0 %v14828_v44  ;;  %v11911_v44 = vcombine.high %v307_v6, %v343_v7  ;;  %v14970_v5 = vld [vmem:[#allocation8 + $0x1cc0] ss:$8 sps:$4 sm:$0xff]  }
 0x3a9   :  { %8588 = vmatpush1.bf16.msra.mxu1 %v14823_v16  ;;  %v14901_v16 = vld [vmem:[#allocation8 + $0xc10] ss:$8 sps:$4 sm:$0xff]  }
 0x3aa   :  { %9436 = vmatpush1.bf16.msra.mxu0 %v14826_v17  ;;  %8589 = vmatprep.subr.bf16.mxu1 %v14831_v18  ;;  %v14904_v17 = vld [vmem:[#allocation8 + $0x1c10] ss:$8 sps:$4 sm:$0xff]   ;;  %v11910_v18 = vcombine.low %v307_v6, %v343_v7  ;;  %v14975_v6 = vld [vmem:[#allocation8 + $0xcd4] ss:$8 sps:$4 sm:$0xff]  }
 0x3ab   :  { %9437 = vmatprep.subr.bf16.mxu0 %v14834_v19  ;;  %v16694_v19 = vld [vmem:[%s17273_s0 + $0x180] sm:$0xff]  ;;  %v14978_v7 = vld [vmem:[#allocation8 + $0x1cd4] ss:$8 sps:$4 sm:$0xff]  }
 0x3ad   :  { %8590 = vmatpush1.bf16.msra.mxu1 %v14829_v20  ;;  %v16699_v20 = vld [vmem:[%s17273_s0 + $0xe0] sm:$0xff] }
 0x3ae   :  { %9438 = vmatpush1.bf16.msra.mxu0 %v14832_v21  ;;  %8591 = vmatprep.subr.bf16.mxu1 %v14837_v22  ;;  %v16704_v21 = vld [vmem:[%s17273_s0 + $0x200] sm:$0xff] }
 0x3af   :  { %9439 = vmatprep.subr.bf16.mxu0 %v14840_v23  ;;  %v14907_v22 = vld [vmem:[#allocation8 + $0xc20] ss:$8 sps:$4 sm:$0xff]  }
 0x3b0   :  { %v14910_v23 = vld [vmem:[#allocation8 + $0x1c20] ss:$8 sps:$4 sm:$0xff]  }
 0x3b1   :  { %8592 = vmatpush1.bf16.msra.mxu1 %v14835_v24  ;;  %v14915_v24 = vld [vmem:[#allocation8 + $0xc34] ss:$8 sps:$4 sm:$0xff]  }
 0x3b2   :  { %9440 = vmatpush1.bf16.msra.mxu0 %v14838_v25  ;;  %8593 = vmatprep.subr.bf16.mxu1 %v14843_v8  ;;  %v14918_v25 = vld [vmem:[#allocation8 + $0x1c34] ss:$8 sps:$4 sm:$0xff]   ;;  %v11809_v8 = vcombine.high %v16689_v2, %v16694_v19 }
 0x3b3   :  { %9441 = vmatprep.subr.bf16.mxu0 %v14846_v9  ;;  %v11841_v9 = vcombine.high %v16699_v20, %v16704_v21 }
 0x3b5   :  { %8594 = vmatpush1.bf16.msra.mxu1 %v14841_v28  ;;  %v14913_v28 = vld [vmem:[#allocation8 + $0xc30] ss:$8 sps:$4 sm:$0xff]  }
 0x3b6   :  { %9442 = vmatpush1.bf16.msra.mxu0 %v14844_v29  ;;  %8595 = vmatprep.subr.bf16.mxu1 %v14849_v60  ;;  %v14916_v29 = vld [vmem:[#allocation8 + $0x1c30] ss:$8 sps:$4 sm:$0xff]   ;;  %v14921_v60 = vld [vmem:[#allocation8 + $0xc44] ss:$8 sps:$4 sm:$0xff]  }
 0x3b7   :  { %9443 = vmatprep.subr.bf16.mxu0 %v14852_v61  ;;  %v14924_v61 = vld [vmem:[#allocation8 + $0x1c44] ss:$8 sps:$4 sm:$0xff]  }
 0x3b9   :  { %8596 = vmatpush1.bf16.msra.mxu1 %v14847_v32  ;;  %v14919_v32 = vld [vmem:[#allocation8 + $0xc40] ss:$8 sps:$4 sm:$0xff]  }
 0x3ba   :  { %9444 = vmatpush1.bf16.msra.mxu0 %v14850_v33  ;;  %8597 = vmatprep.subr.bf16.mxu1 %v14855_v34  ;;  %v14922_v33 = vld [vmem:[#allocation8 + $0x1c40] ss:$8 sps:$4 sm:$0xff]   ;;  %v14927_v34 = vld [vmem:[#allocation8 + $0xc54] ss:$8 sps:$4 sm:$0xff]  }
 0x3bb   :  { %9445 = vmatprep.subr.bf16.mxu0 %v14858_v35  ;;  %v14930_v35 = vld [vmem:[#allocation8 + $0x1c54] ss:$8 sps:$4 sm:$0xff]  }
 0x3bd   :  { %8598 = vmatpush1.bf16.msra.mxu1 %v14853_v36  ;;  %v14925_v36 = vld [vmem:[#allocation8 + $0xc50] ss:$8 sps:$4 sm:$0xff]  }
 0x3be   :  { %9446 = vmatpush1.bf16.msra.mxu0 %v14856_v37  ;;  %8599 = vmatprep.subr.bf16.mxu1 %v14861_v38  ;;  %v14928_v37 = vld [vmem:[#allocation8 + $0x1c50] ss:$8 sps:$4 sm:$0xff]   ;;  %v14933_v38 = vld [vmem:[#allocation8 + $0xc64] ss:$8 sps:$4 sm:$0xff]  }
 0x3bf   :  { %9447 = vmatprep.subr.bf16.mxu0 %v14864_v39  ;;  %v14936_v39 = vld [vmem:[#allocation8 + $0x1c64] ss:$8 sps:$4 sm:$0xff]  }
 0x3c1   :  { %8600 = vmatpush1.bf16.msra.mxu1 %v14859_v40  ;;  %v14931_v40 = vld [vmem:[#allocation8 + $0xc60] ss:$8 sps:$4 sm:$0xff]  }
 0x3c2   :  { %9448 = vmatpush1.bf16.msra.mxu0 %v14862_v41  ;;  %8601 = vmatprep.subr.bf16.mxu1 %v14867_v10  ;;  %v14934_v41 = vld [vmem:[#allocation8 + $0x1c60] ss:$8 sps:$4 sm:$0xff]   ;;  %v14939_v10 = vld [vmem:[#allocation8 + $0xc74] ss:$8 sps:$4 sm:$0xff]  }
 0x3c3   :  { %9449 = vmatprep.subr.bf16.mxu0 %v14870_v13  ;;  %v14942_v13 = vld [vmem:[#allocation8 + $0x1c74] ss:$8 sps:$4 sm:$0xff]  }
 0x3c5   :  { %8602 = vmatpush1.bf16.msra.mxu1 %v14865_v48  ;;  %v14937_v48 = vld [vmem:[#allocation8 + $0xc70] ss:$8 sps:$4 sm:$0xff]  }
 0x3c6   :  { %9450 = vmatpush1.bf16.msra.mxu0 %v14868_v49  ;;  %8603 = vmatprep.subr.bf16.mxu1 %v14873_v14  ;;  %v14940_v49 = vld [vmem:[#allocation8 + $0x1c70] ss:$8 sps:$4 sm:$0xff]   ;;  %v14945_v14 = vld [vmem:[#allocation8 + $0xc84] ss:$8 sps:$4 sm:$0xff]  }
 0x3c7   :  { %9451 = vmatprep.subr.bf16.mxu0 %v14876_v15  ;;  %v14948_v15 = vld [vmem:[#allocation8 + $0x1c84] ss:$8 sps:$4 sm:$0xff]  }
 0x3c9   :  { %8604 = vmatpush1.bf16.msra.mxu1 %v14871_v52  ;;  %v14943_v52 = vld [vmem:[#allocation8 + $0xc80] ss:$8 sps:$4 sm:$0xff]  }
 0x3ca   :  { %9452 = vmatpush1.bf16.msra.mxu0 %v14874_v53  ;;  %8605 = vmatprep.subr.bf16.mxu1 %v14879_v54  ;;  %v14946_v53 = vld [vmem:[#allocation8 + $0x1c80] ss:$8 sps:$4 sm:$0xff]   ;;  %v14951_v54 = vld [vmem:[#allocation8 + $0xc94] ss:$8 sps:$4 sm:$0xff]  }
 0x3cb   :  { %9453 = vmatprep.subr.bf16.mxu0 %v14882_v55  ;;  %v14954_v55 = vld [vmem:[#allocation8 + $0x1c94] ss:$8 sps:$4 sm:$0xff]  }
 0x3cd   :  { %8606 = vmatpush1.bf16.msra.mxu1 %v14877_v42  ;;  %v14949_v42 = vld [vmem:[#allocation8 + $0xc90] ss:$8 sps:$4 sm:$0xff]  }
 0x3ce   :  { %9454 = vmatpush1.bf16.msra.mxu0 %v14880_v45  ;;  %8607 = vmatprep.subr.bf16.mxu1 %v14885_v46  ;;  %v14952_v45 = vld [vmem:[#allocation8 + $0x1c90] ss:$8 sps:$4 sm:$0xff]   ;;  %v14957_v46 = vld [vmem:[#allocation8 + $0xca4] ss:$8 sps:$4 sm:$0xff]  }
 0x3cf   :  { %9455 = vmatprep.subr.bf16.mxu0 %v14888_v47  ;;  %v14960_v47 = vld [vmem:[#allocation8 + $0x1ca4] ss:$8 sps:$4 sm:$0xff]  }
 0x3d1   :  { %8608 = vmatpush1.bf16.msra.mxu1 %v14883_v56  ;;  %v14955_v56 = vld [vmem:[#allocation8 + $0xca0] ss:$8 sps:$4 sm:$0xff]  }
 0x3d2   :  { %9456 = vmatpush1.bf16.msra.mxu0 %v14886_v57  ;;  %8609 = vmatprep.subr.bf16.mxu1 %v14891_v26  ;;  %v14958_v57 = vld [vmem:[#allocation8 + $0x1ca0] ss:$8 sps:$4 sm:$0xff]   ;;  %v14963_v26 = vld [vmem:[#allocation8 + $0xcb4] ss:$8 sps:$4 sm:$0xff]  }
 0x3d3   :  { %9457 = vmatprep.subr.bf16.mxu0 %v14894_v27  ;;  %v14966_v27 = vld [vmem:[#allocation8 + $0x1cb4] ss:$8 sps:$4 sm:$0xff]  }
 0x3d5   :  { %8610 = vmatpush1.bf16.msra.mxu1 %v14889_v0  ;;  %v14961_v0 = vld [vmem:[#allocation8 + $0xcb0] ss:$8 sps:$4 sm:$0xff]  }
 0x3d6   :  { %9458 = vmatpush1.bf16.msra.mxu0 %v14892_v1  ;;  %8632 = vmatprep.subr.bf16.mxu1 %v14897_v30  ;;  %v14964_v1 = vld [vmem:[#allocation8 + $0x1cb0] ss:$8 sps:$4 sm:$0xff]   ;;  %v14969_v30 = vld [vmem:[#allocation8 + $0xcc4] ss:$8 sps:$4 sm:$0xff]  }
 0x3d7   :  { %9480 = vmatprep.subr.bf16.mxu0 %v14900_v31  ;;  %v14972_v31 = vld [vmem:[#allocation8 + $0x1cc4] ss:$8 sps:$4 sm:$0xff]  }
 0x3d8   :  { %8612 = vmatmul.mubr.bf16.vlgmr.msra.gmra.mrb[0].mxu1 %v11806_v58  ;;  %v14973_v58 = vld [vmem:[#allocation8 + $0xcd0] ss:$8 sps:$4 sm:$0xff]  }
 0x3d9   :  { %9460 = vmatmul.mubr.bf16.vlgmr.msra.gmra.mrb[0].mxu0 %v11838_v59  ;;  %8633 = vmatpush1.bf16.msra.mxu1 %v14895_v62  ;;  %v14976_v59 = vld [vmem:[#allocation8 + $0x1cd0] ss:$8 sps:$4 sm:$0xff]   ;;  %v14981_v62 = vld [vmem:[#allocation8 + $0xce4] ss:$8 sps:$4 sm:$0xff]  }
 0x3da   :  { %9481 = vmatpush1.bf16.msra.mxu0 %v14898_v63  ;;  %8634 = vmatprep.subr.bf16.mxu1 %v14903_v11  ;;  %v14984_v63 = vld [vmem:[#allocation8 + $0x1ce4] ss:$8 sps:$4 sm:$0xff]   ;;  %v14979_v11 = vld [vmem:[#allocation8 + $0xce0] ss:$8 sps:$4 sm:$0xff]  }
 0x3db   :  { %9482 = vmatprep.subr.bf16.mxu0 %v14906_v12  ;;  %8621 = vmatprep.mubr.bf16.mxu1 %v11879_v43  ;;  %v14982_v12 = vld [vmem:[#allocation8 + $0x1ce0] ss:$8 sps:$4 sm:$0xff]   ;;  %v14987_v43 = vld [vmem:[#allocation8 + $0xcf4] ss:$8 sps:$4 sm:$0xff]  }
 0x3dc   :  { %9469 = vmatprep.mubr.bf16.mxu0 %v11911_v44  ;;  %v14990_v44 = vld [vmem:[#allocation8 + $0x1cf4] ss:$8 sps:$4 sm:$0xff]  }
 0x3dd   :  { %8635 = vmatpush1.bf16.msra.mxu1 %v14901_v16  ;;  %v14985_v16 = vld [vmem:[#allocation8 + $0xcf0] ss:$8 sps:$4 sm:$0xff]  }
 0x3de   :  { %9483 = vmatpush1.bf16.msra.mxu0 %v14904_v17  ;;  %8636 = vmatprep.subr.bf16.mxu1 %v14909_v50  ;;  %v14988_v17 = vld [vmem:[#allocation8 + $0x1cf0] ss:$8 sps:$4 sm:$0xff]   ;;  %v14993_v50 = vld [vmem:[#allocation8 + $0xd04] ss:$8 sps:$4 sm:$0xff]  }
 0x3df   :  { %9484 = vmatprep.subr.bf16.mxu0 %v14912_v51  ;;  %v14996_v51 = vld [vmem:[#allocation8 + $0x1d04] ss:$8 sps:$4 sm:$0xff]  }
 0x3e0   :  { %8622 = vmatmul.mubr.bf16.gmra.mrb[4].mxu1 %v11878_v3  ;;  %v292_v3 = vld [vmem:[%s17273_s0 + $0x2a0] sm:$0xff] }
 0x3e1   :  { %9470 = vmatmul.mubr.bf16.gmra.mrb[4].mxu0 %v11910_v18  ;;  %8637 = vmatpush1.bf16.msra.mxu1 %v14907_v22  ;;  %v11808_v18 = vcombine.low %v16689_v2, %v16694_v19  ;;  %v11840_v22 = vcombine.low %v16699_v20, %v16704_v21  ;;  %v14999_v2 = vld [vmem:[#allocation8 + $0xd14] ss:$8 sps:$4 sm:$0xff]  }
 0x3e2   :  { %9485 = vmatpush1.bf16.msra.mxu0 %v14910_v23  ;;  %8638 = vmatprep.subr.bf16.mxu1 %v14915_v24  ;;  %v328_v23 = vld [vmem:[%s17273_s0 + $0x3c0] sm:$0xff]  ;;  %v15002_v19 = vld [vmem:[#allocation8 + $0x1d14] ss:$8 sps:$4 sm:$0xff]  }
 0x3e3   :  { %9486 = vmatprep.subr.bf16.mxu0 %v14918_v25  ;;  %8664 = vmatprep.mubr.bf16.mxu1 %v11809_v8  ;;  %v308_v24 = vld [vmem:[%s17273_s0 + $0x320] sm:$0xff]  ;;  %v11881_v20 = vcombine.high %v292_v3, %v328_v23 }
 0x3e4   :  { %9512 = vmatprep.mubr.bf16.mxu0 %v11841_v9  ;;  %v344_v25 = vld [vmem:[%s17273_s0 + $0x440] sm:$0xff] }
 0x3e5   :  { %8639 = vmatpush1.bf16.msra.mxu1 %v14913_v28  ;;  %v14991_v8 = vld [vmem:[#allocation8 + $0xd00] ss:$8 sps:$4 sm:$0xff]   ;;  %v11913_v21 = vcombine.high %v308_v24, %v344_v25  ;;  %v14997_v28 = vld [vmem:[#allocation8 + $0xd10] ss:$8 sps:$4 sm:$0xff]  }
 0x3e6   :  { %9487 = vmatpush1.bf16.msra.mxu0 %v14916_v29  ;;  %8640 = vmatprep.subr.bf16.mxu1 %v14921_v60  ;;  %v14994_v9 = vld [vmem:[#allocation8 + $0x1d00] ss:$8 sps:$4 sm:$0xff]   ;;  %v15000_v29 = vld [vmem:[#allocation8 + $0x1d10] ss:$8 sps:$4 sm:$0xff]   ;;  %v15005_v60 = vld [vmem:[#allocation8 + $0xd24] ss:$8 sps:$4 sm:$0xff]  }
 0x3e7   :  { %9488 = vmatprep.subr.bf16.mxu0 %v14924_v61  ;;  %v15008_v61 = vld [vmem:[#allocation8 + $0x1d24] ss:$8 sps:$4 sm:$0xff]  }
 0x3e9   :  { %8641 = vmatpush1.bf16.msra.mxu1 %v14919_v32  ;;  %v16729_v32 = vld [vmem:[%s17273_s0 + $0x68] sm:$0xff] }
 0x3ea   :  { %9489 = vmatpush1.bf16.msra.mxu0 %v14922_v33  ;;  %8642 = vmatprep.subr.bf16.mxu1 %v14927_v34  ;;  %v11880_v33 = vcombine.low %v292_v3, %v328_v23  ;;  %v11912_v34 = vcombine.low %v308_v24, %v344_v25  ;;  %v15063_v3 = vld [vmem:[#allocation8 + $0xdc0] ss:$8 sps:$4 sm:$0xff]   ;;  %v15074_v23 = vld [vmem:[#allocation8 + $0x1dd4] ss:$8 sps:$4 sm:$0xff]   ;;  %v15069_v24 = vld [vmem:[#allocation8 + $0xdd0] ss:$8 sps:$4 sm:$0xff]  }
 0x3eb   :  { %9490 = vmatprep.subr.bf16.mxu0 %v14930_v35  ;;  %v16734_v35 = vld [vmem:[%s17273_s0 + $0x188] sm:$0xff]  ;;  %v15072_v25 = vld [vmem:[#allocation8 + $0x1dd0] ss:$8 sps:$4 sm:$0xff]  }
 0x3ed   :  { %8643 = vmatpush1.bf16.msra.mxu1 %v14925_v36  ;;  %v16739_v36 = vld [vmem:[%s17273_s0 + $0xe8] sm:$0xff] }
 0x3ee   :  { %9491 = vmatpush1.bf16.msra.mxu0 %v14928_v37  ;;  %8644 = vmatprep.subr.bf16.mxu1 %v14933_v38  ;;  %v16744_v37 = vld [vmem:[%s17273_s0 + $0x208] sm:$0xff] }
 0x3ef   :  { %9492 = vmatprep.subr.bf16.mxu0 %v14936_v39  ;;  %v15003_v38 = vld [vmem:[#allocation8 + $0xd20] ss:$8 sps:$4 sm:$0xff]  }
 0x3f0   :  { %v15006_v39 = vld [vmem:[#allocation8 + $0x1d20] ss:$8 sps:$4 sm:$0xff]  }
 0x3f1   :  { %8645 = vmatpush1.bf16.msra.mxu1 %v14931_v40  ;;  %v15011_v40 = vld [vmem:[#allocation8 + $0xd34] ss:$8 sps:$4 sm:$0xff]  }
 0x3f2   :  { %9493 = vmatpush1.bf16.msra.mxu0 %v14934_v41  ;;  %8646 = vmatprep.subr.bf16.mxu1 %v14939_v10  ;;  %v15014_v41 = vld [vmem:[#allocation8 + $0x1d34] ss:$8 sps:$4 sm:$0xff]   ;;  %v11811_v10 = vcombine.high %v16729_v32, %v16734_v35 }
 0x3f3   :  { %9494 = vmatprep.subr.bf16.mxu0 %v14942_v13  ;;  %v11843_v13 = vcombine.high %v16739_v36, %v16744_v37 }
 0x3f5   :  { %8647 = vmatpush1.bf16.msra.mxu1 %v14937_v48  ;;  %v15009_v48 = vld [vmem:[#allocation8 + $0xd30] ss:$8 sps:$4 sm:$0xff]  }
 0x3f6   :  { %9495 = vmatpush1.bf16.msra.mxu0 %v14940_v49  ;;  %8648 = vmatprep.subr.bf16.mxu1 %v14945_v14  ;;  %v15012_v49 = vld [vmem:[#allocation8 + $0x1d30] ss:$8 sps:$4 sm:$0xff]   ;;  %v15017_v14 = vld [vmem:[#allocation8 + $0xd44] ss:$8 sps:$4 sm:$0xff]  }
 0x3f7   :  { %9496 = vmatprep.subr.bf16.mxu0 %v14948_v15  ;;  %v15020_v15 = vld [vmem:[#allocation8 + $0x1d44] ss:$8 sps:$4 sm:$0xff]  }
 0x3f9   :  { %8649 = vmatpush1.bf16.msra.mxu1 %v14943_v52  ;;  %v15015_v52 = vld [vmem:[#allocation8 + $0xd40] ss:$8 sps:$4 sm:$0xff]  }
 0x3fa   :  { %9497 = vmatpush1.bf16.msra.mxu0 %v14946_v53  ;;  %8650 = vmatprep.subr.bf16.mxu1 %v14951_v54  ;;  %v15018_v53 = vld [vmem:[#allocation8 + $0x1d40] ss:$8 sps:$4 sm:$0xff]   ;;  %v15023_v54 = vld [vmem:[#allocation8 + $0xd54] ss:$8 sps:$4 sm:$0xff]  }
 0x3fb   :  { %9498 = vmatprep.subr.bf16.mxu0 %v14954_v55  ;;  %v15026_v55 = vld [vmem:[#allocation8 + $0x1d54] ss:$8 sps:$4 sm:$0xff]  }
 0x3fd   :  { %8651 = vmatpush1.bf16.msra.mxu1 %v14949_v42  ;;  %v15021_v42 = vld [vmem:[#allocation8 + $0xd50] ss:$8 sps:$4 sm:$0xff]  }
 0x3fe   :  { %9499 = vmatpush1.bf16.msra.mxu0 %v14952_v45  ;;  %8652 = vmatprep.subr.bf16.mxu1 %v14957_v46  ;;  %v15024_v45 = vld [vmem:[#allocation8 + $0x1d50] ss:$8 sps:$4 sm:$0xff]   ;;  %v15029_v46 = vld [vmem:[#allocation8 + $0xd64] ss:$8 sps:$4 sm:$0xff]  }
 0x3ff   :  { %9500 = vmatprep.subr.bf16.mxu0 %v14960_v47  ;;  %v15032_v47 = vld [vmem:[#allocation8 + $0x1d64] ss:$8 sps:$4 sm:$0xff]  }
 0x401   :  { %8653 = vmatpush1.bf16.msra.mxu1 %v14955_v56  ;;  %v15027_v56 = vld [vmem:[#allocation8 + $0xd60] ss:$8 sps:$4 sm:$0xff]  }
 0x402   :  { %9501 = vmatpush1.bf16.msra.mxu0 %v14958_v57  ;;  %8654 = vmatprep.subr.bf16.mxu1 %v14963_v26  ;;  %v15030_v57 = vld [vmem:[#allocation8 + $0x1d60] ss:$8 sps:$4 sm:$0xff]   ;;  %v15035_v26 = vld [vmem:[#allocation8 + $0xd74] ss:$8 sps:$4 sm:$0xff]  }
 0x403   :  { %9502 = vmatprep.subr.bf16.mxu0 %v14966_v27  ;;  %v15038_v27 = vld [vmem:[#allocation8 + $0x1d74] ss:$8 sps:$4 sm:$0xff]  }
 0x405   :  { %8655 = vmatpush1.bf16.msra.mxu1 %v14961_v0  ;;  %v15033_v0 = vld [vmem:[#allocation8 + $0xd70] ss:$8 sps:$4 sm:$0xff]  }
 0x406   :  { %9503 = vmatpush1.bf16.msra.mxu0 %v14964_v1  ;;  %8656 = vmatprep.subr.bf16.mxu1 %v14969_v30  ;;  %v15036_v1 = vld [vmem:[#allocation8 + $0x1d70] ss:$8 sps:$4 sm:$0xff]   ;;  %v15041_v30 = vld [vmem:[#allocation8 + $0xd84] ss:$8 sps:$4 sm:$0xff]  }
 0x407   :  { %9504 = vmatprep.subr.bf16.mxu0 %v14972_v31  ;;  %v15044_v31 = vld [vmem:[#allocation8 + $0x1d84] ss:$8 sps:$4 sm:$0xff]  }
 0x409   :  { %8657 = vmatpush1.bf16.msra.mxu1 %v14967_v4  ;;  %v15039_v4 = vld [vmem:[#allocation8 + $0xd80] ss:$8 sps:$4 sm:$0xff]  }
 0x40a   :  { %9505 = vmatpush1.bf16.msra.mxu0 %v14970_v5  ;;  %8658 = vmatprep.subr.bf16.mxu1 %v14975_v6  ;;  %v15042_v5 = vld [vmem:[#allocation8 + $0x1d80] ss:$8 sps:$4 sm:$0xff]   ;;  %v15047_v6 = vld [vmem:[#allocation8 + $0xd94] ss:$8 sps:$4 sm:$0xff]  }
 0x40b   :  { %9506 = vmatprep.subr.bf16.mxu0 %v14978_v7  ;;  %v15050_v7 = vld [vmem:[#allocation8 + $0x1d94] ss:$8 sps:$4 sm:$0xff]  }
 0x40d   :  { %8659 = vmatpush1.bf16.msra.mxu1 %v14973_v58  ;;  %v15045_v58 = vld [vmem:[#allocation8 + $0xd90] ss:$8 sps:$4 sm:$0xff]  }
 0x40e   :  { %9507 = vmatpush1.bf16.msra.mxu0 %v14976_v59  ;;  %8660 = vmatprep.subr.bf16.mxu1 %v14981_v62  ;;  %v15048_v59 = vld [vmem:[#allocation8 + $0x1d90] ss:$8 sps:$4 sm:$0xff]   ;;  %v15053_v62 = vld [vmem:[#allocation8 + $0xda4] ss:$8 sps:$4 sm:$0xff]  }
 0x40f   :  { %9508 = vmatprep.subr.bf16.mxu0 %v14984_v63  ;;  %v15056_v63 = vld [vmem:[#allocation8 + $0x1da4] ss:$8 sps:$4 sm:$0xff]  }
 0x411   :  { %8661 = vmatpush1.bf16.msra.mxu1 %v14979_v11  ;;  %v15051_v11 = vld [vmem:[#allocation8 + $0xda0] ss:$8 sps:$4 sm:$0xff]  }
 0x412   :  { %9509 = vmatpush1.bf16.msra.mxu0 %v14982_v12  ;;  %8662 = vmatprep.subr.bf16.mxu1 %v14987_v43  ;;  %v15054_v12 = vld [vmem:[#allocation8 + $0x1da0] ss:$8 sps:$4 sm:$0xff]   ;;  %v15059_v43 = vld [vmem:[#allocation8 + $0xdb4] ss:$8 sps:$4 sm:$0xff]  }
 0x413   :  { %9510 = vmatprep.subr.bf16.mxu0 %v14990_v44  ;;  %v15062_v44 = vld [vmem:[#allocation8 + $0x1db4] ss:$8 sps:$4 sm:$0xff]  }
 0x415   :  { %8663 = vmatpush1.bf16.msra.mxu1 %v14985_v16  ;;  %v15057_v16 = vld [vmem:[#allocation8 + $0xdb0] ss:$8 sps:$4 sm:$0xff]  }
 0x416   :  { %9511 = vmatpush1.bf16.msra.mxu0 %v14988_v17  ;;  %8685 = vmatprep.subr.bf16.mxu1 %v14993_v50  ;;  %v15060_v17 = vld [vmem:[#allocation8 + $0x1db0] ss:$8 sps:$4 sm:$0xff]   ;;  %v15065_v50 = vld [vmem:[#allocation8 + $0xdc4] ss:$8 sps:$4 sm:$0xff]  }
 0x417   :  { %9533 = vmatprep.subr.bf16.mxu0 %v14996_v51  ;;  %v15068_v51 = vld [vmem:[#allocation8 + $0x1dc4] ss:$8 sps:$4 sm:$0xff]  }
 0x418   :  { %8665 = vmatmul.mubr.bf16.vlgmr.msra.gmra.mrb[0].mxu1 %v11808_v18  ;;  %v15066_v18 = vld [vmem:[#allocation8 + $0x1dc0] ss:$8 sps:$4 sm:$0xff]  }
 0x419   :  { %9513 = vmatmul.mubr.bf16.vlgmr.msra.gmra.mrb[0].mxu0 %v11840_v22  ;;  %8686 = vmatpush1.bf16.msra.mxu1 %v14991_v8  ;;  %v15071_v22 = vld [vmem:[#allocation8 + $0xdd4] ss:$8 sps:$4 sm:$0xff]   ;;  %v15077_v8 = vld [vmem:[#allocation8 + $0xde4] ss:$8 sps:$4 sm:$0xff]  }
 0x41a   :  { %9534 = vmatpush1.bf16.msra.mxu0 %v14994_v9  ;;  %8687 = vmatprep.subr.bf16.mxu1 %v14999_v2  ;;  %v15080_v9 = vld [vmem:[#allocation8 + $0x1de4] ss:$8 sps:$4 sm:$0xff]   ;;  %v15075_v2 = vld [vmem:[#allocation8 + $0xde0] ss:$8 sps:$4 sm:$0xff]  }
 0x41b   :  { %9535 = vmatprep.subr.bf16.mxu0 %v15002_v19  ;;  %8674 = vmatprep.mubr.bf16.mxu1 %v11881_v20  ;;  %v15078_v19 = vld [vmem:[#allocation8 + $0x1de0] ss:$8 sps:$4 sm:$0xff]   ;;  %v15083_v20 = vld [vmem:[#allocation8 + $0xdf4] ss:$8 sps:$4 sm:$0xff]  }
 0x41c   :  { %9522 = vmatprep.mubr.bf16.mxu0 %v11913_v21  ;;  %v15086_v21 = vld [vmem:[#allocation8 + $0x1df4] ss:$8 sps:$4 sm:$0xff]  }
 0x41d   :  { %8688 = vmatpush1.bf16.msra.mxu1 %v14997_v28  ;;  %v15081_v28 = vld [vmem:[#allocation8 + $0xdf0] ss:$8 sps:$4 sm:$0xff]  }
 0x41e   :  { %9536 = vmatpush1.bf16.msra.mxu0 %v15000_v29  ;;  %8689 = vmatprep.subr.bf16.mxu1 %v15005_v60  ;;  %v15084_v29 = vld [vmem:[#allocation8 + $0x1df0] ss:$8 sps:$4 sm:$0xff]   ;;  %v15089_v60 = vld [vmem:[#allocation8 + $0xe04] ss:$8 sps:$4 sm:$0xff]  }
 0x41f   :  { %9537 = vmatprep.subr.bf16.mxu0 %v15008_v61  ;;  %v15092_v61 = vld [vmem:[#allocation8 + $0x1e04] ss:$8 sps:$4 sm:$0xff]  }
 0x420   :  { %8675 = vmatmul.mubr.bf16.gmra.mrb[4].mxu1 %v11880_v33  ;;  %v293_v33 = vld [vmem:[%s17273_s0 + $0x2a8] sm:$0xff] }
 0x421   :  { %9523 = vmatmul.mubr.bf16.gmra.mrb[4].mxu0 %v11912_v34  ;;  %8690 = vmatpush1.bf16.msra.mxu1 %v15003_v38  ;;  %v11810_v34 = vcombine.low %v16729_v32, %v16734_v35  ;;  %v11842_v38 = vcombine.low %v16739_v36, %v16744_v37  ;;  %v15095_v32 = vld [vmem:[#allocation8 + $0xe14] ss:$8 sps:$4 sm:$0xff]  }
 0x422   :  { %9538 = vmatpush1.bf16.msra.mxu0 %v15006_v39  ;;  %8691 = vmatprep.subr.bf16.mxu1 %v15011_v40  ;;  %v329_v39 = vld [vmem:[%s17273_s0 + $0x3c8] sm:$0xff]  ;;  %v15098_v35 = vld [vmem:[#allocation8 + $0x1e14] ss:$8 sps:$4 sm:$0xff]  }
 0x423   :  { %9539 = vmatprep.subr.bf16.mxu0 %v15014_v41  ;;  %8717 = vmatprep.mubr.bf16.mxu1 %v11811_v10  ;;  %v309_v40 = vld [vmem:[%s17273_s0 + $0x328] sm:$0xff]  ;;  %v11883_v36 = vcombine.high %v293_v33, %v329_v39 }
 0x424   :  { %9565 = vmatprep.mubr.bf16.mxu0 %v11843_v13  ;;  %v345_v41 = vld [vmem:[%s17273_s0 + $0x448] sm:$0xff] }
 0x425   :  { %8692 = vmatpush1.bf16.msra.mxu1 %v15009_v48  ;;  %v15087_v10 = vld [vmem:[#allocation8 + $0xe00] ss:$8 sps:$4 sm:$0xff]   ;;  %v11915_v37 = vcombine.high %v309_v40, %v345_v41  ;;  %v15093_v48 = vld [vmem:[#allocation8 + $0xe10] ss:$8 sps:$4 sm:$0xff]  }
 0x426   :  { %9540 = vmatpush1.bf16.msra.mxu0 %v15012_v49  ;;  %8693 = vmatprep.subr.bf16.mxu1 %v15017_v14  ;;  %v15090_v13 = vld [vmem:[#allocation8 + $0x1e00] ss:$8 sps:$4 sm:$0xff]   ;;  %v15096_v49 = vld [vmem:[#allocation8 + $0x1e10] ss:$8 sps:$4 sm:$0xff]   ;;  %v15101_v14 = vld [vmem:[#allocation8 + $0xe24] ss:$8 sps:$4 sm:$0xff]  }
 0x427   :  { %9541 = vmatprep.subr.bf16.mxu0 %v15020_v15  ;;  %v15104_v15 = vld [vmem:[#allocation8 + $0x1e24] ss:$8 sps:$4 sm:$0xff]  }
 0x429   :  { %8694 = vmatpush1.bf16.msra.mxu1 %v15015_v52  ;;  %v16769_v52 = vld [vmem:[%s17273_s0 + $0x70] sm:$0xff] }
 0x42a   :  { %9542 = vmatpush1.bf16.msra.mxu0 %v15018_v53  ;;  %8695 = vmatprep.subr.bf16.mxu1 %v15023_v54  ;;  %v11882_v53 = vcombine.low %v293_v33, %v329_v39  ;;  %v11914_v54 = vcombine.low %v309_v40, %v345_v41  ;;  %v15159_v33 = vld [vmem:[#allocation8 + $0xec0] ss:$8 sps:$4 sm:$0xff]   ;;  %v15170_v39 = vld [vmem:[#allocation8 + $0x1ed4] ss:$8 sps:$4 sm:$0xff]   ;;  %v15165_v40 = vld [vmem:[#allocation8 + $0xed0] ss:$8 sps:$4 sm:$0xff]  }
 0x42b   :  { %9543 = vmatprep.subr.bf16.mxu0 %v15026_v55  ;;  %v16774_v55 = vld [vmem:[%s17273_s0 + $0x190] sm:$0xff] }
 0x42c   :  { %v15168_v41 = vld [vmem:[#allocation8 + $0x1ed0] ss:$8 sps:$4 sm:$0xff]  }
 0x42d   :  { %8696 = vmatpush1.bf16.msra.mxu1 %v15021_v42  ;;  %v16779_v42 = vld [vmem:[%s17273_s0 + $0xf0] sm:$0xff] }
 0x42e   :  { %9544 = vmatpush1.bf16.msra.mxu0 %v15024_v45  ;;  %8697 = vmatprep.subr.bf16.mxu1 %v15029_v46  ;;  %v16784_v45 = vld [vmem:[%s17273_s0 + $0x210] sm:$0xff]  ;;  %v15099_v46 = vld [vmem:[#allocation8 + $0xe20] ss:$8 sps:$4 sm:$0xff]  }
 0x42f   :  { %9545 = vmatprep.subr.bf16.mxu0 %v15032_v47  ;;  %v15102_v47 = vld [vmem:[#allocation8 + $0x1e20] ss:$8 sps:$4 sm:$0xff]  }
 0x431   :  { %8698 = vmatpush1.bf16.msra.mxu1 %v15027_v56  ;;  %v15107_v56 = vld [vmem:[#allocation8 + $0xe34] ss:$8 sps:$4 sm:$0xff]  }
 0x432   :  { %9546 = vmatpush1.bf16.msra.mxu0 %v15030_v57  ;;  %8699 = vmatprep.subr.bf16.mxu1 %v15035_v26  ;;  %v15110_v57 = vld [vmem:[#allocation8 + $0x1e34] ss:$8 sps:$4 sm:$0xff]   ;;  %v11813_v26 = vcombine.high %v16769_v52, %v16774_v55 }
 0x433   :  { %9547 = vmatprep.subr.bf16.mxu0 %v15038_v27  ;;  %v11845_v27 = vcombine.high %v16779_v42, %v16784_v45 }
 0x435   :  { %8700 = vmatpush1.bf16.msra.mxu1 %v15033_v0  ;;  %v15105_v0 = vld [vmem:[#allocation8 + $0xe30] ss:$8 sps:$4 sm:$0xff]  }
 0x436   :  { %9548 = vmatpush1.bf16.msra.mxu0 %v15036_v1  ;;  %8701 = vmatprep.subr.bf16.mxu1 %v15041_v30  ;;  %v15108_v1 = vld [vmem:[#allocation8 + $0x1e30] ss:$8 sps:$4 sm:$0xff]   ;;  %v15113_v30 = vld [vmem:[#allocation8 + $0xe44] ss:$8 sps:$4 sm:$0xff]  }
 0x437   :  { %9549 = vmatprep.subr.bf16.mxu0 %v15044_v31  ;;  %v15116_v31 = vld [vmem:[#allocation8 + $0x1e44] ss:$8 sps:$4 sm:$0xff]  }
 0x439   :  { %8702 = vmatpush1.bf16.msra.mxu1 %v15039_v4  ;;  %v15111_v4 = vld [vmem:[#allocation8 + $0xe40] ss:$8 sps:$4 sm:$0xff]  }
 0x43a   :  { %9550 = vmatpush1.bf16.msra.mxu0 %v15042_v5  ;;  %8703 = vmatprep.subr.bf16.mxu1 %v15047_v6  ;;  %v15114_v5 = vld [vmem:[#allocation8 + $0x1e40] ss:$8 sps:$4 sm:$0xff]   ;;  %v15119_v6 = vld [vmem:[#allocation8 + $0xe54] ss:$8 sps:$4 sm:$0xff]  }
 0x43b   :  { %9551 = vmatprep.subr.bf16.mxu0 %v15050_v7  ;;  %v15122_v7 = vld [vmem:[#allocation8 + $0x1e54] ss:$8 sps:$4 sm:$0xff]  }
 0x43d   :  { %8704 = vmatpush1.bf16.msra.mxu1 %v15045_v58  ;;  %v15117_v58 = vld [vmem:[#allocation8 + $0xe50] ss:$8 sps:$4 sm:$0xff]  }
 0x43e   :  { %9552 = vmatpush1.bf16.msra.mxu0 %v15048_v59  ;;  %8705 = vmatprep.subr.bf16.mxu1 %v15053_v62  ;;  %v15120_v59 = vld [vmem:[#allocation8 + $0x1e50] ss:$8 sps:$4 sm:$0xff]   ;;  %v15125_v62 = vld [vmem:[#allocation8 + $0xe64] ss:$8 sps:$4 sm:$0xff]  }
 0x43f   :  { %9553 = vmatprep.subr.bf16.mxu0 %v15056_v63  ;;  %v15128_v63 = vld [vmem:[#allocation8 + $0x1e64] ss:$8 sps:$4 sm:$0xff]  }
 0x441   :  { %8706 = vmatpush1.bf16.msra.mxu1 %v15051_v11  ;;  %v15123_v11 = vld [vmem:[#allocation8 + $0xe60] ss:$8 sps:$4 sm:$0xff]  }
 0x442   :  { %9554 = vmatpush1.bf16.msra.mxu0 %v15054_v12  ;;  %8707 = vmatprep.subr.bf16.mxu1 %v15059_v43  ;;  %v15126_v12 = vld [vmem:[#allocation8 + $0x1e60] ss:$8 sps:$4 sm:$0xff]   ;;  %v15131_v43 = vld [vmem:[#allocation8 + $0xe74] ss:$8 sps:$4 sm:$0xff]  }
 0x443   :  { %9555 = vmatprep.subr.bf16.mxu0 %v15062_v44  ;;  %v15134_v44 = vld [vmem:[#allocation8 + $0x1e74] ss:$8 sps:$4 sm:$0xff]  }
 0x445   :  { %8708 = vmatpush1.bf16.msra.mxu1 %v15057_v16  ;;  %v15129_v16 = vld [vmem:[#allocation8 + $0xe70] ss:$8 sps:$4 sm:$0xff]  }
 0x446   :  { %9556 = vmatpush1.bf16.msra.mxu0 %v15060_v17  ;;  %8709 = vmatprep.subr.bf16.mxu1 %v15065_v50  ;;  %v15132_v17 = vld [vmem:[#allocation8 + $0x1e70] ss:$8 sps:$4 sm:$0xff]   ;;  %v15137_v50 = vld [vmem:[#allocation8 + $0xe84] ss:$8 sps:$4 sm:$0xff]  }
 0x447   :  { %9557 = vmatprep.subr.bf16.mxu0 %v15068_v51  ;;  %v15140_v51 = vld [vmem:[#allocation8 + $0x1e84] ss:$8 sps:$4 sm:$0xff]  }
 0x449   :  { %8710 = vmatpush1.bf16.msra.mxu1 %v15063_v3  ;;  %v15135_v3 = vld [vmem:[#allocation8 + $0xe80] ss:$8 sps:$4 sm:$0xff]  }
 0x44a   :  { %9558 = vmatpush1.bf16.msra.mxu0 %v15066_v18  ;;  %8711 = vmatprep.subr.bf16.mxu1 %v15071_v22  ;;  %v15138_v18 = vld [vmem:[#allocation8 + $0x1e80] ss:$8 sps:$4 sm:$0xff]   ;;  %v15143_v22 = vld [vmem:[#allocation8 + $0xe94] ss:$8 sps:$4 sm:$0xff]  }
 0x44b   :  { %9559 = vmatprep.subr.bf16.mxu0 %v15074_v23  ;;  %v15146_v23 = vld [vmem:[#allocation8 + $0x1e94] ss:$8 sps:$4 sm:$0xff]  }
 0x44d   :  { %8712 = vmatpush1.bf16.msra.mxu1 %v15069_v24  ;;  %v15141_v24 = vld [vmem:[#allocation8 + $0xe90] ss:$8 sps:$4 sm:$0xff]  }
 0x44e   :  { %9560 = vmatpush1.bf16.msra.mxu0 %v15072_v25  ;;  %8713 = vmatprep.subr.bf16.mxu1 %v15077_v8  ;;  %v15144_v25 = vld [vmem:[#allocation8 + $0x1e90] ss:$8 sps:$4 sm:$0xff]   ;;  %v15149_v8 = vld [vmem:[#allocation8 + $0xea4] ss:$8 sps:$4 sm:$0xff]  }
 0x44f   :  { %9561 = vmatprep.subr.bf16.mxu0 %v15080_v9  ;;  %v15152_v9 = vld [vmem:[#allocation8 + $0x1ea4] ss:$8 sps:$4 sm:$0xff]  }
 0x451   :  { %8714 = vmatpush1.bf16.msra.mxu1 %v15075_v2  ;;  %v15147_v2 = vld [vmem:[#allocation8 + $0xea0] ss:$8 sps:$4 sm:$0xff]  }
 0x452   :  { %9562 = vmatpush1.bf16.msra.mxu0 %v15078_v19  ;;  %8715 = vmatprep.subr.bf16.mxu1 %v15083_v20  ;;  %v15150_v19 = vld [vmem:[#allocation8 + $0x1ea0] ss:$8 sps:$4 sm:$0xff]   ;;  %v15155_v20 = vld [vmem:[#allocation8 + $0xeb4] ss:$8 sps:$4 sm:$0xff]  }
 0x453   :  { %9563 = vmatprep.subr.bf16.mxu0 %v15086_v21  ;;  %v15158_v21 = vld [vmem:[#allocation8 + $0x1eb4] ss:$8 sps:$4 sm:$0xff]  }
 0x455   :  { %8716 = vmatpush1.bf16.msra.mxu1 %v15081_v28  ;;  %v15153_v28 = vld [vmem:[#allocation8 + $0xeb0] ss:$8 sps:$4 sm:$0xff]  }
 0x456   :  { %9564 = vmatpush1.bf16.msra.mxu0 %v15084_v29  ;;  %8738 = vmatprep.subr.bf16.mxu1 %v15089_v60  ;;  %v15156_v29 = vld [vmem:[#allocation8 + $0x1eb0] ss:$8 sps:$4 sm:$0xff]   ;;  %v15161_v60 = vld [vmem:[#allocation8 + $0xec4] ss:$8 sps:$4 sm:$0xff]  }
 0x457   :  { %9586 = vmatprep.subr.bf16.mxu0 %v15092_v61  ;;  %v15164_v61 = vld [vmem:[#allocation8 + $0x1ec4] ss:$8 sps:$4 sm:$0xff]  }
 0x458   :  { %8718 = vmatmul.mubr.bf16.vlgmr.msra.gmra.mrb[0].mxu1 %v11810_v34  ;;  %v15162_v34 = vld [vmem:[#allocation8 + $0x1ec0] ss:$8 sps:$4 sm:$0xff]  }
 0x459   :  { %9566 = vmatmul.mubr.bf16.vlgmr.msra.gmra.mrb[0].mxu0 %v11842_v38  ;;  %8739 = vmatpush1.bf16.msra.mxu1 %v15087_v10  ;;  %v15167_v38 = vld [vmem:[#allocation8 + $0xed4] ss:$8 sps:$4 sm:$0xff]   ;;  %v15173_v10 = vld [vmem:[#allocation8 + $0xee4] ss:$8 sps:$4 sm:$0xff]  }
 0x45a   :  { %9587 = vmatpush1.bf16.msra.mxu0 %v15090_v13  ;;  %8740 = vmatprep.subr.bf16.mxu1 %v15095_v32  ;;  %v15176_v13 = vld [vmem:[#allocation8 + $0x1ee4] ss:$8 sps:$4 sm:$0xff]   ;;  %v15171_v32 = vld [vmem:[#allocation8 + $0xee0] ss:$8 sps:$4 sm:$0xff]  }
 0x45b   :  { %9588 = vmatprep.subr.bf16.mxu0 %v15098_v35  ;;  %8727 = vmatprep.mubr.bf16.mxu1 %v11883_v36  ;;  %v15174_v35 = vld [vmem:[#allocation8 + $0x1ee0] ss:$8 sps:$4 sm:$0xff]   ;;  %v15179_v36 = vld [vmem:[#allocation8 + $0xef4] ss:$8 sps:$4 sm:$0xff]  }
 0x45c   :  { %9575 = vmatprep.mubr.bf16.mxu0 %v11915_v37  ;;  %v15182_v37 = vld [vmem:[#allocation8 + $0x1ef4] ss:$8 sps:$4 sm:$0xff]  }
 0x45d   :  { %8741 = vmatpush1.bf16.msra.mxu1 %v15093_v48  ;;  %v15177_v48 = vld [vmem:[#allocation8 + $0xef0] ss:$8 sps:$4 sm:$0xff]  }
 0x45e   :  { %9589 = vmatpush1.bf16.msra.mxu0 %v15096_v49  ;;  %8742 = vmatprep.subr.bf16.mxu1 %v15101_v14  ;;  %v15180_v49 = vld [vmem:[#allocation8 + $0x1ef0] ss:$8 sps:$4 sm:$0xff]   ;;  %v15185_v14 = vld [vmem:[#allocation8 + $0xf04] ss:$8 sps:$4 sm:$0xff]  }
 0x45f   :  { %9590 = vmatprep.subr.bf16.mxu0 %v15104_v15  ;;  %v15188_v15 = vld [vmem:[#allocation8 + $0x1f04] ss:$8 sps:$4 sm:$0xff]  }
 0x460   :  { %8728 = vmatmul.mubr.bf16.gmra.mrb[4].mxu1 %v11882_v53  ;;  %v294_v53 = vld [vmem:[%s17273_s0 + $0x2b0] sm:$0xff] }
 0x461   :  { %9576 = vmatmul.mubr.bf16.gmra.mrb[4].mxu0 %v11914_v54  ;;  %8743 = vmatpush1.bf16.msra.mxu1 %v15099_v46  ;;  %v11812_v54 = vcombine.low %v16769_v52, %v16774_v55  ;;  %v11844_v46 = vcombine.low %v16779_v42, %v16784_v45  ;;  %v15191_v52 = vld [vmem:[#allocation8 + $0xf14] ss:$8 sps:$4 sm:$0xff]  }
 0x462   :  { %9591 = vmatpush1.bf16.msra.mxu0 %v15102_v47  ;;  %8744 = vmatprep.subr.bf16.mxu1 %v15107_v56  ;;  %v330_v47 = vld [vmem:[%s17273_s0 + $0x3d0] sm:$0xff] }
 0x463   :  { %9592 = vmatprep.subr.bf16.mxu0 %v15110_v57  ;;  %8770 = vmatprep.mubr.bf16.mxu1 %v11813_v26  ;;  %v310_v56 = vld [vmem:[%s17273_s0 + $0x330] sm:$0xff]  ;;  %v15183_v26 = vld [vmem:[#allocation8 + $0xf00] ss:$8 sps:$4 sm:$0xff]   ;;  %v11885_v42 = vcombine.high %v294_v53, %v330_v47 }
 0x464   :  { %9618 = vmatprep.mubr.bf16.mxu0 %v11845_v27  ;;  %v346_v57 = vld [vmem:[%s17273_s0 + $0x450] sm:$0xff]  ;;  %v15186_v27 = vld [vmem:[#allocation8 + $0x1f00] ss:$8 sps:$4 sm:$0xff]  }
 0x465   :  { %8745 = vmatpush1.bf16.msra.mxu1 %v15105_v0  ;;  %v15194_v55 = vld [vmem:[#allocation8 + $0x1f14] ss:$8 sps:$4 sm:$0xff]   ;;  %v11917_v45 = vcombine.high %v310_v56, %v346_v57  ;;  %v15189_v0 = vld [vmem:[#allocation8 + $0xf10] ss:$8 sps:$4 sm:$0xff]  }
 0x466   :  { %9593 = vmatpush1.bf16.msra.mxu0 %v15108_v1  ;;  %8746 = vmatprep.subr.bf16.mxu1 %v15113_v30  ;;  %v15192_v1 = vld [vmem:[#allocation8 + $0x1f10] ss:$8 sps:$4 sm:$0xff]   ;;  %v15197_v30 = vld [vmem:[#allocation8 + $0xf24] ss:$8 sps:$4 sm:$0xff]  }
 0x467   :  { %9594 = vmatprep.subr.bf16.mxu0 %v15116_v31  ;;  %v15200_v31 = vld [vmem:[#allocation8 + $0x1f24] ss:$8 sps:$4 sm:$0xff]  }
 0x469   :  { %8747 = vmatpush1.bf16.msra.mxu1 %v15111_v4  ;;  %v16809_v4 = vld [vmem:[%s17273_s0 + $0x78] sm:$0xff] }
 0x46a   :  { %9595 = vmatpush1.bf16.msra.mxu0 %v15114_v5  ;;  %8748 = vmatprep.subr.bf16.mxu1 %v15119_v6  ;;  %v11884_v5 = vcombine.low %v294_v53, %v330_v47  ;;  %v11916_v6 = vcombine.low %v310_v56, %v346_v57  ;;  %v15255_v53 = vld [vmem:[#allocation8 + $0xfc0] ss:$8 sps:$4 sm:$0xff]   ;;  %v15266_v47 = vld [vmem:[#allocation8 + $0x1fd4] ss:$8 sps:$4 sm:$0xff]   ;;  %v15261_v56 = vld [vmem:[#allocation8 + $0xfd0] ss:$8 sps:$4 sm:$0xff]  }
 0x46b   :  { %9596 = vmatprep.subr.bf16.mxu0 %v15122_v7  ;;  %v16814_v7 = vld [vmem:[%s17273_s0 + $0x198] sm:$0xff] }
 0x46c   :  { %v15264_v57 = vld [vmem:[#allocation8 + $0x1fd0] ss:$8 sps:$4 sm:$0xff]  }
 0x46d   :  { %8749 = vmatpush1.bf16.msra.mxu1 %v15117_v58  ;;  %v16819_v58 = vld [vmem:[%s17273_s0 + $0xf8] sm:$0xff] }
 0x46e   :  { %9597 = vmatpush1.bf16.msra.mxu0 %v15120_v59  ;;  %8750 = vmatprep.subr.bf16.mxu1 %v15125_v62  ;;  %v16824_v59 = vld [vmem:[%s17273_s0 + $0x218] sm:$0xff]  ;;  %v15195_v62 = vld [vmem:[#allocation8 + $0xf20] ss:$8 sps:$4 sm:$0xff]  }
 0x46f   :  { %9598 = vmatprep.subr.bf16.mxu0 %v15128_v63  ;;  %v15198_v63 = vld [vmem:[#allocation8 + $0x1f20] ss:$8 sps:$4 sm:$0xff]  }
 0x471   :  { %8751 = vmatpush1.bf16.msra.mxu1 %v15123_v11  ;;  %v15203_v11 = vld [vmem:[#allocation8 + $0xf34] ss:$8 sps:$4 sm:$0xff]  }
 0x472   :  { %9599 = vmatpush1.bf16.msra.mxu0 %v15126_v12  ;;  %8752 = vmatprep.subr.bf16.mxu1 %v15131_v43  ;;  %v15206_v12 = vld [vmem:[#allocation8 + $0x1f34] ss:$8 sps:$4 sm:$0xff]   ;;  %v11815_v43 = vcombine.high %v16809_v4, %v16814_v7 }
 0x473   :  { %9600 = vmatprep.subr.bf16.mxu0 %v15134_v44  ;;  %v11847_v44 = vcombine.high %v16819_v58, %v16824_v59 }
 0x475   :  { %8753 = vmatpush1.bf16.msra.mxu1 %v15129_v16  ;;  %v15201_v16 = vld [vmem:[#allocation8 + $0xf30] ss:$8 sps:$4 sm:$0xff]  }
 0x476   :  { %9601 = vmatpush1.bf16.msra.mxu0 %v15132_v17  ;;  %8754 = vmatprep.subr.bf16.mxu1 %v15137_v50  ;;  %v15204_v17 = vld [vmem:[#allocation8 + $0x1f30] ss:$8 sps:$4 sm:$0xff]   ;;  %v15209_v50 = vld [vmem:[#allocation8 + $0xf44] ss:$8 sps:$4 sm:$0xff]  }
 0x477   :  { %9602 = vmatprep.subr.bf16.mxu0 %v15140_v51  ;;  %v15212_v51 = vld [vmem:[#allocation8 + $0x1f44] ss:$8 sps:$4 sm:$0xff]  }
 0x479   :  { %8755 = vmatpush1.bf16.msra.mxu1 %v15135_v3  ;;  %v15207_v3 = vld [vmem:[#allocation8 + $0xf40] ss:$8 sps:$4 sm:$0xff]  }
 0x47a   :  { %9603 = vmatpush1.bf16.msra.mxu0 %v15138_v18  ;;  %8756 = vmatprep.subr.bf16.mxu1 %v15143_v22  ;;  %v15210_v18 = vld [vmem:[#allocation8 + $0x1f40] ss:$8 sps:$4 sm:$0xff]   ;;  %v15215_v22 = vld [vmem:[#allocation8 + $0xf54] ss:$8 sps:$4 sm:$0xff]  }
 0x47b   :  { %9604 = vmatprep.subr.bf16.mxu0 %v15146_v23  ;;  %v15218_v23 = vld [vmem:[#allocation8 + $0x1f54] ss:$8 sps:$4 sm:$0xff]  }
 0x47d   :  { %8757 = vmatpush1.bf16.msra.mxu1 %v15141_v24  ;;  %v15213_v24 = vld [vmem:[#allocation8 + $0xf50] ss:$8 sps:$4 sm:$0xff]  }
 0x47e   :  { %9605 = vmatpush1.bf16.msra.mxu0 %v15144_v25  ;;  %8758 = vmatprep.subr.bf16.mxu1 %v15149_v8  ;;  %v15216_v25 = vld [vmem:[#allocation8 + $0x1f50] ss:$8 sps:$4 sm:$0xff]   ;;  %v15221_v8 = vld [vmem:[#allocation8 + $0xf64] ss:$8 sps:$4 sm:$0xff]  }
 0x47f   :  { %9606 = vmatprep.subr.bf16.mxu0 %v15152_v9  ;;  %v15224_v9 = vld [vmem:[#allocation8 + $0x1f64] ss:$8 sps:$4 sm:$0xff]  }
 0x481   :  { %8759 = vmatpush1.bf16.msra.mxu1 %v15147_v2  ;;  %v15219_v2 = vld [vmem:[#allocation8 + $0xf60] ss:$8 sps:$4 sm:$0xff]  }
 0x482   :  { %9607 = vmatpush1.bf16.msra.mxu0 %v15150_v19  ;;  %8760 = vmatprep.subr.bf16.mxu1 %v15155_v20  ;;  %v15222_v19 = vld [vmem:[#allocation8 + $0x1f60] ss:$8 sps:$4 sm:$0xff]   ;;  %v15227_v20 = vld [vmem:[#allocation8 + $0xf74] ss:$8 sps:$4 sm:$0xff]  }
 0x483   :  { %9608 = vmatprep.subr.bf16.mxu0 %v15158_v21  ;;  %v15230_v21 = vld [vmem:[#allocation8 + $0x1f74] ss:$8 sps:$4 sm:$0xff]  }
 0x485   :  { %8761 = vmatpush1.bf16.msra.mxu1 %v15153_v28  ;;  %v15225_v28 = vld [vmem:[#allocation8 + $0xf70] ss:$8 sps:$4 sm:$0xff]  }
 0x486   :  { %9609 = vmatpush1.bf16.msra.mxu0 %v15156_v29  ;;  %8762 = vmatprep.subr.bf16.mxu1 %v15161_v60  ;;  %v15228_v29 = vld [vmem:[#allocation8 + $0x1f70] ss:$8 sps:$4 sm:$0xff]   ;;  %v15233_v60 = vld [vmem:[#allocation8 + $0xf84] ss:$8 sps:$4 sm:$0xff]  }
 0x487   :  { %9610 = vmatprep.subr.bf16.mxu0 %v15164_v61  ;;  %v15236_v61 = vld [vmem:[#allocation8 + $0x1f84] ss:$8 sps:$4 sm:$0xff]  }
 0x489   :  { %8763 = vmatpush1.bf16.msra.mxu1 %v15159_v33  ;;  %v15231_v33 = vld [vmem:[#allocation8 + $0xf80] ss:$8 sps:$4 sm:$0xff]  }
 0x48a   :  { %9611 = vmatpush1.bf16.msra.mxu0 %v15162_v34  ;;  %8764 = vmatprep.subr.bf16.mxu1 %v15167_v38  ;;  %v15234_v34 = vld [vmem:[#allocation8 + $0x1f80] ss:$8 sps:$4 sm:$0xff]   ;;  %v15239_v38 = vld [vmem:[#allocation8 + $0xf94] ss:$8 sps:$4 sm:$0xff]  }
 0x48b   :  { %9612 = vmatprep.subr.bf16.mxu0 %v15170_v39  ;;  %v15242_v39 = vld [vmem:[#allocation8 + $0x1f94] ss:$8 sps:$4 sm:$0xff]  }
 0x48d   :  { %8765 = vmatpush1.bf16.msra.mxu1 %v15165_v40  ;;  %v15237_v40 = vld [vmem:[#allocation8 + $0xf90] ss:$8 sps:$4 sm:$0xff]  }
 0x48e   :  { %9613 = vmatpush1.bf16.msra.mxu0 %v15168_v41  ;;  %8766 = vmatprep.subr.bf16.mxu1 %v15173_v10  ;;  %v15240_v41 = vld [vmem:[#allocation8 + $0x1f90] ss:$8 sps:$4 sm:$0xff]   ;;  %v15245_v10 = vld [vmem:[#allocation8 + $0xfa4] ss:$8 sps:$4 sm:$0xff]  }
 0x48f   :  { %9614 = vmatprep.subr.bf16.mxu0 %v15176_v13  ;;  %v15248_v13 = vld [vmem:[#allocation8 + $0x1fa4] ss:$8 sps:$4 sm:$0xff]  }
 0x491   :  { %8767 = vmatpush1.bf16.msra.mxu1 %v15171_v32  ;;  %v15243_v32 = vld [vmem:[#allocation8 + $0xfa0] ss:$8 sps:$4 sm:$0xff]  }
 0x492   :  { %9615 = vmatpush1.bf16.msra.mxu0 %v15174_v35  ;;  %8768 = vmatprep.subr.bf16.mxu1 %v15179_v36  ;;  %v15246_v35 = vld [vmem:[#allocation8 + $0x1fa0] ss:$8 sps:$4 sm:$0xff]   ;;  %v15251_v36 = vld [vmem:[#allocation8 + $0xfb4] ss:$8 sps:$4 sm:$0xff]  }
 0x493   :  { %9616 = vmatprep.subr.bf16.mxu0 %v15182_v37  ;;  %v15254_v37 = vld [vmem:[#allocation8 + $0x1fb4] ss:$8 sps:$4 sm:$0xff]  }
 0x495   :  { %8769 = vmatpush1.bf16.msra.mxu1 %v15177_v48  ;;  %v15249_v48 = vld [vmem:[#allocation8 + $0xfb0] ss:$8 sps:$4 sm:$0xff]  }
 0x496   :  { %9617 = vmatpush1.bf16.msra.mxu0 %v15180_v49  ;;  %8791 = vmatprep.subr.bf16.mxu1 %v15185_v14  ;;  %v15252_v49 = vld [vmem:[#allocation8 + $0x1fb0] ss:$8 sps:$4 sm:$0xff]   ;;  %v15257_v14 = vld [vmem:[#allocation8 + $0xfc4] ss:$8 sps:$4 sm:$0xff]  }
 0x497   :  { %9639 = vmatprep.subr.bf16.mxu0 %v15188_v15  ;;  %v15260_v15 = vld [vmem:[#allocation8 + $0x1fc4] ss:$8 sps:$4 sm:$0xff]  }
 0x498   :  { %8771 = vmatmul.mubr.bf16.vlgmr.msra.gmra.mrb[0].mxu1 %v11812_v54  ;;  %v15258_v54 = vld [vmem:[#allocation8 + $0x1fc0] ss:$8 sps:$4 sm:$0xff]  }
 0x499   :  { %9619 = vmatmul.mubr.bf16.vlgmr.msra.gmra.mrb[0].mxu0 %v11844_v46  ;;  %8792 = vmatpush1.bf16.msra.mxu1 %v15183_v26  ;;  %v15263_v46 = vld [vmem:[#allocation8 + $0xfd4] ss:$8 sps:$4 sm:$0xff]   ;;  %v15269_v26 = vld [vmem:[#allocation8 + $0xfe4] ss:$8 sps:$4 sm:$0xff]  }
 0x49a   :  { %9640 = vmatpush1.bf16.msra.mxu0 %v15186_v27  ;;  %8793 = vmatprep.subr.bf16.mxu1 %v15191_v52  ;;  %v15272_v27 = vld [vmem:[#allocation8 + $0x1fe4] ss:$8 sps:$4 sm:$0xff]   ;;  %v15267_v52 = vld [vmem:[#allocation8 + $0xfe0] ss:$8 sps:$4 sm:$0xff]  }
 0x49b   :  { %9641 = vmatprep.subr.bf16.mxu0 %v15194_v55  ;;  %8780 = vmatprep.mubr.bf16.mxu1 %v11885_v42  ;;  %v15270_v55 = vld [vmem:[#allocation8 + $0x1fe0] ss:$8 sps:$4 sm:$0xff]   ;;  %v15275_v42 = vld [vmem:[#allocation8 + $0xff4] ss:$8 sps:$4 sm:$0xff]  }
 0x49c   :  { %9628 = vmatprep.mubr.bf16.mxu0 %v11917_v45  ;;  %v15278_v45 = vld [vmem:[#allocation8 + $0x1ff4] ss:$8 sps:$4 sm:$0xff]  }
 0x49d   :  { %8794 = vmatpush1.bf16.msra.mxu1 %v15189_v0  ;;  %v15273_v0 = vld [vmem:[#allocation8 + $0xff0] ss:$8 sps:$4 sm:$0xff]  }
 0x49e   :  { %9642 = vmatpush1.bf16.msra.mxu0 %v15192_v1  ;;  %8795 = vmatprep.subr.bf16.mxu1 %v15197_v30  ;;  %v15276_v1 = vld [vmem:[#allocation8 + $0x1ff0] ss:$8 sps:$4 sm:$0xff]   ;;  %v15281_v30 = vld [vmem:[#allocation8 + $0x2004] ss:$8 sps:$4 sm:$0xff]  }
 0x49f   :  { %9643 = vmatprep.subr.bf16.mxu0 %v15200_v31  ;;  %v295_v31 = vld [vmem:[%s17273_s0 + $0x2b8] sm:$0xff] }
 0x4a0   :  { %8781 = vmatmul.mubr.bf16.gmra.mrb[4].mxu1 %v11884_v5  ;;  %v331_v5 = vld [vmem:[%s17273_s0 + $0x3d8] sm:$0xff] }
 0x4a1   :  { %9629 = vmatmul.mubr.bf16.gmra.mrb[4].mxu0 %v11916_v6  ;;  %8796 = vmatpush1.bf16.msra.mxu1 %v15195_v62  ;;  %v311_v6 = vld [vmem:[%s17273_s0 + $0x338] sm:$0xff] }
 0x4a2   :  { %9644 = vmatpush1.bf16.msra.mxu0 %v15198_v63  ;;  %8797 = vmatprep.subr.bf16.mxu1 %v15203_v11  ;;  %v347_v62 = vld [vmem:[%s17273_s0 + $0x458] sm:$0xff]  ;;  %v11814_v63 = vcombine.low %v16809_v4, %v16814_v7  ;;  %v11846_v11 = vcombine.low %v16819_v58, %v16824_v59  ;;  %v16849_v4 = vld [vmem:[%s17273_s0 + $0x100] sm:$0xff]  ;;  %v11886_v58 = vcombine.low %v295_v31, %v331_v5 }
 0x4a3   :  { %9645 = vmatprep.subr.bf16.mxu0 %v15206_v12  ;;  %8823 = vmatprep.mubr.bf16.mxu1 %v11815_v43  ;;  %v15279_v12 = vld [vmem:[#allocation8 + $0x2000] ss:$8 sps:$4 sm:$0xff]   ;;  %v11887_v43 = vcombine.high %v295_v31, %v331_v5  ;;  %v11918_v59 = vcombine.low %v311_v6, %v347_v62  ;;  %v15347_v31 = vld [vmem:[#allocation8 + $0x2164] ss:$8 sps:$4 sm:$0xff]  }
 0x4a4   :  { %9671 = vmatprep.mubr.bf16.mxu0 %v11847_v44  ;;  %v15284_v44 = vld [vmem:[#allocation8 + $0x2014] ss:$8 sps:$4 sm:$0xff]   ;;  %v16854_v7 = vld [vmem:[%s17273_s0 + $0x220] sm:$0xff] }
 0x4a5   :  { %8798 = vmatpush1.bf16.msra.mxu1 %v15201_v16  ;;  %v11919_v16 = vcombine.high %v311_v6, %v347_v62  ;;  %v15345_v5 = vld [vmem:[#allocation8 + $0x2160] ss:$8 sps:$4 sm:$0xff]   ;;  %v15350_v6 = vld [vmem:[#allocation8 + $0x2174] ss:$8 sps:$4 sm:$0xff]   ;;  %v15348_v62 = vld [vmem:[#allocation8 + $0x2170] ss:$8 sps:$4 sm:$0xff]  }
 0x4a6   :  { %9646 = vmatpush1.bf16.msra.mxu0 %v15204_v17  ;;  %8799 = vmatprep.subr.bf16.mxu1 %v15209_v50  ;;  %v15282_v17 = vld [vmem:[#allocation8 + $0x2010] ss:$8 sps:$4 sm:$0xff]   ;;  %v15287_v50 = vld [vmem:[#allocation8 + $0x2024] ss:$8 sps:$4 sm:$0xff]  }
 0x4a7   :  { %9647 = vmatprep.subr.bf16.mxu0 %v15212_v51  ;;  %v15285_v51 = vld [vmem:[#allocation8 + $0x2020] ss:$8 sps:$4 sm:$0xff]  }
 0x4a9   :  { %8800 = vmatpush1.bf16.msra.mxu1 %v15207_v3  ;;  %v11849_v3 = vcombine.high %v16849_v4, %v16854_v7 }
 0x4aa   :  { %9648 = vmatpush1.bf16.msra.mxu0 %v15210_v18  ;;  %8801 = vmatprep.subr.bf16.mxu1 %v15215_v22  ;;  %v15290_v18 = vld [vmem:[#allocation8 + $0x2034] ss:$8 sps:$4 sm:$0xff]   ;;  %v15288_v22 = vld [vmem:[#allocation8 + $0x2030] ss:$8 sps:$4 sm:$0xff]  }
 0x4ab   :  { %9649 = vmatprep.subr.bf16.mxu0 %v15218_v23  ;;  %v15293_v23 = vld [vmem:[#allocation8 + $0x2044] ss:$8 sps:$4 sm:$0xff]  }
 0x4ad   :  { %8802 = vmatpush1.bf16.msra.mxu1 %v15213_v24  ;;  %v15291_v24 = vld [vmem:[#allocation8 + $0x2040] ss:$8 sps:$4 sm:$0xff]  }
 0x4ae   :  { %9650 = vmatpush1.bf16.msra.mxu0 %v15216_v25  ;;  %8803 = vmatprep.subr.bf16.mxu1 %v15221_v8  ;;  %v15296_v25 = vld [vmem:[#allocation8 + $0x2054] ss:$8 sps:$4 sm:$0xff]   ;;  %v15294_v8 = vld [vmem:[#allocation8 + $0x2050] ss:$8 sps:$4 sm:$0xff]  }
 0x4af   :  { %9651 = vmatprep.subr.bf16.mxu0 %v15224_v9  ;;  %v15299_v9 = vld [vmem:[#allocation8 + $0x2064] ss:$8 sps:$4 sm:$0xff]  }
 0x4b1   :  { %8804 = vmatpush1.bf16.msra.mxu1 %v15219_v2  ;;  %v15297_v2 = vld [vmem:[#allocation8 + $0x2060] ss:$8 sps:$4 sm:$0xff]  }
 0x4b2   :  { %9652 = vmatpush1.bf16.msra.mxu0 %v15222_v19  ;;  %8805 = vmatprep.subr.bf16.mxu1 %v15227_v20  ;;  %v15302_v19 = vld [vmem:[#allocation8 + $0x2074] ss:$8 sps:$4 sm:$0xff]   ;;  %v15300_v20 = vld [vmem:[#allocation8 + $0x2070] ss:$8 sps:$4 sm:$0xff]  }
 0x4b3   :  { %9653 = vmatprep.subr.bf16.mxu0 %v15230_v21  ;;  %v15305_v21 = vld [vmem:[#allocation8 + $0x2084] ss:$8 sps:$4 sm:$0xff]  }
 0x4b5   :  { %8806 = vmatpush1.bf16.msra.mxu1 %v15225_v28  ;;  %v15303_v28 = vld [vmem:[#allocation8 + $0x2080] ss:$8 sps:$4 sm:$0xff]  }
 0x4b6   :  { %9654 = vmatpush1.bf16.msra.mxu0 %v15228_v29  ;;  %8807 = vmatprep.subr.bf16.mxu1 %v15233_v60  ;;  %v15308_v29 = vld [vmem:[#allocation8 + $0x2094] ss:$8 sps:$4 sm:$0xff]   ;;  %v15306_v60 = vld [vmem:[#allocation8 + $0x2090] ss:$8 sps:$4 sm:$0xff]  }
 0x4b7   :  { %9655 = vmatprep.subr.bf16.mxu0 %v15236_v61  ;;  %v15311_v61 = vld [vmem:[#allocation8 + $0x20a4] ss:$8 sps:$4 sm:$0xff]  }
 0x4b9   :  { %8808 = vmatpush1.bf16.msra.mxu1 %v15231_v33  ;;  %v15309_v33 = vld [vmem:[#allocation8 + $0x20a0] ss:$8 sps:$4 sm:$0xff]  }
 0x4ba   :  { %9656 = vmatpush1.bf16.msra.mxu0 %v15234_v34  ;;  %8809 = vmatprep.subr.bf16.mxu1 %v15239_v38  ;;  %v15314_v34 = vld [vmem:[#allocation8 + $0x20b4] ss:$8 sps:$4 sm:$0xff]   ;;  %v15312_v38 = vld [vmem:[#allocation8 + $0x20b0] ss:$8 sps:$4 sm:$0xff]  }
 0x4bb   :  { %9657 = vmatprep.subr.bf16.mxu0 %v15242_v39  ;;  %v15317_v39 = vld [vmem:[#allocation8 + $0x20c4] ss:$8 sps:$4 sm:$0xff]  }
 0x4bd   :  { %8810 = vmatpush1.bf16.msra.mxu1 %v15237_v40  ;;  %v15315_v40 = vld [vmem:[#allocation8 + $0x20c0] ss:$8 sps:$4 sm:$0xff]  }
 0x4be   :  { %9658 = vmatpush1.bf16.msra.mxu0 %v15240_v41  ;;  %8811 = vmatprep.subr.bf16.mxu1 %v15245_v10  ;;  %v15320_v41 = vld [vmem:[#allocation8 + $0x20d4] ss:$8 sps:$4 sm:$0xff]   ;;  %v15318_v10 = vld [vmem:[#allocation8 + $0x20d0] ss:$8 sps:$4 sm:$0xff]  }
 0x4bf   :  { %9659 = vmatprep.subr.bf16.mxu0 %v15248_v13  ;;  %v15323_v13 = vld [vmem:[#allocation8 + $0x20e4] ss:$8 sps:$4 sm:$0xff]  }
 0x4c1   :  { %8812 = vmatpush1.bf16.msra.mxu1 %v15243_v32  ;;  %v15321_v32 = vld [vmem:[#allocation8 + $0x20e0] ss:$8 sps:$4 sm:$0xff]  }
 0x4c2   :  { %9660 = vmatpush1.bf16.msra.mxu0 %v15246_v35  ;;  %8813 = vmatprep.subr.bf16.mxu1 %v15251_v36  ;;  %v15326_v35 = vld [vmem:[#allocation8 + $0x20f4] ss:$8 sps:$4 sm:$0xff]   ;;  %v15324_v36 = vld [vmem:[#allocation8 + $0x20f0] ss:$8 sps:$4 sm:$0xff]  }
 0x4c3   :  { %9661 = vmatprep.subr.bf16.mxu0 %v15254_v37  ;;  %v15329_v37 = vld [vmem:[#allocation8 + $0x2104] ss:$8 sps:$4 sm:$0xff]  }
 0x4c5   :  { %8814 = vmatpush1.bf16.msra.mxu1 %v15249_v48  ;;  %v312_v48 = vld [vmem:[%s17273_s0 + $0x340] sm:$0xff] }
 0x4c6   :  { %9662 = vmatpush1.bf16.msra.mxu0 %v15252_v49  ;;  %8815 = vmatprep.subr.bf16.mxu1 %v15257_v14  ;;  %v348_v49 = vld [vmem:[%s17273_s0 + $0x460] sm:$0xff]  ;;  %v11848_v14 = vcombine.low %v16849_v4, %v16854_v7 }
 0x4c7   :  { %9663 = vmatprep.subr.bf16.mxu0 %v15260_v15  ;;  %v15327_v15 = vld [vmem:[#allocation8 + $0x2100] ss:$8 sps:$4 sm:$0xff]   ;;  %v15365_v4 = vld [vmem:[#allocation8 + $0x21c4] ss:$8 sps:$4 sm:$0xff]  }
 0x4c8   :  { %v15363_v7 = vld [vmem:[#allocation8 + $0x21c0] ss:$8 sps:$4 sm:$0xff]  }
 0x4c9   :  { %8816 = vmatpush1.bf16.msra.mxu1 %v15255_v53  ;;  %v11921_v53 = vcombine.high %v312_v48, %v348_v49 }
 0x4ca   :  { %9664 = vmatpush1.bf16.msra.mxu0 %v15258_v54  ;;  %8817 = vmatprep.subr.bf16.mxu1 %v15263_v46  ;;  %v15332_v54 = vld [vmem:[#allocation8 + $0x2114] ss:$8 sps:$4 sm:$0xff]   ;;  %v15330_v46 = vld [vmem:[#allocation8 + $0x2110] ss:$8 sps:$4 sm:$0xff]  }
 0x4cb   :  { %9665 = vmatprep.subr.bf16.mxu0 %v15266_v47  ;;  %v15335_v47 = vld [vmem:[#allocation8 + $0x2124] ss:$8 sps:$4 sm:$0xff]  }
 0x4cd   :  { %8818 = vmatpush1.bf16.msra.mxu1 %v15261_v56  ;;  %v16869_v56 = vld [vmem:[%s17273_s0 + $0x108] sm:$0xff] }
 0x4ce   :  { %9666 = vmatpush1.bf16.msra.mxu0 %v15264_v57  ;;  %8819 = vmatprep.subr.bf16.mxu1 %v15269_v26  ;;  %v16874_v57 = vld [vmem:[%s17273_s0 + $0x228] sm:$0xff]  ;;  %v11920_v26 = vcombine.low %v312_v48, %v348_v49  ;;  %v15482_v48 = vld [vmem:[#allocation12 + $0x134] ss:$8 sps:$4 sm:$0xff]  }
 0x4cf   :  { %9667 = vmatprep.subr.bf16.mxu0 %v15272_v27  ;;  %v15333_v27 = vld [vmem:[#allocation8 + $0x2120] ss:$8 sps:$4 sm:$0xff]   ;;  %v15390_v49 = vld [vmem:[#allocation8 + $0x2250] ss:$8 sps:$4 sm:$0xff]  }
 0x4d1   :  { %8820 = vmatpush1.bf16.msra.mxu1 %v15267_v52  ;;  %v11851_v52 = vcombine.high %v16869_v56, %v16874_v57 }
 0x4d2   :  { %9668 = vmatpush1.bf16.msra.mxu0 %v15270_v55  ;;  %8821 = vmatprep.subr.bf16.mxu1 %v15275_v42  ;;  %v15338_v55 = vld [vmem:[#allocation8 + $0x2134] ss:$8 sps:$4 sm:$0xff]   ;;  %v15336_v42 = vld [vmem:[#allocation8 + $0x2130] ss:$8 sps:$4 sm:$0xff]  }
 0x4d3   :  { %9669 = vmatprep.subr.bf16.mxu0 %v15278_v45  ;;  %v15341_v45 = vld [vmem:[#allocation8 + $0x2144] ss:$8 sps:$4 sm:$0xff]  }
 0x4d5   :  { %8822 = vmatpush1.bf16.msra.mxu1 %v15273_v0  ;;  %v15339_v0 = vld [vmem:[#allocation8 + $0x2140] ss:$8 sps:$4 sm:$0xff]  }
 0x4d6   :  { %9670 = vmatpush1.bf16.msra.mxu0 %v15276_v1  ;;  %v15344_v1 = vld [vmem:[#allocation8 + $0x2154] ss:$8 sps:$4 sm:$0xff]  }
 0x4d7   :  { %9692 = vmatprep.subr.bf16.mxu0 %v15281_v30  ;;  %v15342_v30 = vld [vmem:[#allocation8 + $0x2150] ss:$8 sps:$4 sm:$0xff]  }
 0x4d8   :  { %8824 = vmatmul.mubr.bf16.vlgmr.msra.gmra.mrb[0].mxu1 %v11814_v63  ;;  %v15353_v63 = vld [vmem:[#allocation8 + $0x2184] ss:$8 sps:$4 sm:$0xff]  }
 0x4d9   :  { %9672 = vmatmul.mubr.bf16.vlgmr.msra.gmra.mrb[0].mxu0 %v11846_v11  ;;  %8833 = vmatprep.mubr.bf16.mxu1 %v11887_v43  ;;  %v15351_v11 = vld [vmem:[#allocation8 + $0x2180] ss:$8 sps:$4 sm:$0xff]   ;;  %v15354_v43 = vld [vmem:[#allocation8 + $0x2190] ss:$8 sps:$4 sm:$0xff]  }
 0x4da   :  { %9693 = vmatpush1.bf16.msra.mxu0 %v15279_v12  ;;  %9681 = vmatprep.mubr.bf16.mxu0 %v11919_v16  ;;  %v15356_v12 = vld [vmem:[#allocation8 + $0x2194] ss:$8 sps:$4 sm:$0xff]   ;;  %v15357_v16 = vld [vmem:[#allocation8 + $0x21a0] ss:$8 sps:$4 sm:$0xff]  }
 0x4db   :  { %9694 = vmatprep.subr.bf16.mxu0 %v15284_v44  ;;  %v15359_v44 = vld [vmem:[#allocation8 + $0x21a4] ss:$8 sps:$4 sm:$0xff]  }
 0x4de   :  { %9695 = vmatpush1.bf16.msra.mxu0 %v15282_v17  ;;  %v15362_v17 = vld [vmem:[#allocation8 + $0x21b4] ss:$8 sps:$4 sm:$0xff]  }
 0x4df   :  { %9696 = vmatprep.subr.bf16.mxu0 %v15287_v50  ;;  %v15360_v50 = vld [vmem:[#allocation8 + $0x21b0] ss:$8 sps:$4 sm:$0xff]  }
 0x4e0   :  { %8834 = vmatmul.mubr.bf16.gmra.mrb[4].mxu1 %v11886_v58  ;;  %v15368_v58 = vld [vmem:[#allocation8 + $0x21d4] ss:$8 sps:$4 sm:$0xff]  }
 0x4e1   :  { %9682 = vmatmul.mubr.bf16.gmra.mrb[4].mxu0 %v11918_v59  ;;  %v15366_v59 = vld [vmem:[#allocation8 + $0x21d0] ss:$8 sps:$4 sm:$0xff]  }
 0x4e2   :  { %9697 = vmatpush1.bf16.msra.mxu0 %v15285_v51  ;;  %9724 = vmatprep.mubr.bf16.mxu0 %v11849_v3  ;;  %v15371_v51 = vld [vmem:[#allocation8 + $0x21e4] ss:$8 sps:$4 sm:$0xff]   ;;  %v15369_v3 = vld [vmem:[#allocation8 + $0x21e0] ss:$8 sps:$4 sm:$0xff]  }
 0x4e3   :  { %9698 = vmatprep.subr.bf16.mxu0 %v15290_v18  ;;  %v15374_v18 = vld [vmem:[#allocation8 + $0x21f4] ss:$8 sps:$4 sm:$0xff]  }
 0x4e6   :  { %9699 = vmatpush1.bf16.msra.mxu0 %v15288_v22  ;;  %v15372_v22 = vld [vmem:[#allocation8 + $0x21f0] ss:$8 sps:$4 sm:$0xff]  }
 0x4e7   :  { %9700 = vmatprep.subr.bf16.mxu0 %v15293_v23  ;;  %v15377_v23 = vld [vmem:[#allocation8 + $0x2204] ss:$8 sps:$4 sm:$0xff]  }
 0x4ea   :  { %9701 = vmatpush1.bf16.msra.mxu0 %v15291_v24  ;;  %v313_v24 = vld [vmem:[%s17273_s0 + $0x348] sm:$0xff] }
 0x4eb   :  { %9702 = vmatprep.subr.bf16.mxu0 %v15296_v25  ;;  %v349_v25 = vld [vmem:[%s17273_s0 + $0x468] sm:$0xff] }
 0x4ee   :  { %9703 = vmatpush1.bf16.msra.mxu0 %v15294_v8  ;;  %v11850_v8 = vcombine.low %v16869_v56, %v16874_v57  ;;  %v15488_v56 = vld [vmem:[#allocation12 + $0x154] ss:$8 sps:$4 sm:$0xff]  }
 0x4ef   :  { %9704 = vmatprep.subr.bf16.mxu0 %v15299_v9  ;;  %v15375_v9 = vld [vmem:[#allocation8 + $0x2200] ss:$8 sps:$4 sm:$0xff]   ;;  %v15396_v57 = vld [vmem:[#allocation8 + $0x2270] ss:$8 sps:$4 sm:$0xff]  }
 0x4f2   :  { %9705 = vmatpush1.bf16.msra.mxu0 %v15297_v2  ;;  %v11923_v2 = vcombine.high %v313_v24, %v349_v25 }
 0x4f3   :  { %9706 = vmatprep.subr.bf16.mxu0 %v15302_v19  ;;  %v15380_v19 = vld [vmem:[#allocation8 + $0x2214] ss:$8 sps:$4 sm:$0xff]  }
 0x4f6   :  { %9707 = vmatpush1.bf16.msra.mxu0 %v15300_v20  ;;  %v15378_v20 = vld [vmem:[#allocation8 + $0x2210] ss:$8 sps:$4 sm:$0xff]  }
 0x4f7   :  { %9708 = vmatprep.subr.bf16.mxu0 %v15305_v21  ;;  %v15383_v21 = vld [vmem:[#allocation8 + $0x2224] ss:$8 sps:$4 sm:$0xff]  }
 0x4fa   :  { %9709 = vmatpush1.bf16.msra.mxu0 %v15303_v28  ;;  %v16889_v28 = vld [vmem:[%s17273_s0 + $0x110] sm:$0xff] }
 0x4fb   :  { %9710 = vmatprep.subr.bf16.mxu0 %v15308_v29  ;;  %v16894_v29 = vld [vmem:[%s17273_s0 + $0x230] sm:$0xff] }
 0x4fe   :  { %9711 = vmatpush1.bf16.msra.mxu0 %v15306_v60  ;;  %v11922_v60 = vcombine.low %v313_v24, %v349_v25  ;;  %v314_v24 = vld [vmem:[%s17273_s0 + $0x350] sm:$0xff] }
 0x4ff   :  { %9712 = vmatprep.subr.bf16.mxu0 %v15311_v61  ;;  %v15381_v61 = vld [vmem:[#allocation8 + $0x2220] ss:$8 sps:$4 sm:$0xff]   ;;  %v350_v25 = vld [vmem:[%s17273_s0 + $0x470] sm:$0xff] }
 0x502   :  { %9713 = vmatpush1.bf16.msra.mxu0 %v15309_v33  ;;  %v11853_v33 = vcombine.high %v16889_v28, %v16894_v29 }
 0x503   :  { %9714 = vmatprep.subr.bf16.mxu0 %v15314_v34  ;;  %v15386_v34 = vld [vmem:[#allocation8 + $0x2234] ss:$8 sps:$4 sm:$0xff]  }
 0x506   :  { %9715 = vmatpush1.bf16.msra.mxu0 %v15312_v38  ;;  %v15471_v38 = vld [vmem:[#allocation12 + $0x100] ss:$8 sps:$4 sm:$0xff]  }
 0x507   :  { %9716 = vmatprep.subr.bf16.mxu0 %v15317_v39  ;;  %v15473_v39 = vld [vmem:[#allocation12 + $0x104] ss:$8 sps:$4 sm:$0xff]  }
 0x508   :  { %10141 = vmatprep.subr.bf16.mxu1 %v15473_v39 }
 0x509   :  { %10142 = vmatpush1.bf16.msra.mxu1 %v15471_v38  ;;  %v15434_v38 = vld [vmem:[#allocation8 + $0x2334] ss:$8 sps:$4 sm:$0xff]  }
 0x50a   :  { %9717 = vmatpush1.bf16.msra.mxu0 %v15315_v40  ;;  %v15384_v40 = vld [vmem:[#allocation8 + $0x2230] ss:$8 sps:$4 sm:$0xff]  }
 0x50b   :  { %9718 = vmatprep.subr.bf16.mxu0 %v15320_v41  ;;  %v15476_v41 = vld [vmem:[#allocation12 + $0x114] ss:$8 sps:$4 sm:$0xff]  }
 0x50c   :  { %10143 = vmatprep.subr.bf16.mxu1 %v15476_v41  ;;  %v15437_v41 = vld [vmem:[#allocation8 + $0x2344] ss:$8 sps:$4 sm:$0xff]  }
 0x50e   :  { %9719 = vmatpush1.bf16.msra.mxu0 %v15318_v10  ;;  %v15389_v10 = vld [vmem:[#allocation8 + $0x2244] ss:$8 sps:$4 sm:$0xff]  }
 0x50f   :  { %9720 = vmatprep.subr.bf16.mxu0 %v15323_v13  ;;  %v15474_v13 = vld [vmem:[#allocation12 + $0x110] ss:$8 sps:$4 sm:$0xff]  }
 0x510   :  { %10144 = vmatpush1.bf16.msra.mxu1 %v15474_v13  ;;  %v15435_v13 = vld [vmem:[#allocation8 + $0x2340] ss:$8 sps:$4 sm:$0xff]  }
 0x512   :  { %9721 = vmatpush1.bf16.msra.mxu0 %v15321_v32  ;;  %v15479_v32 = vld [vmem:[#allocation12 + $0x124] ss:$8 sps:$4 sm:$0xff]  }
 0x513   :  { %9722 = vmatprep.subr.bf16.mxu0 %v15326_v35  ;;  %v15387_v35 = vld [vmem:[#allocation8 + $0x2240] ss:$8 sps:$4 sm:$0xff]   ;;  %10145 = vmatprep.subr.bf16.mxu1 %v15479_v32 }
 0x514   :  { %v16921_v32 = vld [vmem:[#allocation10] sm:$0x3] }
 0x516   :  { %9723 = vmatpush1.bf16.msra.mxu0 %v15324_v36  ;;  %v15392_v36 = vld [vmem:[#allocation8 + $0x2254] ss:$8 sps:$4 sm:$0xff]  }
 0x517   :  { %9745 = vmatprep.subr.bf16.mxu0 %v15329_v37  ;;  %v15477_v37 = vld [vmem:[#allocation12 + $0x120] ss:$8 sps:$4 sm:$0xff]  }
 0x518   :  { %10146 = vmatpush1.bf16.msra.mxu1 %v15477_v37  ;;  %v15438_v37 = vld [vmem:[#allocation8 + $0x2350] ss:$8 sps:$4 sm:$0xff]  }
 0x519   :  { %9725 = vmatmul.mubr.bf16.vlgmr.msra.gmra.mrb[0].mxu0 %v11848_v14  ;;  %v15395_v14 = vld [vmem:[#allocation8 + $0x2264] ss:$8 sps:$4 sm:$0xff]   ;;  %10147 = vmatprep.subr.bf16.mxu1 %v15482_v48 }
 0x51a   :  { %9746 = vmatpush1.bf16.msra.mxu0 %v15327_v15  ;;  %9734 = vmatprep.mubr.bf16.mxu0 %v11921_v53  ;;  %v15480_v15 = vld [vmem:[#allocation12 + $0x130] ss:$8 sps:$4 sm:$0xff]   ;;  %v15485_v53 = vld [vmem:[#allocation12 + $0x144] ss:$8 sps:$4 sm:$0xff]  }
 0x51b   :  { %9747 = vmatprep.subr.bf16.mxu0 %v15332_v54  ;;  %v15393_v54 = vld [vmem:[#allocation8 + $0x2260] ss:$8 sps:$4 sm:$0xff]   ;;  %v15443_v48 = vld [vmem:[#allocation8 + $0x2364] ss:$8 sps:$4 sm:$0xff]  }
 0x51c   :  { %10148 = vmatpush1.bf16.msra.mxu1 %v15480_v15 }
 0x51d   :  { %10149 = vmatprep.subr.bf16.mxu1 %v15485_v53 }
 0x51e   :  { %9748 = vmatpush1.bf16.msra.mxu0 %v15330_v46  ;;  %v15398_v46 = vld [vmem:[#allocation8 + $0x2274] ss:$8 sps:$4 sm:$0xff]  }
 0x51f   :  { %9749 = vmatprep.subr.bf16.mxu0 %v15335_v47  ;;  %v15483_v47 = vld [vmem:[#allocation12 + $0x140] ss:$8 sps:$4 sm:$0xff]  }
 0x520   :  { %10150 = vmatpush1.bf16.msra.mxu1 %v15483_v47 }
 0x521   :  { %9735 = vmatmul.mubr.bf16.gmra.mrb[4].mxu0 %v11920_v26  ;;  %v15401_v26 = vld [vmem:[#allocation8 + $0x2284] ss:$8 sps:$4 sm:$0xff]   ;;  %10151 = vmatprep.subr.bf16.mxu1 %v15488_v56  ;;  %v15446_v56 = vld [vmem:[#allocation8 + $0x2374] ss:$8 sps:$4 sm:$0xff]  }
 0x522   :  { %9750 = vmatpush1.bf16.msra.mxu0 %v15333_v27  ;;  %9777 = vmatprep.mubr.bf16.mxu0 %v11851_v52  ;;  %v15486_v27 = vld [vmem:[#allocation12 + $0x150] ss:$8 sps:$4 sm:$0xff]   ;;  %v15491_v52 = vld [vmem:[#allocation12 + $0x164] ss:$8 sps:$4 sm:$0xff]  }
 0x523   :  { %9751 = vmatprep.subr.bf16.mxu0 %v15338_v55  ;;  %v15399_v55 = vld [vmem:[#allocation8 + $0x2280] ss:$8 sps:$4 sm:$0xff]  }
 0x524   :  { %10152 = vmatpush1.bf16.msra.mxu1 %v15486_v27 }
 0x525   :  { %10153 = vmatprep.subr.bf16.mxu1 %v15491_v52 }
 0x526   :  { %9752 = vmatpush1.bf16.msra.mxu0 %v15336_v42  ;;  %v15404_v42 = vld [vmem:[#allocation8 + $0x2294] ss:$8 sps:$4 sm:$0xff]  }
 0x527   :  { %9753 = vmatprep.subr.bf16.mxu0 %v15341_v45  ;;  %v15489_v45 = vld [vmem:[#allocation12 + $0x160] ss:$8 sps:$4 sm:$0xff]  }
 0x528   :  { %10154 = vmatpush1.bf16.msra.mxu1 %v15489_v45 }
 0x52a   :  { %9754 = vmatpush1.bf16.msra.mxu0 %v15339_v0  ;;  %v15494_v0 = vld [vmem:[#allocation12 + $0x174] ss:$8 sps:$4 sm:$0xff]  }
 0x52b   :  { %9755 = vmatprep.subr.bf16.mxu0 %v15344_v1  ;;  %v15402_v1 = vld [vmem:[#allocation8 + $0x2290] ss:$8 sps:$4 sm:$0xff]   ;;  %10155 = vmatprep.subr.bf16.mxu1 %v15494_v0  ;;  %v15452_v0 = vld [vmem:[#allocation8 + $0x2394] ss:$8 sps:$4 sm:$0xff]  }
 0x52e   :  { %9756 = vmatpush1.bf16.msra.mxu0 %v15342_v30  ;;  %v15407_v30 = vld [vmem:[#allocation8 + $0x22a4] ss:$8 sps:$4 sm:$0xff]  }
 0x52f   :  { %9757 = vmatprep.subr.bf16.mxu0 %v15347_v31  ;;  %v15492_v31 = vld [vmem:[#allocation12 + $0x170] ss:$8 sps:$4 sm:$0xff]  }
 0x530   :  { %10156 = vmatpush1.bf16.msra.mxu1 %v15492_v31  ;;  %v15453_v31 = vld [vmem:[#allocation8 + $0x23a0] ss:$8 sps:$4 sm:$0xff]  }
 0x532   :  { %9758 = vmatpush1.bf16.msra.mxu0 %v15345_v5  ;;  %v15497_v5 = vld [vmem:[#allocation12 + $0x184] ss:$8 sps:$4 sm:$0xff]  }
 0x533   :  { %9759 = vmatprep.subr.bf16.mxu0 %v15350_v6  ;;  %v15405_v6 = vld [vmem:[#allocation8 + $0x22a0] ss:$8 sps:$4 sm:$0xff]   ;;  %10157 = vmatprep.subr.bf16.mxu1 %v15497_v5  ;;  %v15458_v5 = vld [vmem:[#allocation8 + $0x23b4] ss:$8 sps:$4 sm:$0xff]  }
 0x536   :  { %9760 = vmatpush1.bf16.msra.mxu0 %v15348_v62  ;;  %v15410_v62 = vld [vmem:[#allocation8 + $0x22b4] ss:$8 sps:$4 sm:$0xff]  }
 0x537   :  { %9761 = vmatprep.subr.bf16.mxu0 %v15353_v63  ;;  %v15495_v63 = vld [vmem:[#allocation12 + $0x180] ss:$8 sps:$4 sm:$0xff]  }
 0x538   :  { %10158 = vmatpush1.bf16.msra.mxu1 %v15495_v63  ;;  %v15459_v63 = vld [vmem:[#allocation8 + $0x23c0] ss:$8 sps:$4 sm:$0xff]  }
 0x53a   :  { %9762 = vmatpush1.bf16.msra.mxu0 %v15351_v11  ;;  %v15500_v11 = vld [vmem:[#allocation12 + $0x194] ss:$8 sps:$4 sm:$0xff]  }
 0x53b   :  { %9763 = vmatprep.subr.bf16.mxu0 %v15356_v12  ;;  %v15408_v12 = vld [vmem:[#allocation8 + $0x22b0] ss:$8 sps:$4 sm:$0xff]   ;;  %10159 = vmatprep.subr.bf16.mxu1 %v15500_v11  ;;  %v15464_v11 = vld [vmem:[#allocation8 + $0x23d4] ss:$8 sps:$4 sm:$0xff]  }
 0x53e   :  { %9764 = vmatpush1.bf16.msra.mxu0 %v15354_v43  ;;  %v15413_v43 = vld [vmem:[#allocation8 + $0x22c4] ss:$8 sps:$4 sm:$0xff]  }
 0x53f   :  { %9765 = vmatprep.subr.bf16.mxu0 %v15359_v44  ;;  %v15498_v44 = vld [vmem:[#allocation12 + $0x190] ss:$8 sps:$4 sm:$0xff]  }
 0x540   :  { %10160 = vmatpush1.bf16.msra.mxu1 %v15498_v44  ;;  %v15465_v44 = vld [vmem:[#allocation8 + $0x23e0] ss:$8 sps:$4 sm:$0xff]  }
 0x542   :  { %9766 = vmatpush1.bf16.msra.mxu0 %v15357_v16  ;;  %v15503_v16 = vld [vmem:[#allocation12 + $0x1a4] ss:$8 sps:$4 sm:$0xff]  }
 0x543   :  { %9767 = vmatprep.subr.bf16.mxu0 %v15362_v17  ;;  %v15411_v17 = vld [vmem:[#allocation8 + $0x22c0] ss:$8 sps:$4 sm:$0xff]   ;;  %10161 = vmatprep.subr.bf16.mxu1 %v15503_v16  ;;  %v15470_v16 = vld [vmem:[#allocation8 + $0x23f4] ss:$8 sps:$4 sm:$0xff]  }
 0x546   :  { %9768 = vmatpush1.bf16.msra.mxu0 %v15360_v50  ;;  %v15416_v50 = vld [vmem:[#allocation8 + $0x22d4] ss:$8 sps:$4 sm:$0xff]  }
 0x547   :  { %9769 = vmatprep.subr.bf16.mxu0 %v15365_v4  ;;  %v15501_v4 = vld [vmem:[#allocation12 + $0x1a0] ss:$8 sps:$4 sm:$0xff]  }
 0x548   :  { %10162 = vmatpush1.bf16.msra.mxu1 %v15501_v4  ;;  %v351_v4 = vld [vmem:[%s17273_s0 + $0x478] sm:$0xff] }
 0x54a   :  { %9770 = vmatpush1.bf16.msra.mxu0 %v15363_v7  ;;  %v15506_v7 = vld [vmem:[#allocation12 + $0x1b4] ss:$8 sps:$4 sm:$0xff]  }
 0x54b   :  { %9771 = vmatprep.subr.bf16.mxu0 %v15368_v58  ;;  %v15414_v58 = vld [vmem:[#allocation8 + $0x22d0] ss:$8 sps:$4 sm:$0xff]   ;;  %10163 = vmatprep.subr.bf16.mxu1 %v15506_v7 }
 0x54e   :  { %9772 = vmatpush1.bf16.msra.mxu0 %v15366_v59  ;;  %v15419_v59 = vld [vmem:[#allocation8 + $0x22e4] ss:$8 sps:$4 sm:$0xff]  }
 0x54f   :  { %9773 = vmatprep.subr.bf16.mxu0 %v15371_v51  ;;  %v15504_v51 = vld [vmem:[#allocation12 + $0x1b0] ss:$8 sps:$4 sm:$0xff]  }
 0x550   :  { %10164 = vmatpush1.bf16.msra.mxu1 %v15504_v51  ;;  %v15509_v51 = vld [vmem:[#allocation12 + $0x1c4] ss:$8 sps:$4 sm:$0xff]  }
 0x551   :  { %10165 = vmatprep.subr.bf16.mxu1 %v15509_v51  ;;  %v15542_v51 = vld [vmem:[#allocation12 + $0x74] ss:$8 sps:$4 sm:$0xff]  }
 0x552   :  { %9774 = vmatpush1.bf16.msra.mxu0 %v15369_v3  ;;  %v15417_v3 = vld [vmem:[#allocation8 + $0x22e0] ss:$8 sps:$4 sm:$0xff]  }
 0x553   :  { %9775 = vmatprep.subr.bf16.mxu0 %v15374_v18  ;;  %v15422_v18 = vld [vmem:[#allocation8 + $0x22f4] ss:$8 sps:$4 sm:$0xff]  }
 0x556   :  { %9776 = vmatpush1.bf16.msra.mxu0 %v15372_v22  ;;  %v15420_v22 = vld [vmem:[#allocation8 + $0x22f0] ss:$8 sps:$4 sm:$0xff]  }
 0x557   :  { %9798 = vmatprep.subr.bf16.mxu0 %v15377_v23  ;;  %v15425_v23 = vld [vmem:[#allocation8 + $0x2304] ss:$8 sps:$4 sm:$0xff]  }
 0x559   :  { %9778 = vmatmul.mubr.bf16.vlgmr.msra.gmra.mrb[0].mxu0 %v11850_v8  ;;  %v11852_v8 = vcombine.low %v16889_v28, %v16894_v29  ;;  %v16914_v28 = vld [vmem:[%s17273_s0 + $0x238] sm:$0xff]  ;;  %v1506_v29 = vlaneseq }
 0x55a   :  { %9799 = vmatpush1.bf16.msra.mxu0 %v15375_v9  ;;  %9787 = vmatprep.mubr.bf16.mxu0 %v11923_v2  ;;  %v15423_v9 = vld [vmem:[#allocation8 + $0x2300] ss:$8 sps:$4 sm:$0xff]   ;;  %v11925_v2 = vcombine.high %v314_v24, %v350_v25 }
 0x55b   :  { %9800 = vmatprep.subr.bf16.mxu0 %v15380_v19  ;;  %v15428_v19 = vld [vmem:[#allocation8 + $0x2314] ss:$8 sps:$4 sm:$0xff]   ;;  %v16918_v39 = vshrl.u32 %v1506_v29, 7 }
 0x55e   :  { %9801 = vmatpush1.bf16.msra.mxu0 %v15378_v20  ;;  %v15426_v20 = vld [vmem:[#allocation8 + $0x2310] ss:$8 sps:$4 sm:$0xff]  }
 0x55f   :  { %9802 = vmatprep.subr.bf16.mxu0 %v15383_v21  ;;  %v15431_v21 = vld [vmem:[#allocation8 + $0x2324] ss:$8 sps:$4 sm:$0xff]  }
 0x561   :  { %9788 = vmatmul.mubr.bf16.gmra.mrb[4].mxu0 %v11922_v60  ;;  %v16909_v60 = vld [vmem:[%s17273_s0 + $0x118] sm:$0xff] }
 0x562   :  { %9803 = vmatpush1.bf16.msra.mxu0 %v15381_v61  ;;  %9830 = vmatprep.mubr.bf16.mxu0 %v11853_v33  ;;  %v11924_v61 = vcombine.low %v314_v24, %v350_v25  ;;  %v15429_v33 = vld [vmem:[#allocation8 + $0x2320] ss:$8 sps:$4 sm:$0xff]   ;;  %v11854_v7 = vcombine.low %v16909_v60, %v16914_v28 }
 0x563   :  { %9804 = vmatprep.subr.bf16.mxu0 %v15386_v34  ;;  %v11855_v34 = vcombine.high %v16909_v60, %v16914_v28  ;;  %v15513_v24 = vld [vmem:[#allocation12 + $0x1e0] ss:$8 sps:$4 sm:$0xff]   ;;  %v15518_v25 = vld [vmem:[#allocation12 + $0x1f4] ss:$8 sps:$4 sm:$0xff]   ;;  %v1512_v60 = vsub.s32 1, %v16918_v39 }
 0x565   :  { %v1513_v28 = vrot.slane %v16921_v32, %v1512_v60 }
 0x566   :  { %9805 = vmatpush1.bf16.msra.mxu0 %v15384_v40  ;;  %v15432_v40 = vld [vmem:[#allocation8 + $0x2330] ss:$8 sps:$4 sm:$0xff]  }
 0x567   :  { %9806 = vmatprep.subr.bf16.mxu0 %v15389_v10  ;;  %v1508_v10 = vsub.s32 0, %v16918_v39  ;;  %v15588_v39 = vld [vmem:[%s17278_s5 + $0x88] sm:$0xff]  }
 0x56a   :  { %9807 = vmatpush1.bf16.msra.mxu0 %v15387_v35  ;;  %v15440_v35 = vld [vmem:[#allocation8 + $0x2354] ss:$8 sps:$4 sm:$0xff]  }
 0x56b   :  { %9808 = vmatprep.subr.bf16.mxu0 %v15392_v36  ;;  %v16926_v36 = vrot.slane %v16921_v32, %v1508_v10 }
 0x56e   :  { %9809 = vmatpush1.bf16.msra.mxu0 %v15390_v49 }
 0x56f   :  { %9810 = vmatprep.subr.bf16.mxu0 %v15395_v14 }
 0x572   :  { %9811 = vmatpush1.bf16.msra.mxu0 %v15393_v54  ;;  %v15441_v54 = vld [vmem:[#allocation8 + $0x2360] ss:$8 sps:$4 sm:$0xff]  }
 0x573   :  { %9812 = vmatprep.subr.bf16.mxu0 %v15398_v46 }
 0x576   :  { %9813 = vmatpush1.bf16.msra.mxu0 %v15396_v57  ;;  %v15444_v57 = vld [vmem:[#allocation8 + $0x2370] ss:$8 sps:$4 sm:$0xff]  }
 0x577   :  { %9814 = vmatprep.subr.bf16.mxu0 %v15401_v26  ;;  %v15449_v26 = vld [vmem:[#allocation8 + $0x2384] ss:$8 sps:$4 sm:$0xff]  }
 0x57a   :  { %9815 = vmatpush1.bf16.msra.mxu0 %v15399_v55 }
 0x57b   :  { %9816 = vmatprep.subr.bf16.mxu0 %v15404_v42  ;;  %v15447_v42 = vld [vmem:[#allocation8 + $0x2380] ss:$8 sps:$4 sm:$0xff]  }
 0x57e   :  { %9817 = vmatpush1.bf16.msra.mxu0 %v15402_v1  ;;  %v15450_v1 = vld [vmem:[#allocation8 + $0x2390] ss:$8 sps:$4 sm:$0xff]  }
 0x57f   :  { %9818 = vmatprep.subr.bf16.mxu0 %v15407_v30  ;;  %v15455_v30 = vld [vmem:[#allocation8 + $0x23a4] ss:$8 sps:$4 sm:$0xff]  }
 0x582   :  { %9819 = vmatpush1.bf16.msra.mxu0 %v15405_v6  ;;  %v15456_v6 = vld [vmem:[#allocation8 + $0x23b0] ss:$8 sps:$4 sm:$0xff]  }
 0x583   :  { %9820 = vmatprep.subr.bf16.mxu0 %v15410_v62  ;;  %v15461_v62 = vld [vmem:[#allocation8 + $0x23c4] ss:$8 sps:$4 sm:$0xff]  }
 0x586   :  { %9821 = vmatpush1.bf16.msra.mxu0 %v15408_v12  ;;  %v15462_v12 = vld [vmem:[#allocation8 + $0x23d0] ss:$8 sps:$4 sm:$0xff]  }
 0x587   :  { %9822 = vmatprep.subr.bf16.mxu0 %v15413_v43  ;;  %v15467_v43 = vld [vmem:[#allocation8 + $0x23e4] ss:$8 sps:$4 sm:$0xff]  }
 0x58a   :  { %9823 = vmatpush1.bf16.msra.mxu0 %v15411_v17  ;;  %v15468_v17 = vld [vmem:[#allocation8 + $0x23f0] ss:$8 sps:$4 sm:$0xff]  }
 0x58b   :  { %9824 = vmatprep.subr.bf16.mxu0 %v15416_v50  ;;  %v315_v50 = vld [vmem:[%s17273_s0 + $0x358] sm:$0xff] }
 0x58e   :  { %9825 = vmatpush1.bf16.msra.mxu0 %v15414_v58  ;;  %v11927_v58 = vcombine.high %v315_v50, %v351_v4 }
 0x58f   :  { %9826 = vmatprep.subr.bf16.mxu0 %v15419_v59  ;;  %v11926_v59 = vcombine.low %v315_v50, %v351_v4  ;;  %v15531_v50 = vld [vmem:[#allocation12 + $0x40] ss:$8 sps:$4 sm:$0xff]   ;;  %v15536_v4 = vld [vmem:[#allocation12 + $0x54] ss:$8 sps:$4 sm:$0xff]  }
 0x592   :  { %9827 = vmatpush1.bf16.msra.mxu0 %v15417_v3  ;;  %v15507_v3 = vld [vmem:[#allocation12 + $0x1c0] ss:$8 sps:$4 sm:$0xff]  }
 0x593   :  { %9828 = vmatprep.subr.bf16.mxu0 %v15422_v18  ;;  %10166 = vmatpush1.bf16.msra.mxu1 %v15507_v3  ;;  %v15512_v18 = vld [vmem:[#allocation12 + $0x1d4] ss:$8 sps:$4 sm:$0xff]   ;;  %v15540_v3 = vld [vmem:[#allocation12 + $0x70] ss:$8 sps:$4 sm:$0xff]  }
 0x594   :  { %10167 = vmatprep.subr.bf16.mxu1 %v15512_v18  ;;  %v15545_v18 = vld [vmem:[#allocation12 + $0x84] ss:$8 sps:$4 sm:$0xff]  }
 0x596   :  { %9829 = vmatpush1.bf16.msra.mxu0 %v15420_v22  ;;  %v15510_v22 = vld [vmem:[#allocation12 + $0x1d0] ss:$8 sps:$4 sm:$0xff]  }
 0x597   :  { %9851 = vmatprep.subr.bf16.mxu0 %v15425_v23  ;;  %10168 = vmatpush1.bf16.msra.mxu1 %v15510_v22  ;;  %v15515_v23 = vld [vmem:[#allocation12 + $0x1e4] ss:$8 sps:$4 sm:$0xff]   ;;  %v15543_v22 = vld [vmem:[#allocation12 + $0x80] ss:$8 sps:$4 sm:$0xff]  }
 0x598   :  { %10169 = vmatprep.subr.bf16.mxu1 %v15515_v23  ;;  %v15548_v23 = vld [vmem:[#allocation12 + $0x94] ss:$8 sps:$4 sm:$0xff]  }
 0x599   :  { %9831 = vmatmul.mubr.bf16.vlgmr.msra.gmra.mrb[0].mxu0 %v11852_v8  ;;  %v15516_v8 = vld [vmem:[#allocation12 + $0x1f0] ss:$8 sps:$4 sm:$0xff]  }
 0x59a   :  { %9852 = vmatpush1.bf16.msra.mxu0 %v15423_v9  ;;  %9840 = vmatprep.mubr.bf16.mxu0 %v11925_v2  ;;  %v15521_v9 = vld [vmem:[#allocation12 + $0x4] ss:$8 sps:$4 sm:$0xff]  }
 0x59b   :  { %9853 = vmatprep.subr.bf16.mxu0 %v15428_v19  ;;  %10170 = vmatpush1.bf16.msra.mxu1 %v15513_v24  ;;  %v16954_v2 = vld [vmem:[#allocation16] sm:$0xff]   ;;  %v15959_v19 = vmov 0.0   ;;  %v15546_v24 = vld [vmem:[#allocation12 + $0x90] ss:$8 sps:$4 sm:$0xff]  }
 0x59c   :  { %10171 = vmatprep.subr.bf16.mxu1 %v15518_v25  ;;  %v15551_v25 = vld [vmem:[#allocation12 + $0xa4] ss:$8 sps:$4 sm:$0xff]  }
 0x59e   :  { %9854 = vmatpush1.bf16.msra.mxu0 %v15426_v20  ;;  %v16960_v20 = vld [vmem:[#allocation16 + $0x8] sm:$0xff]  }
 0x59f   :  { %9855 = vmatprep.subr.bf16.mxu0 %v15431_v21  ;;  %10172 = vmatpush1.bf16.msra.mxu1 %v15516_v8  ;;  %v15961_v21 = vmov 0   ;;  %v15549_v8 = vld [vmem:[#allocation12 + $0xa0] ss:$8 sps:$4 sm:$0xff]  }
 0x5a0   :  { %10344 = vmatprep.subr.bf16.mxu1 %v15521_v9  ;;  %v15554_v9 = vld [vmem:[#allocation12 + $0xb4] ss:$8 sps:$4 sm:$0xff]  }
 0x5a1   :  { %9841 = vmatmul.mubr.bf16.gmra.mrb[4].mxu0 %v11924_v61 }
 0x5a2   :  { %9856 = vmatpush1.bf16.msra.mxu0 %v15429_v33  ;;  %9883 = vmatprep.mubr.bf16.mxu0 %v11855_v34 }
 0x5a3   :  { %9857 = vmatprep.subr.bf16.mxu0 %v15434_v38 }
 0x5a6   :  { %9858 = vmatpush1.bf16.msra.mxu0 %v15432_v40 }
 0x5a7   :  { %9859 = vmatprep.subr.bf16.mxu0 %v15437_v41 }
 0x5aa   :  { %9860 = vmatpush1.bf16.msra.mxu0 %v15435_v13 }
 0x5ab   :  { %9861 = vmatprep.subr.bf16.mxu0 %v15440_v35  ;;  %v8825_v49 = vpop.f32.mrb[0].mxu1 }
 0x5ac   :  { %v16929_v14 = vadd.f32 %v8825_v49, %v16926_v36  ;;  %v16931_v15 = vpop.f32.mrb[1].mxu1 }
 0x5ad   :  { %v8829_v53 = vpop.f32.mrb[2].mxu1  ;;  %v13431_v29 = vadd.f32 %v16931_v15, %v1513_v28 }
 0x5ae   :  { %9862 = vmatpush1.bf16.msra.mxu0 %v15438_v37  ;;  %v16934_v46 = vadd.f32 %v8829_v53, %v16926_v36  ;;  %v16936_v47 = vpop.f32.mrb[3].mxu1 }
 0x5af   :  { %9863 = vmatprep.subr.bf16.mxu0 %v15443_v48  ;;  %v13435_v38 = vadd.f32 %v16936_v47, %v1513_v28 }
 0x5b2   :  { %9864 = vmatpush1.bf16.msra.mxu0 %v15441_v54 }
 0x5b3   :  { %9865 = vmatprep.subr.bf16.mxu0 %v15446_v56  ;;  %v16938_v27 = vpop.f32.mrb[4].mxu1 }
 0x5b4   :  { %v16940_v52 = vpop.f32.mrb[5].mxu1  ;;  %v13437_v32 = vadd.f32 %v16938_v27, %v16926_v36 }
 0x5b5   :  { %v16942_v55 = vpop.f32.mrb[6].mxu1 }
 0x5b6   :  { %9866 = vmatpush1.bf16.msra.mxu0 %v15444_v57  ;;  %v16944_v45 = vpop.f32.mrb[7].mxu1  ;;  %v13441_v47 = vadd.f32 %v16942_v55, %v16926_v36  ;;  %v15522_v36 = vld [vmem:[#allocation12 + $0x10] ss:$8 sps:$4 sm:$0xff]   ;;  %v15527_v55 = vld [vmem:[#allocation12 + $0x24] ss:$8 sps:$4 sm:$0xff]  }
 0x5b7   :  { %9867 = vmatprep.subr.bf16.mxu0 %v15449_v26 }
 0x5ba   :  { %9868 = vmatpush1.bf16.msra.mxu0 %v15447_v42  ;;  %v13443_v42 = vadd.f32 %v16944_v45, %v1513_v28  ;;  %v15525_v45 = vld [vmem:[#allocation12 + $0x20] ss:$8 sps:$4 sm:$0xff]  }
 0x5bb   :  { %9869 = vmatprep.subr.bf16.mxu0 %v15452_v0 }
 0x5be   :  { %9870 = vmatpush1.bf16.msra.mxu0 %v15450_v1 }
 0x5bf   :  { %9871 = vmatprep.subr.bf16.mxu0 %v15455_v30 }
 0x5c2   :  { %9872 = vmatpush1.bf16.msra.mxu0 %v15453_v31 }
 0x5c3   :  { %9873 = vmatprep.subr.bf16.mxu0 %v15458_v5 }
 0x5c6   :  { %9874 = vmatpush1.bf16.msra.mxu0 %v15456_v6 }
 0x5c7   :  { %9875 = vmatprep.subr.bf16.mxu0 %v15461_v62 }
 0x5ca   :  { %9876 = vmatpush1.bf16.msra.mxu0 %v15459_v63 }
 0x5cb   :  { %9877 = vmatprep.subr.bf16.mxu0 %v15464_v11 }
 0x5ce   :  { %9878 = vmatpush1.bf16.msra.mxu0 %v15462_v12  ;;  %v15519_v12 = vld [vmem:[#allocation12] ss:$8 sps:$4 sm:$0xff]  }
 0x5cf   :  { %9879 = vmatprep.subr.bf16.mxu0 %v15467_v43  ;;  %v15524_v43 = vld [vmem:[#allocation12 + $0x14] ss:$8 sps:$4 sm:$0xff]  }
 0x5d2   :  { %9880 = vmatpush1.bf16.msra.mxu0 %v15465_v44  ;;  %v15530_v44 = vld [vmem:[#allocation12 + $0x34] ss:$8 sps:$4 sm:$0xff]  }
 0x5d3   :  { %9881 = vmatprep.subr.bf16.mxu0 %v15470_v16  ;;  %v15528_v16 = vld [vmem:[#allocation12 + $0x30] ss:$8 sps:$4 sm:$0xff]  }
 0x5d6   :  { %9882 = vmatpush1.bf16.msra.mxu0 %v15468_v17  ;;  %v15533_v17 = vld [vmem:[#allocation12 + $0x44] ss:$8 sps:$4 sm:$0xff]  }
 0x5d7   :  { %13333 = vmatprep.subr.bf16.mxu0 %v15959_v19 }
 0x5d9   :  { %9884 = vmatmul.mubr.bf16.vlgmr.msra.gmra.mrb[0].mxu0 %v11854_v7  ;;  %v15534_v7 = vld [vmem:[#allocation12 + $0x50] ss:$8 sps:$4 sm:$0xff]  }
 0x5da   :  { %9893 = vmatprep.mubr.bf16.mxu0 %v11927_v58  ;;  %13334 = vmatpush3.bf16.msra.mxu0 %v16954_v2  ;;  %v15539_v58 = vld [vmem:[#allocation12 + $0x64] ss:$8 sps:$4 sm:$0xff]  }
 0x5db   :  { %13335 = vmatprep.subr.bf16.mxu0 %v15959_v19 }
 0x5de   :  { %13336 = vmatpush3.bf16.msra.mxu0 %v16960_v20 }
 0x5e1   :  { %9894 = vmatmul.mubr.bf16.gmra.mrb[4].mxu0 %v11926_v59  ;;  %v15537_v59 = vld [vmem:[#allocation12 + $0x60] ss:$8 sps:$4 sm:$0xff]  }
 0x5e2   :  { %13337 = vmatprep.mubr.msk.bf16.mxu0 %vm15960_vm0, %v15959_v19 }
 0x5e9   :  { %13338 = vmatmul.mubr.bf16.vlgmr.msra.gmra.mrb[8].mxu0 %v15961_v21 }
 0x6ac   :  { %v9885_v61 = vpop.f32.mrb[0].mxu0 }
 0x6ad   :  { %v13430_v33 = vadd.f32 %v16929_v14, %v9885_v61  ;;  %v9887_v34 = vpop.f32.mrb[1].mxu0  ;;  %v13439_v14 = vadd.f32 %v16940_v52, %v1513_v28  ;;  %v15552_v28 = vld [vmem:[#allocation12 + $0xb0] ss:$8 sps:$4 sm:$0xff]   ;;  %v15555_v61 = vld [vmem:[#allocation12 + $0xc0] ss:$8 sps:$4 sm:$0xff]  }
 0x6ae   :  { %v13432_v40 = vadd.f32 %v13431_v29, %v9887_v34  ;;  %v9889_v41 = vpop.f32.mrb[2].mxu0  ;;  %v15557_v29 = vld [vmem:[#allocation12 + $0xc4] ss:$8 sps:$4 sm:$0xff]   ;;  %v15558_v34 = vld [vmem:[#allocation12 + $0xd0] ss:$8 sps:$4 sm:$0xff]  }
 0x6af   :  { %v13434_v13 = vadd.f32 %v16934_v46, %v9889_v41  ;;  %v9891_v35 = vpop.f32.mrb[3].mxu0  ;;  %v9904_v48 = vmax.f32 %v13430_v33, 0.0  ;;  %v15560_v33 = vld [vmem:[#allocation12 + $0xd4] ss:$8 sps:$4 sm:$0xff]  }
 0x6b0   :  { %v13436_v37 = vadd.f32 %v13435_v38, %v9891_v35  ;;  %v9905_v53 = vmax.f32 %v13432_v40, 0.0  ;;  %v15563_v38 = vld [vmem:[#allocation12 + $0xe4] ss:$8 sps:$4 sm:$0xff]   ;;  %v15561_v40 = vld [vmem:[#allocation12 + $0xe0] ss:$8 sps:$4 sm:$0xff]  }
 0x6b1   :  { %v9906_v49 = vmax.f32 %v13434_v13, 0.0  ;;  %v15566_v41 = vld [vmem:[#allocation12 + $0xf4] ss:$8 sps:$4 sm:$0xff]   ;;  %v15564_v13 = vld [vmem:[#allocation12 + $0xf0] ss:$8 sps:$4 sm:$0xff]  }
 0x6b2   :  { %v9907_v54 = vmax.f32 %v13436_v37, 0.0  ;;  %v15569_v35 = vld [vmem:[%s17278_s5 + $0x40] sm:$0xff]  }
 0x6b3   :  { %v16975_v15 = vpack.c.bf16 %v9906_v49, %v9904_v48  ;;  %v15570_v37 = vld [vmem:[%s17278_s5] sm:$0xff]   ;;  %v15571_v48 = vld [vmem:[%s17278_s5 + $0x48] sm:$0xff]  }
 0x6b4   :  { %v9913_v56 = vpack.c.bf16 %v9907_v54, %v9905_v53  ;;  %v9895_v57 = vpop.f32.mrb[4].mxu0  ;;  %v15572_v49 = vld [vmem:[%s17278_s5 + $0x8] sm:$0xff]   ;;  %v15573_v53 = vld [vmem:[%s17278_s5 + $0x50] sm:$0xff]  }
 0x6b5   :  { %v13438_v26 = vadd.f32 %v13437_v32, %v9895_v57  ;;  %v9897_v46 = vpop.f32.mrb[5].mxu0  ;;  %v15574_v54 = vld [vmem:[%s17278_s5 + $0x10] sm:$0xff]   ;;  %v15575_v32 = vld [vmem:[%s17278_s5 + $0x58] sm:$0xff]   ;;  %v15579_v57 = vld [vmem:[%s17278_s5 + $0x68] sm:$0xff]  }
 0x6b6   :  { %v13440_v0 = vadd.f32 %v13439_v14, %v9897_v46  ;;  %v9899_v1 = vpop.f32.mrb[6].mxu0  ;;  %v15577_v14 = vld [vmem:[%s17278_s5 + $0x60] sm:$0xff]   ;;  %v15582_v46 = vld [vmem:[%s17278_s5 + $0x30] sm:$0xff]  }
 0x6b7   :  { %v13442_v30 = vadd.f32 %v13441_v47, %v9899_v1  ;;  %v9901_v31 = vpop.f32.mrb[7].mxu0  ;;  %v9908_v6 = vmax.f32 %v13438_v26, 0.0  ;;  %v15580_v47 = vld [vmem:[%s17278_s5 + $0x28] sm:$0xff]   ;;  %v15581_v26 = vld [vmem:[%s17278_s5 + $0x70] sm:$0xff]   ;;  %v15585_v1 = vld [vmem:[%s17278_s5 + $0xc0] sm:$0xff]  }
 0x6b8   :  { %v13444_v5 = vadd.f32 %v13443_v42, %v9901_v31  ;;  %v9909_v62 = vmax.f32 %v13440_v0, 0.0  ;;  %v15583_v42 = vld [vmem:[%s17278_s5 + $0x78] sm:$0xff]  }
 0x6b9   :  { %v9910_v27 = vmax.f32 %v13442_v30, 0.0  ;;  %v15584_v0 = vld [vmem:[%s17278_s5 + $0x38] sm:$0xff]   ;;  %v13215_v30 = vld [vmem:[#allocation18] ss:$0 sm:$0xff] }
 0x6ba   :  { %v9911_v63 = vmax.f32 %v13444_v5, 0.0  ;;  %10897 = vrot.lane.b32.xlu0 %v13215_v30, %s15944_s4  ;;  %v13217_v5 = vld [vmem:[#allocation18 + $0x1] ss:$0 sm:$0xff] }
 0x6bb   :  { %v9946_v11 = vpack.c.bf16 %v9910_v27, %v9908_v6 }
 0x6bc   :  { %v9947_v52 = vpack.c.bf16 %v9911_v63, %v9909_v62  ;;  %v17034_v31 = vpop.f32.mrb[8].mxu0  ;;  %v10387_v63 = vld [vmem:[#allocation13] sm:$0x3] }
 0x6bd   :  { %v13339_v6 = vpop.f32.mrb[9].mxu0 }
 0x6be   :  { %10173 = vmatprep.mubr.bf16.mxu1 %v9947_v52  ;;  %10934 = vrot.lane.b32.xlu0 %v13217_v5, %s15944_s4  ;;  %v10829_v27 = vpop.f32.mrb[10].mxu0 }
 0x6bf   :  { %10174 = vmatmul.mubr.bf16.vlgmr.msra.gmra.mrb[8].mxu1 %v9946_v11  ;;  %v13340_v62 = vpop.f32.mrb[11].mxu0  ;;  %v10392_v11 = vrot.slane %v10387_v63, %v1508_v10  ;;  %v15587_v10 = vld [vmem:[%s17278_s5 + $0xc8] sm:$0xff]  }
 0x6c0   :  { %10345 = vmatpush1.bf16.msra.mxu1 %v15519_v12  ;;  %10376 = vmatprep.mubr.bf16.mxu1 %v9913_v56  ;;  %v15578_v56 = vld [vmem:[%s17278_s5 + $0x20] sm:$0xff]   ;;  %v10396_v12 = vrot.slane %v10387_v63, %v1512_v60  ;;  %v15589_v60 = vld [vmem:[%s17278_s5 + $0xd0] sm:$0xff]  }
 0x6c1   :  { %10346 = vmatprep.subr.bf16.mxu1 %v15524_v43 }
 0x6c4   :  { %10347 = vmatpush1.bf16.msra.mxu1 %v15522_v36 }
 0x6c5   :  { %10348 = vmatprep.subr.bf16.mxu1 %v15527_v55 }
 0x6c8   :  { %10349 = vmatpush1.bf16.msra.mxu1 %v15525_v45 }
 0x6c9   :  { %10350 = vmatprep.subr.bf16.mxu1 %v15530_v44 }
 0x6cc   :  { %10351 = vmatpush1.bf16.msra.mxu1 %v15528_v16 }
 0x6cd   :  { %10352 = vmatprep.subr.bf16.mxu1 %v15533_v17 }
 0x6d0   :  { %10353 = vmatpush1.bf16.msra.mxu1 %v15531_v50 }
 0x6d1   :  { %10354 = vmatprep.subr.bf16.mxu1 %v15536_v4 }
 0x6d4   :  { %10355 = vmatpush1.bf16.msra.mxu1 %v15534_v7  ;;  %v15586_v7 = vld [vmem:[%s17278_s5 + $0x80] sm:$0xff]  }
 0x6d5   :  { %10356 = vmatprep.subr.bf16.mxu1 %v15539_v58  ;;  %v15590_v58 = vld [vmem:[%s17278_s5 + $0x90] sm:$0xff]  }
 0x6d8   :  { %10357 = vmatpush1.bf16.msra.mxu1 %v15537_v59  ;;  %v15591_v59 = vld [vmem:[%s17278_s5 + $0xd8] sm:$0xff]  }
 0x6d9   :  { %10358 = vmatprep.subr.bf16.mxu1 %v15542_v51 }
 0x6dc   :  { %10359 = vmatpush1.bf16.msra.mxu1 %v15540_v3  ;;  %v15592_v3 = vld [vmem:[%s17278_s5 + $0x98] sm:$0xff]  }
 0x6dd   :  { %10360 = vmatprep.subr.bf16.mxu1 %v15545_v18 }
 0x6e0   :  { %10361 = vmatpush1.bf16.msra.mxu1 %v15543_v22  ;;  %v15593_v22 = vld [vmem:[%s17278_s5 + $0xe0] sm:$0xff]  }
 0x6e1   :  { %10362 = vmatprep.subr.bf16.mxu1 %v15548_v23  ;;  %v15594_v23 = vld [vmem:[%s17278_s5 + $0xa0] sm:$0xff]  }
 0x6e4   :  { %10363 = vmatpush1.bf16.msra.mxu1 %v15546_v24  ;;  %v15595_v24 = vld [vmem:[%s17278_s5 + $0xe8] sm:$0xff]  }
 0x6e5   :  { %10364 = vmatprep.subr.bf16.mxu1 %v15551_v25  ;;  %v15596_v25 = vld [vmem:[%s17278_s5 + $0xa8] sm:$0xff]  }
 0x6e8   :  { %10365 = vmatpush1.bf16.msra.mxu1 %v15549_v8  ;;  %v15597_v8 = vld [vmem:[%s17278_s5 + $0xf0] sm:$0xff]  }
 0x6e9   :  { %10366 = vmatprep.subr.bf16.mxu1 %v15554_v9  ;;  %v15598_v9 = vld [vmem:[%s17278_s5 + $0xb0] sm:$0xff]  }
 0x6ec   :  { %10367 = vmatpush1.bf16.msra.mxu1 %v15552_v28  ;;  %v15599_v28 = vld [vmem:[%s17278_s5 + $0xf8] sm:$0xff]  }
 0x6ed   :  { %10368 = vmatprep.subr.bf16.mxu1 %v15557_v29  ;;  %v15600_v29 = vld [vmem:[%s17278_s5 + $0xb8] sm:$0xff]  }
 0x6f0   :  { %10369 = vmatpush1.bf16.msra.mxu1 %v15555_v61  ;;  %v17091_v61 = vld [vmem:[#allocation16 + $0x10] sm:$0xff]  }
 0x6f1   :  { %10370 = vmatprep.subr.bf16.mxu1 %v15560_v33  ;;  %v17095_v33 = vld [vmem:[#allocation16 + $0x18] sm:$0xff]  }
 0x6f4   :  { %10371 = vmatpush1.bf16.msra.mxu1 %v15558_v34 }
 0x6f5   :  { %10372 = vmatprep.subr.bf16.mxu1 %v15563_v38  ;;  %v13144_v38 = vld [vmem:[#allocation15] ss:$0 sm:$0xff] }
 0x6f8   :  { %10373 = vmatpush1.bf16.msra.mxu1 %v15561_v40 }
 0x6f9   :  { %10374 = vmatprep.subr.bf16.mxu1 %v15566_v41 }
 0x6fc   :  { %10375 = vmatpush1.bf16.msra.mxu1 %v15564_v13 }
 0x6fd   :  { %13253 = vmatprep.subr.bf16.mxu1 %v15569_v35 }
 0x6ff   :  { %10377 = vmatmul.mubr.bf16.vlgmr.msra.gmra.mrb[8].mxu1 %v16975_v15  ;;  %v15576_v15 = vld [vmem:[%s17278_s5 + $0x18] sm:$0xff]   ;;  %s15962_s5 = smov 96  }
 0x700   :  { %13254 = vmatpush3.bf16.msra.mxu1 %v15570_v37 }
 0x701   :  { %13255 = vmatprep.subr.bf16.mxu1 %v15571_v48 }
 0x704   :  { %13256 = vmatpush3.bf16.msra.mxu1 %v15572_v49 }
 0x705   :  { %13257 = vmatprep.subr.bf16.mxu1 %v15573_v53 }
 0x708   :  { %13258 = vmatpush3.bf16.msra.mxu1 %v15574_v54 }
 0x709   :  { %13259 = vmatprep.subr.bf16.mxu1 %v15575_v32 }
 0x70c   :  { %13260 = vmatpush3.bf16.msra.mxu1 %v15576_v15 }
 0x70d   :  { %13261 = vmatprep.subr.bf16.mxu1 %v15577_v14  ;;  %v13193_v14 = vld [vmem:[#allocation15 + $0x1] ss:$0 sm:$0xff] }
 0x710   :  { %13262 = vmatpush3.bf16.msra.mxu1 %v15578_v56 }
 0x711   :  { %13263 = vmatprep.subr.bf16.mxu1 %v15579_v57 }
 0x714   :  { %13264 = vmatpush3.bf16.msra.mxu1 %v15580_v47 }
 0x715   :  { %13265 = vmatprep.subr.bf16.mxu1 %v15581_v26 }
 0x718   :  { %13266 = vmatpush3.bf16.msra.mxu1 %v15582_v46 }
 0x719   :  { %13267 = vmatprep.subr.bf16.mxu1 %v15583_v42 }
 0x71c   :  { %13268 = vmatpush3.bf16.msra.mxu1 %v15584_v0 }
 0x71d   :  { %13275 = vmatprep.subr.bf16.mxu1 %v15585_v1 }
 0x72c   :  { %v17059_v51 = vpop.permute.xlu0 %10897 }
 0x72d   :  { %v10900_v18 = vadd.f32 %v17059_v51, %v17034_v31 }
 0x72f   :  { %10902 = vrot.lane.b32.xlu1 %v10900_v18, %s15944_s4 }
 0x730   :  { %v17113_v1 = vpop.permute.xlu0 %10934 }
 0x7a1   :  { %v10903_v30 = vpop.permute.xlu1 %10902 }
 0x7d2   :  { %v10378_v52 = vpop.f32.mrb[8].mxu1 }
 0x7d3   :  { %v10380_v43 = vpop.f32.mrb[9].mxu1  ;;  %v10399_v55 = vadd.f32 %v10392_v11, %v10378_v52 }
 0x7d4   :  { %v10382_v36 = vpop.f32.mrb[10].mxu1  ;;  %v10400_v16 = vadd.f32 %v10396_v12, %v10380_v43 }
 0x7d5   :  { %v10401_v45 = vadd.f32 %v10392_v11, %v10382_v36  ;;  %v10384_v44 = vpop.f32.mrb[11].mxu1 }
 0x7d6   :  { %v10402_v17 = vadd.f32 %v10396_v12, %v10384_v44 }
 0x7d7   :  { %v10403_v50 = vpack.c.bf16 %v10401_v45, %v10399_v55 }
 0x7d8   :  { %v10404_v4 = vpack.c.bf16 %v10402_v17, %v10400_v16 }
 0x7da   :  { %10572 = vmatprep.mubr.bf16.mxu1 %v10404_v4 }
 0x7db   :  { %10573 = vmatmul.mubr.bf16.vlgmr.msra.gmra.mrb[12].mxu1 %v10403_v50 }
 0x7dc   :  { %13276 = vmatpush3.bf16.msra.mxu1 %v15586_v7  ;;  %10753 = vmatprep.mubr.bf16.mxu1 %v10404_v4 }
 0x7dd   :  { %13277 = vmatprep.subr.bf16.mxu1 %v15587_v10 }
 0x7e0   :  { %13278 = vmatpush3.bf16.msra.mxu1 %v15588_v39 }
 0x7e1   :  { %13279 = vmatprep.subr.bf16.mxu1 %v15589_v60 }
 0x7e4   :  { %13280 = vmatpush3.bf16.msra.mxu1 %v15590_v58 }
 0x7e5   :  { %13281 = vmatprep.subr.bf16.mxu1 %v15591_v59 }
 0x7e8   :  { %13282 = vmatpush3.bf16.msra.mxu1 %v15592_v3 }
 0x7e9   :  { %13283 = vmatprep.subr.bf16.mxu1 %v15593_v22 }
 0x7ec   :  { %13284 = vmatpush3.bf16.msra.mxu1 %v15594_v23 }
 0x7ed   :  { %13285 = vmatprep.subr.bf16.mxu1 %v15595_v24 }
 0x7f0   :  { %13286 = vmatpush3.bf16.msra.mxu1 %v15596_v25 }
 0x7f1   :  { %13287 = vmatprep.subr.bf16.mxu1 %v15597_v8 }
 0x7f4   :  { %13288 = vmatpush3.bf16.msra.mxu1 %v15598_v9 }
 0x7f5   :  { %13289 = vmatprep.subr.bf16.mxu1 %v15599_v28 }
 0x7f8   :  { %13290 = vmatpush3.bf16.msra.mxu1 %v15600_v29 }
 0x7f9   :  { %13341 = vmatprep.subr.bf16.mxu1 %v15959_v19 }
 0x7fb   :  { %10754 = vmatmul.mubr.bf16.vlgmr.msra.gmra.mrb[16].mxu1 %v10403_v50 }
 0x7fc   :  { %13342 = vmatpush3.bf16.msra.mxu1 %v17091_v61  ;;  %13345 = vmatprep.mubr.msk.bf16.mxu1 %vm15960_vm0, %v15959_v19 }
 0x7fd   :  { %13343 = vmatprep.subr.bf16.mxu1 %v15959_v19 }
 0x800   :  { %13344 = vmatpush3.bf16.msra.mxu1 %v17095_v33 }
 0x801   :  { %13349 = vmatprep.subr.bf16.mxu1 %v15959_v19 }
 0x803   :  { %13346 = vmatmul.mubr.bf16.vlgmr.msra.gmra.mrb[20].mxu1 %v15961_v21 }
 0x804   :  { %13350 = vmatpush3.bf16.msra.mxu1 %v16954_v2  ;;  %13353 = vmatprep.mubr.msk.bf16.mxu1 %vm15960_vm0, %v15959_v19 }
 0x805   :  { %13351 = vmatprep.subr.bf16.mxu1 %v15959_v19 }
 0x808   :  { %13352 = vmatpush3.bf16.msra.mxu1 %v16960_v20 }
 0x809   :  { %13357 = vmatprep.subr.bf16.mxu1 %v15959_v19 }
 0x8ae   :  { %v13269_v34 = vpop.f32.mrb[12].mxu1 }
 0x8af   :  { %v13270_v40 = vpop.f32.mrb[13].mxu1 }
 0x8b0   :  { %v13271_v41 = vadd.f32 %v13270_v40, %v13269_v34  ;;  %v13272_v13 = vpop.f32.mrb[14].mxu1 }
 0x8b1   :  { %v13273_v35 = vpop.f32.mrb[15].mxu1 }
 0x8b2   :  { %v10575_v37 = vadd.f32 %v13271_v41, %v13144_v38  ;;  %v13274_v48 = vadd.f32 %v13273_v35, %v13272_v13 }
 0x8b4   :  { %10582 = vst.msk [vmem:[#allocation2] sm:$0xff] %vm10581_vm1, %v10575_v37  ;;  %v10578_v2 = vadd.f32 %v13274_v48, %v13144_v38 }
 0x8b6   :  { %10583 = vst.msk [vmem:[#allocation2 + $0x8] sm:$0xff] %vm10581_vm1, %v10578_v2 }
 0x8bb   :  { %v10884_v49 = vld [vmem:[#allocation2] sm:$0xff] }
 0x8bc   :  { %v10885_v53 = vadd.f32 %v10884_v49, %v17034_v31 }
 0x8bd   :  { %v11063_v35 = vld [vmem:[#allocation2 + $0x8] sm:$0xff] }
 0x8be   :  { %v13214_v20 = vmul.f32 -1.442695, %v10885_v53 }
 0x8c0   :  { %15615 = vpow2.f32 %v13214_v20 }
 0x8ca   :  { %v15616_v54 = vpop.eup %15615 }
 0x8cb   :  { %v10889_v32 = vadd.f32 1.0, %v15616_v54 }
 0x8cd   :  { %15617 = vrcp.f32 %v10889_v32 }
 0x8ce   :  { %v13291_v15 = vpop.f32.mrb[16].mxu1 }
 0x8cf   :  { %v13292_v56 = vpop.f32.mrb[17].mxu1 }
 0x8d0   :  { %v13293_v57 = vadd.f32 %v13292_v56, %v13291_v15  ;;  %v13294_v47 = vpop.f32.mrb[18].mxu1 }
 0x8d1   :  { %v13295_v26 = vpop.f32.mrb[19].mxu1 }
 0x8d2   :  { %v10756_v46 = vadd.f32 %v13293_v57, %v13193_v14  ;;  %v13296_v42 = vadd.f32 %v13295_v26, %v13294_v47 }
 0x8d4   :  { %10762 = vst.msk [vmem:[#allocation3] sm:$0xff] %vm10581_vm1, %v10756_v46  ;;  %v10759_v0 = vadd.f32 %v13296_v42, %v13193_v14 }
 0x8d6   :  { %10763 = vst.msk [vmem:[#allocation3 + $0x8] sm:$0xff] %vm10581_vm1, %v10759_v0  ;;  %v10878_v31 = vpop.f32.mrb[20].mxu1 }
 0x8d7   :  { %v15618_v5 = vpop.eup %15617  ;;  %v13347_v6 = vpop.f32.mrb[21].mxu1  ;;  %v10937_v27 = vadd.f32 %v17113_v1, %v10878_v31 }
 0x8d8   :  { %v10905_v62 = vmul.f32 %v15618_v5, %v10903_v30  ;;  %v10881_v63 = vpop.f32.mrb[22].mxu1  ;;  %v10912_v39 = vsub.f32 1.0, %v15618_v5  ;;  %v10918_v59 = vmul.f32 0.0, %v15618_v5 }
 0x8d9   :  { %10939 = vrot.lane.b32.xlu1 %v10937_v27, %s15944_s4  ;;  %v13348_v11 = vpop.f32.mrb[23].mxu1 }
 0x8da   :  { %10907 = vrot.lane.b32.xlu0 %v10905_v62, %s15944_s4 }
 0x8db   :  { %v11091_v56 = vld [vmem:[#allocation3] sm:$0xff] }
 0x8dd   :  { %v10921_v52 = vld [vmem:[#allocation3 + $0x8] sm:$0xff] }
 0x8de   :  { %v10922_v12 = vadd.f32 %v10921_v52, %v10878_v31 }
 0x8e0   :  { %v13216_v43 = vmul.f32 -1.442695, %v10922_v12 }
 0x8e2   :  { %15619 = vpow2.f32 %v13216_v43 }
 0x8ec   :  { %v15620_v36 = vpop.eup %15619 }
 0x8ed   :  { %v10926_v55 = vadd.f32 1.0, %v15620_v36 }
 0x8ef   :  { %15621 = vrcp.f32 %v10926_v55  ;;  %v15603_v55 = vld [vmem:[#allocation19] sm:$0xff]  }
 0x8f9   :  { %v15622_v45 = vpop.eup %15621 }
 0x8fa   :  { %v10949_v23 = vsub.f32 1.0, %v15622_v45  ;;  %v10955_v25 = vmul.f32 0.0, %v15622_v45 }
 0x94b   :  { %v10940_v44 = vpop.permute.xlu1 %10939 }
 0x94c   :  { %v10942_v16 = vmul.f32 %v15622_v45, %v10940_v44  ;;  %v10908_v17 = vpop.permute.xlu0 %10907  ;;  %v15604_v45 = vld [vmem:[#allocation19 + $0x8] sm:$0xff]  }
 0x94d   :  { %v10910_v50 = vadd.f32 %v10908_v17, %v10884_v49 }
 0x94e   :  { %10944 = vrot.lane.b32.xlu1 %v10942_v16, %s15944_s4 }
 0x94f   :  { %15623 = vtanh.f32 %v10910_v50 }
 0x959   :  { %v15624_v4 = vpop.eup %15623 }
 0x95a   :  { %10914 = vrot.lane.b32.xlu0 %v15624_v4, %s15962_s5 }
 0x9c0   :  { %v10945_v7 = vpop.permute.xlu1 %10944 }
 0x9c1   :  { %v10947_v10 = vadd.f32 %v10945_v7, %v10921_v52 }
 0x9c3   :  { %15625 = vtanh.f32 %v10947_v10 }
 0x9cc   :  { %v10915_v60 = vpop.permute.xlu0 %10914 }
 0x9cd   :  { %v15626_v58 = vpop.eup %15625  ;;  %v10917_v3 = vmul.f32 %v10915_v60, %v10912_v39  ;;  %v13235_v39 = vld [vmem:[#allocation24] ss:$0 sm:$0xff]  ;;  %v13237_v60 = vld [vmem:[#allocation24 + $0x1] ss:$0 sm:$0xff] }
 0x9ce   :  { %10951 = vrot.lane.b32.xlu1 %v15626_v58, %s15962_s5 }
 0x9cf   :  { %v17122_v18 = vadd.f32 %v10918_v59, %v10917_v3 }
 0x9d1   :  { %v10968_v22 = vpack.c.bf16 %v17122_v18, %v17122_v18 }
 0x9d3   :  { %10970 = vrot.lane.b32.xlu0 %v10968_v22, %s15962_s5 }
 0xa40   :  { %v10952_v24 = vpop.permute.xlu1 %10951 }
 0xa41   :  { %v10954_v8 = vmul.f32 %v10952_v24, %v10949_v23 }
 0xa43   :  { %v17127_v9 = vadd.f32 %v10955_v25, %v10954_v8  ;;  %v15605_v25 = vld [vmem:[#allocation19 + $0x10] sm:$0xff]  }
 0xa45   :  { %v10971_v28 = vpop.permute.xlu0 %10970  ;;  %v11015_v29 = vpack.c.bf16 %v17127_v9, %v17127_v9 }
 0xa46   :  { %13354 = vmatmul.mubr.msk.bf16.vlgmr.msra.gmra.mrb[24].mxu1 %vm10788_vm2, %v10971_v28  ;;  %v15607_v28 = vld [vmem:[#allocation22] sm:$0xff]  }
 0xa47   :  { %11017 = vrot.lane.b32.xlu1 %v11015_v29, %s15962_s5  ;;  %13358 = vmatpush3.bf16.msra.mxu1 %v17091_v61  ;;  %v15608_v29 = vld [vmem:[#allocation22 + $0x8] sm:$0xff]  }
 0xa48   :  { %13359 = vmatprep.subr.bf16.mxu1 %v15959_v19  ;;  %13361 = vmatprep.mubr.msk.bf16.mxu1 %vm15960_vm0, %v15959_v19 }
 0xa4b   :  { %13360 = vmatpush3.bf16.msra.mxu1 %v17095_v33 }
 0xa4c   :  { %13365 = vmatprep.subr.bf16.mxu1 %v15959_v19 }
 0xab9   :  { %v11018_v34 = vpop.permute.xlu1 %11017 }
 0xaba   :  { %13362 = vmatmul.mubr.msk.bf16.vlgmr.msra.gmra.mrb[28].mxu1 %vm10788_vm2, %v11018_v34  ;;  %v17175_v34 = vld [vmem:[#allocation22 + $0x10] sm:$0xff]  }
 0xabb   :  { %13369 = vmatprep.mubr.msk.bf16.mxu1 %vm15960_vm0, %v15959_v19  ;;  %13366 = vmatpush3.bf16.msra.mxu1 %v15603_v55 }
 0xabc   :  { %13367 = vmatprep.subr.bf16.mxu1 %v15959_v19 }
 0xabf   :  { %13368 = vmatpush3.bf16.msra.mxu1 %v15604_v45 }
 0xac0   :  { %13373 = vmatprep.subr.bf16.mxu1 %v15959_v19 }
 0xb19   :  { %v11009_v38 = vpop.f32.mrb[24].mxu1 }
 0xb1a   :  { %v13355_v40 = vpop.f32.mrb[25].mxu1  ;;  %v11071_v41 = vadd.f32 %v11009_v38, %v17059_v51  ;;  %v11064_v37 = vadd.f32 %v11063_v35, %v11009_v38  ;;  %v17180_v38 = vld [vmem:[#allocation22 + $0x18] sm:$0xff]  }
 0xb1b   :  { %v11012_v61 = vpop.f32.mrb[26].mxu1  ;;  %v13222_v40 = vld [vmem:[#allocation21] ss:$0 sm:$0xff] }
 0xb1c   :  { %11073 = vrot.lane.b32.xlu0 %v11071_v41, %s15944_s4  ;;  %v13356_v13 = vpop.f32.mrb[27].mxu1  ;;  %v13220_v48 = vmul.f32 -1.442695, %v11064_v37 }
 0xb1e   :  { %15627 = vpow2.f32 %v13220_v48 }
 0xb28   :  { %v15628_v33 = vpop.eup %15627 }
 0xb29   :  { %v11068_v2 = vadd.f32 1.0, %v15628_v33 }
 0xb2b   :  { %15629 = vrcp.f32 %v11068_v2 }
 0xb35   :  { %v15630_v53 = vpop.eup %15629 }
 0xb36   :  { %v11083_v62 = vsub.f32 1.0, %v15630_v53  ;;  %v11089_v52 = vmul.f32 %v15630_v53, %v17122_v18 }
 0xb8d   :  { %v11056_v49 = vpop.f32.mrb[28].mxu1 }
 0xb8e   :  { %v13363_v20 = vpop.f32.mrb[29].mxu1  ;;  %v11074_v54 = vpop.permute.xlu0 %11073  ;;  %v11099_v32 = vadd.f32 %v11056_v49, %v17113_v1  ;;  %v11092_v57 = vadd.f32 %v11091_v56, %v11056_v49 }
 0xb8f   :  { %v11076_v15 = vmul.f32 %v15630_v53, %v11074_v54  ;;  %v11059_v14 = vpop.f32.mrb[30].mxu1 }
 0xb90   :  { %11101 = vrot.lane.b32.xlu1 %v11099_v32, %s15944_s4  ;;  %v13364_v51 = vpop.f32.mrb[31].mxu1  ;;  %v13221_v47 = vmul.f32 -1.442695, %v11092_v57 }
 0xb91   :  { %11078 = vrot.lane.b32.xlu0 %v11076_v15, %s15944_s4 }
 0xb92   :  { %15631 = vpow2.f32 %v13221_v47 }
 0xb9c   :  { %v15632_v26 = vpop.eup %15631 }
 0xb9d   :  { %v11096_v46 = vadd.f32 1.0, %v15632_v26 }
 0xb9f   :  { %15633 = vrcp.f32 %v11096_v46 }
 0xba9   :  { %v15634_v42 = vpop.eup %15633 }
 0xbaa   :  { %v11111_v44 = vsub.f32 1.0, %v15634_v42  ;;  %v11117_v17 = vmul.f32 %v15634_v42, %v17127_v9 }
 0xc02   :  { %v11102_v0 = vpop.permute.xlu1 %11101 }
 0xc03   :  { %v11104_v30 = vmul.f32 %v15634_v42, %v11102_v0  ;;  %v11079_v31 = vpop.permute.xlu0 %11078 }
 0xc04   :  { %v11081_v5 = vadd.f32 %v11079_v31, %v11063_v35 }
 0xc05   :  { %11106 = vrot.lane.b32.xlu1 %v11104_v30, %s15944_s4 }
 0xc06   :  { %15635 = vtanh.f32 %v11081_v5 }
 0xc10   :  { %v15636_v1 = vpop.eup %15635 }
 0xc11   :  { %11085 = vrot.lane.b32.xlu0 %v15636_v1, %s15962_s5 }
 0xc15   :  { %10958 = vrot.lane.b32.xlu0 %v17122_v18, %s15962_s5 }
 0xc77   :  { %v11107_v6 = vpop.permute.xlu1 %11106 }
 0xc78   :  { %v11109_v27 = vadd.f32 %v11107_v6, %v11091_v56 }
 0xc7a   :  { %15637 = vtanh.f32 %v11109_v27 }
 0xc83   :  { %v11086_v63 = vpop.permute.xlu0 %11085 }
 0xc84   :  { %v15638_v11 = vpop.eup %15637  ;;  %v11088_v12 = vmul.f32 %v11086_v63, %v11083_v62 }
 0xc85   :  { %11113 = vrot.lane.b32.xlu1 %v15638_v11, %s15962_s5 }
 0xc86   :  { %v11090_v43 = vadd.f32 %v11089_v52, %v11088_v12 }
 0xc87   :  { %v10959_v36 = vpop.permute.xlu0 %10958 }
 0xc88   :  { %10961 = vst.msk [vmem:[#allocation4] sm:$0xff] %vm10788_vm2, %v10959_v36  ;;  %11120 = vrot.lane.b32.xlu0 %v11090_v43, %s15962_s5 }
 0xc89   :  { %10963 = vrot.lane.b32.xlu1 %v17127_v9, %s15962_s5  ;;  %v15606_v9 = vld [vmem:[#allocation19 + $0x18] sm:$0xff]  }
 0xc8c   :  { %11403 = vrot.lane.b32.xlu0 %v13235_v39, %s15944_s4 }
 0xc8f   :  { %v11130_v18 = vld [vmem:[#allocation4] sm:$0xff] }
 0xcf7   :  { %v11114_v16 = vpop.permute.xlu1 %11113 }
 0xcf8   :  { %v11116_v50 = vmul.f32 %v11114_v16, %v11111_v44 }
 0xcfa   :  { %v11118_v4 = vadd.f32 %v11117_v17, %v11116_v50  ;;  %v11121_v7 = vpop.permute.xlu0 %11120 }
 0xcfb   :  { %11124 = vst.msk [vmem:[#allocation4 + $0x8] sm:$0xff] %vm10788_vm2, %v11121_v7  ;;  %v10964_v10 = vpop.permute.xlu1 %10963 }
 0xcfc   :  { %10967 = vst.msk [vmem:[#allocation5 + $0x8] sm:$0xff] %vm10788_vm2, %v10964_v10  ;;  %11126 = vrot.lane.b32.xlu1 %v11118_v4, %s15962_s5 }
 0xcfe   :  { %v17196_v32 = vpop.permute.xlu0 %11403 }
 0xd00   :  { %11439 = vrot.lane.b32.xlu1 %v13237_v60, %s15944_s4 }
 0xd02   :  { %v11131_v59 = vld [vmem:[#allocation4 + $0x8] sm:$0xff] }
 0xd03   :  { %v11133_v3 = vld [vmem:[#allocation5 + $0x8] sm:$0xff] }
 0xd04   :  { %v11135_v24 = vadd.f32 %v11133_v3, %v11131_v59 }
 0xd6e   :  { %v11127_v58 = vpop.permute.xlu1 %11126 }
 0xd6f   :  { %11129 = vst.msk [vmem:[#allocation5] sm:$0xff] %vm10788_vm2, %v11127_v58 }
 0xd72   :  { %v17200_v47 = vpop.permute.xlu1 %11439 }
 0xd76   :  { %v11132_v22 = vld [vmem:[#allocation5] sm:$0xff] }
 0xd77   :  { %v11134_v23 = vadd.f32 %v11132_v22, %v11130_v18 }
 0xd79   :  { %v11136_v8 = vpack.c.bf16 %v11135_v24, %v11134_v23 }
 0xd7b   :  { %13370 = vmatmul.mubr.msk.bf16.vlgmr.msra.gmra.mrb[32].mxu1 %vm10788_vm2, %v11136_v8 }
 0xd7c   :  { %13374 = vmatpush3.bf16.msra.mxu1 %v15605_v25  ;;  %13377 = vmatprep.mubr.msk.bf16.mxu1 %vm15960_vm0, %v15959_v19 }
 0xd7d   :  { %13375 = vmatprep.subr.bf16.mxu1 %v15959_v19 }
 0xd80   :  { %13376 = vmatpush3.bf16.msra.mxu1 %v15606_v9 }
 0xd81   :  { %13381 = vmatprep.subr.bf16.mxu1 %v15959_v19 }
 0xd83   :  { %13378 = vmatmul.mubr.msk.bf16.vlgmr.msra.gmra.mrb[36].mxu1 %vm10788_vm2, %v11136_v8 }
 0xd84   :  { %13382 = vmatpush3.bf16.msra.mxu1 %v15607_v28  ;;  %13385 = vmatprep.mubr.msk.bf16.mxu1 %vm15960_vm0, %v15959_v19 }
 0xd85   :  { %13383 = vmatprep.subr.bf16.mxu1 %v15959_v19 }
 0xd88   :  { %13384 = vmatpush3.bf16.msra.mxu1 %v15608_v29 }
 0xd89   :  { %13389 = vmatprep.subr.bf16.mxu1 %v15959_v19 }
 0xd8b   :  { %13386 = vmatmul.mubr.bf16.vlgmr.msra.gmra.mrb[40].mxu1 %v15961_v21 }
 0xd8c   :  { %13390 = vmatpush3.bf16.msra.mxu1 %v17175_v34  ;;  %13393 = vmatprep.mubr.msk.bf16.mxu1 %vm15960_vm0, %v15959_v19 }
 0xd8d   :  { %13391 = vmatprep.subr.bf16.mxu1 %v15959_v19 }
 0xd90   :  { %13392 = vmatpush3.bf16.msra.mxu1 %v17180_v38 }
 0xd91   :  { %13397 = vmatprep.subr.bf16.mxu1 %v15959_v19 }
 0xd93   :  { %13394 = vmatmul.mubr.bf16.vlgmr.msra.gmra.mrb[44].mxu1 %v15961_v21  ;;  %v13226_v21 = vld [vmem:[#allocation21 + $0x1] ss:$0 sm:$0xff] }
 0xd94   :  { %13398 = vmatpush3.bf16.msra.mxu1 %v15607_v28  ;;  %13401 = vmatprep.mubr.msk.bf16.mxu1 %vm15960_vm0, %v15959_v19 }
 0xd95   :  { %13399 = vmatprep.subr.bf16.mxu1 %v15959_v19 }
 0xd98   :  { %13400 = vmatpush3.bf16.msra.mxu1 %v15608_v29 }
 0xd99   :  { %13405 = vmatprep.subr.bf16.mxu1 %v15959_v19 }
 0xe4e   :  { %v11197_v41 = vpop.f32.mrb[32].mxu1 }
 0xe4f   :  { %v11198_v61 = vadd.f32 %v13222_v40, %v11197_v41  ;;  %v13371_v13 = vpop.f32.mrb[33].mxu1 }
 0xe50   :  { %v11200_v35 = vpop.f32.mrb[34].mxu1 }
 0xe51   :  { %11204 = vst.msk [vmem:[#allocation2] sm:$0xff] %vm10581_vm1, %v11198_v61  ;;  %v11201_v37 = vadd.f32 %v13222_v40, %v11200_v35  ;;  %v13372_v48 = vpop.f32.mrb[35].mxu1 }
 0xe53   :  { %11205 = vst.msk [vmem:[#allocation2 + $0x8] sm:$0xff] %vm10581_vm1, %v11201_v37 }
 0xe56   :  { %v11265_v33 = vpop.f32.mrb[36].mxu1 }
 0xe57   :  { %v11266_v2 = vadd.f32 %v13226_v21, %v11265_v33  ;;  %v13379_v49 = vpop.f32.mrb[37].mxu1 }
 0xe58   :  { %v11268_v53 = vpop.f32.mrb[38].mxu1  ;;  %v11390_v31 = vld [vmem:[#allocation2] sm:$0xff] }
 0xe59   :  { %11272 = vst.msk [vmem:[#allocation3] sm:$0xff] %vm10581_vm1, %v11266_v2  ;;  %v11269_v20 = vadd.f32 %v13226_v21, %v11268_v53  ;;  %v13380_v54 = vpop.f32.mrb[39].mxu1 }
 0xe5a   :  { %v11567_v2 = vld [vmem:[#allocation2 + $0x8] sm:$0xff] }
 0xe5b   :  { %11273 = vst.msk [vmem:[#allocation3 + $0x8] sm:$0xff] %vm10581_vm1, %v11269_v20 }
 0xe5e   :  { %v11332_v15 = vpop.f32.mrb[40].mxu1 }
 0xe5f   :  { %v13387_v14 = vpop.f32.mrb[41].mxu1  ;;  %v11406_v51 = vadd.f32 %v17196_v32, %v11332_v15  ;;  %v11391_v5 = vadd.f32 %v11390_v31, %v11332_v15 }
 0xe60   :  { %v11335_v56 = vpop.f32.mrb[42].mxu1  ;;  %v11595_v20 = vld [vmem:[#allocation3] sm:$0xff] }
 0xe61   :  { %11408 = vrot.lane.b32.xlu0 %v11406_v51, %s15944_s4  ;;  %v13388_v57 = vpop.f32.mrb[43].mxu1  ;;  %v13234_v1 = vmul.f32 -1.442695, %v11391_v5 }
 0xe62   :  { %v11426_v6 = vld [vmem:[#allocation3 + $0x8] sm:$0xff] }
 0xe63   :  { %15639 = vpow2.f32 %v13234_v1 }
 0xe66   :  { %v11384_v26 = vpop.f32.mrb[44].mxu1 }
 0xe67   :  { %v13395_v46 = vpop.f32.mrb[45].mxu1  ;;  %v11442_v42 = vadd.f32 %v17200_v47, %v11384_v26  ;;  %v11427_v27 = vadd.f32 %v11426_v6, %v11384_v26 }
 0xe68   :  { %v11387_v0 = vpop.f32.mrb[46].mxu1 }
 0xe69   :  { %11444 = vrot.lane.b32.xlu1 %v11442_v42, %s15944_s4  ;;  %v13396_v30 = vpop.f32.mrb[47].mxu1  ;;  %v13236_v62 = vmul.f32 -1.442695, %v11427_v27 }
 0xe6b   :  { %15641 = vpow2.f32 %v13236_v62  ;;  %v15611_v62 = vld [vmem:[%s17286_s13 + $0x10] sm:$0xff]  }
 0xe6d   :  { %v15640_v63 = vpop.eup %15639 }
 0xe6e   :  { %v11395_v11 = vadd.f32 1.0, %v15640_v63  ;;  %v15612_v63 = vld [vmem:[%s17286_s13 + $0x18] sm:$0xff]  }
 0xe70   :  { %15643 = vrcp.f32 %v11395_v11 }
 0xe75   :  { %v15642_v52 = vpop.eup %15641 }
 0xe76   :  { %v11431_v12 = vadd.f32 1.0, %v15642_v52 }
 0xe78   :  { %15645 = vrcp.f32 %v11431_v12 }
 0xe7a   :  { %v15644_v43 = vpop.eup %15643 }
 0xe7b   :  { %v11418_v60 = vsub.f32 1.0, %v15644_v43  ;;  %v11424_v59 = vmul.f32 0.0, %v15644_v43 }
 0xe82   :  { %v15646_v45 = vpop.eup %15645 }
 0xe83   :  { %v11454_v23 = vsub.f32 1.0, %v15646_v45  ;;  %v11460_v25 = vmul.f32 0.0, %v15646_v45 }
 0xed3   :  { %v11409_v36 = vpop.permute.xlu0 %11408 }
 0xed4   :  { %v11411_v55 = vmul.f32 %v15644_v43, %v11409_v36 }
 0xed6   :  { %11413 = vrot.lane.b32.xlu0 %v11411_v55, %s15944_s4 }
 0xedb   :  { %v11445_v44 = vpop.permute.xlu1 %11444 }
 0xedc   :  { %v11447_v16 = vmul.f32 %v15646_v45, %v11445_v44 }
 0xede   :  { %11449 = vrot.lane.b32.xlu1 %v11447_v16, %s15944_s4 }
 0xf48   :  { %v11414_v17 = vpop.permute.xlu0 %11413 }
 0xf49   :  { %v11416_v50 = vadd.f32 %v11414_v17, %v11390_v31 }
 0xf4b   :  { %15647 = vtanh.f32 %v11416_v50 }
 0xf50   :  { %v11450_v4 = vpop.permute.xlu1 %11449 }
 0xf51   :  { %v11452_v7 = vadd.f32 %v11450_v4, %v11426_v6 }
 0xf53   :  { %15649 = vtanh.f32 %v11452_v7 }
 0xf55   :  { %v15648_v10 = vpop.eup %15647 }
 0xf56   :  { %11420 = vrot.lane.b32.xlu0 %v15648_v10, %s15962_s5 }
 0xf5d   :  { %v15650_v39 = vpop.eup %15649 }
 0xf5e   :  { %11456 = vrot.lane.b32.xlu1 %v15650_v39, %s15962_s5 }
 0xfc8   :  { %v11421_v58 = vpop.permute.xlu0 %11420 }
 0xfc9   :  { %v11423_v3 = vmul.f32 %v11421_v58, %v11418_v60  ;;  %v15613_v58 = vld [vmem:[%s17286_s13] sm:$0xff]  }
 0xfcb   :  { %v17208_v18 = vadd.f32 %v11424_v59, %v11423_v3  ;;  %v15614_v3 = vld [vmem:[%s17286_s13 + $0x8] sm:$0xff]  }
 0xfcd   :  { %v11473_v22 = vpack.c.bf16 %v17208_v18, %v17208_v18 }
 0xfcf   :  { %11475 = vrot.lane.b32.xlu0 %v11473_v22, %s15962_s5 }
 0xfd0   :  { %v11457_v24 = vpop.permute.xlu1 %11456 }
 0xfd1   :  { %v11459_v8 = vmul.f32 %v11457_v24, %v11454_v23 }
 0xfd3   :  { %v17213_v9 = vadd.f32 %v11460_v25, %v11459_v8 }
 0xfd5   :  { %v11520_v28 = vpack.c.bf16 %v17213_v9, %v17213_v9 }
 0xfd7   :  { %11522 = vrot.lane.b32.xlu1 %v11520_v28, %s15962_s5 }
0x1041   :  { %v11476_v29 = vpop.permute.xlu0 %11475 }
0x1042   :  { %13402 = vmatmul.mubr.msk.bf16.vlgmr.msra.gmra.mrb[48].mxu1 %vm10788_vm2, %v11476_v29  ;;  %v13252_v29 = vld [vmem:[#allocation25] ss:$0 sm:$0xff] }
0x1043   :  { %13406 = vmatpush3.bf16.msra.mxu1 %v17175_v34  ;;  %13409 = vmatprep.mubr.msk.bf16.mxu1 %vm15960_vm0, %v15959_v19 }
0x1044   :  { %13407 = vmatprep.subr.bf16.mxu1 %v15959_v19 }
0x1047   :  { %13408 = vmatpush3.bf16.msra.mxu1 %v17180_v38 }
0x1048   :  { %13413 = vmatprep.subr.bf16.mxu1 %v15959_v19 }
0x1049   :  { %v11523_v40 = vpop.permute.xlu1 %11522 }
0x104a   :  { %13410 = vmatmul.mubr.msk.bf16.vlgmr.msra.gmra.mrb[52].mxu1 %vm10788_vm2, %v11523_v40 }
0x104b   :  { %13417 = vmatprep.mubr.msk.bf16.mxu1 %vm15960_vm0, %v15959_v19  ;;  %13414 = vmatpush3.bf16.msra.mxu1 %v15611_v62 }
0x104c   :  { %13415 = vmatprep.subr.bf16.mxu1 %v15959_v19 }
0x104f   :  { %13416 = vmatpush3.bf16.msra.mxu1 %v15612_v63 }
0x1050   :  { %13421 = vmatprep.subr.bf16.mxu1 %v15959_v19 }
0x1115   :  { %v11514_v41 = vpop.f32.mrb[48].mxu1 }
0x1116   :  { %v13403_v61 = vpop.f32.mrb[49].mxu1  ;;  %v11575_v13 = vadd.f32 %v11514_v41, %v17196_v32  ;;  %v11568_v49 = vadd.f32 %v11567_v2, %v11514_v41 }
0x1117   :  { %v11517_v34 = vpop.f32.mrb[50].mxu1 }
0x1118   :  { %11577 = vrot.lane.b32.xlu1 %v11575_v13, %s15944_s4  ;;  %v13404_v35 = vpop.f32.mrb[51].mxu1  ;;  %v13240_v53 = vmul.f32 -1.442695, %v11568_v49 }
0x111a   :  { %15651 = vpow2.f32 %v13240_v53 }
0x111d   :  { %v11561_v37 = vpop.f32.mrb[52].mxu1 }
0x111e   :  { %v13411_v48 = vpop.f32.mrb[53].mxu1  ;;  %v11603_v38 = vadd.f32 %v11561_v37, %v17200_v47  ;;  %v11596_v54 = vadd.f32 %v11595_v20, %v11561_v37 }
0x111f   :  { %v11564_v21 = vpop.f32.mrb[54].mxu1 }
0x1120   :  { %11605 = vrot.lane.b32.xlu0 %v11603_v38, %s15944_s4  ;;  %v13412_v33 = vpop.f32.mrb[55].mxu1  ;;  %v13241_v15 = vmul.f32 -1.442695, %v11596_v54 }
0x1122   :  { %15653 = vpow2.f32 %v13241_v15 }
0x1124   :  { %v15652_v32 = vpop.eup %15651 }
0x1125   :  { %v11572_v14 = vadd.f32 1.0, %v15652_v32 }
0x1127   :  { %15655 = vrcp.f32 %v11572_v14 }
0x112c   :  { %v15654_v51 = vpop.eup %15653 }
0x112d   :  { %v11600_v56 = vadd.f32 1.0, %v15654_v51 }
0x112f   :  { %15657 = vrcp.f32 %v11600_v56 }
0x1131   :  { %v15656_v57 = vpop.eup %15655 }
0x1132   :  { %v11587_v43 = vsub.f32 1.0, %v15656_v57  ;;  %v11593_v17 = vmul.f32 %v15656_v57, %v17208_v18 }
0x1139   :  { %v15658_v46 = vpop.eup %15657 }
0x113a   :  { %v11615_v11 = vsub.f32 1.0, %v15658_v46  ;;  %v11621_v36 = vmul.f32 %v15658_v46, %v17213_v9 }
0x118a   :  { %v11578_v47 = vpop.permute.xlu1 %11577 }
0x118b   :  { %v11580_v26 = vmul.f32 %v15656_v57, %v11578_v47 }
0x118d   :  { %11582 = vrot.lane.b32.xlu1 %v11580_v26, %s15944_s4 }
0x1192   :  { %v11606_v42 = vpop.permute.xlu0 %11605 }
0x1193   :  { %v11608_v0 = vmul.f32 %v15658_v46, %v11606_v42 }
0x1195   :  { %11610 = vrot.lane.b32.xlu0 %v11608_v0, %s15944_s4 }
0x11ff   :  { %v11583_v30 = vpop.permute.xlu1 %11582 }
0x1200   :  { %v11585_v31 = vadd.f32 %v11583_v30, %v11567_v2 }
0x1202   :  { %15659 = vtanh.f32 %v11585_v31 }
0x1207   :  { %v11611_v5 = vpop.permute.xlu0 %11610 }
0x1208   :  { %v11613_v1 = vadd.f32 %v11611_v5, %v11595_v20 }
0x120a   :  { %15661 = vtanh.f32 %v11613_v1 }
0x120c   :  { %v15660_v6 = vpop.eup %15659 }
0x120d   :  { %11589 = vrot.lane.b32.xlu1 %v15660_v6, %s15962_s5 }
0x1214   :  { %v15662_v27 = vpop.eup %15661 }
0x1215   :  { %11617 = vrot.lane.b32.xlu0 %v15662_v27, %s15962_s5 }
0x1219   :  { %11468 = vrot.lane.b32.xlu0 %v17213_v9, %s15962_s5 }
0x121d   :  { %11463 = vrot.lane.b32.xlu0 %v17208_v18, %s15962_s5 }
0x127f   :  { %v11590_v52 = vpop.permute.xlu1 %11589 }
0x1280   :  { %v11592_v45 = vmul.f32 %v11590_v52, %v11587_v43 }
0x1282   :  { %v11594_v50 = vadd.f32 %v11593_v17, %v11592_v45 }
0x1287   :  { %v11618_v12 = vpop.permute.xlu0 %11617 }
0x1288   :  { %v11620_v55 = vmul.f32 %v11618_v12, %v11615_v11 }
0x128a   :  { %v11622_v44 = vadd.f32 %v11621_v36, %v11620_v55 }
0x128b   :  { %v11469_v16 = vpop.permute.xlu0 %11468 }
0x128c   :  { %11472 = vst.msk [vmem:[#allocation7 + $0x8] sm:$0xff] %vm10788_vm2, %v11469_v16  ;;  %11630 = vrot.lane.b32.xlu1 %v11622_v44, %s15962_s5 }
0x128f   :  { %v11464_v4 = vpop.permute.xlu0 %11463 }
0x1290   :  { %11466 = vst.msk [vmem:[#allocation6] sm:$0xff] %vm10788_vm2, %v11464_v4  ;;  %11624 = vrot.lane.b32.xlu1 %v11594_v50, %s15962_s5 }
0x1293   :  { %v11642_v60 = vld [vmem:[#allocation7 + $0x8] sm:$0xff] }
0x1297   :  { %v11634_v22 = vld [vmem:[#allocation6] sm:$0xff] }
0x12fe   :  { %v11631_v7 = vpop.permute.xlu1 %11630 }
0x12ff   :  { %11633 = vst.msk [vmem:[#allocation7] sm:$0xff] %vm10788_vm2, %v11631_v7 }
0x1302   :  { %v11625_v10 = vpop.permute.xlu1 %11624 }
0x1303   :  { %11628 = vst.msk [vmem:[#allocation6 + $0x8] sm:$0xff] %vm10788_vm2, %v11625_v10 }
0x1306   :  { %v11641_v39 = vld [vmem:[#allocation7] sm:$0xff] }
0x1307   :  { %v11643_v59 = vpack.c.bf16 %v11642_v60, %v11641_v39 }
0x1309   :  { %13418 = vmatmul.mubr.msk.bf16.vlgmr.msra.gmra.mrb[56].mxu1 %vm10788_vm2, %v11643_v59 }
0x130a   :  { %13422 = vmatpush3.bf16.msra.mxu1 %v15613_v58  ;;  %13425 = vmatprep.mubr.msk.bf16.mxu1 %vm15960_vm0, %v15959_v19  ;;  %v11635_v18 = vld [vmem:[#allocation6 + $0x8] sm:$0xff] }
0x130b   :  { %13423 = vmatprep.subr.bf16.mxu1 %v15959_v19  ;;  %v11636_v23 = vpack.c.bf16 %v11635_v18, %v11634_v22 }
0x130e   :  { %13424 = vmatpush3.bf16.msra.mxu1 %v15614_v3 }
0x1311   :  { %13426 = vmatmul.mubr.msk.bf16.vlgmr.msra.gmra.mrb[60].mxu1 %vm10788_vm2, %v11636_v23 }
0x13dc   :  { %v11698_v24 = vpop.f32.mrb[56].mxu1 }
0x13dd   :  { %v13419_v25 = vpop.f32.mrb[57].mxu1 }
0x13de   :  { %v11701_v8 = vpop.f32.mrb[58].mxu1 }
0x13df   :  { %v13420_v9 = vpop.f32.mrb[59].mxu1 }
0x13e4   :  { %v11754_v28 = vpop.f32.mrb[60].mxu1 }
0x13e5   :  { %v11755_v40 = vadd.f32 %v11754_v28, %v11698_v24  ;;  %v13427_v41 = vpop.f32.mrb[61].mxu1 }
0x13e6   :  { %v11757_v61 = vpop.f32.mrb[62].mxu1 }
0x13e7   :  { %v11768_v13 = vadd.f32 %v13252_v29, %v11755_v40  ;;  %v11758_v34 = vadd.f32 %v11757_v61, %v11701_v8  ;;  %v13428_v35 = vpop.f32.mrb[63].mxu1 }
0x13e9   :  { %11771 = vst.msk [vmem:[%s17288_s15] sm:$0xff] %vm11770_vm3, %v11768_v13  ;;  %v11769_v19 = vadd.f32 %v13252_v29, %v11758_v34 }
0x13eb   :  { %11772 = vst.msk [vmem:[%s17288_s15 + $0x8] sm:$0xff] %vm11770_vm3, %v11769_v19 }
0x13ec   :  { %11777 = vsyncpa [#allocation9], 1 }
0x13ed   :  { %11778 = vsyncpa [#allocation11], 1 }
0x13ee   :  { %11779 = vsyncpa [#allocation14], 1 }
0x13ef   :  { %11780 = vsyncpa [#allocation17], 1 }
0x13f0   :  { %11781 = vsyncpa [#allocation20], 1 }
0x13f1   :  { %11782 = vsyncpa [#allocation23], 1 }
0x13f2   :  { %11783 = vsyncpa [#allocation26], 1 }

</bundles_post_ra>
